<compile_context>
chip_gen: v5e
topology: v5e:2x2
jax: 0.10.0
libtpu: 0.0.40
codegen_flags: <defaults>
</compile_context>

<pallas_src>
import functools

import jax
import jax.numpy as jnp
import numpy as np
from jax import lax
from jax.experimental import pallas as pl
from jax.experimental.pallas import tpu as pltpu


# ----------------------------------------------------------------------------- kernel

def _bilstm_layer_kernel(gx_ref, len_ref, whh_f_ref, whh_b_ref, out_ref,
                         hf, cf, hb, cb, mxf, mxb, *, hidden, pool, unroll):
    """Fused bidirectional LSTM layer (+ optional time max-pool).

    gx_ref:    (T, B, 8H)  precomputed x@W_ih + b for both directions: [fwd 4H | bwd 4H]
    len_ref:   (B, 1)      int32 valid lengths
    whh_*_ref: (H, 4H)     hidden->gates weights per direction (gate order i, f, g, o)
    out_ref:   (T, B, 2H)  per-step hidden outputs          (pool=False)
               (B, 2H)     max over time of those outputs   (pool=True)
    hf/cf/hb/cb: (B, H)    running LSTM state (VMEM scratch)
    mxf/mxb:     (B, H)    running max per direction (VMEM scratch, used only when pool=True)
    """
    H = hidden
    G = 4 * H
    T = gx_ref.shape[0]

    hf[...] = jnp.zeros_like(hf)
    cf[...] = jnp.zeros_like(cf)
    hb[...] = jnp.zeros_like(hb)
    cb[...] = jnp.zeros_like(cb)
    if pool:
        mxf[...] = jnp.full_like(mxf, -jnp.inf)
        mxb[...] = jnp.full_like(mxb, -jnp.inf)

    lens = len_ref[...]          # (B, 1) int32
    w_f = whh_f_ref[...]         # hoisted out of the loop
    w_b = whh_b_ref[...]

    def cell(gates, c_prev):
        i_g = jax.nn.sigmoid(gates[:, 0 * H:1 * H])
        f_g = jax.nn.sigmoid(gates[:, 1 * H:2 * H])
        g_g = jnp.tanh(gates[:, 2 * H:3 * H])
        o_g = jax.nn.sigmoid(gates[:, 3 * H:4 * H])
        c_new = f_g * c_prev + i_g * g_g
        h_new = o_g * jnp.tanh(c_new)
        return h_new, c_new

    def step(t, carry):
        tr = T - 1 - t                       # reversed time index for the backward direction

        gx_f = gx_ref[t]                     # (B, 8H)
        gx_b = gx_ref[tr]

        g_f = gx_f[:, :G] + jnp.dot(hf[...], w_f, preferred_element_type=jnp.float32)
        g_b = gx_b[:, G:] + jnp.dot(hb[...], w_b, preferred_element_type=jnp.float32)

        h_f, c_f = cell(g_f, cf[...])
        h_b, c_b = cell(g_b, cb[...])

        v_f = t < lens                       # (B, 1) bool: is step t valid for this batch row?
        v_b = tr < lens

        # Padded steps keep the previous state (packed-sequence semantics).
        cf[...] = jnp.where(v_f, c_f, cf[...])
        hf[...] = jnp.where(v_f, h_f, hf[...])
        cb[...] = jnp.where(v_b, c_b, cb[...])
        hb[...] = jnp.where(v_b, h_b, hb[...])

        # Emitted outputs are zero at padded steps (matches pad_packed_sequence).
        o_f = jnp.where(v_f, h_f, 0.0)
        o_b = jnp.where(v_b, h_b, 0.0)

        if pool:
            mxf[...] = jnp.maximum(mxf[...], o_f)
            mxb[...] = jnp.maximum(mxb[...], o_b)
        else:
            out_ref[t, :, :H] = o_f
            out_ref[tr, :, H:] = o_b
        return carry

    lax.fori_loop(0, T, step, 0, unroll=unroll)

    if pool:
        out_ref[:, :H] = mxf[...]
        out_ref[:, H:] = mxb[...]


# ----------------------------------------------------------------------------- wrappers

_VMEM_SPEC = pl.BlockSpec(memory_space=pltpu.MemorySpace.VMEM)


def _run_bilstm_layer(gx, lens, w_hh_f, w_hh_b, *, hidden, pool):
    T, B, _ = gx.shape
    out_shape = (jax.ShapeDtypeStruct((B, 2 * hidden), jnp.float32) if pool
                 else jax.ShapeDtypeStruct((T, B, 2 * hidden), jnp.float32))
    kernel = functools.partial(
        _bilstm_layer_kernel, hidden=hidden, pool=pool,
        unroll=True if T <= 16 else 2)
    return pl.pallas_call(
        kernel,
        out_shape=out_shape,
        in_specs=[_VMEM_SPEC] * 4,
        out_specs=_VMEM_SPEC,
        scratch_shapes=[pltpu.VMEM((B, hidden), jnp.float32) for _ in range(6)],
    )(gx, lens, w_hh_f, w_hh_b)


@functools.partial(jax.jit, static_argnames=("lstm_dim",))
def bilstm_maxpool_encoder(sent, sent_len, params, lstm_dim):
    """Forward pass of BiLSTMMaxPoolEncoder.

    sent:     (T, B, E) float32
    sent_len: (B,) int valid lengths
    params:   list (one per layer) of dicts {'fwd': (W_ih, W_hh, b), 'bwd': (...)}
              with W_ih (IN, 4H), W_hh (H, 4H), b (1, 4H), gate order i, f, g, o
    returns:  (B, 2 * lstm_dim) float32
    """
    T, B, _ = sent.shape
    lens = sent_len.astype(jnp.int32).reshape(B, 1)
    n_layers = len(params)

    x = sent
    for li, layer in enumerate(params):
        w_ih_f, w_hh_f, b_f = layer["fwd"]
        w_ih_b, w_hh_b, b_b = layer["bwd"]
        # Both directions' input weights fused so the projection is one wide matmul.
        w_ih_both = jnp.concatenate([w_ih_f, w_ih_b], axis=1)     # (IN, 8H)
        b_both = jnp.concatenate([b_f, b_b], axis=1)              # (1, 8H)

        in_dim = x.shape[-1]
        # Phase 1 (XLA, MXU-shaped): input projection for every timestep and both directions.
        gx = (x.reshape(T * B, in_dim) @ w_ih_both + b_both).reshape(T, B, 8 * lstm_dim)
        # Phase 2 (Pallas): fused bidirectional recurrence (+ max-pool on the last layer).
        x = _run_bilstm_layer(gx, lens, w_hh_f, w_hh_b,
                              hidden=lstm_dim, pool=(li == n_layers - 1))
    return x


# ----------------------------------------------------------------------------- reference (pure JAX)

def _lstm_dir_ref(x, mask, w_ih, w_hh, b):
    T, B, _ = x.shape
    H = w_hh.shape[0]

    def step(carry, inp):
        h, c = carry
        x_t, m_t = inp
        gates = x_t @ w_ih + h @ w_hh + b
        i_g = jax.nn.sigmoid(gates[:, :H])
        f_g = jax.nn.sigmoid(gates[:, H:2 * H])
        g_g = jnp.tanh(gates[:, 2 * H:3 * H])
        o_g = jax.nn.sigmoid(gates[:, 3 * H:])
        c_new = f_g * c + i_g * g_g
        h_new = o_g * jnp.tanh(c_new)
        c = m_t * c_new + (1.0 - m_t) * c
        h = m_t * h_new + (1.0 - m_t) * h
        return (h, c), m_t * h_new

    init = (jnp.zeros((B, H), jnp.float32), jnp.zeros((B, H), jnp.float32))
    _, outs = lax.scan(step, init, (x, mask))
    return outs


def bilstm_maxpool_encoder_ref(sent, sent_len, params):
    T, B, _ = sent.shape
    mask = (jnp.arange(T)[:, None] < sent_len[None, :]).astype(jnp.float32)[:, :, None]
    x = sent
    for layer in params:
        out_f = _lstm_dir_ref(x, mask, *layer["fwd"])
        out_b = _lstm_dir_ref(x[::-1], mask[::-1], *layer["bwd"])[::-1]
        x = jnp.concatenate([out_f, out_b], axis=-1)
    return jnp.max(x, axis=0)


# ----------------------------------------------------------------------------- params

def init_params(key, word_emb_dim, lstm_dim, lstm_layers):
    """Deterministic synthetic weights with PyTorch nn.LSTM shapes (stored transposed)."""
    params = []
    for layer_idx in range(lstm_layers):
        in_dim = word_emb_dim if layer_idx == 0 else 2 * lstm_dim
        layer = {}
        for direction in ("fwd", "bwd"):
            key, k1, k2, k3, k4 = jax.random.split(key, 5)
            scale = 1.0 / np.sqrt(lstm_dim)
            w_ih = jax.random.uniform(k1, (in_dim, 4 * lstm_dim), jnp.float32, -scale, scale)
            w_hh = jax.random.uniform(k2, (lstm_dim, 4 * lstm_dim), jnp.float32, -scale, scale)
            b_ih = jax.random.uniform(k3, (4 * lstm_dim,), jnp.float32, -scale, scale)
            b_hh = jax.random.uniform(k4, (4 * lstm_dim,), jnp.float32, -scale, scale)
            layer[direction] = (w_ih, w_hh, (b_ih + b_hh).reshape(1, 4 * lstm_dim))
        params.append(layer)
    return params


# ----------------------------------------------------------------------------- main

if __name__ == "__main__":
    config = {"word_emb_dim": 32, "lstm_dim": 32, "lstm_layers": 2}
    T, B = 8, 4

    key = jax.random.PRNGKey(0)
    key, k_sent = jax.random.split(key)
    sent = jax.random.normal(k_sent, (T, B, config["word_emb_dim"]), jnp.float32)
    # max length == T so pad_packed_sequence's output length equals T (exact max-pool match)
    sent_len = jnp.array([8, 5, 8, 3], dtype=jnp.int32)

    params = init_params(key, config["word_emb_dim"], config["lstm_dim"], config["lstm_layers"])

    emb = bilstm_maxpool_encoder(sent, sent_len, params, config["lstm_dim"])
    emb = jax.block_until_ready(emb)

    emb_ref = bilstm_maxpool_encoder_ref(sent, sent_len, params)
    np.testing.assert_allclose(np.asarray(emb), np.asarray(emb_ref), rtol=1e-5, atol=1e-5)

    assert emb.shape == (B, 2 * config["lstm_dim"])
    print("KERNEL_OK")
</pallas_src>

<mosaic_0001>
module attributes {stable_mosaic.version = 11 : i64} {
  func.func @_bilstm_layer_kernel(%arg0: memref<8x4x256xf32, #tpu.memory_space<vmem>>, %arg1: memref<4x1xi32, #tpu.memory_space<vmem>>, %arg2: memref<32x128xf32, #tpu.memory_space<vmem>>, %arg3: memref<32x128xf32, #tpu.memory_space<vmem>>, %arg4: memref<4x64xf32, #tpu.memory_space<vmem>>, %arg5: memref<4x32xf32, #tpu.memory_space<vmem>>, %arg6: memref<4x32xf32, #tpu.memory_space<vmem>>, %arg7: memref<4x32xf32, #tpu.memory_space<vmem>>, %arg8: memref<4x32xf32, #tpu.memory_space<vmem>>, %arg9: memref<4x32xf32, #tpu.memory_space<vmem>>, %arg10: memref<4x32xf32, #tpu.memory_space<vmem>>) attributes {dimension_semantics = [], scalar_prefetch = 0 : i64, scratch_operands = 6 : i64, tpu.core_type = #tpu.core_type<tc>} {
    %cst = arith.constant 0.000000e+00 : f32
    %0 = vector.broadcast %cst : f32 to vector<4x32xf32>
    %c0 = arith.constant 0 : index
    %c0_0 = arith.constant 0 : index
    %1 = vector.load %arg5[%c0, %c0_0] : memref<4x32xf32, #tpu.memory_space<vmem>>, vector<4x32xf32>
    tpu.vector_store %arg5[%c0, %c0_0], %0 {strides = array<i32>} : memref<4x32xf32, #tpu.memory_space<vmem>>, vector<4x32xf32>,
    %cst_1 = arith.constant 0.000000e+00 : f32
    %2 = vector.broadcast %cst_1 : f32 to vector<4x32xf32>
    %c0_2 = arith.constant 0 : index
    %c0_3 = arith.constant 0 : index
    %3 = vector.load %arg6[%c0_2, %c0_3] : memref<4x32xf32, #tpu.memory_space<vmem>>, vector<4x32xf32>
    tpu.vector_store %arg6[%c0_2, %c0_3], %2 {strides = array<i32>} : memref<4x32xf32, #tpu.memory_space<vmem>>, vector<4x32xf32>,
    %cst_4 = arith.constant 0.000000e+00 : f32
    %4 = vector.broadcast %cst_4 : f32 to vector<4x32xf32>
    %c0_5 = arith.constant 0 : index
    %c0_6 = arith.constant 0 : index
    %5 = vector.load %arg7[%c0_5, %c0_6] : memref<4x32xf32, #tpu.memory_space<vmem>>, vector<4x32xf32>
    tpu.vector_store %arg7[%c0_5, %c0_6], %4 {strides = array<i32>} : memref<4x32xf32, #tpu.memory_space<vmem>>, vector<4x32xf32>,
    %cst_7 = arith.constant 0.000000e+00 : f32
    %6 = vector.broadcast %cst_7 : f32 to vector<4x32xf32>
    %c0_8 = arith.constant 0 : index
    %c0_9 = arith.constant 0 : index
    %7 = vector.load %arg8[%c0_8, %c0_9] : memref<4x32xf32, #tpu.memory_space<vmem>>, vector<4x32xf32>
    tpu.vector_store %arg8[%c0_8, %c0_9], %6 {strides = array<i32>} : memref<4x32xf32, #tpu.memory_space<vmem>>, vector<4x32xf32>,
    %cst_10 = arith.constant 0xFF800000 : f32
    %8 = vector.broadcast %cst_10 : f32 to vector<4x32xf32>
    %c0_11 = arith.constant 0 : index
    %c0_12 = arith.constant 0 : index
    %9 = vector.load %arg9[%c0_11, %c0_12] : memref<4x32xf32, #tpu.memory_space<vmem>>, vector<4x32xf32>
    tpu.vector_store %arg9[%c0_11, %c0_12], %8 {strides = array<i32>} : memref<4x32xf32, #tpu.memory_space<vmem>>, vector<4x32xf32>,
    %cst_13 = arith.constant 0xFF800000 : f32
    %10 = vector.broadcast %cst_13 : f32 to vector<4x32xf32>
    %c0_14 = arith.constant 0 : index
    %c0_15 = arith.constant 0 : index
    %11 = vector.load %arg10[%c0_14, %c0_15] : memref<4x32xf32, #tpu.memory_space<vmem>>, vector<4x32xf32>
    tpu.vector_store %arg10[%c0_14, %c0_15], %10 {strides = array<i32>} : memref<4x32xf32, #tpu.memory_space<vmem>>, vector<4x32xf32>,
    %c0_16 = arith.constant 0 : index
    %c0_17 = arith.constant 0 : index
    %12 = vector.load %arg1[%c0_16, %c0_17] : memref<4x1xi32, #tpu.memory_space<vmem>>, vector<4x1xi32>
    %c0_18 = arith.constant 0 : index
    %c0_19 = arith.constant 0 : index
    %13 = vector.load %arg2[%c0_18, %c0_19] : memref<32x128xf32, #tpu.memory_space<vmem>>, vector<32x128xf32>
    %c0_20 = arith.constant 0 : index
    %c0_21 = arith.constant 0 : index
    %14 = vector.load %arg3[%c0_20, %c0_21] : memref<32x128xf32, #tpu.memory_space<vmem>>, vector<32x128xf32>
    %c0_i32 = arith.constant 0 : i32
    %c7_i32 = arith.constant 7 : i32
    %15 = arith.subi %c7_i32, %c0_i32 : i32
    %16 = arith.index_cast %c0_i32 : i32 to index
    %c0_22 = arith.constant 0 : index
    %c0_23 = arith.constant 0 : index
    %17 = vector.load %arg0[%16, %c0_22, %c0_23] : memref<8x4x256xf32, #tpu.memory_space<vmem>>, vector<1x4x256xf32>
    %18 = vector.shape_cast %17 : vector<1x4x256xf32> to vector<4x256xf32>
    %19 = arith.index_cast %15 : i32 to index
    %c0_24 = arith.constant 0 : index
    %c0_25 = arith.constant 0 : index
    %20 = vector.load %arg0[%19, %c0_24, %c0_25] : memref<8x4x256xf32, #tpu.memory_space<vmem>>, vector<1x4x256xf32>
    %21 = vector.shape_cast %20 : vector<1x4x256xf32> to vector<4x256xf32>
    %22 = vector.extract_strided_slice %18 {offsets = [0, 0], sizes = [4, 128], strides = [1, 1]} : vector<4x256xf32> to vector<4x128xf32>
    %c0_26 = arith.constant 0 : index
    %c0_27 = arith.constant 0 : index
    %23 = vector.load %arg5[%c0_26, %c0_27] : memref<4x32xf32, #tpu.memory_space<vmem>>, vector<4x32xf32>
    %cst_28 = arith.constant dense<0.000000e+00> : vector<4x128xf32>
    %24 = tpu.matmul %23, %13, %cst_28 {dimension_numbers = #tpu.dot_dimension_numbers<[1], [0], [0], [1], [0, 0, 1, 1], [], []>} : vector<4x32xf32>, vector<32x128xf32>, vector<4x128xf32> -> vector<4x128xf32>
    %25 = arith.addf %22, %24 : vector<4x128xf32>
    %26 = vector.extract_strided_slice %21 {offsets = [0, 128], sizes = [4, 128], strides = [1, 1]} : vector<4x256xf32> to vector<4x128xf32>
    %c0_29 = arith.constant 0 : index
    %c0_30 = arith.constant 0 : index
    %27 = vector.load %arg7[%c0_29, %c0_30] : memref<4x32xf32, #tpu.memory_space<vmem>>, vector<4x32xf32>
    %cst_31 = arith.constant dense<0.000000e+00> : vector<4x128xf32>
    %28 = tpu.matmul %27, %14, %cst_31 {dimension_numbers = #tpu.dot_dimension_numbers<[1], [0], [0], [1], [0, 0, 1, 1], [], []>} : vector<4x32xf32>, vector<32x128xf32>, vector<4x128xf32> -> vector<4x128xf32>
    %29 = arith.addf %26, %28 : vector<4x128xf32>
    %c0_32 = arith.constant 0 : index
    %c0_33 = arith.constant 0 : index
    %30 = vector.load %arg6[%c0_32, %c0_33] : memref<4x32xf32, #tpu.memory_space<vmem>>, vector<4x32xf32>
    %31 = vector.extract_strided_slice %25 {offsets = [0, 0], sizes = [4, 32], strides = [1, 1]} : vector<4x128xf32> to vector<4x32xf32>
    %32 = arith.negf %31 : vector<4x32xf32>
    %33 = math.exp %32 : vector<4x32xf32>
    %cst_34 = arith.constant 1.000000e+00 : f32
    %34 = vector.broadcast %cst_34 : f32 to vector<4x32xf32>
    %35 = arith.addf %34, %33 : vector<4x32xf32>
    %36 = arith.divf %34, %35 : vector<4x32xf32>
    %37 = vector.extract_strided_slice %25 {offsets = [0, 32], sizes = [4, 32], strides = [1, 1]} : vector<4x128xf32> to vector<4x32xf32>
    %38 = arith.negf %37 : vector<4x32xf32>
    %39 = math.exp %38 : vector<4x32xf32>
    %cst_35 = arith.constant 1.000000e+00 : f32
    %40 = vector.broadcast %cst_35 : f32 to vector<4x32xf32>
    %41 = arith.addf %40, %39 : vector<4x32xf32>
    %42 = arith.divf %40, %41 : vector<4x32xf32>
    %43 = vector.extract_strided_slice %25 {offsets = [0, 64], sizes = [4, 32], strides = [1, 1]} : vector<4x128xf32> to vector<4x32xf32>
    %44 = math.tanh %43 : vector<4x32xf32>
    %45 = vector.extract_strided_slice %25 {offsets = [0, 96], sizes = [4, 32], strides = [1, 1]} : vector<4x128xf32> to vector<4x32xf32>
    %46 = arith.negf %45 : vector<4x32xf32>
    %47 = math.exp %46 : vector<4x32xf32>
    %cst_36 = arith.constant 1.000000e+00 : f32
    %48 = vector.broadcast %cst_36 : f32 to vector<4x32xf32>
    %49 = arith.addf %48, %47 : vector<4x32xf32>
    %50 = arith.divf %48, %49 : vector<4x32xf32>
    %51 = arith.mulf %42, %30 : vector<4x32xf32>
    %52 = arith.mulf %36, %44 : vector<4x32xf32>
    %53 = arith.addf %51, %52 : vector<4x32xf32>
    %54 = math.tanh %53 : vector<4x32xf32>
    %55 = arith.mulf %50, %54 : vector<4x32xf32>
    %c0_37 = arith.constant 0 : index
    %c0_38 = arith.constant 0 : index
    %56 = vector.load %arg8[%c0_37, %c0_38] : memref<4x32xf32, #tpu.memory_space<vmem>>, vector<4x32xf32>
    %57 = vector.extract_strided_slice %29 {offsets = [0, 0], sizes = [4, 32], strides = [1, 1]} : vector<4x128xf32> to vector<4x32xf32>
    %58 = arith.negf %57 : vector<4x32xf32>
    %59 = math.exp %58 : vector<4x32xf32>
    %cst_39 = arith.constant 1.000000e+00 : f32
    %60 = vector.broadcast %cst_39 : f32 to vector<4x32xf32>
    %61 = arith.addf %60, %59 : vector<4x32xf32>
    %62 = arith.divf %60, %61 : vector<4x32xf32>
    %63 = vector.extract_strided_slice %29 {offsets = [0, 32], sizes = [4, 32], strides = [1, 1]} : vector<4x128xf32> to vector<4x32xf32>
    %64 = arith.negf %63 : vector<4x32xf32>
    %65 = math.exp %64 : vector<4x32xf32>
    %cst_40 = arith.constant 1.000000e+00 : f32
    %66 = vector.broadcast %cst_40 : f32 to vector<4x32xf32>
    %67 = arith.addf %66, %65 : vector<4x32xf32>
    %68 = arith.divf %66, %67 : vector<4x32xf32>
    %69 = vector.extract_strided_slice %29 {offsets = [0, 64], sizes = [4, 32], strides = [1, 1]} : vector<4x128xf32> to vector<4x32xf32>
    %70 = math.tanh %69 : vector<4x32xf32>
    %71 = vector.extract_strided_slice %29 {offsets = [0, 96], sizes = [4, 32], strides = [1, 1]} : vector<4x128xf32> to vector<4x32xf32>
    %72 = arith.negf %71 : vector<4x32xf32>
    %73 = math.exp %72 : vector<4x32xf32>
    %cst_41 = arith.constant 1.000000e+00 : f32
    %74 = vector.broadcast %cst_41 : f32 to vector<4x32xf32>
    %75 = arith.addf %74, %73 : vector<4x32xf32>
    %76 = arith.divf %74, %75 : vector<4x32xf32>
    %77 = arith.mulf %68, %56 : vector<4x32xf32>
    %78 = arith.mulf %62, %70 : vector<4x32xf32>
    %79 = arith.addf %77, %78 : vector<4x32xf32>
    %80 = math.tanh %79 : vector<4x32xf32>
    %81 = arith.mulf %76, %80 : vector<4x32xf32>
    %82 = vector.broadcast %c0_i32 : i32 to vector<4x1xi32>
    %83 = arith.cmpi slt, %82, %12 : vector<4x1xi32>
    %84 = vector.broadcast %15 : i32 to vector<4x1xi32>
    %85 = arith.cmpi slt, %84, %12 : vector<4x1xi32>
    %c0_42 = arith.constant 0 : index
    %c0_43 = arith.constant 0 : index
    %86 = vector.load %arg6[%c0_42, %c0_43] : memref<4x32xf32, #tpu.memory_space<vmem>>, vector<4x32xf32>
    %87 = vector.shape_cast %83 : vector<4x1xi1> to vector<4x1xi1>
    %88 = vector.broadcast %87 : vector<4x1xi1> to vector<4x32xi1>
    %89 = arith.select %88, %53, %86 : vector<4x32xi1>, vector<4x32xf32>
    %c0_44 = arith.constant 0 : index
    %c0_45 = arith.constant 0 : index
    %90 = vector.load %arg6[%c0_44, %c0_45] : memref<4x32xf32, #tpu.memory_space<vmem>>, vector<4x32xf32>
    tpu.vector_store %arg6[%c0_44, %c0_45], %89 {strides = array<i32>} : memref<4x32xf32, #tpu.memory_space<vmem>>, vector<4x32xf32>,
    %c0_46 = arith.constant 0 : index
    %c0_47 = arith.constant 0 : index
    %91 = vector.load %arg5[%c0_46, %c0_47] : memref<4x32xf32, #tpu.memory_space<vmem>>, vector<4x32xf32>
    %92 = vector.shape_cast %83 : vector<4x1xi1> to vector<4x1xi1>
    %93 = vector.broadcast %92 : vector<4x1xi1> to vector<4x32xi1>
    %94 = arith.select %93, %55, %91 : vector<4x32xi1>, vector<4x32xf32>
    %c0_48 = arith.constant 0 : index
    %c0_49 = arith.constant 0 : index
    %95 = vector.load %arg5[%c0_48, %c0_49] : memref<4x32xf32, #tpu.memory_space<vmem>>, vector<4x32xf32>
    tpu.vector_store %arg5[%c0_48, %c0_49], %94 {strides = array<i32>} : memref<4x32xf32, #tpu.memory_space<vmem>>, vector<4x32xf32>,
    %c0_50 = arith.constant 0 : index
    %c0_51 = arith.constant 0 : index
    %96 = vector.load %arg8[%c0_50, %c0_51] : memref<4x32xf32, #tpu.memory_space<vmem>>, vector<4x32xf32>
    %97 = vector.shape_cast %85 : vector<4x1xi1> to vector<4x1xi1>
    %98 = vector.broadcast %97 : vector<4x1xi1> to vector<4x32xi1>
    %99 = arith.select %98, %79, %96 : vector<4x32xi1>, vector<4x32xf32>
    %c0_52 = arith.constant 0 : index
    %c0_53 = arith.constant 0 : index
    %100 = vector.load %arg8[%c0_52, %c0_53] : memref<4x32xf32, #tpu.memory_space<vmem>>, vector<4x32xf32>
    tpu.vector_store %arg8[%c0_52, %c0_53], %99 {strides = array<i32>} : memref<4x32xf32, #tpu.memory_space<vmem>>, vector<4x32xf32>,
    %c0_54 = arith.constant 0 : index
    %c0_55 = arith.constant 0 : index
    %101 = vector.load %arg7[%c0_54, %c0_55] : memref<4x32xf32, #tpu.memory_space<vmem>>, vector<4x32xf32>
    %102 = vector.shape_cast %85 : vector<4x1xi1> to vector<4x1xi1>
    %103 = vector.broadcast %102 : vector<4x1xi1> to vector<4x32xi1>
    %104 = arith.select %103, %81, %101 : vector<4x32xi1>, vector<4x32xf32>
    %c0_56 = arith.constant 0 : index
    %c0_57 = arith.constant 0 : index
    %105 = vector.load %arg7[%c0_56, %c0_57] : memref<4x32xf32, #tpu.memory_space<vmem>>, vector<4x32xf32>
    tpu.vector_store %arg7[%c0_56, %c0_57], %104 {strides = array<i32>} : memref<4x32xf32, #tpu.memory_space<vmem>>, vector<4x32xf32>,
    %cst_58 = arith.constant 0.000000e+00 : f32
    %106 = vector.shape_cast %83 : vector<4x1xi1> to vector<4x1xi1>
    %107 = vector.broadcast %106 : vector<4x1xi1> to vector<4x32xi1>
    %108 = vector.broadcast %cst_58 : f32 to vector<4x32xf32>
    %109 = arith.select %107, %55, %108 : vector<4x32xi1>, vector<4x32xf32>
    %cst_59 = arith.constant 0.000000e+00 : f32
    %110 = vector.shape_cast %85 : vector<4x1xi1> to vector<4x1xi1>
    %111 = vector.broadcast %110 : vector<4x1xi1> to vector<4x32xi1>
    %112 = vector.broadcast %cst_59 : f32 to vector<4x32xf32>
    %113 = arith.select %111, %81, %112 : vector<4x32xi1>, vector<4x32xf32>
    %c0_60 = arith.constant 0 : index
    %c0_61 = arith.constant 0 : index
    %114 = vector.load %arg9[%c0_60, %c0_61] : memref<4x32xf32, #tpu.memory_space<vmem>>, vector<4x32xf32>
    %115 = arith.maximumf %114, %109 : vector<4x32xf32>
    %c0_62 = arith.constant 0 : index
    %c0_63 = arith.constant 0 : index
    %116 = vector.load %arg9[%c0_62, %c0_63] : memref<4x32xf32, #tpu.memory_space<vmem>>, vector<4x32xf32>
    tpu.vector_store %arg9[%c0_62, %c0_63], %115 {strides = array<i32>} : memref<4x32xf32, #tpu.memory_space<vmem>>, vector<4x32xf32>,
    %c0_64 = arith.constant 0 : index
    %c0_65 = arith.constant 0 : index
    %117 = vector.load %arg10[%c0_64, %c0_65] : memref<4x32xf32, #tpu.memory_space<vmem>>, vector<4x32xf32>
    %118 = arith.maximumf %117, %113 : vector<4x32xf32>
    %c0_66 = arith.constant 0 : index
    %c0_67 = arith.constant 0 : index
    %119 = vector.load %arg10[%c0_66, %c0_67] : memref<4x32xf32, #tpu.memory_space<vmem>>, vector<4x32xf32>
    tpu.vector_store %arg10[%c0_66, %c0_67], %118 {strides = array<i32>} : memref<4x32xf32, #tpu.memory_space<vmem>>, vector<4x32xf32>,
    %c1_i32 = arith.constant 1 : i32
    %c7_i32_68 = arith.constant 7 : i32
    %120 = arith.subi %c7_i32_68, %c1_i32 : i32
    %121 = arith.index_cast %c1_i32 : i32 to index
    %c0_69 = arith.constant 0 : index
    %c0_70 = arith.constant 0 : index
    %122 = vector.load %arg0[%121, %c0_69, %c0_70] : memref<8x4x256xf32, #tpu.memory_space<vmem>>, vector<1x4x256xf32>
    %123 = vector.shape_cast %122 : vector<1x4x256xf32> to vector<4x256xf32>
    %124 = arith.index_cast %120 : i32 to index
    %c0_71 = arith.constant 0 : index
    %c0_72 = arith.constant 0 : index
    %125 = vector.load %arg0[%124, %c0_71, %c0_72] : memref<8x4x256xf32, #tpu.memory_space<vmem>>, vector<1x4x256xf32>
    %126 = vector.shape_cast %125 : vector<1x4x256xf32> to vector<4x256xf32>
    %127 = vector.extract_strided_slice %123 {offsets = [0, 0], sizes = [4, 128], strides = [1, 1]} : vector<4x256xf32> to vector<4x128xf32>
    %c0_73 = arith.constant 0 : index
    %c0_74 = arith.constant 0 : index
    %128 = vector.load %arg5[%c0_73, %c0_74] : memref<4x32xf32, #tpu.memory_space<vmem>>, vector<4x32xf32>
    %cst_75 = arith.constant dense<0.000000e+00> : vector<4x128xf32>
    %129 = tpu.matmul %128, %13, %cst_75 {dimension_numbers = #tpu.dot_dimension_numbers<[1], [0], [0], [1], [0, 0, 1, 1], [], []>} : vector<4x32xf32>, vector<32x128xf32>, vector<4x128xf32> -> vector<4x128xf32>
    %130 = arith.addf %127, %129 : vector<4x128xf32>
    %131 = vector.extract_strided_slice %126 {offsets = [0, 128], sizes = [4, 128], strides = [1, 1]} : vector<4x256xf32> to vector<4x128xf32>
    %c0_76 = arith.constant 0 : index
    %c0_77 = arith.constant 0 : index
    %132 = vector.load %arg7[%c0_76, %c0_77] : memref<4x32xf32, #tpu.memory_space<vmem>>, vector<4x32xf32>
    %cst_78 = arith.constant dense<0.000000e+00> : vector<4x128xf32>
    %133 = tpu.matmul %132, %14, %cst_78 {dimension_numbers = #tpu.dot_dimension_numbers<[1], [0], [0], [1], [0, 0, 1, 1], [], []>} : vector<4x32xf32>, vector<32x128xf32>, vector<4x128xf32> -> vector<4x128xf32>
    %134 = arith.addf %131, %133 : vector<4x128xf32>
    %c0_79 = arith.constant 0 : index
    %c0_80 = arith.constant 0 : index
    %135 = vector.load %arg6[%c0_79, %c0_80] : memref<4x32xf32, #tpu.memory_space<vmem>>, vector<4x32xf32>
    %136 = vector.extract_strided_slice %130 {offsets = [0, 0], sizes = [4, 32], strides = [1, 1]} : vector<4x128xf32> to vector<4x32xf32>
    %137 = arith.negf %136 : vector<4x32xf32>
    %138 = math.exp %137 : vector<4x32xf32>
    %cst_81 = arith.constant 1.000000e+00 : f32
    %139 = vector.broadcast %cst_81 : f32 to vector<4x32xf32>
    %140 = arith.addf %139, %138 : vector<4x32xf32>
    %141 = arith.divf %139, %140 : vector<4x32xf32>
    %142 = vector.extract_strided_slice %130 {offsets = [0, 32], sizes = [4, 32], strides = [1, 1]} : vector<4x128xf32> to vector<4x32xf32>
    %143 = arith.negf %142 : vector<4x32xf32>
    %144 = math.exp %143 : vector<4x32xf32>
    %cst_82 = arith.constant 1.000000e+00 : f32
    %145 = vector.broadcast %cst_82 : f32 to vector<4x32xf32>
    %146 = arith.addf %145, %144 : vector<4x32xf32>
    %147 = arith.divf %145, %146 : vector<4x32xf32>
    %148 = vector.extract_strided_slice %130 {offsets = [0, 64], sizes = [4, 32], strides = [1, 1]} : vector<4x128xf32> to vector<4x32xf32>
    %149 = math.tanh %148 : vector<4x32xf32>
    %150 = vector.extract_strided_slice %130 {offsets = [0, 96], sizes = [4, 32], strides = [1, 1]} : vector<4x128xf32> to vector<4x32xf32>
    %151 = arith.negf %150 : vector<4x32xf32>
    %152 = math.exp %151 : vector<4x32xf32>
    %cst_83 = arith.constant 1.000000e+00 : f32
    %153 = vector.broadcast %cst_83 : f32 to vector<4x32xf32>
    %154 = arith.addf %153, %152 : vector<4x32xf32>
    %155 = arith.divf %153, %154 : vector<4x32xf32>
    %156 = arith.mulf %147, %135 : vector<4x32xf32>
    %157 = arith.mulf %141, %149 : vector<4x32xf32>
    %158 = arith.addf %156, %157 : vector<4x32xf32>
    %159 = math.tanh %158 : vector<4x32xf32>
    %160 = arith.mulf %155, %159 : vector<4x32xf32>
    %c0_84 = arith.constant 0 : index
    %c0_85 = arith.constant 0 : index
    %161 = vector.load %arg8[%c0_84, %c0_85] : memref<4x32xf32, #tpu.memory_space<vmem>>, vector<4x32xf32>
    %162 = vector.extract_strided_slice %134 {offsets = [0, 0], sizes = [4, 32], strides = [1, 1]} : vector<4x128xf32> to vector<4x32xf32>
    %163 = arith.negf %162 : vector<4x32xf32>
    %164 = math.exp %163 : vector<4x32xf32>
    %cst_86 = arith.constant 1.000000e+00 : f32
    %165 = vector.broadcast %cst_86 : f32 to vector<4x32xf32>
    %166 = arith.addf %165, %164 : vector<4x32xf32>
    %167 = arith.divf %165, %166 : vector<4x32xf32>
    %168 = vector.extract_strided_slice %134 {offsets = [0, 32], sizes = [4, 32], strides = [1, 1]} : vector<4x128xf32> to vector<4x32xf32>
    %169 = arith.negf %168 : vector<4x32xf32>
    %170 = math.exp %169 : vector<4x32xf32>
    %cst_87 = arith.constant 1.000000e+00 : f32
    %171 = vector.broadcast %cst_87 : f32 to vector<4x32xf32>
    %172 = arith.addf %171, %170 : vector<4x32xf32>
    %173 = arith.divf %171, %172 : vector<4x32xf32>
    %174 = vector.extract_strided_slice %134 {offsets = [0, 64], sizes = [4, 32], strides = [1, 1]} : vector<4x128xf32> to vector<4x32xf32>
    %175 = math.tanh %174 : vector<4x32xf32>
    %176 = vector.extract_strided_slice %134 {offsets = [0, 96], sizes = [4, 32], strides = [1, 1]} : vector<4x128xf32> to vector<4x32xf32>
    %177 = arith.negf %176 : vector<4x32xf32>
    %178 = math.exp %177 : vector<4x32xf32>
    %cst_88 = arith.constant 1.000000e+00 : f32
    %179 = vector.broadcast %cst_88 : f32 to vector<4x32xf32>
    %180 = arith.addf %179, %178 : vector<4x32xf32>
    %181 = arith.divf %179, %180 : vector<4x32xf32>
    %182 = arith.mulf %173, %161 : vector<4x32xf32>
    %183 = arith.mulf %167, %175 : vector<4x32xf32>
    %184 = arith.addf %182, %183 : vector<4x32xf32>
    %185 = math.tanh %184 : vector<4x32xf32>
    %186 = arith.mulf %181, %185 : vector<4x32xf32>
    %187 = vector.broadcast %c1_i32 : i32 to vector<4x1xi32>
    %188 = arith.cmpi slt, %187, %12 : vector<4x1xi32>
    %189 = vector.broadcast %120 : i32 to vector<4x1xi32>
    %190 = arith.cmpi slt, %189, %12 : vector<4x1xi32>
    %c0_89 = arith.constant 0 : index
    %c0_90 = arith.constant 0 : index
    %191 = vector.load %arg6[%c0_89, %c0_90] : memref<4x32xf32, #tpu.memory_space<vmem>>, vector<4x32xf32>
    %192 = vector.shape_cast %188 : vector<4x1xi1> to vector<4x1xi1>
    %193 = vector.broadcast %192 : vector<4x1xi1> to vector<4x32xi1>
    %194 = arith.select %193, %158, %191 : vector<4x32xi1>, vector<4x32xf32>
    %c0_91 = arith.constant 0 : index
    %c0_92 = arith.constant 0 : index
    %195 = vector.load %arg6[%c0_91, %c0_92] : memref<4x32xf32, #tpu.memory_space<vmem>>, vector<4x32xf32>
    tpu.vector_store %arg6[%c0_91, %c0_92], %194 {strides = array<i32>} : memref<4x32xf32, #tpu.memory_space<vmem>>, vector<4x32xf32>,
    %c0_93 = arith.constant 0 : index
    %c0_94 = arith.constant 0 : index
    %196 = vector.load %arg5[%c0_93, %c0_94] : memref<4x32xf32, #tpu.memory_space<vmem>>, vector<4x32xf32>
    %197 = vector.shape_cast %188 : vector<4x1xi1> to vector<4x1xi1>
    %198 = vector.broadcast %197 : vector<4x1xi1> to vector<4x32xi1>
    %199 = arith.select %198, %160, %196 : vector<4x32xi1>, vector<4x32xf32>
    %c0_95 = arith.constant 0 : index
    %c0_96 = arith.constant 0 : index
    %200 = vector.load %arg5[%c0_95, %c0_96] : memref<4x32xf32, #tpu.memory_space<vmem>>, vector<4x32xf32>
    tpu.vector_store %arg5[%c0_95, %c0_96], %199 {strides = array<i32>} : memref<4x32xf32, #tpu.memory_space<vmem>>, vector<4x32xf32>,
    %c0_97 = arith.constant 0 : index
    %c0_98 = arith.constant 0 : index
    %201 = vector.load %arg8[%c0_97, %c0_98] : memref<4x32xf32, #tpu.memory_space<vmem>>, vector<4x32xf32>
    %202 = vector.shape_cast %190 : vector<4x1xi1> to vector<4x1xi1>
    %203 = vector.broadcast %202 : vector<4x1xi1> to vector<4x32xi1>
    %204 = arith.select %203, %184, %201 : vector<4x32xi1>, vector<4x32xf32>
    %c0_99 = arith.constant 0 : index
    %c0_100 = arith.constant 0 : index
    %205 = vector.load %arg8[%c0_99, %c0_100] : memref<4x32xf32, #tpu.memory_space<vmem>>, vector<4x32xf32>
    tpu.vector_store %arg8[%c0_99, %c0_100], %204 {strides = array<i32>} : memref<4x32xf32, #tpu.memory_space<vmem>>, vector<4x32xf32>,
    %c0_101 = arith.constant 0 : index
    %c0_102 = arith.constant 0 : index
    %206 = vector.load %arg7[%c0_101, %c0_102] : memref<4x32xf32, #tpu.memory_space<vmem>>, vector<4x32xf32>
    %207 = vector.shape_cast %190 : vector<4x1xi1> to vector<4x1xi1>
    %208 = vector.broadcast %207 : vector<4x1xi1> to vector<4x32xi1>
    %209 = arith.select %208, %186, %206 : vector<4x32xi1>, vector<4x32xf32>
    %c0_103 = arith.constant 0 : index
    %c0_104 = arith.constant 0 : index
    %210 = vector.load %arg7[%c0_103, %c0_104] : memref<4x32xf32, #tpu.memory_space<vmem>>, vector<4x32xf32>
    tpu.vector_store %arg7[%c0_103, %c0_104], %209 {strides = array<i32>} : memref<4x32xf32, #tpu.memory_space<vmem>>, vector<4x32xf32>,
    %cst_105 = arith.constant 0.000000e+00 : f32
    %211 = vector.shape_cast %188 : vector<4x1xi1> to vector<4x1xi1>
    %212 = vector.broadcast %211 : vector<4x1xi1> to vector<4x32xi1>
    %213 = vector.broadcast %cst_105 : f32 to vector<4x32xf32>
    %214 = arith.select %212, %160, %213 : vector<4x32xi1>, vector<4x32xf32>
    %cst_106 = arith.constant 0.000000e+00 : f32
    %215 = vector.shape_cast %190 : vector<4x1xi1> to vector<4x1xi1>
    %216 = vector.broadcast %215 : vector<4x1xi1> to vector<4x32xi1>
    %217 = vector.broadcast %cst_106 : f32 to vector<4x32xf32>
    %218 = arith.select %216, %186, %217 : vector<4x32xi1>, vector<4x32xf32>
    %c0_107 = arith.constant 0 : index
    %c0_108 = arith.constant 0 : index
    %219 = vector.load %arg9[%c0_107, %c0_108] : memref<4x32xf32, #tpu.memory_space<vmem>>, vector<4x32xf32>
    %220 = arith.maximumf %219, %214 : vector<4x32xf32>
    %c0_109 = arith.constant 0 : index
    %c0_110 = arith.constant 0 : index
    %221 = vector.load %arg9[%c0_109, %c0_110] : memref<4x32xf32, #tpu.memory_space<vmem>>, vector<4x32xf32>
    tpu.vector_store %arg9[%c0_109, %c0_110], %220 {strides = array<i32>} : memref<4x32xf32, #tpu.memory_space<vmem>>, vector<4x32xf32>,
    %c0_111 = arith.constant 0 : index
    %c0_112 = arith.constant 0 : index
    %222 = vector.load %arg10[%c0_111, %c0_112] : memref<4x32xf32, #tpu.memory_space<vmem>>, vector<4x32xf32>
    %223 = arith.maximumf %222, %218 : vector<4x32xf32>
    %c0_113 = arith.constant 0 : index
    %c0_114 = arith.constant 0 : index
    %224 = vector.load %arg10[%c0_113, %c0_114] : memref<4x32xf32, #tpu.memory_space<vmem>>, vector<4x32xf32>
    tpu.vector_store %arg10[%c0_113, %c0_114], %223 {strides = array<i32>} : memref<4x32xf32, #tpu.memory_space<vmem>>, vector<4x32xf32>,
    %c2_i32 = arith.constant 2 : i32
    %c7_i32_115 = arith.constant 7 : i32
    %225 = arith.subi %c7_i32_115, %c2_i32 : i32
    %226 = arith.index_cast %c2_i32 : i32 to index
    %c0_116 = arith.constant 0 : index
    %c0_117 = arith.constant 0 : index
    %227 = vector.load %arg0[%226, %c0_116, %c0_117] : memref<8x4x256xf32, #tpu.memory_space<vmem>>, vector<1x4x256xf32>
    %228 = vector.shape_cast %227 : vector<1x4x256xf32> to vector<4x256xf32>
    %229 = arith.index_cast %225 : i32 to index
    %c0_118 = arith.constant 0 : index
    %c0_119 = arith.constant 0 : index
    %230 = vector.load %arg0[%229, %c0_118, %c0_119] : memref<8x4x256xf32, #tpu.memory_space<vmem>>, vector<1x4x256xf32>
    %231 = vector.shape_cast %230 : vector<1x4x256xf32> to vector<4x256xf32>
    %232 = vector.extract_strided_slice %228 {offsets = [0, 0], sizes = [4, 128], strides = [1, 1]} : vector<4x256xf32> to vector<4x128xf32>
    %c0_120 = arith.constant 0 : index
    %c0_121 = arith.constant 0 : index
    %233 = vector.load %arg5[%c0_120, %c0_121] : memref<4x32xf32, #tpu.memory_space<vmem>>, vector<4x32xf32>
    %cst_122 = arith.constant dense<0.000000e+00> : vector<4x128xf32>
    %234 = tpu.matmul %233, %13, %cst_122 {dimension_numbers = #tpu.dot_dimension_numbers<[1], [0], [0], [1], [0, 0, 1, 1], [], []>} : vector<4x32xf32>, vector<32x128xf32>, vector<4x128xf32> -> vector<4x128xf32>
    %235 = arith.addf %232, %234 : vector<4x128xf32>
    %236 = vector.extract_strided_slice %231 {offsets = [0, 128], sizes = [4, 128], strides = [1, 1]} : vector<4x256xf32> to vector<4x128xf32>
    %c0_123 = arith.constant 0 : index
    %c0_124 = arith.constant 0 : index
    %237 = vector.load %arg7[%c0_123, %c0_124] : memref<4x32xf32, #tpu.memory_space<vmem>>, vector<4x32xf32>
    %cst_125 = arith.constant dense<0.000000e+00> : vector<4x128xf32>
    %238 = tpu.matmul %237, %14, %cst_125 {dimension_numbers = #tpu.dot_dimension_numbers<[1], [0], [0], [1], [0, 0, 1, 1], [], []>} : vector<4x32xf32>, vector<32x128xf32>, vector<4x128xf32> -> vector<4x128xf32>
    %239 = arith.addf %236, %238 : vector<4x128xf32>
    %c0_126 = arith.constant 0 : index
    %c0_127 = arith.constant 0 : index
    %240 = vector.load %arg6[%c0_126, %c0_127] : memref<4x32xf32, #tpu.memory_space<vmem>>, vector<4x32xf32>
    %241 = vector.extract_strided_slice %235 {offsets = [0, 0], sizes = [4, 32], strides = [1, 1]} : vector<4x128xf32> to vector<4x32xf32>
    %242 = arith.negf %241 : vector<4x32xf32>
    %243 = math.exp %242 : vector<4x32xf32>
    %cst_128 = arith.constant 1.000000e+00 : f32
    %244 = vector.broadcast %cst_128 : f32 to vector<4x32xf32>
    %245 = arith.addf %244, %243 : vector<4x32xf32>
    %246 = arith.divf %244, %245 : vector<4x32xf32>
    %247 = vector.extract_strided_slice %235 {offsets = [0, 32], sizes = [4, 32], strides = [1, 1]} : vector<4x128xf32> to vector<4x32xf32>
    %248 = arith.negf %247 : vector<4x32xf32>
    %249 = math.exp %248 : vector<4x32xf32>
    %cst_129 = arith.constant 1.000000e+00 : f32
    %250 = vector.broadcast %cst_129 : f32 to vector<4x32xf32>
    %251 = arith.addf %250, %249 : vector<4x32xf32>
    %252 = arith.divf %250, %251 : vector<4x32xf32>
    %253 = vector.extract_strided_slice %235 {offsets = [0, 64], sizes = [4, 32], strides = [1, 1]} : vector<4x128xf32> to vector<4x32xf32>
    %254 = math.tanh %253 : vector<4x32xf32>
    %255 = vector.extract_strided_slice %235 {offsets = [0, 96], sizes = [4, 32], strides = [1, 1]} : vector<4x128xf32> to vector<4x32xf32>
    %256 = arith.negf %255 : vector<4x32xf32>
    %257 = math.exp %256 : vector<4x32xf32>
    %cst_130 = arith.constant 1.000000e+00 : f32
    %258 = vector.broadcast %cst_130 : f32 to vector<4x32xf32>
    %259 = arith.addf %258, %257 : vector<4x32xf32>
    %260 = arith.divf %258, %259 : vector<4x32xf32>
    %261 = arith.mulf %252, %240 : vector<4x32xf32>
    %262 = arith.mulf %246, %254 : vector<4x32xf32>
    %263 = arith.addf %261, %262 : vector<4x32xf32>
    %264 = math.tanh %263 : vector<4x32xf32>
    %265 = arith.mulf %260, %264 : vector<4x32xf32>
    %c0_131 = arith.constant 0 : index
    %c0_132 = arith.constant 0 : index
    %266 = vector.load %arg8[%c0_131, %c0_132] : memref<4x32xf32, #tpu.memory_space<vmem>>, vector<4x32xf32>
    %267 = vector.extract_strided_slice %239 {offsets = [0, 0], sizes = [4, 32], strides = [1, 1]} : vector<4x128xf32> to vector<4x32xf32>
    %268 = arith.negf %267 : vector<4x32xf32>
    %269 = math.exp %268 : vector<4x32xf32>
    %cst_133 = arith.constant 1.000000e+00 : f32
    %270 = vector.broadcast %cst_133 : f32 to vector<4x32xf32>
    %271 = arith.addf %270, %269 : vector<4x32xf32>
    %272 = arith.divf %270, %271 : vector<4x32xf32>
    %273 = vector.extract_strided_slice %239 {offsets = [0, 32], sizes = [4, 32], strides = [1, 1]} : vector<4x128xf32> to vector<4x32xf32>
    %274 = arith.negf %273 : vector<4x32xf32>
    %275 = math.exp %274 : vector<4x32xf32>
    %cst_134 = arith.constant 1.000000e+00 : f32
    %276 = vector.broadcast %cst_134 : f32 to vector<4x32xf32>
    %277 = arith.addf %276, %275 : vector<4x32xf32>
    %278 = arith.divf %276, %277 : vector<4x32xf32>
    %279 = vector.extract_strided_slice %239 {offsets = [0, 64], sizes = [4, 32], strides = [1, 1]} : vector<4x128xf32> to vector<4x32xf32>
    %280 = math.tanh %279 : vector<4x32xf32>
    %281 = vector.extract_strided_slice %239 {offsets = [0, 96], sizes = [4, 32], strides = [1, 1]} : vector<4x128xf32> to vector<4x32xf32>
    %282 = arith.negf %281 : vector<4x32xf32>
    %283 = math.exp %282 : vector<4x32xf32>
    %cst_135 = arith.constant 1.000000e+00 : f32
    %284 = vector.broadcast %cst_135 : f32 to vector<4x32xf32>
    %285 = arith.addf %284, %283 : vector<4x32xf32>
    %286 = arith.divf %284, %285 : vector<4x32xf32>
    %287 = arith.mulf %278, %266 : vector<4x32xf32>
    %288 = arith.mulf %272, %280 : vector<4x32xf32>
    %289 = arith.addf %287, %288 : vector<4x32xf32>
    %290 = math.tanh %289 : vector<4x32xf32>
    %291 = arith.mulf %286, %290 : vector<4x32xf32>
    %292 = vector.broadcast %c2_i32 : i32 to vector<4x1xi32>
    %293 = arith.cmpi slt, %292, %12 : vector<4x1xi32>
    %294 = vector.broadcast %225 : i32 to vector<4x1xi32>
    %295 = arith.cmpi slt, %294, %12 : vector<4x1xi32>
    %c0_136 = arith.constant 0 : index
    %c0_137 = arith.constant 0 : index
    %296 = vector.load %arg6[%c0_136, %c0_137] : memref<4x32xf32, #tpu.memory_space<vmem>>, vector<4x32xf32>
    %297 = vector.shape_cast %293 : vector<4x1xi1> to vector<4x1xi1>
    %298 = vector.broadcast %297 : vector<4x1xi1> to vector<4x32xi1>
    %299 = arith.select %298, %263, %296 : vector<4x32xi1>, vector<4x32xf32>
    %c0_138 = arith.constant 0 : index
    %c0_139 = arith.constant 0 : index
    %300 = vector.load %arg6[%c0_138, %c0_139] : memref<4x32xf32, #tpu.memory_space<vmem>>, vector<4x32xf32>
    tpu.vector_store %arg6[%c0_138, %c0_139], %299 {strides = array<i32>} : memref<4x32xf32, #tpu.memory_space<vmem>>, vector<4x32xf32>,
    %c0_140 = arith.constant 0 : index
    %c0_141 = arith.constant 0 : index
    %301 = vector.load %arg5[%c0_140, %c0_141] : memref<4x32xf32, #tpu.memory_space<vmem>>, vector<4x32xf32>
    %302 = vector.shape_cast %293 : vector<4x1xi1> to vector<4x1xi1>
    %303 = vector.broadcast %302 : vector<4x1xi1> to vector<4x32xi1>
    %304 = arith.select %303, %265, %301 : vector<4x32xi1>, vector<4x32xf32>
    %c0_142 = arith.constant 0 : index
    %c0_143 = arith.constant 0 : index
    %305 = vector.load %arg5[%c0_142, %c0_143] : memref<4x32xf32, #tpu.memory_space<vmem>>, vector<4x32xf32>
    tpu.vector_store %arg5[%c0_142, %c0_143], %304 {strides = array<i32>} : memref<4x32xf32, #tpu.memory_space<vmem>>, vector<4x32xf32>,
    %c0_144 = arith.constant 0 : index
    %c0_145 = arith.constant 0 : index
    %306 = vector.load %arg8[%c0_144, %c0_145] : memref<4x32xf32, #tpu.memory_space<vmem>>, vector<4x32xf32>
    %307 = vector.shape_cast %295 : vector<4x1xi1> to vector<4x1xi1>
    %308 = vector.broadcast %307 : vector<4x1xi1> to vector<4x32xi1>
    %309 = arith.select %308, %289, %306 : vector<4x32xi1>, vector<4x32xf32>
    %c0_146 = arith.constant 0 : index
    %c0_147 = arith.constant 0 : index
    %310 = vector.load %arg8[%c0_146, %c0_147] : memref<4x32xf32, #tpu.memory_space<vmem>>, vector<4x32xf32>
    tpu.vector_store %arg8[%c0_146, %c0_147], %309 {strides = array<i32>} : memref<4x32xf32, #tpu.memory_space<vmem>>, vector<4x32xf32>,
    %c0_148 = arith.constant 0 : index
    %c0_149 = arith.constant 0 : index
    %311 = vector.load %arg7[%c0_148, %c0_149] : memref<4x32xf32, #tpu.memory_space<vmem>>, vector<4x32xf32>
    %312 = vector.shape_cast %295 : vector<4x1xi1> to vector<4x1xi1>
    %313 = vector.broadcast %312 : vector<4x1xi1> to vector<4x32xi1>
    %314 = arith.select %313, %291, %311 : vector<4x32xi1>, vector<4x32xf32>
    %c0_150 = arith.constant 0 : index
    %c0_151 = arith.constant 0 : index
    %315 = vector.load %arg7[%c0_150, %c0_151] : memref<4x32xf32, #tpu.memory_space<vmem>>, vector<4x32xf32>
    tpu.vector_store %arg7[%c0_150, %c0_151], %314 {strides = array<i32>} : memref<4x32xf32, #tpu.memory_space<vmem>>, vector<4x32xf32>,
    %cst_152 = arith.constant 0.000000e+00 : f32
    %316 = vector.shape_cast %293 : vector<4x1xi1> to vector<4x1xi1>
    %317 = vector.broadcast %316 : vector<4x1xi1> to vector<4x32xi1>
    %318 = vector.broadcast %cst_152 : f32 to vector<4x32xf32>
    %319 = arith.select %317, %265, %318 : vector<4x32xi1>, vector<4x32xf32>
    %cst_153 = arith.constant 0.000000e+00 : f32
    %320 = vector.shape_cast %295 : vector<4x1xi1> to vector<4x1xi1>
    %321 = vector.broadcast %320 : vector<4x1xi1> to vector<4x32xi1>
    %322 = vector.broadcast %cst_153 : f32 to vector<4x32xf32>
    %323 = arith.select %321, %291, %322 : vector<4x32xi1>, vector<4x32xf32>
    %c0_154 = arith.constant 0 : index
    %c0_155 = arith.constant 0 : index
    %324 = vector.load %arg9[%c0_154, %c0_155] : memref<4x32xf32, #tpu.memory_space<vmem>>, vector<4x32xf32>
    %325 = arith.maximumf %324, %319 : vector<4x32xf32>
    %c0_156 = arith.constant 0 : index
    %c0_157 = arith.constant 0 : index
    %326 = vector.load %arg9[%c0_156, %c0_157] : memref<4x32xf32, #tpu.memory_space<vmem>>, vector<4x32xf32>
    tpu.vector_store %arg9[%c0_156, %c0_157], %325 {strides = array<i32>} : memref<4x32xf32, #tpu.memory_space<vmem>>, vector<4x32xf32>,
    %c0_158 = arith.constant 0 : index
    %c0_159 = arith.constant 0 : index
    %327 = vector.load %arg10[%c0_158, %c0_159] : memref<4x32xf32, #tpu.memory_space<vmem>>, vector<4x32xf32>
    %328 = arith.maximumf %327, %323 : vector<4x32xf32>
    %c0_160 = arith.constant 0 : index
    %c0_161 = arith.constant 0 : index
    %329 = vector.load %arg10[%c0_160, %c0_161] : memref<4x32xf32, #tpu.memory_space<vmem>>, vector<4x32xf32>
    tpu.vector_store %arg10[%c0_160, %c0_161], %328 {strides = array<i32>} : memref<4x32xf32, #tpu.memory_space<vmem>>, vector<4x32xf32>,
    %c3_i32 = arith.constant 3 : i32
    %c7_i32_162 = arith.constant 7 : i32
    %330 = arith.subi %c7_i32_162, %c3_i32 : i32
    %331 = arith.index_cast %c3_i32 : i32 to index
    %c0_163 = arith.constant 0 : index
    %c0_164 = arith.constant 0 : index
    %332 = vector.load %arg0[%331, %c0_163, %c0_164] : memref<8x4x256xf32, #tpu.memory_space<vmem>>, vector<1x4x256xf32>
    %333 = vector.shape_cast %332 : vector<1x4x256xf32> to vector<4x256xf32>
    %334 = arith.index_cast %330 : i32 to index
    %c0_165 = arith.constant 0 : index
    %c0_166 = arith.constant 0 : index
    %335 = vector.load %arg0[%334, %c0_165, %c0_166] : memref<8x4x256xf32, #tpu.memory_space<vmem>>, vector<1x4x256xf32>
    %336 = vector.shape_cast %335 : vector<1x4x256xf32> to vector<4x256xf32>
    %337 = vector.extract_strided_slice %333 {offsets = [0, 0], sizes = [4, 128], strides = [1, 1]} : vector<4x256xf32> to vector<4x128xf32>
    %c0_167 = arith.constant 0 : index
    %c0_168 = arith.constant 0 : index
    %338 = vector.load %arg5[%c0_167, %c0_168] : memref<4x32xf32, #tpu.memory_space<vmem>>, vector<4x32xf32>
    %cst_169 = arith.constant dense<0.000000e+00> : vector<4x128xf32>
    %339 = tpu.matmul %338, %13, %cst_169 {dimension_numbers = #tpu.dot_dimension_numbers<[1], [0], [0], [1], [0, 0, 1, 1], [], []>} : vector<4x32xf32>, vector<32x128xf32>, vector<4x128xf32> -> vector<4x128xf32>
    %340 = arith.addf %337, %339 : vector<4x128xf32>
    %341 = vector.extract_strided_slice %336 {offsets = [0, 128], sizes = [4, 128], strides = [1, 1]} : vector<4x256xf32> to vector<4x128xf32>
    %c0_170 = arith.constant 0 : index
    %c0_171 = arith.constant 0 : index
    %342 = vector.load %arg7[%c0_170, %c0_171] : memref<4x32xf32, #tpu.memory_space<vmem>>, vector<4x32xf32>
    %cst_172 = arith.constant dense<0.000000e+00> : vector<4x128xf32>
    %343 = tpu.matmul %342, %14, %cst_172 {dimension_numbers = #tpu.dot_dimension_numbers<[1], [0], [0], [1], [0, 0, 1, 1], [], []>} : vector<4x32xf32>, vector<32x128xf32>, vector<4x128xf32> -> vector<4x128xf32>
    %344 = arith.addf %341, %343 : vector<4x128xf32>
    %c0_173 = arith.constant 0 : index
    %c0_174 = arith.constant 0 : index
    %345 = vector.load %arg6[%c0_173, %c0_174] : memref<4x32xf32, #tpu.memory_space<vmem>>, vector<4x32xf32>
    %346 = vector.extract_strided_slice %340 {offsets = [0, 0], sizes = [4, 32], strides = [1, 1]} : vector<4x128xf32> to vector<4x32xf32>
    %347 = arith.negf %346 : vector<4x32xf32>
    %348 = math.exp %347 : vector<4x32xf32>
    %cst_175 = arith.constant 1.000000e+00 : f32
    %349 = vector.broadcast %cst_175 : f32 to vector<4x32xf32>
    %350 = arith.addf %349, %348 : vector<4x32xf32>
    %351 = arith.divf %349, %350 : vector<4x32xf32>
    %352 = vector.extract_strided_slice %340 {offsets = [0, 32], sizes = [4, 32], strides = [1, 1]} : vector<4x128xf32> to vector<4x32xf32>
    %353 = arith.negf %352 : vector<4x32xf32>
    %354 = math.exp %353 : vector<4x32xf32>
    %cst_176 = arith.constant 1.000000e+00 : f32
    %355 = vector.broadcast %cst_176 : f32 to vector<4x32xf32>
    %356 = arith.addf %355, %354 : vector<4x32xf32>
    %357 = arith.divf %355, %356 : vector<4x32xf32>
    %358 = vector.extract_strided_slice %340 {offsets = [0, 64], sizes = [4, 32], strides = [1, 1]} : vector<4x128xf32> to vector<4x32xf32>
    %359 = math.tanh %358 : vector<4x32xf32>
    %360 = vector.extract_strided_slice %340 {offsets = [0, 96], sizes = [4, 32], strides = [1, 1]} : vector<4x128xf32> to vector<4x32xf32>
    %361 = arith.negf %360 : vector<4x32xf32>
    %362 = math.exp %361 : vector<4x32xf32>
    %cst_177 = arith.constant 1.000000e+00 : f32
    %363 = vector.broadcast %cst_177 : f32 to vector<4x32xf32>
    %364 = arith.addf %363, %362 : vector<4x32xf32>
    %365 = arith.divf %363, %364 : vector<4x32xf32>
    %366 = arith.mulf %357, %345 : vector<4x32xf32>
    %367 = arith.mulf %351, %359 : vector<4x32xf32>
    %368 = arith.addf %366, %367 : vector<4x32xf32>
    %369 = math.tanh %368 : vector<4x32xf32>
    %370 = arith.mulf %365, %369 : vector<4x32xf32>
    %c0_178 = arith.constant 0 : index
    %c0_179 = arith.constant 0 : index
    %371 = vector.load %arg8[%c0_178, %c0_179] : memref<4x32xf32, #tpu.memory_space<vmem>>, vector<4x32xf32>
    %372 = vector.extract_strided_slice %344 {offsets = [0, 0], sizes = [4, 32], strides = [1, 1]} : vector<4x128xf32> to vector<4x32xf32>
    %373 = arith.negf %372 : vector<4x32xf32>
    %374 = math.exp %373 : vector<4x32xf32>
    %cst_180 = arith.constant 1.000000e+00 : f32
    %375 = vector.broadcast %cst_180 : f32 to vector<4x32xf32>
    %376 = arith.addf %375, %374 : vector<4x32xf32>
    %377 = arith.divf %375, %376 : vector<4x32xf32>
    %378 = vector.extract_strided_slice %344 {offsets = [0, 32], sizes = [4, 32], strides = [1, 1]} : vector<4x128xf32> to vector<4x32xf32>
    %379 = arith.negf %378 : vector<4x32xf32>
    %380 = math.exp %379 : vector<4x32xf32>
    %cst_181 = arith.constant 1.000000e+00 : f32
    %381 = vector.broadcast %cst_181 : f32 to vector<4x32xf32>
    %382 = arith.addf %381, %380 : vector<4x32xf32>
    %383 = arith.divf %381, %382 : vector<4x32xf32>
    %384 = vector.extract_strided_slice %344 {offsets = [0, 64], sizes = [4, 32], strides = [1, 1]} : vector<4x128xf32> to vector<4x32xf32>
    %385 = math.tanh %384 : vector<4x32xf32>
    %386 = vector.extract_strided_slice %344 {offsets = [0, 96], sizes = [4, 32], strides = [1, 1]} : vector<4x128xf32> to vector<4x32xf32>
    %387 = arith.negf %386 : vector<4x32xf32>
    %388 = math.exp %387 : vector<4x32xf32>
    %cst_182 = arith.constant 1.000000e+00 : f32
    %389 = vector.broadcast %cst_182 : f32 to vector<4x32xf32>
    %390 = arith.addf %389, %388 : vector<4x32xf32>
    %391 = arith.divf %389, %390 : vector<4x32xf32>
    %392 = arith.mulf %383, %371 : vector<4x32xf32>
    %393 = arith.mulf %377, %385 : vector<4x32xf32>
    %394 = arith.addf %392, %393 : vector<4x32xf32>
    %395 = math.tanh %394 : vector<4x32xf32>
    %396 = arith.mulf %391, %395 : vector<4x32xf32>
    %397 = vector.broadcast %c3_i32 : i32 to vector<4x1xi32>
    %398 = arith.cmpi slt, %397, %12 : vector<4x1xi32>
    %399 = vector.broadcast %330 : i32 to vector<4x1xi32>
    %400 = arith.cmpi slt, %399, %12 : vector<4x1xi32>
    %c0_183 = arith.constant 0 : index
    %c0_184 = arith.constant 0 : index
    %401 = vector.load %arg6[%c0_183, %c0_184] : memref<4x32xf32, #tpu.memory_space<vmem>>, vector<4x32xf32>
    %402 = vector.shape_cast %398 : vector<4x1xi1> to vector<4x1xi1>
    %403 = vector.broadcast %402 : vector<4x1xi1> to vector<4x32xi1>
    %404 = arith.select %403, %368, %401 : vector<4x32xi1>, vector<4x32xf32>
    %c0_185 = arith.constant 0 : index
    %c0_186 = arith.constant 0 : index
    %405 = vector.load %arg6[%c0_185, %c0_186] : memref<4x32xf32, #tpu.memory_space<vmem>>, vector<4x32xf32>
    tpu.vector_store %arg6[%c0_185, %c0_186], %404 {strides = array<i32>} : memref<4x32xf32, #tpu.memory_space<vmem>>, vector<4x32xf32>,
    %c0_187 = arith.constant 0 : index
    %c0_188 = arith.constant 0 : index
    %406 = vector.load %arg5[%c0_187, %c0_188] : memref<4x32xf32, #tpu.memory_space<vmem>>, vector<4x32xf32>
    %407 = vector.shape_cast %398 : vector<4x1xi1> to vector<4x1xi1>
    %408 = vector.broadcast %407 : vector<4x1xi1> to vector<4x32xi1>
    %409 = arith.select %408, %370, %406 : vector<4x32xi1>, vector<4x32xf32>
    %c0_189 = arith.constant 0 : index
    %c0_190 = arith.constant 0 : index
    %410 = vector.load %arg5[%c0_189, %c0_190] : memref<4x32xf32, #tpu.memory_space<vmem>>, vector<4x32xf32>
    tpu.vector_store %arg5[%c0_189, %c0_190], %409 {strides = array<i32>} : memref<4x32xf32, #tpu.memory_space<vmem>>, vector<4x32xf32>,
    %c0_191 = arith.constant 0 : index
    %c0_192 = arith.constant 0 : index
    %411 = vector.load %arg8[%c0_191, %c0_192] : memref<4x32xf32, #tpu.memory_space<vmem>>, vector<4x32xf32>
    %412 = vector.shape_cast %400 : vector<4x1xi1> to vector<4x1xi1>
    %413 = vector.broadcast %412 : vector<4x1xi1> to vector<4x32xi1>
    %414 = arith.select %413, %394, %411 : vector<4x32xi1>, vector<4x32xf32>
    %c0_193 = arith.constant 0 : index
    %c0_194 = arith.constant 0 : index
    %415 = vector.load %arg8[%c0_193, %c0_194] : memref<4x32xf32, #tpu.memory_space<vmem>>, vector<4x32xf32>
    tpu.vector_store %arg8[%c0_193, %c0_194], %414 {strides = array<i32>} : memref<4x32xf32, #tpu.memory_space<vmem>>, vector<4x32xf32>,
    %c0_195 = arith.constant 0 : index
    %c0_196 = arith.constant 0 : index
    %416 = vector.load %arg7[%c0_195, %c0_196] : memref<4x32xf32, #tpu.memory_space<vmem>>, vector<4x32xf32>
    %417 = vector.shape_cast %400 : vector<4x1xi1> to vector<4x1xi1>
    %418 = vector.broadcast %417 : vector<4x1xi1> to vector<4x32xi1>
    %419 = arith.select %418, %396, %416 : vector<4x32xi1>, vector<4x32xf32>
    %c0_197 = arith.constant 0 : index
    %c0_198 = arith.constant 0 : index
    %420 = vector.load %arg7[%c0_197, %c0_198] : memref<4x32xf32, #tpu.memory_space<vmem>>, vector<4x32xf32>
    tpu.vector_store %arg7[%c0_197, %c0_198], %419 {strides = array<i32>} : memref<4x32xf32, #tpu.memory_space<vmem>>, vector<4x32xf32>,
    %cst_199 = arith.constant 0.000000e+00 : f32
    %421 = vector.shape_cast %398 : vector<4x1xi1> to vector<4x1xi1>
    %422 = vector.broadcast %421 : vector<4x1xi1> to vector<4x32xi1>
    %423 = vector.broadcast %cst_199 : f32 to vector<4x32xf32>
    %424 = arith.select %422, %370, %423 : vector<4x32xi1>, vector<4x32xf32>
    %cst_200 = arith.constant 0.000000e+00 : f32
    %425 = vector.shape_cast %400 : vector<4x1xi1> to vector<4x1xi1>
    %426 = vector.broadcast %425 : vector<4x1xi1> to vector<4x32xi1>
    %427 = vector.broadcast %cst_200 : f32 to vector<4x32xf32>
    %428 = arith.select %426, %396, %427 : vector<4x32xi1>, vector<4x32xf32>
    %c0_201 = arith.constant 0 : index
    %c0_202 = arith.constant 0 : index
    %429 = vector.load %arg9[%c0_201, %c0_202] : memref<4x32xf32, #tpu.memory_space<vmem>>, vector<4x32xf32>
    %430 = arith.maximumf %429, %424 : vector<4x32xf32>
    %c0_203 = arith.constant 0 : index
    %c0_204 = arith.constant 0 : index
    %431 = vector.load %arg9[%c0_203, %c0_204] : memref<4x32xf32, #tpu.memory_space<vmem>>, vector<4x32xf32>
    tpu.vector_store %arg9[%c0_203, %c0_204], %430 {strides = array<i32>} : memref<4x32xf32, #tpu.memory_space<vmem>>, vector<4x32xf32>,
    %c0_205 = arith.constant 0 : index
    %c0_206 = arith.constant 0 : index
    %432 = vector.load %arg10[%c0_205, %c0_206] : memref<4x32xf32, #tpu.memory_space<vmem>>, vector<4x32xf32>
    %433 = arith.maximumf %432, %428 : vector<4x32xf32>
    %c0_207 = arith.constant 0 : index
    %c0_208 = arith.constant 0 : index
    %434 = vector.load %arg10[%c0_207, %c0_208] : memref<4x32xf32, #tpu.memory_space<vmem>>, vector<4x32xf32>
    tpu.vector_store %arg10[%c0_207, %c0_208], %433 {strides = array<i32>} : memref<4x32xf32, #tpu.memory_space<vmem>>, vector<4x32xf32>,
    %c4_i32 = arith.constant 4 : i32
    %c7_i32_209 = arith.constant 7 : i32
    %435 = arith.subi %c7_i32_209, %c4_i32 : i32
    %436 = arith.index_cast %c4_i32 : i32 to index
    %c0_210 = arith.constant 0 : index
    %c0_211 = arith.constant 0 : index
    %437 = vector.load %arg0[%436, %c0_210, %c0_211] : memref<8x4x256xf32, #tpu.memory_space<vmem>>, vector<1x4x256xf32>
    %438 = vector.shape_cast %437 : vector<1x4x256xf32> to vector<4x256xf32>
    %439 = arith.index_cast %435 : i32 to index
    %c0_212 = arith.constant 0 : index
    %c0_213 = arith.constant 0 : index
    %440 = vector.load %arg0[%439, %c0_212, %c0_213] : memref<8x4x256xf32, #tpu.memory_space<vmem>>, vector<1x4x256xf32>
    %441 = vector.shape_cast %440 : vector<1x4x256xf32> to vector<4x256xf32>
    %442 = vector.extract_strided_slice %438 {offsets = [0, 0], sizes = [4, 128], strides = [1, 1]} : vector<4x256xf32> to vector<4x128xf32>
    %c0_214 = arith.constant 0 : index
    %c0_215 = arith.constant 0 : index
    %443 = vector.load %arg5[%c0_214, %c0_215] : memref<4x32xf32, #tpu.memory_space<vmem>>, vector<4x32xf32>
    %cst_216 = arith.constant dense<0.000000e+00> : vector<4x128xf32>
    %444 = tpu.matmul %443, %13, %cst_216 {dimension_numbers = #tpu.dot_dimension_numbers<[1], [0], [0], [1], [0, 0, 1, 1], [], []>} : vector<4x32xf32>, vector<32x128xf32>, vector<4x128xf32> -> vector<4x128xf32>
    %445 = arith.addf %442, %444 : vector<4x128xf32>
    %446 = vector.extract_strided_slice %441 {offsets = [0, 128], sizes = [4, 128], strides = [1, 1]} : vector<4x256xf32> to vector<4x128xf32>
    %c0_217 = arith.constant 0 : index
    %c0_218 = arith.constant 0 : index
    %447 = vector.load %arg7[%c0_217, %c0_218] : memref<4x32xf32, #tpu.memory_space<vmem>>, vector<4x32xf32>
    %cst_219 = arith.constant dense<0.000000e+00> : vector<4x128xf32>
    %448 = tpu.matmul %447, %14, %cst_219 {dimension_numbers = #tpu.dot_dimension_numbers<[1], [0], [0], [1], [0, 0, 1, 1], [], []>} : vector<4x32xf32>, vector<32x128xf32>, vector<4x128xf32> -> vector<4x128xf32>
    %449 = arith.addf %446, %448 : vector<4x128xf32>
    %c0_220 = arith.constant 0 : index
    %c0_221 = arith.constant 0 : index
    %450 = vector.load %arg6[%c0_220, %c0_221] : memref<4x32xf32, #tpu.memory_space<vmem>>, vector<4x32xf32>
    %451 = vector.extract_strided_slice %445 {offsets = [0, 0], sizes = [4, 32], strides = [1, 1]} : vector<4x128xf32> to vector<4x32xf32>
    %452 = arith.negf %451 : vector<4x32xf32>
    %453 = math.exp %452 : vector<4x32xf32>
    %cst_222 = arith.constant 1.000000e+00 : f32
    %454 = vector.broadcast %cst_222 : f32 to vector<4x32xf32>
    %455 = arith.addf %454, %453 : vector<4x32xf32>
    %456 = arith.divf %454, %455 : vector<4x32xf32>
    %457 = vector.extract_strided_slice %445 {offsets = [0, 32], sizes = [4, 32], strides = [1, 1]} : vector<4x128xf32> to vector<4x32xf32>
    %458 = arith.negf %457 : vector<4x32xf32>
    %459 = math.exp %458 : vector<4x32xf32>
    %cst_223 = arith.constant 1.000000e+00 : f32
    %460 = vector.broadcast %cst_223 : f32 to vector<4x32xf32>
    %461 = arith.addf %460, %459 : vector<4x32xf32>
    %462 = arith.divf %460, %461 : vector<4x32xf32>
    %463 = vector.extract_strided_slice %445 {offsets = [0, 64], sizes = [4, 32], strides = [1, 1]} : vector<4x128xf32> to vector<4x32xf32>
    %464 = math.tanh %463 : vector<4x32xf32>
    %465 = vector.extract_strided_slice %445 {offsets = [0, 96], sizes = [4, 32], strides = [1, 1]} : vector<4x128xf32> to vector<4x32xf32>
    %466 = arith.negf %465 : vector<4x32xf32>
    %467 = math.exp %466 : vector<4x32xf32>
    %cst_224 = arith.constant 1.000000e+00 : f32
    %468 = vector.broadcast %cst_224 : f32 to vector<4x32xf32>
    %469 = arith.addf %468, %467 : vector<4x32xf32>
    %470 = arith.divf %468, %469 : vector<4x32xf32>
    %471 = arith.mulf %462, %450 : vector<4x32xf32>
    %472 = arith.mulf %456, %464 : vector<4x32xf32>
    %473 = arith.addf %471, %472 : vector<4x32xf32>
    %474 = math.tanh %473 : vector<4x32xf32>
    %475 = arith.mulf %470, %474 : vector<4x32xf32>
    %c0_225 = arith.constant 0 : index
    %c0_226 = arith.constant 0 : index
    %476 = vector.load %arg8[%c0_225, %c0_226] : memref<4x32xf32, #tpu.memory_space<vmem>>, vector<4x32xf32>
    %477 = vector.extract_strided_slice %449 {offsets = [0, 0], sizes = [4, 32], strides = [1, 1]} : vector<4x128xf32> to vector<4x32xf32>
    %478 = arith.negf %477 : vector<4x32xf32>
    %479 = math.exp %478 : vector<4x32xf32>
    %cst_227 = arith.constant 1.000000e+00 : f32
    %480 = vector.broadcast %cst_227 : f32 to vector<4x32xf32>
    %481 = arith.addf %480, %479 : vector<4x32xf32>
    %482 = arith.divf %480, %481 : vector<4x32xf32>
    %483 = vector.extract_strided_slice %449 {offsets = [0, 32], sizes = [4, 32], strides = [1, 1]} : vector<4x128xf32> to vector<4x32xf32>
    %484 = arith.negf %483 : vector<4x32xf32>
    %485 = math.exp %484 : vector<4x32xf32>
    %cst_228 = arith.constant 1.000000e+00 : f32
    %486 = vector.broadcast %cst_228 : f32 to vector<4x32xf32>
    %487 = arith.addf %486, %485 : vector<4x32xf32>
    %488 = arith.divf %486, %487 : vector<4x32xf32>
    %489 = vector.extract_strided_slice %449 {offsets = [0, 64], sizes = [4, 32], strides = [1, 1]} : vector<4x128xf32> to vector<4x32xf32>
    %490 = math.tanh %489 : vector<4x32xf32>
    %491 = vector.extract_strided_slice %449 {offsets = [0, 96], sizes = [4, 32], strides = [1, 1]} : vector<4x128xf32> to vector<4x32xf32>
    %492 = arith.negf %491 : vector<4x32xf32>
    %493 = math.exp %492 : vector<4x32xf32>
    %cst_229 = arith.constant 1.000000e+00 : f32
    %494 = vector.broadcast %cst_229 : f32 to vector<4x32xf32>
    %495 = arith.addf %494, %493 : vector<4x32xf32>
    %496 = arith.divf %494, %495 : vector<4x32xf32>
    %497 = arith.mulf %488, %476 : vector<4x32xf32>
    %498 = arith.mulf %482, %490 : vector<4x32xf32>
    %499 = arith.addf %497, %498 : vector<4x32xf32>
    %500 = math.tanh %499 : vector<4x32xf32>
    %501 = arith.mulf %496, %500 : vector<4x32xf32>
    %502 = vector.broadcast %c4_i32 : i32 to vector<4x1xi32>
    %503 = arith.cmpi slt, %502, %12 : vector<4x1xi32>
    %504 = vector.broadcast %435 : i32 to vector<4x1xi32>
    %505 = arith.cmpi slt, %504, %12 : vector<4x1xi32>
    %c0_230 = arith.constant 0 : index
    %c0_231 = arith.constant 0 : index
    %506 = vector.load %arg6[%c0_230, %c0_231] : memref<4x32xf32, #tpu.memory_space<vmem>>, vector<4x32xf32>
    %507 = vector.shape_cast %503 : vector<4x1xi1> to vector<4x1xi1>
    %508 = vector.broadcast %507 : vector<4x1xi1> to vector<4x32xi1>
    %509 = arith.select %508, %473, %506 : vector<4x32xi1>, vector<4x32xf32>
    %c0_232 = arith.constant 0 : index
    %c0_233 = arith.constant 0 : index
    %510 = vector.load %arg6[%c0_232, %c0_233] : memref<4x32xf32, #tpu.memory_space<vmem>>, vector<4x32xf32>
    tpu.vector_store %arg6[%c0_232, %c0_233], %509 {strides = array<i32>} : memref<4x32xf32, #tpu.memory_space<vmem>>, vector<4x32xf32>,
    %c0_234 = arith.constant 0 : index
    %c0_235 = arith.constant 0 : index
    %511 = vector.load %arg5[%c0_234, %c0_235] : memref<4x32xf32, #tpu.memory_space<vmem>>, vector<4x32xf32>
    %512 = vector.shape_cast %503 : vector<4x1xi1> to vector<4x1xi1>
    %513 = vector.broadcast %512 : vector<4x1xi1> to vector<4x32xi1>
    %514 = arith.select %513, %475, %511 : vector<4x32xi1>, vector<4x32xf32>
    %c0_236 = arith.constant 0 : index
    %c0_237 = arith.constant 0 : index
    %515 = vector.load %arg5[%c0_236, %c0_237] : memref<4x32xf32, #tpu.memory_space<vmem>>, vector<4x32xf32>
    tpu.vector_store %arg5[%c0_236, %c0_237], %514 {strides = array<i32>} : memref<4x32xf32, #tpu.memory_space<vmem>>, vector<4x32xf32>,
    %c0_238 = arith.constant 0 : index
    %c0_239 = arith.constant 0 : index
    %516 = vector.load %arg8[%c0_238, %c0_239] : memref<4x32xf32, #tpu.memory_space<vmem>>, vector<4x32xf32>
    %517 = vector.shape_cast %505 : vector<4x1xi1> to vector<4x1xi1>
    %518 = vector.broadcast %517 : vector<4x1xi1> to vector<4x32xi1>
    %519 = arith.select %518, %499, %516 : vector<4x32xi1>, vector<4x32xf32>
    %c0_240 = arith.constant 0 : index
    %c0_241 = arith.constant 0 : index
    %520 = vector.load %arg8[%c0_240, %c0_241] : memref<4x32xf32, #tpu.memory_space<vmem>>, vector<4x32xf32>
    tpu.vector_store %arg8[%c0_240, %c0_241], %519 {strides = array<i32>} : memref<4x32xf32, #tpu.memory_space<vmem>>, vector<4x32xf32>,
    %c0_242 = arith.constant 0 : index
    %c0_243 = arith.constant 0 : index
    %521 = vector.load %arg7[%c0_242, %c0_243] : memref<4x32xf32, #tpu.memory_space<vmem>>, vector<4x32xf32>
    %522 = vector.shape_cast %505 : vector<4x1xi1> to vector<4x1xi1>
    %523 = vector.broadcast %522 : vector<4x1xi1> to vector<4x32xi1>
    %524 = arith.select %523, %501, %521 : vector<4x32xi1>, vector<4x32xf32>
    %c0_244 = arith.constant 0 : index
    %c0_245 = arith.constant 0 : index
    %525 = vector.load %arg7[%c0_244, %c0_245] : memref<4x32xf32, #tpu.memory_space<vmem>>, vector<4x32xf32>
    tpu.vector_store %arg7[%c0_244, %c0_245], %524 {strides = array<i32>} : memref<4x32xf32, #tpu.memory_space<vmem>>, vector<4x32xf32>,
    %cst_246 = arith.constant 0.000000e+00 : f32
    %526 = vector.shape_cast %503 : vector<4x1xi1> to vector<4x1xi1>
    %527 = vector.broadcast %526 : vector<4x1xi1> to vector<4x32xi1>
    %528 = vector.broadcast %cst_246 : f32 to vector<4x32xf32>
    %529 = arith.select %527, %475, %528 : vector<4x32xi1>, vector<4x32xf32>
    %cst_247 = arith.constant 0.000000e+00 : f32
    %530 = vector.shape_cast %505 : vector<4x1xi1> to vector<4x1xi1>
    %531 = vector.broadcast %530 : vector<4x1xi1> to vector<4x32xi1>
    %532 = vector.broadcast %cst_247 : f32 to vector<4x32xf32>
    %533 = arith.select %531, %501, %532 : vector<4x32xi1>, vector<4x32xf32>
    %c0_248 = arith.constant 0 : index
    %c0_249 = arith.constant 0 : index
    %534 = vector.load %arg9[%c0_248, %c0_249] : memref<4x32xf32, #tpu.memory_space<vmem>>, vector<4x32xf32>
    %535 = arith.maximumf %534, %529 : vector<4x32xf32>
    %c0_250 = arith.constant 0 : index
    %c0_251 = arith.constant 0 : index
    %536 = vector.load %arg9[%c0_250, %c0_251] : memref<4x32xf32, #tpu.memory_space<vmem>>, vector<4x32xf32>
    tpu.vector_store %arg9[%c0_250, %c0_251], %535 {strides = array<i32>} : memref<4x32xf32, #tpu.memory_space<vmem>>, vector<4x32xf32>,
    %c0_252 = arith.constant 0 : index
    %c0_253 = arith.constant 0 : index
    %537 = vector.load %arg10[%c0_252, %c0_253] : memref<4x32xf32, #tpu.memory_space<vmem>>, vector<4x32xf32>
    %538 = arith.maximumf %537, %533 : vector<4x32xf32>
    %c0_254 = arith.constant 0 : index
    %c0_255 = arith.constant 0 : index
    %539 = vector.load %arg10[%c0_254, %c0_255] : memref<4x32xf32, #tpu.memory_space<vmem>>, vector<4x32xf32>
    tpu.vector_store %arg10[%c0_254, %c0_255], %538 {strides = array<i32>} : memref<4x32xf32, #tpu.memory_space<vmem>>, vector<4x32xf32>,
    %c5_i32 = arith.constant 5 : i32
    %c7_i32_256 = arith.constant 7 : i32
    %540 = arith.subi %c7_i32_256, %c5_i32 : i32
    %541 = arith.index_cast %c5_i32 : i32 to index
    %c0_257 = arith.constant 0 : index
    %c0_258 = arith.constant 0 : index
    %542 = vector.load %arg0[%541, %c0_257, %c0_258] : memref<8x4x256xf32, #tpu.memory_space<vmem>>, vector<1x4x256xf32>
    %543 = vector.shape_cast %542 : vector<1x4x256xf32> to vector<4x256xf32>
    %544 = arith.index_cast %540 : i32 to index
    %c0_259 = arith.constant 0 : index
    %c0_260 = arith.constant 0 : index
    %545 = vector.load %arg0[%544, %c0_259, %c0_260] : memref<8x4x256xf32, #tpu.memory_space<vmem>>, vector<1x4x256xf32>
    %546 = vector.shape_cast %545 : vector<1x4x256xf32> to vector<4x256xf32>
    %547 = vector.extract_strided_slice %543 {offsets = [0, 0], sizes = [4, 128], strides = [1, 1]} : vector<4x256xf32> to vector<4x128xf32>
    %c0_261 = arith.constant 0 : index
    %c0_262 = arith.constant 0 : index
    %548 = vector.load %arg5[%c0_261, %c0_262] : memref<4x32xf32, #tpu.memory_space<vmem>>, vector<4x32xf32>
    %cst_263 = arith.constant dense<0.000000e+00> : vector<4x128xf32>
    %549 = tpu.matmul %548, %13, %cst_263 {dimension_numbers = #tpu.dot_dimension_numbers<[1], [0], [0], [1], [0, 0, 1, 1], [], []>} : vector<4x32xf32>, vector<32x128xf32>, vector<4x128xf32> -> vector<4x128xf32>
    %550 = arith.addf %547, %549 : vector<4x128xf32>
    %551 = vector.extract_strided_slice %546 {offsets = [0, 128], sizes = [4, 128], strides = [1, 1]} : vector<4x256xf32> to vector<4x128xf32>
    %c0_264 = arith.constant 0 : index
    %c0_265 = arith.constant 0 : index
    %552 = vector.load %arg7[%c0_264, %c0_265] : memref<4x32xf32, #tpu.memory_space<vmem>>, vector<4x32xf32>
    %cst_266 = arith.constant dense<0.000000e+00> : vector<4x128xf32>
    %553 = tpu.matmul %552, %14, %cst_266 {dimension_numbers = #tpu.dot_dimension_numbers<[1], [0], [0], [1], [0, 0, 1, 1], [], []>} : vector<4x32xf32>, vector<32x128xf32>, vector<4x128xf32> -> vector<4x128xf32>
    %554 = arith.addf %551, %553 : vector<4x128xf32>
    %c0_267 = arith.constant 0 : index
    %c0_268 = arith.constant 0 : index
    %555 = vector.load %arg6[%c0_267, %c0_268] : memref<4x32xf32, #tpu.memory_space<vmem>>, vector<4x32xf32>
    %556 = vector.extract_strided_slice %550 {offsets = [0, 0], sizes = [4, 32], strides = [1, 1]} : vector<4x128xf32> to vector<4x32xf32>
    %557 = arith.negf %556 : vector<4x32xf32>
    %558 = math.exp %557 : vector<4x32xf32>
    %cst_269 = arith.constant 1.000000e+00 : f32
    %559 = vector.broadcast %cst_269 : f32 to vector<4x32xf32>
    %560 = arith.addf %559, %558 : vector<4x32xf32>
    %561 = arith.divf %559, %560 : vector<4x32xf32>
    %562 = vector.extract_strided_slice %550 {offsets = [0, 32], sizes = [4, 32], strides = [1, 1]} : vector<4x128xf32> to vector<4x32xf32>
    %563 = arith.negf %562 : vector<4x32xf32>
    %564 = math.exp %563 : vector<4x32xf32>
    %cst_270 = arith.constant 1.000000e+00 : f32
    %565 = vector.broadcast %cst_270 : f32 to vector<4x32xf32>
    %566 = arith.addf %565, %564 : vector<4x32xf32>
    %567 = arith.divf %565, %566 : vector<4x32xf32>
    %568 = vector.extract_strided_slice %550 {offsets = [0, 64], sizes = [4, 32], strides = [1, 1]} : vector<4x128xf32> to vector<4x32xf32>
    %569 = math.tanh %568 : vector<4x32xf32>
    %570 = vector.extract_strided_slice %550 {offsets = [0, 96], sizes = [4, 32], strides = [1, 1]} : vector<4x128xf32> to vector<4x32xf32>
    %571 = arith.negf %570 : vector<4x32xf32>
    %572 = math.exp %571 : vector<4x32xf32>
    %cst_271 = arith.constant 1.000000e+00 : f32
    %573 = vector.broadcast %cst_271 : f32 to vector<4x32xf32>
    %574 = arith.addf %573, %572 : vector<4x32xf32>
    %575 = arith.divf %573, %574 : vector<4x32xf32>
    %576 = arith.mulf %567, %555 : vector<4x32xf32>
    %577 = arith.mulf %561, %569 : vector<4x32xf32>
    %578 = arith.addf %576, %577 : vector<4x32xf32>
    %579 = math.tanh %578 : vector<4x32xf32>
    %580 = arith.mulf %575, %579 : vector<4x32xf32>
    %c0_272 = arith.constant 0 : index
    %c0_273 = arith.constant 0 : index
    %581 = vector.load %arg8[%c0_272, %c0_273] : memref<4x32xf32, #tpu.memory_space<vmem>>, vector<4x32xf32>
    %582 = vector.extract_strided_slice %554 {offsets = [0, 0], sizes = [4, 32], strides = [1, 1]} : vector<4x128xf32> to vector<4x32xf32>
    %583 = arith.negf %582 : vector<4x32xf32>
    %584 = math.exp %583 : vector<4x32xf32>
    %cst_274 = arith.constant 1.000000e+00 : f32
    %585 = vector.broadcast %cst_274 : f32 to vector<4x32xf32>
    %586 = arith.addf %585, %584 : vector<4x32xf32>
    %587 = arith.divf %585, %586 : vector<4x32xf32>
    %588 = vector.extract_strided_slice %554 {offsets = [0, 32], sizes = [4, 32], strides = [1, 1]} : vector<4x128xf32> to vector<4x32xf32>
    %589 = arith.negf %588 : vector<4x32xf32>
    %590 = math.exp %589 : vector<4x32xf32>
    %cst_275 = arith.constant 1.000000e+00 : f32
    %591 = vector.broadcast %cst_275 : f32 to vector<4x32xf32>
    %592 = arith.addf %591, %590 : vector<4x32xf32>
    %593 = arith.divf %591, %592 : vector<4x32xf32>
    %594 = vector.extract_strided_slice %554 {offsets = [0, 64], sizes = [4, 32], strides = [1, 1]} : vector<4x128xf32> to vector<4x32xf32>
    %595 = math.tanh %594 : vector<4x32xf32>
    %596 = vector.extract_strided_slice %554 {offsets = [0, 96], sizes = [4, 32], strides = [1, 1]} : vector<4x128xf32> to vector<4x32xf32>
    %597 = arith.negf %596 : vector<4x32xf32>
    %598 = math.exp %597 : vector<4x32xf32>
    %cst_276 = arith.constant 1.000000e+00 : f32
    %599 = vector.broadcast %cst_276 : f32 to vector<4x32xf32>
    %600 = arith.addf %599, %598 : vector<4x32xf32>
    %601 = arith.divf %599, %600 : vector<4x32xf32>
    %602 = arith.mulf %593, %581 : vector<4x32xf32>
    %603 = arith.mulf %587, %595 : vector<4x32xf32>
    %604 = arith.addf %602, %603 : vector<4x32xf32>
    %605 = math.tanh %604 : vector<4x32xf32>
    %606 = arith.mulf %601, %605 : vector<4x32xf32>
    %607 = vector.broadcast %c5_i32 : i32 to vector<4x1xi32>
    %608 = arith.cmpi slt, %607, %12 : vector<4x1xi32>
    %609 = vector.broadcast %540 : i32 to vector<4x1xi32>
    %610 = arith.cmpi slt, %609, %12 : vector<4x1xi32>
    %c0_277 = arith.constant 0 : index
    %c0_278 = arith.constant 0 : index
    %611 = vector.load %arg6[%c0_277, %c0_278] : memref<4x32xf32, #tpu.memory_space<vmem>>, vector<4x32xf32>
    %612 = vector.shape_cast %608 : vector<4x1xi1> to vector<4x1xi1>
    %613 = vector.broadcast %612 : vector<4x1xi1> to vector<4x32xi1>
    %614 = arith.select %613, %578, %611 : vector<4x32xi1>, vector<4x32xf32>
    %c0_279 = arith.constant 0 : index
    %c0_280 = arith.constant 0 : index
    %615 = vector.load %arg6[%c0_279, %c0_280] : memref<4x32xf32, #tpu.memory_space<vmem>>, vector<4x32xf32>
    tpu.vector_store %arg6[%c0_279, %c0_280], %614 {strides = array<i32>} : memref<4x32xf32, #tpu.memory_space<vmem>>, vector<4x32xf32>,
    %c0_281 = arith.constant 0 : index
    %c0_282 = arith.constant 0 : index
    %616 = vector.load %arg5[%c0_281, %c0_282] : memref<4x32xf32, #tpu.memory_space<vmem>>, vector<4x32xf32>
    %617 = vector.shape_cast %608 : vector<4x1xi1> to vector<4x1xi1>
    %618 = vector.broadcast %617 : vector<4x1xi1> to vector<4x32xi1>
    %619 = arith.select %618, %580, %616 : vector<4x32xi1>, vector<4x32xf32>
    %c0_283 = arith.constant 0 : index
    %c0_284 = arith.constant 0 : index
    %620 = vector.load %arg5[%c0_283, %c0_284] : memref<4x32xf32, #tpu.memory_space<vmem>>, vector<4x32xf32>
    tpu.vector_store %arg5[%c0_283, %c0_284], %619 {strides = array<i32>} : memref<4x32xf32, #tpu.memory_space<vmem>>, vector<4x32xf32>,
    %c0_285 = arith.constant 0 : index
    %c0_286 = arith.constant 0 : index
    %621 = vector.load %arg8[%c0_285, %c0_286] : memref<4x32xf32, #tpu.memory_space<vmem>>, vector<4x32xf32>
    %622 = vector.shape_cast %610 : vector<4x1xi1> to vector<4x1xi1>
    %623 = vector.broadcast %622 : vector<4x1xi1> to vector<4x32xi1>
    %624 = arith.select %623, %604, %621 : vector<4x32xi1>, vector<4x32xf32>
    %c0_287 = arith.constant 0 : index
    %c0_288 = arith.constant 0 : index
    %625 = vector.load %arg8[%c0_287, %c0_288] : memref<4x32xf32, #tpu.memory_space<vmem>>, vector<4x32xf32>
    tpu.vector_store %arg8[%c0_287, %c0_288], %624 {strides = array<i32>} : memref<4x32xf32, #tpu.memory_space<vmem>>, vector<4x32xf32>,
    %c0_289 = arith.constant 0 : index
    %c0_290 = arith.constant 0 : index
    %626 = vector.load %arg7[%c0_289, %c0_290] : memref<4x32xf32, #tpu.memory_space<vmem>>, vector<4x32xf32>
    %627 = vector.shape_cast %610 : vector<4x1xi1> to vector<4x1xi1>
    %628 = vector.broadcast %627 : vector<4x1xi1> to vector<4x32xi1>
    %629 = arith.select %628, %606, %626 : vector<4x32xi1>, vector<4x32xf32>
    %c0_291 = arith.constant 0 : index
    %c0_292 = arith.constant 0 : index
    %630 = vector.load %arg7[%c0_291, %c0_292] : memref<4x32xf32, #tpu.memory_space<vmem>>, vector<4x32xf32>
    tpu.vector_store %arg7[%c0_291, %c0_292], %629 {strides = array<i32>} : memref<4x32xf32, #tpu.memory_space<vmem>>, vector<4x32xf32>,
    %cst_293 = arith.constant 0.000000e+00 : f32
    %631 = vector.shape_cast %608 : vector<4x1xi1> to vector<4x1xi1>
    %632 = vector.broadcast %631 : vector<4x1xi1> to vector<4x32xi1>
    %633 = vector.broadcast %cst_293 : f32 to vector<4x32xf32>
    %634 = arith.select %632, %580, %633 : vector<4x32xi1>, vector<4x32xf32>
    %cst_294 = arith.constant 0.000000e+00 : f32
    %635 = vector.shape_cast %610 : vector<4x1xi1> to vector<4x1xi1>
    %636 = vector.broadcast %635 : vector<4x1xi1> to vector<4x32xi1>
    %637 = vector.broadcast %cst_294 : f32 to vector<4x32xf32>
    %638 = arith.select %636, %606, %637 : vector<4x32xi1>, vector<4x32xf32>
    %c0_295 = arith.constant 0 : index
    %c0_296 = arith.constant 0 : index
    %639 = vector.load %arg9[%c0_295, %c0_296] : memref<4x32xf32, #tpu.memory_space<vmem>>, vector<4x32xf32>
    %640 = arith.maximumf %639, %634 : vector<4x32xf32>
    %c0_297 = arith.constant 0 : index
    %c0_298 = arith.constant 0 : index
    %641 = vector.load %arg9[%c0_297, %c0_298] : memref<4x32xf32, #tpu.memory_space<vmem>>, vector<4x32xf32>
    tpu.vector_store %arg9[%c0_297, %c0_298], %640 {strides = array<i32>} : memref<4x32xf32, #tpu.memory_space<vmem>>, vector<4x32xf32>,
    %c0_299 = arith.constant 0 : index
    %c0_300 = arith.constant 0 : index
    %642 = vector.load %arg10[%c0_299, %c0_300] : memref<4x32xf32, #tpu.memory_space<vmem>>, vector<4x32xf32>
    %643 = arith.maximumf %642, %638 : vector<4x32xf32>
    %c0_301 = arith.constant 0 : index
    %c0_302 = arith.constant 0 : index
    %644 = vector.load %arg10[%c0_301, %c0_302] : memref<4x32xf32, #tpu.memory_space<vmem>>, vector<4x32xf32>
    tpu.vector_store %arg10[%c0_301, %c0_302], %643 {strides = array<i32>} : memref<4x32xf32, #tpu.memory_space<vmem>>, vector<4x32xf32>,
    %c6_i32 = arith.constant 6 : i32
    %c7_i32_303 = arith.constant 7 : i32
    %645 = arith.subi %c7_i32_303, %c6_i32 : i32
    %646 = arith.index_cast %c6_i32 : i32 to index
    %c0_304 = arith.constant 0 : index
    %c0_305 = arith.constant 0 : index
    %647 = vector.load %arg0[%646, %c0_304, %c0_305] : memref<8x4x256xf32, #tpu.memory_space<vmem>>, vector<1x4x256xf32>
    %648 = vector.shape_cast %647 : vector<1x4x256xf32> to vector<4x256xf32>
    %649 = arith.index_cast %645 : i32 to index
    %c0_306 = arith.constant 0 : index
    %c0_307 = arith.constant 0 : index
    %650 = vector.load %arg0[%649, %c0_306, %c0_307] : memref<8x4x256xf32, #tpu.memory_space<vmem>>, vector<1x4x256xf32>
    %651 = vector.shape_cast %650 : vector<1x4x256xf32> to vector<4x256xf32>
    %652 = vector.extract_strided_slice %648 {offsets = [0, 0], sizes = [4, 128], strides = [1, 1]} : vector<4x256xf32> to vector<4x128xf32>
    %c0_308 = arith.constant 0 : index
    %c0_309 = arith.constant 0 : index
    %653 = vector.load %arg5[%c0_308, %c0_309] : memref<4x32xf32, #tpu.memory_space<vmem>>, vector<4x32xf32>
    %cst_310 = arith.constant dense<0.000000e+00> : vector<4x128xf32>
    %654 = tpu.matmul %653, %13, %cst_310 {dimension_numbers = #tpu.dot_dimension_numbers<[1], [0], [0], [1], [0, 0, 1, 1], [], []>} : vector<4x32xf32>, vector<32x128xf32>, vector<4x128xf32> -> vector<4x128xf32>
    %655 = arith.addf %652, %654 : vector<4x128xf32>
    %656 = vector.extract_strided_slice %651 {offsets = [0, 128], sizes = [4, 128], strides = [1, 1]} : vector<4x256xf32> to vector<4x128xf32>
    %c0_311 = arith.constant 0 : index
    %c0_312 = arith.constant 0 : index
    %657 = vector.load %arg7[%c0_311, %c0_312] : memref<4x32xf32, #tpu.memory_space<vmem>>, vector<4x32xf32>
    %cst_313 = arith.constant dense<0.000000e+00> : vector<4x128xf32>
    %658 = tpu.matmul %657, %14, %cst_313 {dimension_numbers = #tpu.dot_dimension_numbers<[1], [0], [0], [1], [0, 0, 1, 1], [], []>} : vector<4x32xf32>, vector<32x128xf32>, vector<4x128xf32> -> vector<4x128xf32>
    %659 = arith.addf %656, %658 : vector<4x128xf32>
    %c0_314 = arith.constant 0 : index
    %c0_315 = arith.constant 0 : index
    %660 = vector.load %arg6[%c0_314, %c0_315] : memref<4x32xf32, #tpu.memory_space<vmem>>, vector<4x32xf32>
    %661 = vector.extract_strided_slice %655 {offsets = [0, 0], sizes = [4, 32], strides = [1, 1]} : vector<4x128xf32> to vector<4x32xf32>
    %662 = arith.negf %661 : vector<4x32xf32>
    %663 = math.exp %662 : vector<4x32xf32>
    %cst_316 = arith.constant 1.000000e+00 : f32
    %664 = vector.broadcast %cst_316 : f32 to vector<4x32xf32>
    %665 = arith.addf %664, %663 : vector<4x32xf32>
    %666 = arith.divf %664, %665 : vector<4x32xf32>
    %667 = vector.extract_strided_slice %655 {offsets = [0, 32], sizes = [4, 32], strides = [1, 1]} : vector<4x128xf32> to vector<4x32xf32>
    %668 = arith.negf %667 : vector<4x32xf32>
    %669 = math.exp %668 : vector<4x32xf32>
    %cst_317 = arith.constant 1.000000e+00 : f32
    %670 = vector.broadcast %cst_317 : f32 to vector<4x32xf32>
    %671 = arith.addf %670, %669 : vector<4x32xf32>
    %672 = arith.divf %670, %671 : vector<4x32xf32>
    %673 = vector.extract_strided_slice %655 {offsets = [0, 64], sizes = [4, 32], strides = [1, 1]} : vector<4x128xf32> to vector<4x32xf32>
    %674 = math.tanh %673 : vector<4x32xf32>
    %675 = vector.extract_strided_slice %655 {offsets = [0, 96], sizes = [4, 32], strides = [1, 1]} : vector<4x128xf32> to vector<4x32xf32>
    %676 = arith.negf %675 : vector<4x32xf32>
    %677 = math.exp %676 : vector<4x32xf32>
    %cst_318 = arith.constant 1.000000e+00 : f32
    %678 = vector.broadcast %cst_318 : f32 to vector<4x32xf32>
    %679 = arith.addf %678, %677 : vector<4x32xf32>
    %680 = arith.divf %678, %679 : vector<4x32xf32>
    %681 = arith.mulf %672, %660 : vector<4x32xf32>
    %682 = arith.mulf %666, %674 : vector<4x32xf32>
    %683 = arith.addf %681, %682 : vector<4x32xf32>
    %684 = math.tanh %683 : vector<4x32xf32>
    %685 = arith.mulf %680, %684 : vector<4x32xf32>
    %c0_319 = arith.constant 0 : index
    %c0_320 = arith.constant 0 : index
    %686 = vector.load %arg8[%c0_319, %c0_320] : memref<4x32xf32, #tpu.memory_space<vmem>>, vector<4x32xf32>
    %687 = vector.extract_strided_slice %659 {offsets = [0, 0], sizes = [4, 32], strides = [1, 1]} : vector<4x128xf32> to vector<4x32xf32>
    %688 = arith.negf %687 : vector<4x32xf32>
    %689 = math.exp %688 : vector<4x32xf32>
    %cst_321 = arith.constant 1.000000e+00 : f32
    %690 = vector.broadcast %cst_321 : f32 to vector<4x32xf32>
    %691 = arith.addf %690, %689 : vector<4x32xf32>
    %692 = arith.divf %690, %691 : vector<4x32xf32>
    %693 = vector.extract_strided_slice %659 {offsets = [0, 32], sizes = [4, 32], strides = [1, 1]} : vector<4x128xf32> to vector<4x32xf32>
    %694 = arith.negf %693 : vector<4x32xf32>
    %695 = math.exp %694 : vector<4x32xf32>
    %cst_322 = arith.constant 1.000000e+00 : f32
    %696 = vector.broadcast %cst_322 : f32 to vector<4x32xf32>
    %697 = arith.addf %696, %695 : vector<4x32xf32>
    %698 = arith.divf %696, %697 : vector<4x32xf32>
    %699 = vector.extract_strided_slice %659 {offsets = [0, 64], sizes = [4, 32], strides = [1, 1]} : vector<4x128xf32> to vector<4x32xf32>
    %700 = math.tanh %699 : vector<4x32xf32>
    %701 = vector.extract_strided_slice %659 {offsets = [0, 96], sizes = [4, 32], strides = [1, 1]} : vector<4x128xf32> to vector<4x32xf32>
    %702 = arith.negf %701 : vector<4x32xf32>
    %703 = math.exp %702 : vector<4x32xf32>
    %cst_323 = arith.constant 1.000000e+00 : f32
    %704 = vector.broadcast %cst_323 : f32 to vector<4x32xf32>
    %705 = arith.addf %704, %703 : vector<4x32xf32>
    %706 = arith.divf %704, %705 : vector<4x32xf32>
    %707 = arith.mulf %698, %686 : vector<4x32xf32>
    %708 = arith.mulf %692, %700 : vector<4x32xf32>
    %709 = arith.addf %707, %708 : vector<4x32xf32>
    %710 = math.tanh %709 : vector<4x32xf32>
    %711 = arith.mulf %706, %710 : vector<4x32xf32>
    %712 = vector.broadcast %c6_i32 : i32 to vector<4x1xi32>
    %713 = arith.cmpi slt, %712, %12 : vector<4x1xi32>
    %714 = vector.broadcast %645 : i32 to vector<4x1xi32>
    %715 = arith.cmpi slt, %714, %12 : vector<4x1xi32>
    %c0_324 = arith.constant 0 : index
    %c0_325 = arith.constant 0 : index
    %716 = vector.load %arg6[%c0_324, %c0_325] : memref<4x32xf32, #tpu.memory_space<vmem>>, vector<4x32xf32>
    %717 = vector.shape_cast %713 : vector<4x1xi1> to vector<4x1xi1>
    %718 = vector.broadcast %717 : vector<4x1xi1> to vector<4x32xi1>
    %719 = arith.select %718, %683, %716 : vector<4x32xi1>, vector<4x32xf32>
    %c0_326 = arith.constant 0 : index
    %c0_327 = arith.constant 0 : index
    %720 = vector.load %arg6[%c0_326, %c0_327] : memref<4x32xf32, #tpu.memory_space<vmem>>, vector<4x32xf32>
    tpu.vector_store %arg6[%c0_326, %c0_327], %719 {strides = array<i32>} : memref<4x32xf32, #tpu.memory_space<vmem>>, vector<4x32xf32>,
    %c0_328 = arith.constant 0 : index
    %c0_329 = arith.constant 0 : index
    %721 = vector.load %arg5[%c0_328, %c0_329] : memref<4x32xf32, #tpu.memory_space<vmem>>, vector<4x32xf32>
    %722 = vector.shape_cast %713 : vector<4x1xi1> to vector<4x1xi1>
    %723 = vector.broadcast %722 : vector<4x1xi1> to vector<4x32xi1>
    %724 = arith.select %723, %685, %721 : vector<4x32xi1>, vector<4x32xf32>
    %c0_330 = arith.constant 0 : index
    %c0_331 = arith.constant 0 : index
    %725 = vector.load %arg5[%c0_330, %c0_331] : memref<4x32xf32, #tpu.memory_space<vmem>>, vector<4x32xf32>
    tpu.vector_store %arg5[%c0_330, %c0_331], %724 {strides = array<i32>} : memref<4x32xf32, #tpu.memory_space<vmem>>, vector<4x32xf32>,
    %c0_332 = arith.constant 0 : index
    %c0_333 = arith.constant 0 : index
    %726 = vector.load %arg8[%c0_332, %c0_333] : memref<4x32xf32, #tpu.memory_space<vmem>>, vector<4x32xf32>
    %727 = vector.shape_cast %715 : vector<4x1xi1> to vector<4x1xi1>
    %728 = vector.broadcast %727 : vector<4x1xi1> to vector<4x32xi1>
    %729 = arith.select %728, %709, %726 : vector<4x32xi1>, vector<4x32xf32>
    %c0_334 = arith.constant 0 : index
    %c0_335 = arith.constant 0 : index
    %730 = vector.load %arg8[%c0_334, %c0_335] : memref<4x32xf32, #tpu.memory_space<vmem>>, vector<4x32xf32>
    tpu.vector_store %arg8[%c0_334, %c0_335], %729 {strides = array<i32>} : memref<4x32xf32, #tpu.memory_space<vmem>>, vector<4x32xf32>,
    %c0_336 = arith.constant 0 : index
    %c0_337 = arith.constant 0 : index
    %731 = vector.load %arg7[%c0_336, %c0_337] : memref<4x32xf32, #tpu.memory_space<vmem>>, vector<4x32xf32>
    %732 = vector.shape_cast %715 : vector<4x1xi1> to vector<4x1xi1>
    %733 = vector.broadcast %732 : vector<4x1xi1> to vector<4x32xi1>
    %734 = arith.select %733, %711, %731 : vector<4x32xi1>, vector<4x32xf32>
    %c0_338 = arith.constant 0 : index
    %c0_339 = arith.constant 0 : index
    %735 = vector.load %arg7[%c0_338, %c0_339] : memref<4x32xf32, #tpu.memory_space<vmem>>, vector<4x32xf32>
    tpu.vector_store %arg7[%c0_338, %c0_339], %734 {strides = array<i32>} : memref<4x32xf32, #tpu.memory_space<vmem>>, vector<4x32xf32>,
    %cst_340 = arith.constant 0.000000e+00 : f32
    %736 = vector.shape_cast %713 : vector<4x1xi1> to vector<4x1xi1>
    %737 = vector.broadcast %736 : vector<4x1xi1> to vector<4x32xi1>
    %738 = vector.broadcast %cst_340 : f32 to vector<4x32xf32>
    %739 = arith.select %737, %685, %738 : vector<4x32xi1>, vector<4x32xf32>
    %cst_341 = arith.constant 0.000000e+00 : f32
    %740 = vector.shape_cast %715 : vector<4x1xi1> to vector<4x1xi1>
    %741 = vector.broadcast %740 : vector<4x1xi1> to vector<4x32xi1>
    %742 = vector.broadcast %cst_341 : f32 to vector<4x32xf32>
    %743 = arith.select %741, %711, %742 : vector<4x32xi1>, vector<4x32xf32>
    %c0_342 = arith.constant 0 : index
    %c0_343 = arith.constant 0 : index
    %744 = vector.load %arg9[%c0_342, %c0_343] : memref<4x32xf32, #tpu.memory_space<vmem>>, vector<4x32xf32>
    %745 = arith.maximumf %744, %739 : vector<4x32xf32>
    %c0_344 = arith.constant 0 : index
    %c0_345 = arith.constant 0 : index
    %746 = vector.load %arg9[%c0_344, %c0_345] : memref<4x32xf32, #tpu.memory_space<vmem>>, vector<4x32xf32>
    tpu.vector_store %arg9[%c0_344, %c0_345], %745 {strides = array<i32>} : memref<4x32xf32, #tpu.memory_space<vmem>>, vector<4x32xf32>,
    %c0_346 = arith.constant 0 : index
    %c0_347 = arith.constant 0 : index
    %747 = vector.load %arg10[%c0_346, %c0_347] : memref<4x32xf32, #tpu.memory_space<vmem>>, vector<4x32xf32>
    %748 = arith.maximumf %747, %743 : vector<4x32xf32>
    %c0_348 = arith.constant 0 : index
    %c0_349 = arith.constant 0 : index
    %749 = vector.load %arg10[%c0_348, %c0_349] : memref<4x32xf32, #tpu.memory_space<vmem>>, vector<4x32xf32>
    tpu.vector_store %arg10[%c0_348, %c0_349], %748 {strides = array<i32>} : memref<4x32xf32, #tpu.memory_space<vmem>>, vector<4x32xf32>,
    %c7_i32_350 = arith.constant 7 : i32
    %c7_i32_351 = arith.constant 7 : i32
    %750 = arith.subi %c7_i32_351, %c7_i32_350 : i32
    %751 = arith.index_cast %c7_i32_350 : i32 to index
    %c0_352 = arith.constant 0 : index
    %c0_353 = arith.constant 0 : index
    %752 = vector.load %arg0[%751, %c0_352, %c0_353] : memref<8x4x256xf32, #tpu.memory_space<vmem>>, vector<1x4x256xf32>
    %753 = vector.shape_cast %752 : vector<1x4x256xf32> to vector<4x256xf32>
    %754 = arith.index_cast %750 : i32 to index
    %c0_354 = arith.constant 0 : index
    %c0_355 = arith.constant 0 : index
    %755 = vector.load %arg0[%754, %c0_354, %c0_355] : memref<8x4x256xf32, #tpu.memory_space<vmem>>, vector<1x4x256xf32>
    %756 = vector.shape_cast %755 : vector<1x4x256xf32> to vector<4x256xf32>
    %757 = vector.extract_strided_slice %753 {offsets = [0, 0], sizes = [4, 128], strides = [1, 1]} : vector<4x256xf32> to vector<4x128xf32>
    %c0_356 = arith.constant 0 : index
    %c0_357 = arith.constant 0 : index
    %758 = vector.load %arg5[%c0_356, %c0_357] : memref<4x32xf32, #tpu.memory_space<vmem>>, vector<4x32xf32>
    %cst_358 = arith.constant dense<0.000000e+00> : vector<4x128xf32>
    %759 = tpu.matmul %758, %13, %cst_358 {dimension_numbers = #tpu.dot_dimension_numbers<[1], [0], [0], [1], [0, 0, 1, 1], [], []>} : vector<4x32xf32>, vector<32x128xf32>, vector<4x128xf32> -> vector<4x128xf32>
    %760 = arith.addf %757, %759 : vector<4x128xf32>
    %761 = vector.extract_strided_slice %756 {offsets = [0, 128], sizes = [4, 128], strides = [1, 1]} : vector<4x256xf32> to vector<4x128xf32>
    %c0_359 = arith.constant 0 : index
    %c0_360 = arith.constant 0 : index
    %762 = vector.load %arg7[%c0_359, %c0_360] : memref<4x32xf32, #tpu.memory_space<vmem>>, vector<4x32xf32>
    %cst_361 = arith.constant dense<0.000000e+00> : vector<4x128xf32>
    %763 = tpu.matmul %762, %14, %cst_361 {dimension_numbers = #tpu.dot_dimension_numbers<[1], [0], [0], [1], [0, 0, 1, 1], [], []>} : vector<4x32xf32>, vector<32x128xf32>, vector<4x128xf32> -> vector<4x128xf32>
    %764 = arith.addf %761, %763 : vector<4x128xf32>
    %c0_362 = arith.constant 0 : index
    %c0_363 = arith.constant 0 : index
    %765 = vector.load %arg6[%c0_362, %c0_363] : memref<4x32xf32, #tpu.memory_space<vmem>>, vector<4x32xf32>
    %766 = vector.extract_strided_slice %760 {offsets = [0, 0], sizes = [4, 32], strides = [1, 1]} : vector<4x128xf32> to vector<4x32xf32>
    %767 = arith.negf %766 : vector<4x32xf32>
    %768 = math.exp %767 : vector<4x32xf32>
    %cst_364 = arith.constant 1.000000e+00 : f32
    %769 = vector.broadcast %cst_364 : f32 to vector<4x32xf32>
    %770 = arith.addf %769, %768 : vector<4x32xf32>
    %771 = arith.divf %769, %770 : vector<4x32xf32>
    %772 = vector.extract_strided_slice %760 {offsets = [0, 32], sizes = [4, 32], strides = [1, 1]} : vector<4x128xf32> to vector<4x32xf32>
    %773 = arith.negf %772 : vector<4x32xf32>
    %774 = math.exp %773 : vector<4x32xf32>
    %cst_365 = arith.constant 1.000000e+00 : f32
    %775 = vector.broadcast %cst_365 : f32 to vector<4x32xf32>
    %776 = arith.addf %775, %774 : vector<4x32xf32>
    %777 = arith.divf %775, %776 : vector<4x32xf32>
    %778 = vector.extract_strided_slice %760 {offsets = [0, 64], sizes = [4, 32], strides = [1, 1]} : vector<4x128xf32> to vector<4x32xf32>
    %779 = math.tanh %778 : vector<4x32xf32>
    %780 = vector.extract_strided_slice %760 {offsets = [0, 96], sizes = [4, 32], strides = [1, 1]} : vector<4x128xf32> to vector<4x32xf32>
    %781 = arith.negf %780 : vector<4x32xf32>
    %782 = math.exp %781 : vector<4x32xf32>
    %cst_366 = arith.constant 1.000000e+00 : f32
    %783 = vector.broadcast %cst_366 : f32 to vector<4x32xf32>
    %784 = arith.addf %783, %782 : vector<4x32xf32>
    %785 = arith.divf %783, %784 : vector<4x32xf32>
    %786 = arith.mulf %777, %765 : vector<4x32xf32>
    %787 = arith.mulf %771, %779 : vector<4x32xf32>
    %788 = arith.addf %786, %787 : vector<4x32xf32>
    %789 = math.tanh %788 : vector<4x32xf32>
    %790 = arith.mulf %785, %789 : vector<4x32xf32>
    %c0_367 = arith.constant 0 : index
    %c0_368 = arith.constant 0 : index
    %791 = vector.load %arg8[%c0_367, %c0_368] : memref<4x32xf32, #tpu.memory_space<vmem>>, vector<4x32xf32>
    %792 = vector.extract_strided_slice %764 {offsets = [0, 0], sizes = [4, 32], strides = [1, 1]} : vector<4x128xf32> to vector<4x32xf32>
    %793 = arith.negf %792 : vector<4x32xf32>
    %794 = math.exp %793 : vector<4x32xf32>
    %cst_369 = arith.constant 1.000000e+00 : f32
    %795 = vector.broadcast %cst_369 : f32 to vector<4x32xf32>
    %796 = arith.addf %795, %794 : vector<4x32xf32>
    %797 = arith.divf %795, %796 : vector<4x32xf32>
    %798 = vector.extract_strided_slice %764 {offsets = [0, 32], sizes = [4, 32], strides = [1, 1]} : vector<4x128xf32> to vector<4x32xf32>
    %799 = arith.negf %798 : vector<4x32xf32>
    %800 = math.exp %799 : vector<4x32xf32>
    %cst_370 = arith.constant 1.000000e+00 : f32
    %801 = vector.broadcast %cst_370 : f32 to vector<4x32xf32>
    %802 = arith.addf %801, %800 : vector<4x32xf32>
    %803 = arith.divf %801, %802 : vector<4x32xf32>
    %804 = vector.extract_strided_slice %764 {offsets = [0, 64], sizes = [4, 32], strides = [1, 1]} : vector<4x128xf32> to vector<4x32xf32>
    %805 = math.tanh %804 : vector<4x32xf32>
    %806 = vector.extract_strided_slice %764 {offsets = [0, 96], sizes = [4, 32], strides = [1, 1]} : vector<4x128xf32> to vector<4x32xf32>
    %807 = arith.negf %806 : vector<4x32xf32>
    %808 = math.exp %807 : vector<4x32xf32>
    %cst_371 = arith.constant 1.000000e+00 : f32
    %809 = vector.broadcast %cst_371 : f32 to vector<4x32xf32>
    %810 = arith.addf %809, %808 : vector<4x32xf32>
    %811 = arith.divf %809, %810 : vector<4x32xf32>
    %812 = arith.mulf %803, %791 : vector<4x32xf32>
    %813 = arith.mulf %797, %805 : vector<4x32xf32>
    %814 = arith.addf %812, %813 : vector<4x32xf32>
    %815 = math.tanh %814 : vector<4x32xf32>
    %816 = arith.mulf %811, %815 : vector<4x32xf32>
    %817 = vector.broadcast %c7_i32_350 : i32 to vector<4x1xi32>
    %818 = arith.cmpi slt, %817, %12 : vector<4x1xi32>
    %819 = vector.broadcast %750 : i32 to vector<4x1xi32>
    %820 = arith.cmpi slt, %819, %12 : vector<4x1xi32>
    %c0_372 = arith.constant 0 : index
    %c0_373 = arith.constant 0 : index
    %821 = vector.load %arg6[%c0_372, %c0_373] : memref<4x32xf32, #tpu.memory_space<vmem>>, vector<4x32xf32>
    %822 = vector.shape_cast %818 : vector<4x1xi1> to vector<4x1xi1>
    %823 = vector.broadcast %822 : vector<4x1xi1> to vector<4x32xi1>
    %824 = arith.select %823, %788, %821 : vector<4x32xi1>, vector<4x32xf32>
    %c0_374 = arith.constant 0 : index
    %c0_375 = arith.constant 0 : index
    %825 = vector.load %arg6[%c0_374, %c0_375] : memref<4x32xf32, #tpu.memory_space<vmem>>, vector<4x32xf32>
    tpu.vector_store %arg6[%c0_374, %c0_375], %824 {strides = array<i32>} : memref<4x32xf32, #tpu.memory_space<vmem>>, vector<4x32xf32>,
    %c0_376 = arith.constant 0 : index
    %c0_377 = arith.constant 0 : index
    %826 = vector.load %arg5[%c0_376, %c0_377] : memref<4x32xf32, #tpu.memory_space<vmem>>, vector<4x32xf32>
    %827 = vector.shape_cast %818 : vector<4x1xi1> to vector<4x1xi1>
    %828 = vector.broadcast %827 : vector<4x1xi1> to vector<4x32xi1>
    %829 = arith.select %828, %790, %826 : vector<4x32xi1>, vector<4x32xf32>
    %c0_378 = arith.constant 0 : index
    %c0_379 = arith.constant 0 : index
    %830 = vector.load %arg5[%c0_378, %c0_379] : memref<4x32xf32, #tpu.memory_space<vmem>>, vector<4x32xf32>
    tpu.vector_store %arg5[%c0_378, %c0_379], %829 {strides = array<i32>} : memref<4x32xf32, #tpu.memory_space<vmem>>, vector<4x32xf32>,
    %c0_380 = arith.constant 0 : index
    %c0_381 = arith.constant 0 : index
    %831 = vector.load %arg8[%c0_380, %c0_381] : memref<4x32xf32, #tpu.memory_space<vmem>>, vector<4x32xf32>
    %832 = vector.shape_cast %820 : vector<4x1xi1> to vector<4x1xi1>
    %833 = vector.broadcast %832 : vector<4x1xi1> to vector<4x32xi1>
    %834 = arith.select %833, %814, %831 : vector<4x32xi1>, vector<4x32xf32>
    %c0_382 = arith.constant 0 : index
    %c0_383 = arith.constant 0 : index
    %835 = vector.load %arg8[%c0_382, %c0_383] : memref<4x32xf32, #tpu.memory_space<vmem>>, vector<4x32xf32>
    tpu.vector_store %arg8[%c0_382, %c0_383], %834 {strides = array<i32>} : memref<4x32xf32, #tpu.memory_space<vmem>>, vector<4x32xf32>,
    %c0_384 = arith.constant 0 : index
    %c0_385 = arith.constant 0 : index
    %836 = vector.load %arg7[%c0_384, %c0_385] : memref<4x32xf32, #tpu.memory_space<vmem>>, vector<4x32xf32>
    %837 = vector.shape_cast %820 : vector<4x1xi1> to vector<4x1xi1>
    %838 = vector.broadcast %837 : vector<4x1xi1> to vector<4x32xi1>
    %839 = arith.select %838, %816, %836 : vector<4x32xi1>, vector<4x32xf32>
    %c0_386 = arith.constant 0 : index
    %c0_387 = arith.constant 0 : index
    %840 = vector.load %arg7[%c0_386, %c0_387] : memref<4x32xf32, #tpu.memory_space<vmem>>, vector<4x32xf32>
    tpu.vector_store %arg7[%c0_386, %c0_387], %839 {strides = array<i32>} : memref<4x32xf32, #tpu.memory_space<vmem>>, vector<4x32xf32>,
    %cst_388 = arith.constant 0.000000e+00 : f32
    %841 = vector.shape_cast %818 : vector<4x1xi1> to vector<4x1xi1>
    %842 = vector.broadcast %841 : vector<4x1xi1> to vector<4x32xi1>
    %843 = vector.broadcast %cst_388 : f32 to vector<4x32xf32>
    %844 = arith.select %842, %790, %843 : vector<4x32xi1>, vector<4x32xf32>
    %cst_389 = arith.constant 0.000000e+00 : f32
    %845 = vector.shape_cast %820 : vector<4x1xi1> to vector<4x1xi1>
    %846 = vector.broadcast %845 : vector<4x1xi1> to vector<4x32xi1>
    %847 = vector.broadcast %cst_389 : f32 to vector<4x32xf32>
    %848 = arith.select %846, %816, %847 : vector<4x32xi1>, vector<4x32xf32>
    %c0_390 = arith.constant 0 : index
    %c0_391 = arith.constant 0 : index
    %849 = vector.load %arg9[%c0_390, %c0_391] : memref<4x32xf32, #tpu.memory_space<vmem>>, vector<4x32xf32>
    %850 = arith.maximumf %849, %844 : vector<4x32xf32>
    %c0_392 = arith.constant 0 : index
    %c0_393 = arith.constant 0 : index
    %851 = vector.load %arg9[%c0_392, %c0_393] : memref<4x32xf32, #tpu.memory_space<vmem>>, vector<4x32xf32>
    tpu.vector_store %arg9[%c0_392, %c0_393], %850 {strides = array<i32>} : memref<4x32xf32, #tpu.memory_space<vmem>>, vector<4x32xf32>,
    %c0_394 = arith.constant 0 : index
    %c0_395 = arith.constant 0 : index
    %852 = vector.load %arg10[%c0_394, %c0_395] : memref<4x32xf32, #tpu.memory_space<vmem>>, vector<4x32xf32>
    %853 = arith.maximumf %852, %848 : vector<4x32xf32>
    %c0_396 = arith.constant 0 : index
    %c0_397 = arith.constant 0 : index
    %854 = vector.load %arg10[%c0_396, %c0_397] : memref<4x32xf32, #tpu.memory_space<vmem>>, vector<4x32xf32>
    tpu.vector_store %arg10[%c0_396, %c0_397], %853 {strides = array<i32>} : memref<4x32xf32, #tpu.memory_space<vmem>>, vector<4x32xf32>,
    %c8_i32 = arith.constant 8 : i32
    %c0_398 = arith.constant 0 : index
    %c0_399 = arith.constant 0 : index
    %855 = vector.load %arg9[%c0_398, %c0_399] : memref<4x32xf32, #tpu.memory_space<vmem>>, vector<4x32xf32>
    %c0_400 = arith.constant 0 : index
    %c0_401 = arith.constant 0 : index
    %856 = vector.load %arg4[%c0_400, %c0_401] : memref<4x64xf32, #tpu.memory_space<vmem>>, vector<4x32xf32>
    tpu.vector_store %arg4[%c0_400, %c0_401], %855 {strides = array<i32>} : memref<4x64xf32, #tpu.memory_space<vmem>>, vector<4x32xf32>,
    %c0_402 = arith.constant 0 : index
    %c0_403 = arith.constant 0 : index
    %857 = vector.load %arg10[%c0_402, %c0_403] : memref<4x32xf32, #tpu.memory_space<vmem>>, vector<4x32xf32>
    %c0_404 = arith.constant 0 : index
    %c32 = arith.constant 32 : index
    %858 = vector.load %arg4[%c0_404, %c32] : memref<4x64xf32, #tpu.memory_space<vmem>>, vector<4x32xf32>
    tpu.vector_store %arg4[%c0_404, %c32], %857 {strides = array<i32>} : memref<4x64xf32, #tpu.memory_space<vmem>>, vector<4x32xf32>,
    return
  }
}

module attributes {stable_mosaic.version = 11 : i64} {
  func.func @_bilstm_layer_kernel(%arg0: memref<8x4x256xf32, #tpu.memory_space<vmem>>, %arg1: memref<4x1xi32, #tpu.memory_space<vmem>>, %arg2: memref<32x128xf32, #tpu.memory_space<vmem>>, %arg3: memref<32x128xf32, #tpu.memory_space<vmem>>, %arg4: memref<8x4x64xf32, #tpu.memory_space<vmem>>, %arg5: memref<4x32xf32, #tpu.memory_space<vmem>>, %arg6: memref<4x32xf32, #tpu.memory_space<vmem>>, %arg7: memref<4x32xf32, #tpu.memory_space<vmem>>, %arg8: memref<4x32xf32, #tpu.memory_space<vmem>>, %arg9: memref<4x32xf32, #tpu.memory_space<vmem>>, %arg10: memref<4x32xf32, #tpu.memory_space<vmem>>) attributes {dimension_semantics = [], scalar_prefetch = 0 : i64, scratch_operands = 6 : i64, tpu.core_type = #tpu.core_type<tc>} {
    %cst = arith.constant 0.000000e+00 : f32
    %0 = vector.broadcast %cst : f32 to vector<4x32xf32>
    %c0 = arith.constant 0 : index
    %c0_0 = arith.constant 0 : index
    %1 = vector.load %arg5[%c0, %c0_0] : memref<4x32xf32, #tpu.memory_space<vmem>>, vector<4x32xf32>
    tpu.vector_store %arg5[%c0, %c0_0], %0 {strides = array<i32>} : memref<4x32xf32, #tpu.memory_space<vmem>>, vector<4x32xf32>,
    %cst_1 = arith.constant 0.000000e+00 : f32
    %2 = vector.broadcast %cst_1 : f32 to vector<4x32xf32>
    %c0_2 = arith.constant 0 : index
    %c0_3 = arith.constant 0 : index
    %3 = vector.load %arg6[%c0_2, %c0_3] : memref<4x32xf32, #tpu.memory_space<vmem>>, vector<4x32xf32>
    tpu.vector_store %arg6[%c0_2, %c0_3], %2 {strides = array<i32>} : memref<4x32xf32, #tpu.memory_space<vmem>>, vector<4x32xf32>,
    %cst_4 = arith.constant 0.000000e+00 : f32
    %4 = vector.broadcast %cst_4 : f32 to vector<4x32xf32>
    %c0_5 = arith.constant 0 : index
    %c0_6 = arith.constant 0 : index
    %5 = vector.load %arg7[%c0_5, %c0_6] : memref<4x32xf32, #tpu.memory_space<vmem>>, vector<4x32xf32>
    tpu.vector_store %arg7[%c0_5, %c0_6], %4 {strides = array<i32>} : memref<4x32xf32, #tpu.memory_space<vmem>>, vector<4x32xf32>,
    %cst_7 = arith.constant 0.000000e+00 : f32
    %6 = vector.broadcast %cst_7 : f32 to vector<4x32xf32>
    %c0_8 = arith.constant 0 : index
    %c0_9 = arith.constant 0 : index
    %7 = vector.load %arg8[%c0_8, %c0_9] : memref<4x32xf32, #tpu.memory_space<vmem>>, vector<4x32xf32>
    tpu.vector_store %arg8[%c0_8, %c0_9], %6 {strides = array<i32>} : memref<4x32xf32, #tpu.memory_space<vmem>>, vector<4x32xf32>,
    %c0_10 = arith.constant 0 : index
    %c0_11 = arith.constant 0 : index
    %8 = vector.load %arg1[%c0_10, %c0_11] : memref<4x1xi32, #tpu.memory_space<vmem>>, vector<4x1xi32>
    %c0_12 = arith.constant 0 : index
    %c0_13 = arith.constant 0 : index
    %9 = vector.load %arg2[%c0_12, %c0_13] : memref<32x128xf32, #tpu.memory_space<vmem>>, vector<32x128xf32>
    %c0_14 = arith.constant 0 : index
    %c0_15 = arith.constant 0 : index
    %10 = vector.load %arg3[%c0_14, %c0_15] : memref<32x128xf32, #tpu.memory_space<vmem>>, vector<32x128xf32>
    %c0_i32 = arith.constant 0 : i32
    %c7_i32 = arith.constant 7 : i32
    %11 = arith.subi %c7_i32, %c0_i32 : i32
    %12 = arith.index_cast %c0_i32 : i32 to index
    %c0_16 = arith.constant 0 : index
    %c0_17 = arith.constant 0 : index
    %13 = vector.load %arg0[%12, %c0_16, %c0_17] : memref<8x4x256xf32, #tpu.memory_space<vmem>>, vector<1x4x256xf32>
    %14 = vector.shape_cast %13 : vector<1x4x256xf32> to vector<4x256xf32>
    %15 = arith.index_cast %11 : i32 to index
    %c0_18 = arith.constant 0 : index
    %c0_19 = arith.constant 0 : index
    %16 = vector.load %arg0[%15, %c0_18, %c0_19] : memref<8x4x256xf32, #tpu.memory_space<vmem>>, vector<1x4x256xf32>
    %17 = vector.shape_cast %16 : vector<1x4x256xf32> to vector<4x256xf32>
    %18 = vector.extract_strided_slice %14 {offsets = [0, 0], sizes = [4, 128], strides = [1, 1]} : vector<4x256xf32> to vector<4x128xf32>
    %c0_20 = arith.constant 0 : index
    %c0_21 = arith.constant 0 : index
    %19 = vector.load %arg5[%c0_20, %c0_21] : memref<4x32xf32, #tpu.memory_space<vmem>>, vector<4x32xf32>
    %cst_22 = arith.constant dense<0.000000e+00> : vector<4x128xf32>
    %20 = tpu.matmul %19, %9, %cst_22 {dimension_numbers = #tpu.dot_dimension_numbers<[1], [0], [0], [1], [0, 0, 1, 1], [], []>} : vector<4x32xf32>, vector<32x128xf32>, vector<4x128xf32> -> vector<4x128xf32>
    %21 = arith.addf %18, %20 : vector<4x128xf32>
    %22 = vector.extract_strided_slice %17 {offsets = [0, 128], sizes = [4, 128], strides = [1, 1]} : vector<4x256xf32> to vector<4x128xf32>
    %c0_23 = arith.constant 0 : index
    %c0_24 = arith.constant 0 : index
    %23 = vector.load %arg7[%c0_23, %c0_24] : memref<4x32xf32, #tpu.memory_space<vmem>>, vector<4x32xf32>
    %cst_25 = arith.constant dense<0.000000e+00> : vector<4x128xf32>
    %24 = tpu.matmul %23, %10, %cst_25 {dimension_numbers = #tpu.dot_dimension_numbers<[1], [0], [0], [1], [0, 0, 1, 1], [], []>} : vector<4x32xf32>, vector<32x128xf32>, vector<4x128xf32> -> vector<4x128xf32>
    %25 = arith.addf %22, %24 : vector<4x128xf32>
    %c0_26 = arith.constant 0 : index
    %c0_27 = arith.constant 0 : index
    %26 = vector.load %arg6[%c0_26, %c0_27] : memref<4x32xf32, #tpu.memory_space<vmem>>, vector<4x32xf32>
    %27 = vector.extract_strided_slice %21 {offsets = [0, 0], sizes = [4, 32], strides = [1, 1]} : vector<4x128xf32> to vector<4x32xf32>
    %28 = arith.negf %27 : vector<4x32xf32>
    %29 = math.exp %28 : vector<4x32xf32>
    %cst_28 = arith.constant 1.000000e+00 : f32
    %30 = vector.broadcast %cst_28 : f32 to vector<4x32xf32>
    %31 = arith.addf %30, %29 : vector<4x32xf32>
    %32 = arith.divf %30, %31 : vector<4x32xf32>
    %33 = vector.extract_strided_slice %21 {offsets = [0, 32], sizes = [4, 32], strides = [1, 1]} : vector<4x128xf32> to vector<4x32xf32>
    %34 = arith.negf %33 : vector<4x32xf32>
    %35 = math.exp %34 : vector<4x32xf32>
    %cst_29 = arith.constant 1.000000e+00 : f32
    %36 = vector.broadcast %cst_29 : f32 to vector<4x32xf32>
    %37 = arith.addf %36, %35 : vector<4x32xf32>
    %38 = arith.divf %36, %37 : vector<4x32xf32>
    %39 = vector.extract_strided_slice %21 {offsets = [0, 64], sizes = [4, 32], strides = [1, 1]} : vector<4x128xf32> to vector<4x32xf32>
    %40 = math.tanh %39 : vector<4x32xf32>
    %41 = vector.extract_strided_slice %21 {offsets = [0, 96], sizes = [4, 32], strides = [1, 1]} : vector<4x128xf32> to vector<4x32xf32>
    %42 = arith.negf %41 : vector<4x32xf32>
    %43 = math.exp %42 : vector<4x32xf32>
    %cst_30 = arith.constant 1.000000e+00 : f32
    %44 = vector.broadcast %cst_30 : f32 to vector<4x32xf32>
    %45 = arith.addf %44, %43 : vector<4x32xf32>
    %46 = arith.divf %44, %45 : vector<4x32xf32>
    %47 = arith.mulf %38, %26 : vector<4x32xf32>
    %48 = arith.mulf %32, %40 : vector<4x32xf32>
    %49 = arith.addf %47, %48 : vector<4x32xf32>
    %50 = math.tanh %49 : vector<4x32xf32>
    %51 = arith.mulf %46, %50 : vector<4x32xf32>
    %c0_31 = arith.constant 0 : index
    %c0_32 = arith.constant 0 : index
    %52 = vector.load %arg8[%c0_31, %c0_32] : memref<4x32xf32, #tpu.memory_space<vmem>>, vector<4x32xf32>
    %53 = vector.extract_strided_slice %25 {offsets = [0, 0], sizes = [4, 32], strides = [1, 1]} : vector<4x128xf32> to vector<4x32xf32>
    %54 = arith.negf %53 : vector<4x32xf32>
    %55 = math.exp %54 : vector<4x32xf32>
    %cst_33 = arith.constant 1.000000e+00 : f32
    %56 = vector.broadcast %cst_33 : f32 to vector<4x32xf32>
    %57 = arith.addf %56, %55 : vector<4x32xf32>
    %58 = arith.divf %56, %57 : vector<4x32xf32>
    %59 = vector.extract_strided_slice %25 {offsets = [0, 32], sizes = [4, 32], strides = [1, 1]} : vector<4x128xf32> to vector<4x32xf32>
    %60 = arith.negf %59 : vector<4x32xf32>
    %61 = math.exp %60 : vector<4x32xf32>
    %cst_34 = arith.constant 1.000000e+00 : f32
    %62 = vector.broadcast %cst_34 : f32 to vector<4x32xf32>
    %63 = arith.addf %62, %61 : vector<4x32xf32>
    %64 = arith.divf %62, %63 : vector<4x32xf32>
    %65 = vector.extract_strided_slice %25 {offsets = [0, 64], sizes = [4, 32], strides = [1, 1]} : vector<4x128xf32> to vector<4x32xf32>
    %66 = math.tanh %65 : vector<4x32xf32>
    %67 = vector.extract_strided_slice %25 {offsets = [0, 96], sizes = [4, 32], strides = [1, 1]} : vector<4x128xf32> to vector<4x32xf32>
    %68 = arith.negf %67 : vector<4x32xf32>
    %69 = math.exp %68 : vector<4x32xf32>
    %cst_35 = arith.constant 1.000000e+00 : f32
    %70 = vector.broadcast %cst_35 : f32 to vector<4x32xf32>
    %71 = arith.addf %70, %69 : vector<4x32xf32>
    %72 = arith.divf %70, %71 : vector<4x32xf32>
    %73 = arith.mulf %64, %52 : vector<4x32xf32>
    %74 = arith.mulf %58, %66 : vector<4x32xf32>
    %75 = arith.addf %73, %74 : vector<4x32xf32>
    %76 = math.tanh %75 : vector<4x32xf32>
    %77 = arith.mulf %72, %76 : vector<4x32xf32>
    %78 = vector.broadcast %c0_i32 : i32 to vector<4x1xi32>
    %79 = arith.cmpi slt, %78, %8 : vector<4x1xi32>
    %80 = vector.broadcast %11 : i32 to vector<4x1xi32>
    %81 = arith.cmpi slt, %80, %8 : vector<4x1xi32>
    %c0_36 = arith.constant 0 : index
    %c0_37 = arith.constant 0 : index
    %82 = vector.load %arg6[%c0_36, %c0_37] : memref<4x32xf32, #tpu.memory_space<vmem>>, vector<4x32xf32>
    %83 = vector.shape_cast %79 : vector<4x1xi1> to vector<4x1xi1>
    %84 = vector.broadcast %83 : vector<4x1xi1> to vector<4x32xi1>
    %85 = arith.select %84, %49, %82 : vector<4x32xi1>, vector<4x32xf32>
    %c0_38 = arith.constant 0 : index
    %c0_39 = arith.constant 0 : index
    %86 = vector.load %arg6[%c0_38, %c0_39] : memref<4x32xf32, #tpu.memory_space<vmem>>, vector<4x32xf32>
    tpu.vector_store %arg6[%c0_38, %c0_39], %85 {strides = array<i32>} : memref<4x32xf32, #tpu.memory_space<vmem>>, vector<4x32xf32>,
    %c0_40 = arith.constant 0 : index
    %c0_41 = arith.constant 0 : index
    %87 = vector.load %arg5[%c0_40, %c0_41] : memref<4x32xf32, #tpu.memory_space<vmem>>, vector<4x32xf32>
    %88 = vector.shape_cast %79 : vector<4x1xi1> to vector<4x1xi1>
    %89 = vector.broadcast %88 : vector<4x1xi1> to vector<4x32xi1>
    %90 = arith.select %89, %51, %87 : vector<4x32xi1>, vector<4x32xf32>
    %c0_42 = arith.constant 0 : index
    %c0_43 = arith.constant 0 : index
    %91 = vector.load %arg5[%c0_42, %c0_43] : memref<4x32xf32, #tpu.memory_space<vmem>>, vector<4x32xf32>
    tpu.vector_store %arg5[%c0_42, %c0_43], %90 {strides = array<i32>} : memref<4x32xf32, #tpu.memory_space<vmem>>, vector<4x32xf32>,
    %c0_44 = arith.constant 0 : index
    %c0_45 = arith.constant 0 : index
    %92 = vector.load %arg8[%c0_44, %c0_45] : memref<4x32xf32, #tpu.memory_space<vmem>>, vector<4x32xf32>
    %93 = vector.shape_cast %81 : vector<4x1xi1> to vector<4x1xi1>
    %94 = vector.broadcast %93 : vector<4x1xi1> to vector<4x32xi1>
    %95 = arith.select %94, %75, %92 : vector<4x32xi1>, vector<4x32xf32>
    %c0_46 = arith.constant 0 : index
    %c0_47 = arith.constant 0 : index
    %96 = vector.load %arg8[%c0_46, %c0_47] : memref<4x32xf32, #tpu.memory_space<vmem>>, vector<4x32xf32>
    tpu.vector_store %arg8[%c0_46, %c0_47], %95 {strides = array<i32>} : memref<4x32xf32, #tpu.memory_space<vmem>>, vector<4x32xf32>,
    %c0_48 = arith.constant 0 : index
    %c0_49 = arith.constant 0 : index
    %97 = vector.load %arg7[%c0_48, %c0_49] : memref<4x32xf32, #tpu.memory_space<vmem>>, vector<4x32xf32>
    %98 = vector.shape_cast %81 : vector<4x1xi1> to vector<4x1xi1>
    %99 = vector.broadcast %98 : vector<4x1xi1> to vector<4x32xi1>
    %100 = arith.select %99, %77, %97 : vector<4x32xi1>, vector<4x32xf32>
    %c0_50 = arith.constant 0 : index
    %c0_51 = arith.constant 0 : index
    %101 = vector.load %arg7[%c0_50, %c0_51] : memref<4x32xf32, #tpu.memory_space<vmem>>, vector<4x32xf32>
    tpu.vector_store %arg7[%c0_50, %c0_51], %100 {strides = array<i32>} : memref<4x32xf32, #tpu.memory_space<vmem>>, vector<4x32xf32>,
    %cst_52 = arith.constant 0.000000e+00 : f32
    %102 = vector.shape_cast %79 : vector<4x1xi1> to vector<4x1xi1>
    %103 = vector.broadcast %102 : vector<4x1xi1> to vector<4x32xi1>
    %104 = vector.broadcast %cst_52 : f32 to vector<4x32xf32>
    %105 = arith.select %103, %51, %104 : vector<4x32xi1>, vector<4x32xf32>
    %cst_53 = arith.constant 0.000000e+00 : f32
    %106 = vector.shape_cast %81 : vector<4x1xi1> to vector<4x1xi1>
    %107 = vector.broadcast %106 : vector<4x1xi1> to vector<4x32xi1>
    %108 = vector.broadcast %cst_53 : f32 to vector<4x32xf32>
    %109 = arith.select %107, %77, %108 : vector<4x32xi1>, vector<4x32xf32>
    %110 = arith.index_cast %c0_i32 : i32 to index
    %c0_54 = arith.constant 0 : index
    %c0_55 = arith.constant 0 : index
    %111 = vector.load %arg4[%110, %c0_54, %c0_55] : memref<8x4x64xf32, #tpu.memory_space<vmem>>, vector<1x4x32xf32>
    %112 = vector.shape_cast %111 : vector<1x4x32xf32> to vector<4x32xf32>
    %113 = vector.shape_cast %105 : vector<4x32xf32> to vector<1x4x32xf32>
    tpu.vector_store %arg4[%110, %c0_54, %c0_55], %113 {strides = array<i32>} : memref<8x4x64xf32, #tpu.memory_space<vmem>>, vector<1x4x32xf32>,
    %114 = arith.index_cast %11 : i32 to index
    %c0_56 = arith.constant 0 : index
    %c32 = arith.constant 32 : index
    %115 = vector.load %arg4[%114, %c0_56, %c32] : memref<8x4x64xf32, #tpu.memory_space<vmem>>, vector<1x4x32xf32>
    %116 = vector.shape_cast %115 : vector<1x4x32xf32> to vector<4x32xf32>
    %117 = vector.shape_cast %109 : vector<4x32xf32> to vector<1x4x32xf32>
    tpu.vector_store %arg4[%114, %c0_56, %c32], %117 {strides = array<i32>} : memref<8x4x64xf32, #tpu.memory_space<vmem>>, vector<1x4x32xf32>,
    %c1_i32 = arith.constant 1 : i32
    %c7_i32_57 = arith.constant 7 : i32
    %118 = arith.subi %c7_i32_57, %c1_i32 : i32
    %119 = arith.index_cast %c1_i32 : i32 to index
    %c0_58 = arith.constant 0 : index
    %c0_59 = arith.constant 0 : index
    %120 = vector.load %arg0[%119, %c0_58, %c0_59] : memref<8x4x256xf32, #tpu.memory_space<vmem>>, vector<1x4x256xf32>
    %121 = vector.shape_cast %120 : vector<1x4x256xf32> to vector<4x256xf32>
    %122 = arith.index_cast %118 : i32 to index
    %c0_60 = arith.constant 0 : index
    %c0_61 = arith.constant 0 : index
    %123 = vector.load %arg0[%122, %c0_60, %c0_61] : memref<8x4x256xf32, #tpu.memory_space<vmem>>, vector<1x4x256xf32>
    %124 = vector.shape_cast %123 : vector<1x4x256xf32> to vector<4x256xf32>
    %125 = vector.extract_strided_slice %121 {offsets = [0, 0], sizes = [4, 128], strides = [1, 1]} : vector<4x256xf32> to vector<4x128xf32>
    %c0_62 = arith.constant 0 : index
    %c0_63 = arith.constant 0 : index
    %126 = vector.load %arg5[%c0_62, %c0_63] : memref<4x32xf32, #tpu.memory_space<vmem>>, vector<4x32xf32>
    %cst_64 = arith.constant dense<0.000000e+00> : vector<4x128xf32>
    %127 = tpu.matmul %126, %9, %cst_64 {dimension_numbers = #tpu.dot_dimension_numbers<[1], [0], [0], [1], [0, 0, 1, 1], [], []>} : vector<4x32xf32>, vector<32x128xf32>, vector<4x128xf32> -> vector<4x128xf32>
    %128 = arith.addf %125, %127 : vector<4x128xf32>
    %129 = vector.extract_strided_slice %124 {offsets = [0, 128], sizes = [4, 128], strides = [1, 1]} : vector<4x256xf32> to vector<4x128xf32>
    %c0_65 = arith.constant 0 : index
    %c0_66 = arith.constant 0 : index
    %130 = vector.load %arg7[%c0_65, %c0_66] : memref<4x32xf32, #tpu.memory_space<vmem>>, vector<4x32xf32>
    %cst_67 = arith.constant dense<0.000000e+00> : vector<4x128xf32>
    %131 = tpu.matmul %130, %10, %cst_67 {dimension_numbers = #tpu.dot_dimension_numbers<[1], [0], [0], [1], [0, 0, 1, 1], [], []>} : vector<4x32xf32>, vector<32x128xf32>, vector<4x128xf32> -> vector<4x128xf32>
    %132 = arith.addf %129, %131 : vector<4x128xf32>
    %c0_68 = arith.constant 0 : index
    %c0_69 = arith.constant 0 : index
    %133 = vector.load %arg6[%c0_68, %c0_69] : memref<4x32xf32, #tpu.memory_space<vmem>>, vector<4x32xf32>
    %134 = vector.extract_strided_slice %128 {offsets = [0, 0], sizes = [4, 32], strides = [1, 1]} : vector<4x128xf32> to vector<4x32xf32>
    %135 = arith.negf %134 : vector<4x32xf32>
    %136 = math.exp %135 : vector<4x32xf32>
    %cst_70 = arith.constant 1.000000e+00 : f32
    %137 = vector.broadcast %cst_70 : f32 to vector<4x32xf32>
    %138 = arith.addf %137, %136 : vector<4x32xf32>
    %139 = arith.divf %137, %138 : vector<4x32xf32>
    %140 = vector.extract_strided_slice %128 {offsets = [0, 32], sizes = [4, 32], strides = [1, 1]} : vector<4x128xf32> to vector<4x32xf32>
    %141 = arith.negf %140 : vector<4x32xf32>
    %142 = math.exp %141 : vector<4x32xf32>
    %cst_71 = arith.constant 1.000000e+00 : f32
    %143 = vector.broadcast %cst_71 : f32 to vector<4x32xf32>
    %144 = arith.addf %143, %142 : vector<4x32xf32>
    %145 = arith.divf %143, %144 : vector<4x32xf32>
    %146 = vector.extract_strided_slice %128 {offsets = [0, 64], sizes = [4, 32], strides = [1, 1]} : vector<4x128xf32> to vector<4x32xf32>
    %147 = math.tanh %146 : vector<4x32xf32>
    %148 = vector.extract_strided_slice %128 {offsets = [0, 96], sizes = [4, 32], strides = [1, 1]} : vector<4x128xf32> to vector<4x32xf32>
    %149 = arith.negf %148 : vector<4x32xf32>
    %150 = math.exp %149 : vector<4x32xf32>
    %cst_72 = arith.constant 1.000000e+00 : f32
    %151 = vector.broadcast %cst_72 : f32 to vector<4x32xf32>
    %152 = arith.addf %151, %150 : vector<4x32xf32>
    %153 = arith.divf %151, %152 : vector<4x32xf32>
    %154 = arith.mulf %145, %133 : vector<4x32xf32>
    %155 = arith.mulf %139, %147 : vector<4x32xf32>
    %156 = arith.addf %154, %155 : vector<4x32xf32>
    %157 = math.tanh %156 : vector<4x32xf32>
    %158 = arith.mulf %153, %157 : vector<4x32xf32>
    %c0_73 = arith.constant 0 : index
    %c0_74 = arith.constant 0 : index
    %159 = vector.load %arg8[%c0_73, %c0_74] : memref<4x32xf32, #tpu.memory_space<vmem>>, vector<4x32xf32>
    %160 = vector.extract_strided_slice %132 {offsets = [0, 0], sizes = [4, 32], strides = [1, 1]} : vector<4x128xf32> to vector<4x32xf32>
    %161 = arith.negf %160 : vector<4x32xf32>
    %162 = math.exp %161 : vector<4x32xf32>
    %cst_75 = arith.constant 1.000000e+00 : f32
    %163 = vector.broadcast %cst_75 : f32 to vector<4x32xf32>
    %164 = arith.addf %163, %162 : vector<4x32xf32>
    %165 = arith.divf %163, %164 : vector<4x32xf32>
    %166 = vector.extract_strided_slice %132 {offsets = [0, 32], sizes = [4, 32], strides = [1, 1]} : vector<4x128xf32> to vector<4x32xf32>
    %167 = arith.negf %166 : vector<4x32xf32>
    %168 = math.exp %167 : vector<4x32xf32>
    %cst_76 = arith.constant 1.000000e+00 : f32
    %169 = vector.broadcast %cst_76 : f32 to vector<4x32xf32>
    %170 = arith.addf %169, %168 : vector<4x32xf32>
    %171 = arith.divf %169, %170 : vector<4x32xf32>
    %172 = vector.extract_strided_slice %132 {offsets = [0, 64], sizes = [4, 32], strides = [1, 1]} : vector<4x128xf32> to vector<4x32xf32>
    %173 = math.tanh %172 : vector<4x32xf32>
    %174 = vector.extract_strided_slice %132 {offsets = [0, 96], sizes = [4, 32], strides = [1, 1]} : vector<4x128xf32> to vector<4x32xf32>
    %175 = arith.negf %174 : vector<4x32xf32>
    %176 = math.exp %175 : vector<4x32xf32>
    %cst_77 = arith.constant 1.000000e+00 : f32
    %177 = vector.broadcast %cst_77 : f32 to vector<4x32xf32>
    %178 = arith.addf %177, %176 : vector<4x32xf32>
    %179 = arith.divf %177, %178 : vector<4x32xf32>
    %180 = arith.mulf %171, %159 : vector<4x32xf32>
    %181 = arith.mulf %165, %173 : vector<4x32xf32>
    %182 = arith.addf %180, %181 : vector<4x32xf32>
    %183 = math.tanh %182 : vector<4x32xf32>
    %184 = arith.mulf %179, %183 : vector<4x32xf32>
    %185 = vector.broadcast %c1_i32 : i32 to vector<4x1xi32>
    %186 = arith.cmpi slt, %185, %8 : vector<4x1xi32>
    %187 = vector.broadcast %118 : i32 to vector<4x1xi32>
    %188 = arith.cmpi slt, %187, %8 : vector<4x1xi32>
    %c0_78 = arith.constant 0 : index
    %c0_79 = arith.constant 0 : index
    %189 = vector.load %arg6[%c0_78, %c0_79] : memref<4x32xf32, #tpu.memory_space<vmem>>, vector<4x32xf32>
    %190 = vector.shape_cast %186 : vector<4x1xi1> to vector<4x1xi1>
    %191 = vector.broadcast %190 : vector<4x1xi1> to vector<4x32xi1>
    %192 = arith.select %191, %156, %189 : vector<4x32xi1>, vector<4x32xf32>
    %c0_80 = arith.constant 0 : index
    %c0_81 = arith.constant 0 : index
    %193 = vector.load %arg6[%c0_80, %c0_81] : memref<4x32xf32, #tpu.memory_space<vmem>>, vector<4x32xf32>
    tpu.vector_store %arg6[%c0_80, %c0_81], %192 {strides = array<i32>} : memref<4x32xf32, #tpu.memory_space<vmem>>, vector<4x32xf32>,
    %c0_82 = arith.constant 0 : index
    %c0_83 = arith.constant 0 : index
    %194 = vector.load %arg5[%c0_82, %c0_83] : memref<4x32xf32, #tpu.memory_space<vmem>>, vector<4x32xf32>
    %195 = vector.shape_cast %186 : vector<4x1xi1> to vector<4x1xi1>
    %196 = vector.broadcast %195 : vector<4x1xi1> to vector<4x32xi1>
    %197 = arith.select %196, %158, %194 : vector<4x32xi1>, vector<4x32xf32>
    %c0_84 = arith.constant 0 : index
    %c0_85 = arith.constant 0 : index
    %198 = vector.load %arg5[%c0_84, %c0_85] : memref<4x32xf32, #tpu.memory_space<vmem>>, vector<4x32xf32>
    tpu.vector_store %arg5[%c0_84, %c0_85], %197 {strides = array<i32>} : memref<4x32xf32, #tpu.memory_space<vmem>>, vector<4x32xf32>,
    %c0_86 = arith.constant 0 : index
    %c0_87 = arith.constant 0 : index
    %199 = vector.load %arg8[%c0_86, %c0_87] : memref<4x32xf32, #tpu.memory_space<vmem>>, vector<4x32xf32>
    %200 = vector.shape_cast %188 : vector<4x1xi1> to vector<4x1xi1>
    %201 = vector.broadcast %200 : vector<4x1xi1> to vector<4x32xi1>
    %202 = arith.select %201, %182, %199 : vector<4x32xi1>, vector<4x32xf32>
    %c0_88 = arith.constant 0 : index
    %c0_89 = arith.constant 0 : index
    %203 = vector.load %arg8[%c0_88, %c0_89] : memref<4x32xf32, #tpu.memory_space<vmem>>, vector<4x32xf32>
    tpu.vector_store %arg8[%c0_88, %c0_89], %202 {strides = array<i32>} : memref<4x32xf32, #tpu.memory_space<vmem>>, vector<4x32xf32>,
    %c0_90 = arith.constant 0 : index
    %c0_91 = arith.constant 0 : index
    %204 = vector.load %arg7[%c0_90, %c0_91] : memref<4x32xf32, #tpu.memory_space<vmem>>, vector<4x32xf32>
    %205 = vector.shape_cast %188 : vector<4x1xi1> to vector<4x1xi1>
    %206 = vector.broadcast %205 : vector<4x1xi1> to vector<4x32xi1>
    %207 = arith.select %206, %184, %204 : vector<4x32xi1>, vector<4x32xf32>
    %c0_92 = arith.constant 0 : index
    %c0_93 = arith.constant 0 : index
    %208 = vector.load %arg7[%c0_92, %c0_93] : memref<4x32xf32, #tpu.memory_space<vmem>>, vector<4x32xf32>
    tpu.vector_store %arg7[%c0_92, %c0_93], %207 {strides = array<i32>} : memref<4x32xf32, #tpu.memory_space<vmem>>, vector<4x32xf32>,
    %cst_94 = arith.constant 0.000000e+00 : f32
    %209 = vector.shape_cast %186 : vector<4x1xi1> to vector<4x1xi1>
    %210 = vector.broadcast %209 : vector<4x1xi1> to vector<4x32xi1>
    %211 = vector.broadcast %cst_94 : f32 to vector<4x32xf32>
    %212 = arith.select %210, %158, %211 : vector<4x32xi1>, vector<4x32xf32>
    %cst_95 = arith.constant 0.000000e+00 : f32
    %213 = vector.shape_cast %188 : vector<4x1xi1> to vector<4x1xi1>
    %214 = vector.broadcast %213 : vector<4x1xi1> to vector<4x32xi1>
    %215 = vector.broadcast %cst_95 : f32 to vector<4x32xf32>
    %216 = arith.select %214, %184, %215 : vector<4x32xi1>, vector<4x32xf32>
    %217 = arith.index_cast %c1_i32 : i32 to index
    %c0_96 = arith.constant 0 : index
    %c0_97 = arith.constant 0 : index
    %218 = vector.load %arg4[%217, %c0_96, %c0_97] : memref<8x4x64xf32, #tpu.memory_space<vmem>>, vector<1x4x32xf32>
    %219 = vector.shape_cast %218 : vector<1x4x32xf32> to vector<4x32xf32>
    %220 = vector.shape_cast %212 : vector<4x32xf32> to vector<1x4x32xf32>
    tpu.vector_store %arg4[%217, %c0_96, %c0_97], %220 {strides = array<i32>} : memref<8x4x64xf32, #tpu.memory_space<vmem>>, vector<1x4x32xf32>,
    %221 = arith.index_cast %118 : i32 to index
    %c0_98 = arith.constant 0 : index
    %c32_99 = arith.constant 32 : index
    %222 = vector.load %arg4[%221, %c0_98, %c32_99] : memref<8x4x64xf32, #tpu.memory_space<vmem>>, vector<1x4x32xf32>
    %223 = vector.shape_cast %222 : vector<1x4x32xf32> to vector<4x32xf32>
    %224 = vector.shape_cast %216 : vector<4x32xf32> to vector<1x4x32xf32>
    tpu.vector_store %arg4[%221, %c0_98, %c32_99], %224 {strides = array<i32>} : memref<8x4x64xf32, #tpu.memory_space<vmem>>, vector<1x4x32xf32>,
    %c2_i32 = arith.constant 2 : i32
    %c7_i32_100 = arith.constant 7 : i32
    %225 = arith.subi %c7_i32_100, %c2_i32 : i32
    %226 = arith.index_cast %c2_i32 : i32 to index
    %c0_101 = arith.constant 0 : index
    %c0_102 = arith.constant 0 : index
    %227 = vector.load %arg0[%226, %c0_101, %c0_102] : memref<8x4x256xf32, #tpu.memory_space<vmem>>, vector<1x4x256xf32>
    %228 = vector.shape_cast %227 : vector<1x4x256xf32> to vector<4x256xf32>
    %229 = arith.index_cast %225 : i32 to index
    %c0_103 = arith.constant 0 : index
    %c0_104 = arith.constant 0 : index
    %230 = vector.load %arg0[%229, %c0_103, %c0_104] : memref<8x4x256xf32, #tpu.memory_space<vmem>>, vector<1x4x256xf32>
    %231 = vector.shape_cast %230 : vector<1x4x256xf32> to vector<4x256xf32>
    %232 = vector.extract_strided_slice %228 {offsets = [0, 0], sizes = [4, 128], strides = [1, 1]} : vector<4x256xf32> to vector<4x128xf32>
    %c0_105 = arith.constant 0 : index
    %c0_106 = arith.constant 0 : index
    %233 = vector.load %arg5[%c0_105, %c0_106] : memref<4x32xf32, #tpu.memory_space<vmem>>, vector<4x32xf32>
    %cst_107 = arith.constant dense<0.000000e+00> : vector<4x128xf32>
    %234 = tpu.matmul %233, %9, %cst_107 {dimension_numbers = #tpu.dot_dimension_numbers<[1], [0], [0], [1], [0, 0, 1, 1], [], []>} : vector<4x32xf32>, vector<32x128xf32>, vector<4x128xf32> -> vector<4x128xf32>
    %235 = arith.addf %232, %234 : vector<4x128xf32>
    %236 = vector.extract_strided_slice %231 {offsets = [0, 128], sizes = [4, 128], strides = [1, 1]} : vector<4x256xf32> to vector<4x128xf32>
    %c0_108 = arith.constant 0 : index
    %c0_109 = arith.constant 0 : index
    %237 = vector.load %arg7[%c0_108, %c0_109] : memref<4x32xf32, #tpu.memory_space<vmem>>, vector<4x32xf32>
    %cst_110 = arith.constant dense<0.000000e+00> : vector<4x128xf32>
    %238 = tpu.matmul %237, %10, %cst_110 {dimension_numbers = #tpu.dot_dimension_numbers<[1], [0], [0], [1], [0, 0, 1, 1], [], []>} : vector<4x32xf32>, vector<32x128xf32>, vector<4x128xf32> -> vector<4x128xf32>
    %239 = arith.addf %236, %238 : vector<4x128xf32>
    %c0_111 = arith.constant 0 : index
    %c0_112 = arith.constant 0 : index
    %240 = vector.load %arg6[%c0_111, %c0_112] : memref<4x32xf32, #tpu.memory_space<vmem>>, vector<4x32xf32>
    %241 = vector.extract_strided_slice %235 {offsets = [0, 0], sizes = [4, 32], strides = [1, 1]} : vector<4x128xf32> to vector<4x32xf32>
    %242 = arith.negf %241 : vector<4x32xf32>
    %243 = math.exp %242 : vector<4x32xf32>
    %cst_113 = arith.constant 1.000000e+00 : f32
    %244 = vector.broadcast %cst_113 : f32 to vector<4x32xf32>
    %245 = arith.addf %244, %243 : vector<4x32xf32>
    %246 = arith.divf %244, %245 : vector<4x32xf32>
    %247 = vector.extract_strided_slice %235 {offsets = [0, 32], sizes = [4, 32], strides = [1, 1]} : vector<4x128xf32> to vector<4x32xf32>
    %248 = arith.negf %247 : vector<4x32xf32>
    %249 = math.exp %248 : vector<4x32xf32>
    %cst_114 = arith.constant 1.000000e+00 : f32
    %250 = vector.broadcast %cst_114 : f32 to vector<4x32xf32>
    %251 = arith.addf %250, %249 : vector<4x32xf32>
    %252 = arith.divf %250, %251 : vector<4x32xf32>
    %253 = vector.extract_strided_slice %235 {offsets = [0, 64], sizes = [4, 32], strides = [1, 1]} : vector<4x128xf32> to vector<4x32xf32>
    %254 = math.tanh %253 : vector<4x32xf32>
    %255 = vector.extract_strided_slice %235 {offsets = [0, 96], sizes = [4, 32], strides = [1, 1]} : vector<4x128xf32> to vector<4x32xf32>
    %256 = arith.negf %255 : vector<4x32xf32>
    %257 = math.exp %256 : vector<4x32xf32>
    %cst_115 = arith.constant 1.000000e+00 : f32
    %258 = vector.broadcast %cst_115 : f32 to vector<4x32xf32>
    %259 = arith.addf %258, %257 : vector<4x32xf32>
    %260 = arith.divf %258, %259 : vector<4x32xf32>
    %261 = arith.mulf %252, %240 : vector<4x32xf32>
    %262 = arith.mulf %246, %254 : vector<4x32xf32>
    %263 = arith.addf %261, %262 : vector<4x32xf32>
    %264 = math.tanh %263 : vector<4x32xf32>
    %265 = arith.mulf %260, %264 : vector<4x32xf32>
    %c0_116 = arith.constant 0 : index
    %c0_117 = arith.constant 0 : index
    %266 = vector.load %arg8[%c0_116, %c0_117] : memref<4x32xf32, #tpu.memory_space<vmem>>, vector<4x32xf32>
    %267 = vector.extract_strided_slice %239 {offsets = [0, 0], sizes = [4, 32], strides = [1, 1]} : vector<4x128xf32> to vector<4x32xf32>
    %268 = arith.negf %267 : vector<4x32xf32>
    %269 = math.exp %268 : vector<4x32xf32>
    %cst_118 = arith.constant 1.000000e+00 : f32
    %270 = vector.broadcast %cst_118 : f32 to vector<4x32xf32>
    %271 = arith.addf %270, %269 : vector<4x32xf32>
    %272 = arith.divf %270, %271 : vector<4x32xf32>
    %273 = vector.extract_strided_slice %239 {offsets = [0, 32], sizes = [4, 32], strides = [1, 1]} : vector<4x128xf32> to vector<4x32xf32>
    %274 = arith.negf %273 : vector<4x32xf32>
    %275 = math.exp %274 : vector<4x32xf32>
    %cst_119 = arith.constant 1.000000e+00 : f32
    %276 = vector.broadcast %cst_119 : f32 to vector<4x32xf32>
    %277 = arith.addf %276, %275 : vector<4x32xf32>
    %278 = arith.divf %276, %277 : vector<4x32xf32>
    %279 = vector.extract_strided_slice %239 {offsets = [0, 64], sizes = [4, 32], strides = [1, 1]} : vector<4x128xf32> to vector<4x32xf32>
    %280 = math.tanh %279 : vector<4x32xf32>
    %281 = vector.extract_strided_slice %239 {offsets = [0, 96], sizes = [4, 32], strides = [1, 1]} : vector<4x128xf32> to vector<4x32xf32>
    %282 = arith.negf %281 : vector<4x32xf32>
    %283 = math.exp %282 : vector<4x32xf32>
    %cst_120 = arith.constant 1.000000e+00 : f32
    %284 = vector.broadcast %cst_120 : f32 to vector<4x32xf32>
    %285 = arith.addf %284, %283 : vector<4x32xf32>
    %286 = arith.divf %284, %285 : vector<4x32xf32>
    %287 = arith.mulf %278, %266 : vector<4x32xf32>
    %288 = arith.mulf %272, %280 : vector<4x32xf32>
    %289 = arith.addf %287, %288 : vector<4x32xf32>
    %290 = math.tanh %289 : vector<4x32xf32>
    %291 = arith.mulf %286, %290 : vector<4x32xf32>
    %292 = vector.broadcast %c2_i32 : i32 to vector<4x1xi32>
    %293 = arith.cmpi slt, %292, %8 : vector<4x1xi32>
    %294 = vector.broadcast %225 : i32 to vector<4x1xi32>
    %295 = arith.cmpi slt, %294, %8 : vector<4x1xi32>
    %c0_121 = arith.constant 0 : index
    %c0_122 = arith.constant 0 : index
    %296 = vector.load %arg6[%c0_121, %c0_122] : memref<4x32xf32, #tpu.memory_space<vmem>>, vector<4x32xf32>
    %297 = vector.shape_cast %293 : vector<4x1xi1> to vector<4x1xi1>
    %298 = vector.broadcast %297 : vector<4x1xi1> to vector<4x32xi1>
    %299 = arith.select %298, %263, %296 : vector<4x32xi1>, vector<4x32xf32>
    %c0_123 = arith.constant 0 : index
    %c0_124 = arith.constant 0 : index
    %300 = vector.load %arg6[%c0_123, %c0_124] : memref<4x32xf32, #tpu.memory_space<vmem>>, vector<4x32xf32>
    tpu.vector_store %arg6[%c0_123, %c0_124], %299 {strides = array<i32>} : memref<4x32xf32, #tpu.memory_space<vmem>>, vector<4x32xf32>,
    %c0_125 = arith.constant 0 : index
    %c0_126 = arith.constant 0 : index
    %301 = vector.load %arg5[%c0_125, %c0_126] : memref<4x32xf32, #tpu.memory_space<vmem>>, vector<4x32xf32>
    %302 = vector.shape_cast %293 : vector<4x1xi1> to vector<4x1xi1>
    %303 = vector.broadcast %302 : vector<4x1xi1> to vector<4x32xi1>
    %304 = arith.select %303, %265, %301 : vector<4x32xi1>, vector<4x32xf32>
    %c0_127 = arith.constant 0 : index
    %c0_128 = arith.constant 0 : index
    %305 = vector.load %arg5[%c0_127, %c0_128] : memref<4x32xf32, #tpu.memory_space<vmem>>, vector<4x32xf32>
    tpu.vector_store %arg5[%c0_127, %c0_128], %304 {strides = array<i32>} : memref<4x32xf32, #tpu.memory_space<vmem>>, vector<4x32xf32>,
    %c0_129 = arith.constant 0 : index
    %c0_130 = arith.constant 0 : index
    %306 = vector.load %arg8[%c0_129, %c0_130] : memref<4x32xf32, #tpu.memory_space<vmem>>, vector<4x32xf32>
    %307 = vector.shape_cast %295 : vector<4x1xi1> to vector<4x1xi1>
    %308 = vector.broadcast %307 : vector<4x1xi1> to vector<4x32xi1>
    %309 = arith.select %308, %289, %306 : vector<4x32xi1>, vector<4x32xf32>
    %c0_131 = arith.constant 0 : index
    %c0_132 = arith.constant 0 : index
    %310 = vector.load %arg8[%c0_131, %c0_132] : memref<4x32xf32, #tpu.memory_space<vmem>>, vector<4x32xf32>
    tpu.vector_store %arg8[%c0_131, %c0_132], %309 {strides = array<i32>} : memref<4x32xf32, #tpu.memory_space<vmem>>, vector<4x32xf32>,
    %c0_133 = arith.constant 0 : index
    %c0_134 = arith.constant 0 : index
    %311 = vector.load %arg7[%c0_133, %c0_134] : memref<4x32xf32, #tpu.memory_space<vmem>>, vector<4x32xf32>
    %312 = vector.shape_cast %295 : vector<4x1xi1> to vector<4x1xi1>
    %313 = vector.broadcast %312 : vector<4x1xi1> to vector<4x32xi1>
    %314 = arith.select %313, %291, %311 : vector<4x32xi1>, vector<4x32xf32>
    %c0_135 = arith.constant 0 : index
    %c0_136 = arith.constant 0 : index
    %315 = vector.load %arg7[%c0_135, %c0_136] : memref<4x32xf32, #tpu.memory_space<vmem>>, vector<4x32xf32>
    tpu.vector_store %arg7[%c0_135, %c0_136], %314 {strides = array<i32>} : memref<4x32xf32, #tpu.memory_space<vmem>>, vector<4x32xf32>,
    %cst_137 = arith.constant 0.000000e+00 : f32
    %316 = vector.shape_cast %293 : vector<4x1xi1> to vector<4x1xi1>
    %317 = vector.broadcast %316 : vector<4x1xi1> to vector<4x32xi1>
    %318 = vector.broadcast %cst_137 : f32 to vector<4x32xf32>
    %319 = arith.select %317, %265, %318 : vector<4x32xi1>, vector<4x32xf32>
    %cst_138 = arith.constant 0.000000e+00 : f32
    %320 = vector.shape_cast %295 : vector<4x1xi1> to vector<4x1xi1>
    %321 = vector.broadcast %320 : vector<4x1xi1> to vector<4x32xi1>
    %322 = vector.broadcast %cst_138 : f32 to vector<4x32xf32>
    %323 = arith.select %321, %291, %322 : vector<4x32xi1>, vector<4x32xf32>
    %324 = arith.index_cast %c2_i32 : i32 to index
    %c0_139 = arith.constant 0 : index
    %c0_140 = arith.constant 0 : index
    %325 = vector.load %arg4[%324, %c0_139, %c0_140] : memref<8x4x64xf32, #tpu.memory_space<vmem>>, vector<1x4x32xf32>
    %326 = vector.shape_cast %325 : vector<1x4x32xf32> to vector<4x32xf32>
    %327 = vector.shape_cast %319 : vector<4x32xf32> to vector<1x4x32xf32>
    tpu.vector_store %arg4[%324, %c0_139, %c0_140], %327 {strides = array<i32>} : memref<8x4x64xf32, #tpu.memory_space<vmem>>, vector<1x4x32xf32>,
    %328 = arith.index_cast %225 : i32 to index
    %c0_141 = arith.constant 0 : index
    %c32_142 = arith.constant 32 : index
    %329 = vector.load %arg4[%328, %c0_141, %c32_142] : memref<8x4x64xf32, #tpu.memory_space<vmem>>, vector<1x4x32xf32>
    %330 = vector.shape_cast %329 : vector<1x4x32xf32> to vector<4x32xf32>
    %331 = vector.shape_cast %323 : vector<4x32xf32> to vector<1x4x32xf32>
    tpu.vector_store %arg4[%328, %c0_141, %c32_142], %331 {strides = array<i32>} : memref<8x4x64xf32, #tpu.memory_space<vmem>>, vector<1x4x32xf32>,
    %c3_i32 = arith.constant 3 : i32
    %c7_i32_143 = arith.constant 7 : i32
    %332 = arith.subi %c7_i32_143, %c3_i32 : i32
    %333 = arith.index_cast %c3_i32 : i32 to index
    %c0_144 = arith.constant 0 : index
    %c0_145 = arith.constant 0 : index
    %334 = vector.load %arg0[%333, %c0_144, %c0_145] : memref<8x4x256xf32, #tpu.memory_space<vmem>>, vector<1x4x256xf32>
    %335 = vector.shape_cast %334 : vector<1x4x256xf32> to vector<4x256xf32>
    %336 = arith.index_cast %332 : i32 to index
    %c0_146 = arith.constant 0 : index
    %c0_147 = arith.constant 0 : index
    %337 = vector.load %arg0[%336, %c0_146, %c0_147] : memref<8x4x256xf32, #tpu.memory_space<vmem>>, vector<1x4x256xf32>
    %338 = vector.shape_cast %337 : vector<1x4x256xf32> to vector<4x256xf32>
    %339 = vector.extract_strided_slice %335 {offsets = [0, 0], sizes = [4, 128], strides = [1, 1]} : vector<4x256xf32> to vector<4x128xf32>
    %c0_148 = arith.constant 0 : index
    %c0_149 = arith.constant 0 : index
    %340 = vector.load %arg5[%c0_148, %c0_149] : memref<4x32xf32, #tpu.memory_space<vmem>>, vector<4x32xf32>
    %cst_150 = arith.constant dense<0.000000e+00> : vector<4x128xf32>
    %341 = tpu.matmul %340, %9, %cst_150 {dimension_numbers = #tpu.dot_dimension_numbers<[1], [0], [0], [1], [0, 0, 1, 1], [], []>} : vector<4x32xf32>, vector<32x128xf32>, vector<4x128xf32> -> vector<4x128xf32>
    %342 = arith.addf %339, %341 : vector<4x128xf32>
    %343 = vector.extract_strided_slice %338 {offsets = [0, 128], sizes = [4, 128], strides = [1, 1]} : vector<4x256xf32> to vector<4x128xf32>
    %c0_151 = arith.constant 0 : index
    %c0_152 = arith.constant 0 : index
    %344 = vector.load %arg7[%c0_151, %c0_152] : memref<4x32xf32, #tpu.memory_space<vmem>>, vector<4x32xf32>
    %cst_153 = arith.constant dense<0.000000e+00> : vector<4x128xf32>
    %345 = tpu.matmul %344, %10, %cst_153 {dimension_numbers = #tpu.dot_dimension_numbers<[1], [0], [0], [1], [0, 0, 1, 1], [], []>} : vector<4x32xf32>, vector<32x128xf32>, vector<4x128xf32> -> vector<4x128xf32>
    %346 = arith.addf %343, %345 : vector<4x128xf32>
    %c0_154 = arith.constant 0 : index
    %c0_155 = arith.constant 0 : index
    %347 = vector.load %arg6[%c0_154, %c0_155] : memref<4x32xf32, #tpu.memory_space<vmem>>, vector<4x32xf32>
    %348 = vector.extract_strided_slice %342 {offsets = [0, 0], sizes = [4, 32], strides = [1, 1]} : vector<4x128xf32> to vector<4x32xf32>
    %349 = arith.negf %348 : vector<4x32xf32>
    %350 = math.exp %349 : vector<4x32xf32>
    %cst_156 = arith.constant 1.000000e+00 : f32
    %351 = vector.broadcast %cst_156 : f32 to vector<4x32xf32>
    %352 = arith.addf %351, %350 : vector<4x32xf32>
    %353 = arith.divf %351, %352 : vector<4x32xf32>
    %354 = vector.extract_strided_slice %342 {offsets = [0, 32], sizes = [4, 32], strides = [1, 1]} : vector<4x128xf32> to vector<4x32xf32>
    %355 = arith.negf %354 : vector<4x32xf32>
    %356 = math.exp %355 : vector<4x32xf32>
    %cst_157 = arith.constant 1.000000e+00 : f32
    %357 = vector.broadcast %cst_157 : f32 to vector<4x32xf32>
    %358 = arith.addf %357, %356 : vector<4x32xf32>
    %359 = arith.divf %357, %358 : vector<4x32xf32>
    %360 = vector.extract_strided_slice %342 {offsets = [0, 64], sizes = [4, 32], strides = [1, 1]} : vector<4x128xf32> to vector<4x32xf32>
    %361 = math.tanh %360 : vector<4x32xf32>
    %362 = vector.extract_strided_slice %342 {offsets = [0, 96], sizes = [4, 32], strides = [1, 1]} : vector<4x128xf32> to vector<4x32xf32>
    %363 = arith.negf %362 : vector<4x32xf32>
    %364 = math.exp %363 : vector<4x32xf32>
    %cst_158 = arith.constant 1.000000e+00 : f32
    %365 = vector.broadcast %cst_158 : f32 to vector<4x32xf32>
    %366 = arith.addf %365, %364 : vector<4x32xf32>
    %367 = arith.divf %365, %366 : vector<4x32xf32>
    %368 = arith.mulf %359, %347 : vector<4x32xf32>
    %369 = arith.mulf %353, %361 : vector<4x32xf32>
    %370 = arith.addf %368, %369 : vector<4x32xf32>
    %371 = math.tanh %370 : vector<4x32xf32>
    %372 = arith.mulf %367, %371 : vector<4x32xf32>
    %c0_159 = arith.constant 0 : index
    %c0_160 = arith.constant 0 : index
    %373 = vector.load %arg8[%c0_159, %c0_160] : memref<4x32xf32, #tpu.memory_space<vmem>>, vector<4x32xf32>
    %374 = vector.extract_strided_slice %346 {offsets = [0, 0], sizes = [4, 32], strides = [1, 1]} : vector<4x128xf32> to vector<4x32xf32>
    %375 = arith.negf %374 : vector<4x32xf32>
    %376 = math.exp %375 : vector<4x32xf32>
    %cst_161 = arith.constant 1.000000e+00 : f32
    %377 = vector.broadcast %cst_161 : f32 to vector<4x32xf32>
    %378 = arith.addf %377, %376 : vector<4x32xf32>
    %379 = arith.divf %377, %378 : vector<4x32xf32>
    %380 = vector.extract_strided_slice %346 {offsets = [0, 32], sizes = [4, 32], strides = [1, 1]} : vector<4x128xf32> to vector<4x32xf32>
    %381 = arith.negf %380 : vector<4x32xf32>
    %382 = math.exp %381 : vector<4x32xf32>
    %cst_162 = arith.constant 1.000000e+00 : f32
    %383 = vector.broadcast %cst_162 : f32 to vector<4x32xf32>
    %384 = arith.addf %383, %382 : vector<4x32xf32>
    %385 = arith.divf %383, %384 : vector<4x32xf32>
    %386 = vector.extract_strided_slice %346 {offsets = [0, 64], sizes = [4, 32], strides = [1, 1]} : vector<4x128xf32> to vector<4x32xf32>
    %387 = math.tanh %386 : vector<4x32xf32>
    %388 = vector.extract_strided_slice %346 {offsets = [0, 96], sizes = [4, 32], strides = [1, 1]} : vector<4x128xf32> to vector<4x32xf32>
    %389 = arith.negf %388 : vector<4x32xf32>
    %390 = math.exp %389 : vector<4x32xf32>
    %cst_163 = arith.constant 1.000000e+00 : f32
    %391 = vector.broadcast %cst_163 : f32 to vector<4x32xf32>
    %392 = arith.addf %391, %390 : vector<4x32xf32>
    %393 = arith.divf %391, %392 : vector<4x32xf32>
    %394 = arith.mulf %385, %373 : vector<4x32xf32>
    %395 = arith.mulf %379, %387 : vector<4x32xf32>
    %396 = arith.addf %394, %395 : vector<4x32xf32>
    %397 = math.tanh %396 : vector<4x32xf32>
    %398 = arith.mulf %393, %397 : vector<4x32xf32>
    %399 = vector.broadcast %c3_i32 : i32 to vector<4x1xi32>
    %400 = arith.cmpi slt, %399, %8 : vector<4x1xi32>
    %401 = vector.broadcast %332 : i32 to vector<4x1xi32>
    %402 = arith.cmpi slt, %401, %8 : vector<4x1xi32>
    %c0_164 = arith.constant 0 : index
    %c0_165 = arith.constant 0 : index
    %403 = vector.load %arg6[%c0_164, %c0_165] : memref<4x32xf32, #tpu.memory_space<vmem>>, vector<4x32xf32>
    %404 = vector.shape_cast %400 : vector<4x1xi1> to vector<4x1xi1>
    %405 = vector.broadcast %404 : vector<4x1xi1> to vector<4x32xi1>
    %406 = arith.select %405, %370, %403 : vector<4x32xi1>, vector<4x32xf32>
    %c0_166 = arith.constant 0 : index
    %c0_167 = arith.constant 0 : index
    %407 = vector.load %arg6[%c0_166, %c0_167] : memref<4x32xf32, #tpu.memory_space<vmem>>, vector<4x32xf32>
    tpu.vector_store %arg6[%c0_166, %c0_167], %406 {strides = array<i32>} : memref<4x32xf32, #tpu.memory_space<vmem>>, vector<4x32xf32>,
    %c0_168 = arith.constant 0 : index
    %c0_169 = arith.constant 0 : index
    %408 = vector.load %arg5[%c0_168, %c0_169] : memref<4x32xf32, #tpu.memory_space<vmem>>, vector<4x32xf32>
    %409 = vector.shape_cast %400 : vector<4x1xi1> to vector<4x1xi1>
    %410 = vector.broadcast %409 : vector<4x1xi1> to vector<4x32xi1>
    %411 = arith.select %410, %372, %408 : vector<4x32xi1>, vector<4x32xf32>
    %c0_170 = arith.constant 0 : index
    %c0_171 = arith.constant 0 : index
    %412 = vector.load %arg5[%c0_170, %c0_171] : memref<4x32xf32, #tpu.memory_space<vmem>>, vector<4x32xf32>
    tpu.vector_store %arg5[%c0_170, %c0_171], %411 {strides = array<i32>} : memref<4x32xf32, #tpu.memory_space<vmem>>, vector<4x32xf32>,
    %c0_172 = arith.constant 0 : index
    %c0_173 = arith.constant 0 : index
    %413 = vector.load %arg8[%c0_172, %c0_173] : memref<4x32xf32, #tpu.memory_space<vmem>>, vector<4x32xf32>
    %414 = vector.shape_cast %402 : vector<4x1xi1> to vector<4x1xi1>
    %415 = vector.broadcast %414 : vector<4x1xi1> to vector<4x32xi1>
    %416 = arith.select %415, %396, %413 : vector<4x32xi1>, vector<4x32xf32>
    %c0_174 = arith.constant 0 : index
    %c0_175 = arith.constant 0 : index
    %417 = vector.load %arg8[%c0_174, %c0_175] : memref<4x32xf32, #tpu.memory_space<vmem>>, vector<4x32xf32>
    tpu.vector_store %arg8[%c0_174, %c0_175], %416 {strides = array<i32>} : memref<4x32xf32, #tpu.memory_space<vmem>>, vector<4x32xf32>,
    %c0_176 = arith.constant 0 : index
    %c0_177 = arith.constant 0 : index
    %418 = vector.load %arg7[%c0_176, %c0_177] : memref<4x32xf32, #tpu.memory_space<vmem>>, vector<4x32xf32>
    %419 = vector.shape_cast %402 : vector<4x1xi1> to vector<4x1xi1>
    %420 = vector.broadcast %419 : vector<4x1xi1> to vector<4x32xi1>
    %421 = arith.select %420, %398, %418 : vector<4x32xi1>, vector<4x32xf32>
    %c0_178 = arith.constant 0 : index
    %c0_179 = arith.constant 0 : index
    %422 = vector.load %arg7[%c0_178, %c0_179] : memref<4x32xf32, #tpu.memory_space<vmem>>, vector<4x32xf32>
    tpu.vector_store %arg7[%c0_178, %c0_179], %421 {strides = array<i32>} : memref<4x32xf32, #tpu.memory_space<vmem>>, vector<4x32xf32>,
    %cst_180 = arith.constant 0.000000e+00 : f32
    %423 = vector.shape_cast %400 : vector<4x1xi1> to vector<4x1xi1>
    %424 = vector.broadcast %423 : vector<4x1xi1> to vector<4x32xi1>
    %425 = vector.broadcast %cst_180 : f32 to vector<4x32xf32>
    %426 = arith.select %424, %372, %425 : vector<4x32xi1>, vector<4x32xf32>
    %cst_181 = arith.constant 0.000000e+00 : f32
    %427 = vector.shape_cast %402 : vector<4x1xi1> to vector<4x1xi1>
    %428 = vector.broadcast %427 : vector<4x1xi1> to vector<4x32xi1>
    %429 = vector.broadcast %cst_181 : f32 to vector<4x32xf32>
    %430 = arith.select %428, %398, %429 : vector<4x32xi1>, vector<4x32xf32>
    %431 = arith.index_cast %c3_i32 : i32 to index
    %c0_182 = arith.constant 0 : index
    %c0_183 = arith.constant 0 : index
    %432 = vector.load %arg4[%431, %c0_182, %c0_183] : memref<8x4x64xf32, #tpu.memory_space<vmem>>, vector<1x4x32xf32>
    %433 = vector.shape_cast %432 : vector<1x4x32xf32> to vector<4x32xf32>
    %434 = vector.shape_cast %426 : vector<4x32xf32> to vector<1x4x32xf32>
    tpu.vector_store %arg4[%431, %c0_182, %c0_183], %434 {strides = array<i32>} : memref<8x4x64xf32, #tpu.memory_space<vmem>>, vector<1x4x32xf32>,
    %435 = arith.index_cast %332 : i32 to index
    %c0_184 = arith.constant 0 : index
    %c32_185 = arith.constant 32 : index
    %436 = vector.load %arg4[%435, %c0_184, %c32_185] : memref<8x4x64xf32, #tpu.memory_space<vmem>>, vector<1x4x32xf32>
    %437 = vector.shape_cast %436 : vector<1x4x32xf32> to vector<4x32xf32>
    %438 = vector.shape_cast %430 : vector<4x32xf32> to vector<1x4x32xf32>
    tpu.vector_store %arg4[%435, %c0_184, %c32_185], %438 {strides = array<i32>} : memref<8x4x64xf32, #tpu.memory_space<vmem>>, vector<1x4x32xf32>,
    %c4_i32 = arith.constant 4 : i32
    %c7_i32_186 = arith.constant 7 : i32
    %439 = arith.subi %c7_i32_186, %c4_i32 : i32
    %440 = arith.index_cast %c4_i32 : i32 to index
    %c0_187 = arith.constant 0 : index
    %c0_188 = arith.constant 0 : index
    %441 = vector.load %arg0[%440, %c0_187, %c0_188] : memref<8x4x256xf32, #tpu.memory_space<vmem>>, vector<1x4x256xf32>
    %442 = vector.shape_cast %441 : vector<1x4x256xf32> to vector<4x256xf32>
    %443 = arith.index_cast %439 : i32 to index
    %c0_189 = arith.constant 0 : index
    %c0_190 = arith.constant 0 : index
    %444 = vector.load %arg0[%443, %c0_189, %c0_190] : memref<8x4x256xf32, #tpu.memory_space<vmem>>, vector<1x4x256xf32>
    %445 = vector.shape_cast %444 : vector<1x4x256xf32> to vector<4x256xf32>
    %446 = vector.extract_strided_slice %442 {offsets = [0, 0], sizes = [4, 128], strides = [1, 1]} : vector<4x256xf32> to vector<4x128xf32>
    %c0_191 = arith.constant 0 : index
    %c0_192 = arith.constant 0 : index
    %447 = vector.load %arg5[%c0_191, %c0_192] : memref<4x32xf32, #tpu.memory_space<vmem>>, vector<4x32xf32>
    %cst_193 = arith.constant dense<0.000000e+00> : vector<4x128xf32>
    %448 = tpu.matmul %447, %9, %cst_193 {dimension_numbers = #tpu.dot_dimension_numbers<[1], [0], [0], [1], [0, 0, 1, 1], [], []>} : vector<4x32xf32>, vector<32x128xf32>, vector<4x128xf32> -> vector<4x128xf32>
    %449 = arith.addf %446, %448 : vector<4x128xf32>
    %450 = vector.extract_strided_slice %445 {offsets = [0, 128], sizes = [4, 128], strides = [1, 1]} : vector<4x256xf32> to vector<4x128xf32>
    %c0_194 = arith.constant 0 : index
    %c0_195 = arith.constant 0 : index
    %451 = vector.load %arg7[%c0_194, %c0_195] : memref<4x32xf32, #tpu.memory_space<vmem>>, vector<4x32xf32>
    %cst_196 = arith.constant dense<0.000000e+00> : vector<4x128xf32>
    %452 = tpu.matmul %451, %10, %cst_196 {dimension_numbers = #tpu.dot_dimension_numbers<[1], [0], [0], [1], [0, 0, 1, 1], [], []>} : vector<4x32xf32>, vector<32x128xf32>, vector<4x128xf32> -> vector<4x128xf32>
    %453 = arith.addf %450, %452 : vector<4x128xf32>
    %c0_197 = arith.constant 0 : index
    %c0_198 = arith.constant 0 : index
    %454 = vector.load %arg6[%c0_197, %c0_198] : memref<4x32xf32, #tpu.memory_space<vmem>>, vector<4x32xf32>
    %455 = vector.extract_strided_slice %449 {offsets = [0, 0], sizes = [4, 32], strides = [1, 1]} : vector<4x128xf32> to vector<4x32xf32>
    %456 = arith.negf %455 : vector<4x32xf32>
    %457 = math.exp %456 : vector<4x32xf32>
    %cst_199 = arith.constant 1.000000e+00 : f32
    %458 = vector.broadcast %cst_199 : f32 to vector<4x32xf32>
    %459 = arith.addf %458, %457 : vector<4x32xf32>
    %460 = arith.divf %458, %459 : vector<4x32xf32>
    %461 = vector.extract_strided_slice %449 {offsets = [0, 32], sizes = [4, 32], strides = [1, 1]} : vector<4x128xf32> to vector<4x32xf32>
    %462 = arith.negf %461 : vector<4x32xf32>
    %463 = math.exp %462 : vector<4x32xf32>
    %cst_200 = arith.constant 1.000000e+00 : f32
    %464 = vector.broadcast %cst_200 : f32 to vector<4x32xf32>
    %465 = arith.addf %464, %463 : vector<4x32xf32>
    %466 = arith.divf %464, %465 : vector<4x32xf32>
    %467 = vector.extract_strided_slice %449 {offsets = [0, 64], sizes = [4, 32], strides = [1, 1]} : vector<4x128xf32> to vector<4x32xf32>
    %468 = math.tanh %467 : vector<4x32xf32>
    %469 = vector.extract_strided_slice %449 {offsets = [0, 96], sizes = [4, 32], strides = [1, 1]} : vector<4x128xf32> to vector<4x32xf32>
    %470 = arith.negf %469 : vector<4x32xf32>
    %471 = math.exp %470 : vector<4x32xf32>
    %cst_201 = arith.constant 1.000000e+00 : f32
    %472 = vector.broadcast %cst_201 : f32 to vector<4x32xf32>
    %473 = arith.addf %472, %471 : vector<4x32xf32>
    %474 = arith.divf %472, %473 : vector<4x32xf32>
    %475 = arith.mulf %466, %454 : vector<4x32xf32>
    %476 = arith.mulf %460, %468 : vector<4x32xf32>
    %477 = arith.addf %475, %476 : vector<4x32xf32>
    %478 = math.tanh %477 : vector<4x32xf32>
    %479 = arith.mulf %474, %478 : vector<4x32xf32>
    %c0_202 = arith.constant 0 : index
    %c0_203 = arith.constant 0 : index
    %480 = vector.load %arg8[%c0_202, %c0_203] : memref<4x32xf32, #tpu.memory_space<vmem>>, vector<4x32xf32>
    %481 = vector.extract_strided_slice %453 {offsets = [0, 0], sizes = [4, 32], strides = [1, 1]} : vector<4x128xf32> to vector<4x32xf32>
    %482 = arith.negf %481 : vector<4x32xf32>
    %483 = math.exp %482 : vector<4x32xf32>
    %cst_204 = arith.constant 1.000000e+00 : f32
    %484 = vector.broadcast %cst_204 : f32 to vector<4x32xf32>
    %485 = arith.addf %484, %483 : vector<4x32xf32>
    %486 = arith.divf %484, %485 : vector<4x32xf32>
    %487 = vector.extract_strided_slice %453 {offsets = [0, 32], sizes = [4, 32], strides = [1, 1]} : vector<4x128xf32> to vector<4x32xf32>
    %488 = arith.negf %487 : vector<4x32xf32>
    %489 = math.exp %488 : vector<4x32xf32>
    %cst_205 = arith.constant 1.000000e+00 : f32
    %490 = vector.broadcast %cst_205 : f32 to vector<4x32xf32>
    %491 = arith.addf %490, %489 : vector<4x32xf32>
    %492 = arith.divf %490, %491 : vector<4x32xf32>
    %493 = vector.extract_strided_slice %453 {offsets = [0, 64], sizes = [4, 32], strides = [1, 1]} : vector<4x128xf32> to vector<4x32xf32>
    %494 = math.tanh %493 : vector<4x32xf32>
    %495 = vector.extract_strided_slice %453 {offsets = [0, 96], sizes = [4, 32], strides = [1, 1]} : vector<4x128xf32> to vector<4x32xf32>
    %496 = arith.negf %495 : vector<4x32xf32>
    %497 = math.exp %496 : vector<4x32xf32>
    %cst_206 = arith.constant 1.000000e+00 : f32
    %498 = vector.broadcast %cst_206 : f32 to vector<4x32xf32>
    %499 = arith.addf %498, %497 : vector<4x32xf32>
    %500 = arith.divf %498, %499 : vector<4x32xf32>
    %501 = arith.mulf %492, %480 : vector<4x32xf32>
    %502 = arith.mulf %486, %494 : vector<4x32xf32>
    %503 = arith.addf %501, %502 : vector<4x32xf32>
    %504 = math.tanh %503 : vector<4x32xf32>
    %505 = arith.mulf %500, %504 : vector<4x32xf32>
    %506 = vector.broadcast %c4_i32 : i32 to vector<4x1xi32>
    %507 = arith.cmpi slt, %506, %8 : vector<4x1xi32>
    %508 = vector.broadcast %439 : i32 to vector<4x1xi32>
    %509 = arith.cmpi slt, %508, %8 : vector<4x1xi32>
    %c0_207 = arith.constant 0 : index
    %c0_208 = arith.constant 0 : index
    %510 = vector.load %arg6[%c0_207, %c0_208] : memref<4x32xf32, #tpu.memory_space<vmem>>, vector<4x32xf32>
    %511 = vector.shape_cast %507 : vector<4x1xi1> to vector<4x1xi1>
    %512 = vector.broadcast %511 : vector<4x1xi1> to vector<4x32xi1>
    %513 = arith.select %512, %477, %510 : vector<4x32xi1>, vector<4x32xf32>
    %c0_209 = arith.constant 0 : index
    %c0_210 = arith.constant 0 : index
    %514 = vector.load %arg6[%c0_209, %c0_210] : memref<4x32xf32, #tpu.memory_space<vmem>>, vector<4x32xf32>
    tpu.vector_store %arg6[%c0_209, %c0_210], %513 {strides = array<i32>} : memref<4x32xf32, #tpu.memory_space<vmem>>, vector<4x32xf32>,
    %c0_211 = arith.constant 0 : index
    %c0_212 = arith.constant 0 : index
    %515 = vector.load %arg5[%c0_211, %c0_212] : memref<4x32xf32, #tpu.memory_space<vmem>>, vector<4x32xf32>
    %516 = vector.shape_cast %507 : vector<4x1xi1> to vector<4x1xi1>
    %517 = vector.broadcast %516 : vector<4x1xi1> to vector<4x32xi1>
    %518 = arith.select %517, %479, %515 : vector<4x32xi1>, vector<4x32xf32>
    %c0_213 = arith.constant 0 : index
    %c0_214 = arith.constant 0 : index
    %519 = vector.load %arg5[%c0_213, %c0_214] : memref<4x32xf32, #tpu.memory_space<vmem>>, vector<4x32xf32>
    tpu.vector_store %arg5[%c0_213, %c0_214], %518 {strides = array<i32>} : memref<4x32xf32, #tpu.memory_space<vmem>>, vector<4x32xf32>,
    %c0_215 = arith.constant 0 : index
    %c0_216 = arith.constant 0 : index
    %520 = vector.load %arg8[%c0_215, %c0_216] : memref<4x32xf32, #tpu.memory_space<vmem>>, vector<4x32xf32>
    %521 = vector.shape_cast %509 : vector<4x1xi1> to vector<4x1xi1>
    %522 = vector.broadcast %521 : vector<4x1xi1> to vector<4x32xi1>
    %523 = arith.select %522, %503, %520 : vector<4x32xi1>, vector<4x32xf32>
    %c0_217 = arith.constant 0 : index
    %c0_218 = arith.constant 0 : index
    %524 = vector.load %arg8[%c0_217, %c0_218] : memref<4x32xf32, #tpu.memory_space<vmem>>, vector<4x32xf32>
    tpu.vector_store %arg8[%c0_217, %c0_218], %523 {strides = array<i32>} : memref<4x32xf32, #tpu.memory_space<vmem>>, vector<4x32xf32>,
    %c0_219 = arith.constant 0 : index
    %c0_220 = arith.constant 0 : index
    %525 = vector.load %arg7[%c0_219, %c0_220] : memref<4x32xf32, #tpu.memory_space<vmem>>, vector<4x32xf32>
    %526 = vector.shape_cast %509 : vector<4x1xi1> to vector<4x1xi1>
    %527 = vector.broadcast %526 : vector<4x1xi1> to vector<4x32xi1>
    %528 = arith.select %527, %505, %525 : vector<4x32xi1>, vector<4x32xf32>
    %c0_221 = arith.constant 0 : index
    %c0_222 = arith.constant 0 : index
    %529 = vector.load %arg7[%c0_221, %c0_222] : memref<4x32xf32, #tpu.memory_space<vmem>>, vector<4x32xf32>
    tpu.vector_store %arg7[%c0_221, %c0_222], %528 {strides = array<i32>} : memref<4x32xf32, #tpu.memory_space<vmem>>, vector<4x32xf32>,
    %cst_223 = arith.constant 0.000000e+00 : f32
    %530 = vector.shape_cast %507 : vector<4x1xi1> to vector<4x1xi1>
    %531 = vector.broadcast %530 : vector<4x1xi1> to vector<4x32xi1>
    %532 = vector.broadcast %cst_223 : f32 to vector<4x32xf32>
    %533 = arith.select %531, %479, %532 : vector<4x32xi1>, vector<4x32xf32>
    %cst_224 = arith.constant 0.000000e+00 : f32
    %534 = vector.shape_cast %509 : vector<4x1xi1> to vector<4x1xi1>
    %535 = vector.broadcast %534 : vector<4x1xi1> to vector<4x32xi1>
    %536 = vector.broadcast %cst_224 : f32 to vector<4x32xf32>
    %537 = arith.select %535, %505, %536 : vector<4x32xi1>, vector<4x32xf32>
    %538 = arith.index_cast %c4_i32 : i32 to index
    %c0_225 = arith.constant 0 : index
    %c0_226 = arith.constant 0 : index
    %539 = vector.load %arg4[%538, %c0_225, %c0_226] : memref<8x4x64xf32, #tpu.memory_space<vmem>>, vector<1x4x32xf32>
    %540 = vector.shape_cast %539 : vector<1x4x32xf32> to vector<4x32xf32>
    %541 = vector.shape_cast %533 : vector<4x32xf32> to vector<1x4x32xf32>
    tpu.vector_store %arg4[%538, %c0_225, %c0_226], %541 {strides = array<i32>} : memref<8x4x64xf32, #tpu.memory_space<vmem>>, vector<1x4x32xf32>,
    %542 = arith.index_cast %439 : i32 to index
    %c0_227 = arith.constant 0 : index
    %c32_228 = arith.constant 32 : index
    %543 = vector.load %arg4[%542, %c0_227, %c32_228] : memref<8x4x64xf32, #tpu.memory_space<vmem>>, vector<1x4x32xf32>
    %544 = vector.shape_cast %543 : vector<1x4x32xf32> to vector<4x32xf32>
    %545 = vector.shape_cast %537 : vector<4x32xf32> to vector<1x4x32xf32>
    tpu.vector_store %arg4[%542, %c0_227, %c32_228], %545 {strides = array<i32>} : memref<8x4x64xf32, #tpu.memory_space<vmem>>, vector<1x4x32xf32>,
    %c5_i32 = arith.constant 5 : i32
    %c7_i32_229 = arith.constant 7 : i32
    %546 = arith.subi %c7_i32_229, %c5_i32 : i32
    %547 = arith.index_cast %c5_i32 : i32 to index
    %c0_230 = arith.constant 0 : index
    %c0_231 = arith.constant 0 : index
    %548 = vector.load %arg0[%547, %c0_230, %c0_231] : memref<8x4x256xf32, #tpu.memory_space<vmem>>, vector<1x4x256xf32>
    %549 = vector.shape_cast %548 : vector<1x4x256xf32> to vector<4x256xf32>
    %550 = arith.index_cast %546 : i32 to index
    %c0_232 = arith.constant 0 : index
    %c0_233 = arith.constant 0 : index
    %551 = vector.load %arg0[%550, %c0_232, %c0_233] : memref<8x4x256xf32, #tpu.memory_space<vmem>>, vector<1x4x256xf32>
    %552 = vector.shape_cast %551 : vector<1x4x256xf32> to vector<4x256xf32>
    %553 = vector.extract_strided_slice %549 {offsets = [0, 0], sizes = [4, 128], strides = [1, 1]} : vector<4x256xf32> to vector<4x128xf32>
    %c0_234 = arith.constant 0 : index
    %c0_235 = arith.constant 0 : index
    %554 = vector.load %arg5[%c0_234, %c0_235] : memref<4x32xf32, #tpu.memory_space<vmem>>, vector<4x32xf32>
    %cst_236 = arith.constant dense<0.000000e+00> : vector<4x128xf32>
    %555 = tpu.matmul %554, %9, %cst_236 {dimension_numbers = #tpu.dot_dimension_numbers<[1], [0], [0], [1], [0, 0, 1, 1], [], []>} : vector<4x32xf32>, vector<32x128xf32>, vector<4x128xf32> -> vector<4x128xf32>
    %556 = arith.addf %553, %555 : vector<4x128xf32>
    %557 = vector.extract_strided_slice %552 {offsets = [0, 128], sizes = [4, 128], strides = [1, 1]} : vector<4x256xf32> to vector<4x128xf32>
    %c0_237 = arith.constant 0 : index
    %c0_238 = arith.constant 0 : index
    %558 = vector.load %arg7[%c0_237, %c0_238] : memref<4x32xf32, #tpu.memory_space<vmem>>, vector<4x32xf32>
    %cst_239 = arith.constant dense<0.000000e+00> : vector<4x128xf32>
    %559 = tpu.matmul %558, %10, %cst_239 {dimension_numbers = #tpu.dot_dimension_numbers<[1], [0], [0], [1], [0, 0, 1, 1], [], []>} : vector<4x32xf32>, vector<32x128xf32>, vector<4x128xf32> -> vector<4x128xf32>
    %560 = arith.addf %557, %559 : vector<4x128xf32>
    %c0_240 = arith.constant 0 : index
    %c0_241 = arith.constant 0 : index
    %561 = vector.load %arg6[%c0_240, %c0_241] : memref<4x32xf32, #tpu.memory_space<vmem>>, vector<4x32xf32>
    %562 = vector.extract_strided_slice %556 {offsets = [0, 0], sizes = [4, 32], strides = [1, 1]} : vector<4x128xf32> to vector<4x32xf32>
    %563 = arith.negf %562 : vector<4x32xf32>
    %564 = math.exp %563 : vector<4x32xf32>
    %cst_242 = arith.constant 1.000000e+00 : f32
    %565 = vector.broadcast %cst_242 : f32 to vector<4x32xf32>
    %566 = arith.addf %565, %564 : vector<4x32xf32>
    %567 = arith.divf %565, %566 : vector<4x32xf32>
    %568 = vector.extract_strided_slice %556 {offsets = [0, 32], sizes = [4, 32], strides = [1, 1]} : vector<4x128xf32> to vector<4x32xf32>
    %569 = arith.negf %568 : vector<4x32xf32>
    %570 = math.exp %569 : vector<4x32xf32>
    %cst_243 = arith.constant 1.000000e+00 : f32
    %571 = vector.broadcast %cst_243 : f32 to vector<4x32xf32>
    %572 = arith.addf %571, %570 : vector<4x32xf32>
    %573 = arith.divf %571, %572 : vector<4x32xf32>
    %574 = vector.extract_strided_slice %556 {offsets = [0, 64], sizes = [4, 32], strides = [1, 1]} : vector<4x128xf32> to vector<4x32xf32>
    %575 = math.tanh %574 : vector<4x32xf32>
    %576 = vector.extract_strided_slice %556 {offsets = [0, 96], sizes = [4, 32], strides = [1, 1]} : vector<4x128xf32> to vector<4x32xf32>
    %577 = arith.negf %576 : vector<4x32xf32>
    %578 = math.exp %577 : vector<4x32xf32>
    %cst_244 = arith.constant 1.000000e+00 : f32
    %579 = vector.broadcast %cst_244 : f32 to vector<4x32xf32>
    %580 = arith.addf %579, %578 : vector<4x32xf32>
    %581 = arith.divf %579, %580 : vector<4x32xf32>
    %582 = arith.mulf %573, %561 : vector<4x32xf32>
    %583 = arith.mulf %567, %575 : vector<4x32xf32>
    %584 = arith.addf %582, %583 : vector<4x32xf32>
    %585 = math.tanh %584 : vector<4x32xf32>
    %586 = arith.mulf %581, %585 : vector<4x32xf32>
    %c0_245 = arith.constant 0 : index
    %c0_246 = arith.constant 0 : index
    %587 = vector.load %arg8[%c0_245, %c0_246] : memref<4x32xf32, #tpu.memory_space<vmem>>, vector<4x32xf32>
    %588 = vector.extract_strided_slice %560 {offsets = [0, 0], sizes = [4, 32], strides = [1, 1]} : vector<4x128xf32> to vector<4x32xf32>
    %589 = arith.negf %588 : vector<4x32xf32>
    %590 = math.exp %589 : vector<4x32xf32>
    %cst_247 = arith.constant 1.000000e+00 : f32
    %591 = vector.broadcast %cst_247 : f32 to vector<4x32xf32>
    %592 = arith.addf %591, %590 : vector<4x32xf32>
    %593 = arith.divf %591, %592 : vector<4x32xf32>
    %594 = vector.extract_strided_slice %560 {offsets = [0, 32], sizes = [4, 32], strides = [1, 1]} : vector<4x128xf32> to vector<4x32xf32>
    %595 = arith.negf %594 : vector<4x32xf32>
    %596 = math.exp %595 : vector<4x32xf32>
    %cst_248 = arith.constant 1.000000e+00 : f32
    %597 = vector.broadcast %cst_248 : f32 to vector<4x32xf32>
    %598 = arith.addf %597, %596 : vector<4x32xf32>
    %599 = arith.divf %597, %598 : vector<4x32xf32>
    %600 = vector.extract_strided_slice %560 {offsets = [0, 64], sizes = [4, 32], strides = [1, 1]} : vector<4x128xf32> to vector<4x32xf32>
    %601 = math.tanh %600 : vector<4x32xf32>
    %602 = vector.extract_strided_slice %560 {offsets = [0, 96], sizes = [4, 32], strides = [1, 1]} : vector<4x128xf32> to vector<4x32xf32>
    %603 = arith.negf %602 : vector<4x32xf32>
    %604 = math.exp %603 : vector<4x32xf32>
    %cst_249 = arith.constant 1.000000e+00 : f32
    %605 = vector.broadcast %cst_249 : f32 to vector<4x32xf32>
    %606 = arith.addf %605, %604 : vector<4x32xf32>
    %607 = arith.divf %605, %606 : vector<4x32xf32>
    %608 = arith.mulf %599, %587 : vector<4x32xf32>
    %609 = arith.mulf %593, %601 : vector<4x32xf32>
    %610 = arith.addf %608, %609 : vector<4x32xf32>
    %611 = math.tanh %610 : vector<4x32xf32>
    %612 = arith.mulf %607, %611 : vector<4x32xf32>
    %613 = vector.broadcast %c5_i32 : i32 to vector<4x1xi32>
    %614 = arith.cmpi slt, %613, %8 : vector<4x1xi32>
    %615 = vector.broadcast %546 : i32 to vector<4x1xi32>
    %616 = arith.cmpi slt, %615, %8 : vector<4x1xi32>
    %c0_250 = arith.constant 0 : index
    %c0_251 = arith.constant 0 : index
    %617 = vector.load %arg6[%c0_250, %c0_251] : memref<4x32xf32, #tpu.memory_space<vmem>>, vector<4x32xf32>
    %618 = vector.shape_cast %614 : vector<4x1xi1> to vector<4x1xi1>
    %619 = vector.broadcast %618 : vector<4x1xi1> to vector<4x32xi1>
    %620 = arith.select %619, %584, %617 : vector<4x32xi1>, vector<4x32xf32>
    %c0_252 = arith.constant 0 : index
    %c0_253 = arith.constant 0 : index
    %621 = vector.load %arg6[%c0_252, %c0_253] : memref<4x32xf32, #tpu.memory_space<vmem>>, vector<4x32xf32>
    tpu.vector_store %arg6[%c0_252, %c0_253], %620 {strides = array<i32>} : memref<4x32xf32, #tpu.memory_space<vmem>>, vector<4x32xf32>,
    %c0_254 = arith.constant 0 : index
    %c0_255 = arith.constant 0 : index
    %622 = vector.load %arg5[%c0_254, %c0_255] : memref<4x32xf32, #tpu.memory_space<vmem>>, vector<4x32xf32>
    %623 = vector.shape_cast %614 : vector<4x1xi1> to vector<4x1xi1>
    %624 = vector.broadcast %623 : vector<4x1xi1> to vector<4x32xi1>
    %625 = arith.select %624, %586, %622 : vector<4x32xi1>, vector<4x32xf32>
    %c0_256 = arith.constant 0 : index
    %c0_257 = arith.constant 0 : index
    %626 = vector.load %arg5[%c0_256, %c0_257] : memref<4x32xf32, #tpu.memory_space<vmem>>, vector<4x32xf32>
    tpu.vector_store %arg5[%c0_256, %c0_257], %625 {strides = array<i32>} : memref<4x32xf32, #tpu.memory_space<vmem>>, vector<4x32xf32>,
    %c0_258 = arith.constant 0 : index
    %c0_259 = arith.constant 0 : index
    %627 = vector.load %arg8[%c0_258, %c0_259] : memref<4x32xf32, #tpu.memory_space<vmem>>, vector<4x32xf32>
    %628 = vector.shape_cast %616 : vector<4x1xi1> to vector<4x1xi1>
    %629 = vector.broadcast %628 : vector<4x1xi1> to vector<4x32xi1>
    %630 = arith.select %629, %610, %627 : vector<4x32xi1>, vector<4x32xf32>
    %c0_260 = arith.constant 0 : index
    %c0_261 = arith.constant 0 : index
    %631 = vector.load %arg8[%c0_260, %c0_261] : memref<4x32xf32, #tpu.memory_space<vmem>>, vector<4x32xf32>
    tpu.vector_store %arg8[%c0_260, %c0_261], %630 {strides = array<i32>} : memref<4x32xf32, #tpu.memory_space<vmem>>, vector<4x32xf32>,
    %c0_262 = arith.constant 0 : index
    %c0_263 = arith.constant 0 : index
    %632 = vector.load %arg7[%c0_262, %c0_263] : memref<4x32xf32, #tpu.memory_space<vmem>>, vector<4x32xf32>
    %633 = vector.shape_cast %616 : vector<4x1xi1> to vector<4x1xi1>
    %634 = vector.broadcast %633 : vector<4x1xi1> to vector<4x32xi1>
    %635 = arith.select %634, %612, %632 : vector<4x32xi1>, vector<4x32xf32>
    %c0_264 = arith.constant 0 : index
    %c0_265 = arith.constant 0 : index
    %636 = vector.load %arg7[%c0_264, %c0_265] : memref<4x32xf32, #tpu.memory_space<vmem>>, vector<4x32xf32>
    tpu.vector_store %arg7[%c0_264, %c0_265], %635 {strides = array<i32>} : memref<4x32xf32, #tpu.memory_space<vmem>>, vector<4x32xf32>,
    %cst_266 = arith.constant 0.000000e+00 : f32
    %637 = vector.shape_cast %614 : vector<4x1xi1> to vector<4x1xi1>
    %638 = vector.broadcast %637 : vector<4x1xi1> to vector<4x32xi1>
    %639 = vector.broadcast %cst_266 : f32 to vector<4x32xf32>
    %640 = arith.select %638, %586, %639 : vector<4x32xi1>, vector<4x32xf32>
    %cst_267 = arith.constant 0.000000e+00 : f32
    %641 = vector.shape_cast %616 : vector<4x1xi1> to vector<4x1xi1>
    %642 = vector.broadcast %641 : vector<4x1xi1> to vector<4x32xi1>
    %643 = vector.broadcast %cst_267 : f32 to vector<4x32xf32>
    %644 = arith.select %642, %612, %643 : vector<4x32xi1>, vector<4x32xf32>
    %645 = arith.index_cast %c5_i32 : i32 to index
    %c0_268 = arith.constant 0 : index
    %c0_269 = arith.constant 0 : index
    %646 = vector.load %arg4[%645, %c0_268, %c0_269] : memref<8x4x64xf32, #tpu.memory_space<vmem>>, vector<1x4x32xf32>
    %647 = vector.shape_cast %646 : vector<1x4x32xf32> to vector<4x32xf32>
    %648 = vector.shape_cast %640 : vector<4x32xf32> to vector<1x4x32xf32>
    tpu.vector_store %arg4[%645, %c0_268, %c0_269], %648 {strides = array<i32>} : memref<8x4x64xf32, #tpu.memory_space<vmem>>, vector<1x4x32xf32>,
    %649 = arith.index_cast %546 : i32 to index
    %c0_270 = arith.constant 0 : index
    %c32_271 = arith.constant 32 : index
    %650 = vector.load %arg4[%649, %c0_270, %c32_271] : memref<8x4x64xf32, #tpu.memory_space<vmem>>, vector<1x4x32xf32>
    %651 = vector.shape_cast %650 : vector<1x4x32xf32> to vector<4x32xf32>
    %652 = vector.shape_cast %644 : vector<4x32xf32> to vector<1x4x32xf32>
    tpu.vector_store %arg4[%649, %c0_270, %c32_271], %652 {strides = array<i32>} : memref<8x4x64xf32, #tpu.memory_space<vmem>>, vector<1x4x32xf32>,
    %c6_i32 = arith.constant 6 : i32
    %c7_i32_272 = arith.constant 7 : i32
    %653 = arith.subi %c7_i32_272, %c6_i32 : i32
    %654 = arith.index_cast %c6_i32 : i32 to index
    %c0_273 = arith.constant 0 : index
    %c0_274 = arith.constant 0 : index
    %655 = vector.load %arg0[%654, %c0_273, %c0_274] : memref<8x4x256xf32, #tpu.memory_space<vmem>>, vector<1x4x256xf32>
    %656 = vector.shape_cast %655 : vector<1x4x256xf32> to vector<4x256xf32>
    %657 = arith.index_cast %653 : i32 to index
    %c0_275 = arith.constant 0 : index
    %c0_276 = arith.constant 0 : index
    %658 = vector.load %arg0[%657, %c0_275, %c0_276] : memref<8x4x256xf32, #tpu.memory_space<vmem>>, vector<1x4x256xf32>
    %659 = vector.shape_cast %658 : vector<1x4x256xf32> to vector<4x256xf32>
    %660 = vector.extract_strided_slice %656 {offsets = [0, 0], sizes = [4, 128], strides = [1, 1]} : vector<4x256xf32> to vector<4x128xf32>
    %c0_277 = arith.constant 0 : index
    %c0_278 = arith.constant 0 : index
    %661 = vector.load %arg5[%c0_277, %c0_278] : memref<4x32xf32, #tpu.memory_space<vmem>>, vector<4x32xf32>
    %cst_279 = arith.constant dense<0.000000e+00> : vector<4x128xf32>
    %662 = tpu.matmul %661, %9, %cst_279 {dimension_numbers = #tpu.dot_dimension_numbers<[1], [0], [0], [1], [0, 0, 1, 1], [], []>} : vector<4x32xf32>, vector<32x128xf32>, vector<4x128xf32> -> vector<4x128xf32>
    %663 = arith.addf %660, %662 : vector<4x128xf32>
    %664 = vector.extract_strided_slice %659 {offsets = [0, 128], sizes = [4, 128], strides = [1, 1]} : vector<4x256xf32> to vector<4x128xf32>
    %c0_280 = arith.constant 0 : index
    %c0_281 = arith.constant 0 : index
    %665 = vector.load %arg7[%c0_280, %c0_281] : memref<4x32xf32, #tpu.memory_space<vmem>>, vector<4x32xf32>
    %cst_282 = arith.constant dense<0.000000e+00> : vector<4x128xf32>
    %666 = tpu.matmul %665, %10, %cst_282 {dimension_numbers = #tpu.dot_dimension_numbers<[1], [0], [0], [1], [0, 0, 1, 1], [], []>} : vector<4x32xf32>, vector<32x128xf32>, vector<4x128xf32> -> vector<4x128xf32>
    %667 = arith.addf %664, %666 : vector<4x128xf32>
    %c0_283 = arith.constant 0 : index
    %c0_284 = arith.constant 0 : index
    %668 = vector.load %arg6[%c0_283, %c0_284] : memref<4x32xf32, #tpu.memory_space<vmem>>, vector<4x32xf32>
    %669 = vector.extract_strided_slice %663 {offsets = [0, 0], sizes = [4, 32], strides = [1, 1]} : vector<4x128xf32> to vector<4x32xf32>
    %670 = arith.negf %669 : vector<4x32xf32>
    %671 = math.exp %670 : vector<4x32xf32>
    %cst_285 = arith.constant 1.000000e+00 : f32
    %672 = vector.broadcast %cst_285 : f32 to vector<4x32xf32>
    %673 = arith.addf %672, %671 : vector<4x32xf32>
    %674 = arith.divf %672, %673 : vector<4x32xf32>
    %675 = vector.extract_strided_slice %663 {offsets = [0, 32], sizes = [4, 32], strides = [1, 1]} : vector<4x128xf32> to vector<4x32xf32>
    %676 = arith.negf %675 : vector<4x32xf32>
    %677 = math.exp %676 : vector<4x32xf32>
    %cst_286 = arith.constant 1.000000e+00 : f32
    %678 = vector.broadcast %cst_286 : f32 to vector<4x32xf32>
    %679 = arith.addf %678, %677 : vector<4x32xf32>
    %680 = arith.divf %678, %679 : vector<4x32xf32>
    %681 = vector.extract_strided_slice %663 {offsets = [0, 64], sizes = [4, 32], strides = [1, 1]} : vector<4x128xf32> to vector<4x32xf32>
    %682 = math.tanh %681 : vector<4x32xf32>
    %683 = vector.extract_strided_slice %663 {offsets = [0, 96], sizes = [4, 32], strides = [1, 1]} : vector<4x128xf32> to vector<4x32xf32>
    %684 = arith.negf %683 : vector<4x32xf32>
    %685 = math.exp %684 : vector<4x32xf32>
    %cst_287 = arith.constant 1.000000e+00 : f32
    %686 = vector.broadcast %cst_287 : f32 to vector<4x32xf32>
    %687 = arith.addf %686, %685 : vector<4x32xf32>
    %688 = arith.divf %686, %687 : vector<4x32xf32>
    %689 = arith.mulf %680, %668 : vector<4x32xf32>
    %690 = arith.mulf %674, %682 : vector<4x32xf32>
    %691 = arith.addf %689, %690 : vector<4x32xf32>
    %692 = math.tanh %691 : vector<4x32xf32>
    %693 = arith.mulf %688, %692 : vector<4x32xf32>
    %c0_288 = arith.constant 0 : index
    %c0_289 = arith.constant 0 : index
    %694 = vector.load %arg8[%c0_288, %c0_289] : memref<4x32xf32, #tpu.memory_space<vmem>>, vector<4x32xf32>
    %695 = vector.extract_strided_slice %667 {offsets = [0, 0], sizes = [4, 32], strides = [1, 1]} : vector<4x128xf32> to vector<4x32xf32>
    %696 = arith.negf %695 : vector<4x32xf32>
    %697 = math.exp %696 : vector<4x32xf32>
    %cst_290 = arith.constant 1.000000e+00 : f32
    %698 = vector.broadcast %cst_290 : f32 to vector<4x32xf32>
    %699 = arith.addf %698, %697 : vector<4x32xf32>
    %700 = arith.divf %698, %699 : vector<4x32xf32>
    %701 = vector.extract_strided_slice %667 {offsets = [0, 32], sizes = [4, 32], strides = [1, 1]} : vector<4x128xf32> to vector<4x32xf32>
    %702 = arith.negf %701 : vector<4x32xf32>
    %703 = math.exp %702 : vector<4x32xf32>
    %cst_291 = arith.constant 1.000000e+00 : f32
    %704 = vector.broadcast %cst_291 : f32 to vector<4x32xf32>
    %705 = arith.addf %704, %703 : vector<4x32xf32>
    %706 = arith.divf %704, %705 : vector<4x32xf32>
    %707 = vector.extract_strided_slice %667 {offsets = [0, 64], sizes = [4, 32], strides = [1, 1]} : vector<4x128xf32> to vector<4x32xf32>
    %708 = math.tanh %707 : vector<4x32xf32>
    %709 = vector.extract_strided_slice %667 {offsets = [0, 96], sizes = [4, 32], strides = [1, 1]} : vector<4x128xf32> to vector<4x32xf32>
    %710 = arith.negf %709 : vector<4x32xf32>
    %711 = math.exp %710 : vector<4x32xf32>
    %cst_292 = arith.constant 1.000000e+00 : f32
    %712 = vector.broadcast %cst_292 : f32 to vector<4x32xf32>
    %713 = arith.addf %712, %711 : vector<4x32xf32>
    %714 = arith.divf %712, %713 : vector<4x32xf32>
    %715 = arith.mulf %706, %694 : vector<4x32xf32>
    %716 = arith.mulf %700, %708 : vector<4x32xf32>
    %717 = arith.addf %715, %716 : vector<4x32xf32>
    %718 = math.tanh %717 : vector<4x32xf32>
    %719 = arith.mulf %714, %718 : vector<4x32xf32>
    %720 = vector.broadcast %c6_i32 : i32 to vector<4x1xi32>
    %721 = arith.cmpi slt, %720, %8 : vector<4x1xi32>
    %722 = vector.broadcast %653 : i32 to vector<4x1xi32>
    %723 = arith.cmpi slt, %722, %8 : vector<4x1xi32>
    %c0_293 = arith.constant 0 : index
    %c0_294 = arith.constant 0 : index
    %724 = vector.load %arg6[%c0_293, %c0_294] : memref<4x32xf32, #tpu.memory_space<vmem>>, vector<4x32xf32>
    %725 = vector.shape_cast %721 : vector<4x1xi1> to vector<4x1xi1>
    %726 = vector.broadcast %725 : vector<4x1xi1> to vector<4x32xi1>
    %727 = arith.select %726, %691, %724 : vector<4x32xi1>, vector<4x32xf32>
    %c0_295 = arith.constant 0 : index
    %c0_296 = arith.constant 0 : index
    %728 = vector.load %arg6[%c0_295, %c0_296] : memref<4x32xf32, #tpu.memory_space<vmem>>, vector<4x32xf32>
    tpu.vector_store %arg6[%c0_295, %c0_296], %727 {strides = array<i32>} : memref<4x32xf32, #tpu.memory_space<vmem>>, vector<4x32xf32>,
    %c0_297 = arith.constant 0 : index
    %c0_298 = arith.constant 0 : index
    %729 = vector.load %arg5[%c0_297, %c0_298] : memref<4x32xf32, #tpu.memory_space<vmem>>, vector<4x32xf32>
    %730 = vector.shape_cast %721 : vector<4x1xi1> to vector<4x1xi1>
    %731 = vector.broadcast %730 : vector<4x1xi1> to vector<4x32xi1>
    %732 = arith.select %731, %693, %729 : vector<4x32xi1>, vector<4x32xf32>
    %c0_299 = arith.constant 0 : index
    %c0_300 = arith.constant 0 : index
    %733 = vector.load %arg5[%c0_299, %c0_300] : memref<4x32xf32, #tpu.memory_space<vmem>>, vector<4x32xf32>
    tpu.vector_store %arg5[%c0_299, %c0_300], %732 {strides = array<i32>} : memref<4x32xf32, #tpu.memory_space<vmem>>, vector<4x32xf32>,
    %c0_301 = arith.constant 0 : index
    %c0_302 = arith.constant 0 : index
    %734 = vector.load %arg8[%c0_301, %c0_302] : memref<4x32xf32, #tpu.memory_space<vmem>>, vector<4x32xf32>
    %735 = vector.shape_cast %723 : vector<4x1xi1> to vector<4x1xi1>
    %736 = vector.broadcast %735 : vector<4x1xi1> to vector<4x32xi1>
    %737 = arith.select %736, %717, %734 : vector<4x32xi1>, vector<4x32xf32>
    %c0_303 = arith.constant 0 : index
    %c0_304 = arith.constant 0 : index
    %738 = vector.load %arg8[%c0_303, %c0_304] : memref<4x32xf32, #tpu.memory_space<vmem>>, vector<4x32xf32>
    tpu.vector_store %arg8[%c0_303, %c0_304], %737 {strides = array<i32>} : memref<4x32xf32, #tpu.memory_space<vmem>>, vector<4x32xf32>,
    %c0_305 = arith.constant 0 : index
    %c0_306 = arith.constant 0 : index
    %739 = vector.load %arg7[%c0_305, %c0_306] : memref<4x32xf32, #tpu.memory_space<vmem>>, vector<4x32xf32>
    %740 = vector.shape_cast %723 : vector<4x1xi1> to vector<4x1xi1>
    %741 = vector.broadcast %740 : vector<4x1xi1> to vector<4x32xi1>
    %742 = arith.select %741, %719, %739 : vector<4x32xi1>, vector<4x32xf32>
    %c0_307 = arith.constant 0 : index
    %c0_308 = arith.constant 0 : index
    %743 = vector.load %arg7[%c0_307, %c0_308] : memref<4x32xf32, #tpu.memory_space<vmem>>, vector<4x32xf32>
    tpu.vector_store %arg7[%c0_307, %c0_308], %742 {strides = array<i32>} : memref<4x32xf32, #tpu.memory_space<vmem>>, vector<4x32xf32>,
    %cst_309 = arith.constant 0.000000e+00 : f32
    %744 = vector.shape_cast %721 : vector<4x1xi1> to vector<4x1xi1>
    %745 = vector.broadcast %744 : vector<4x1xi1> to vector<4x32xi1>
    %746 = vector.broadcast %cst_309 : f32 to vector<4x32xf32>
    %747 = arith.select %745, %693, %746 : vector<4x32xi1>, vector<4x32xf32>
    %cst_310 = arith.constant 0.000000e+00 : f32
    %748 = vector.shape_cast %723 : vector<4x1xi1> to vector<4x1xi1>
    %749 = vector.broadcast %748 : vector<4x1xi1> to vector<4x32xi1>
    %750 = vector.broadcast %cst_310 : f32 to vector<4x32xf32>
    %751 = arith.select %749, %719, %750 : vector<4x32xi1>, vector<4x32xf32>
    %752 = arith.index_cast %c6_i32 : i32 to index
    %c0_311 = arith.constant 0 : index
    %c0_312 = arith.constant 0 : index
    %753 = vector.load %arg4[%752, %c0_311, %c0_312] : memref<8x4x64xf32, #tpu.memory_space<vmem>>, vector<1x4x32xf32>
    %754 = vector.shape_cast %753 : vector<1x4x32xf32> to vector<4x32xf32>
    %755 = vector.shape_cast %747 : vector<4x32xf32> to vector<1x4x32xf32>
    tpu.vector_store %arg4[%752, %c0_311, %c0_312], %755 {strides = array<i32>} : memref<8x4x64xf32, #tpu.memory_space<vmem>>, vector<1x4x32xf32>,
    %756 = arith.index_cast %653 : i32 to index
    %c0_313 = arith.constant 0 : index
    %c32_314 = arith.constant 32 : index
    %757 = vector.load %arg4[%756, %c0_313, %c32_314] : memref<8x4x64xf32, #tpu.memory_space<vmem>>, vector<1x4x32xf32>
    %758 = vector.shape_cast %757 : vector<1x4x32xf32> to vector<4x32xf32>
    %759 = vector.shape_cast %751 : vector<4x32xf32> to vector<1x4x32xf32>
    tpu.vector_store %arg4[%756, %c0_313, %c32_314], %759 {strides = array<i32>} : memref<8x4x64xf32, #tpu.memory_space<vmem>>, vector<1x4x32xf32>,
    %c7_i32_315 = arith.constant 7 : i32
    %c7_i32_316 = arith.constant 7 : i32
    %760 = arith.subi %c7_i32_316, %c7_i32_315 : i32
    %761 = arith.index_cast %c7_i32_315 : i32 to index
    %c0_317 = arith.constant 0 : index
    %c0_318 = arith.constant 0 : index
    %762 = vector.load %arg0[%761, %c0_317, %c0_318] : memref<8x4x256xf32, #tpu.memory_space<vmem>>, vector<1x4x256xf32>
    %763 = vector.shape_cast %762 : vector<1x4x256xf32> to vector<4x256xf32>
    %764 = arith.index_cast %760 : i32 to index
    %c0_319 = arith.constant 0 : index
    %c0_320 = arith.constant 0 : index
    %765 = vector.load %arg0[%764, %c0_319, %c0_320] : memref<8x4x256xf32, #tpu.memory_space<vmem>>, vector<1x4x256xf32>
    %766 = vector.shape_cast %765 : vector<1x4x256xf32> to vector<4x256xf32>
    %767 = vector.extract_strided_slice %763 {offsets = [0, 0], sizes = [4, 128], strides = [1, 1]} : vector<4x256xf32> to vector<4x128xf32>
    %c0_321 = arith.constant 0 : index
    %c0_322 = arith.constant 0 : index
    %768 = vector.load %arg5[%c0_321, %c0_322] : memref<4x32xf32, #tpu.memory_space<vmem>>, vector<4x32xf32>
    %cst_323 = arith.constant dense<0.000000e+00> : vector<4x128xf32>
    %769 = tpu.matmul %768, %9, %cst_323 {dimension_numbers = #tpu.dot_dimension_numbers<[1], [0], [0], [1], [0, 0, 1, 1], [], []>} : vector<4x32xf32>, vector<32x128xf32>, vector<4x128xf32> -> vector<4x128xf32>
    %770 = arith.addf %767, %769 : vector<4x128xf32>
    %771 = vector.extract_strided_slice %766 {offsets = [0, 128], sizes = [4, 128], strides = [1, 1]} : vector<4x256xf32> to vector<4x128xf32>
    %c0_324 = arith.constant 0 : index
    %c0_325 = arith.constant 0 : index
    %772 = vector.load %arg7[%c0_324, %c0_325] : memref<4x32xf32, #tpu.memory_space<vmem>>, vector<4x32xf32>
    %cst_326 = arith.constant dense<0.000000e+00> : vector<4x128xf32>
    %773 = tpu.matmul %772, %10, %cst_326 {dimension_numbers = #tpu.dot_dimension_numbers<[1], [0], [0], [1], [0, 0, 1, 1], [], []>} : vector<4x32xf32>, vector<32x128xf32>, vector<4x128xf32> -> vector<4x128xf32>
    %774 = arith.addf %771, %773 : vector<4x128xf32>
    %c0_327 = arith.constant 0 : index
    %c0_328 = arith.constant 0 : index
    %775 = vector.load %arg6[%c0_327, %c0_328] : memref<4x32xf32, #tpu.memory_space<vmem>>, vector<4x32xf32>
    %776 = vector.extract_strided_slice %770 {offsets = [0, 0], sizes = [4, 32], strides = [1, 1]} : vector<4x128xf32> to vector<4x32xf32>
    %777 = arith.negf %776 : vector<4x32xf32>
    %778 = math.exp %777 : vector<4x32xf32>
    %cst_329 = arith.constant 1.000000e+00 : f32
    %779 = vector.broadcast %cst_329 : f32 to vector<4x32xf32>
    %780 = arith.addf %779, %778 : vector<4x32xf32>
    %781 = arith.divf %779, %780 : vector<4x32xf32>
    %782 = vector.extract_strided_slice %770 {offsets = [0, 32], sizes = [4, 32], strides = [1, 1]} : vector<4x128xf32> to vector<4x32xf32>
    %783 = arith.negf %782 : vector<4x32xf32>
    %784 = math.exp %783 : vector<4x32xf32>
    %cst_330 = arith.constant 1.000000e+00 : f32
    %785 = vector.broadcast %cst_330 : f32 to vector<4x32xf32>
    %786 = arith.addf %785, %784 : vector<4x32xf32>
    %787 = arith.divf %785, %786 : vector<4x32xf32>
    %788 = vector.extract_strided_slice %770 {offsets = [0, 64], sizes = [4, 32], strides = [1, 1]} : vector<4x128xf32> to vector<4x32xf32>
    %789 = math.tanh %788 : vector<4x32xf32>
    %790 = vector.extract_strided_slice %770 {offsets = [0, 96], sizes = [4, 32], strides = [1, 1]} : vector<4x128xf32> to vector<4x32xf32>
    %791 = arith.negf %790 : vector<4x32xf32>
    %792 = math.exp %791 : vector<4x32xf32>
    %cst_331 = arith.constant 1.000000e+00 : f32
    %793 = vector.broadcast %cst_331 : f32 to vector<4x32xf32>
    %794 = arith.addf %793, %792 : vector<4x32xf32>
    %795 = arith.divf %793, %794 : vector<4x32xf32>
    %796 = arith.mulf %787, %775 : vector<4x32xf32>
    %797 = arith.mulf %781, %789 : vector<4x32xf32>
    %798 = arith.addf %796, %797 : vector<4x32xf32>
    %799 = math.tanh %798 : vector<4x32xf32>
    %800 = arith.mulf %795, %799 : vector<4x32xf32>
    %c0_332 = arith.constant 0 : index
    %c0_333 = arith.constant 0 : index
    %801 = vector.load %arg8[%c0_332, %c0_333] : memref<4x32xf32, #tpu.memory_space<vmem>>, vector<4x32xf32>
    %802 = vector.extract_strided_slice %774 {offsets = [0, 0], sizes = [4, 32], strides = [1, 1]} : vector<4x128xf32> to vector<4x32xf32>
    %803 = arith.negf %802 : vector<4x32xf32>
    %804 = math.exp %803 : vector<4x32xf32>
    %cst_334 = arith.constant 1.000000e+00 : f32
    %805 = vector.broadcast %cst_334 : f32 to vector<4x32xf32>
    %806 = arith.addf %805, %804 : vector<4x32xf32>
    %807 = arith.divf %805, %806 : vector<4x32xf32>
    %808 = vector.extract_strided_slice %774 {offsets = [0, 32], sizes = [4, 32], strides = [1, 1]} : vector<4x128xf32> to vector<4x32xf32>
    %809 = arith.negf %808 : vector<4x32xf32>
    %810 = math.exp %809 : vector<4x32xf32>
    %cst_335 = arith.constant 1.000000e+00 : f32
    %811 = vector.broadcast %cst_335 : f32 to vector<4x32xf32>
    %812 = arith.addf %811, %810 : vector<4x32xf32>
    %813 = arith.divf %811, %812 : vector<4x32xf32>
    %814 = vector.extract_strided_slice %774 {offsets = [0, 64], sizes = [4, 32], strides = [1, 1]} : vector<4x128xf32> to vector<4x32xf32>
    %815 = math.tanh %814 : vector<4x32xf32>
    %816 = vector.extract_strided_slice %774 {offsets = [0, 96], sizes = [4, 32], strides = [1, 1]} : vector<4x128xf32> to vector<4x32xf32>
    %817 = arith.negf %816 : vector<4x32xf32>
    %818 = math.exp %817 : vector<4x32xf32>
    %cst_336 = arith.constant 1.000000e+00 : f32
    %819 = vector.broadcast %cst_336 : f32 to vector<4x32xf32>
    %820 = arith.addf %819, %818 : vector<4x32xf32>
    %821 = arith.divf %819, %820 : vector<4x32xf32>
    %822 = arith.mulf %813, %801 : vector<4x32xf32>
    %823 = arith.mulf %807, %815 : vector<4x32xf32>
    %824 = arith.addf %822, %823 : vector<4x32xf32>
    %825 = math.tanh %824 : vector<4x32xf32>
    %826 = arith.mulf %821, %825 : vector<4x32xf32>
    %827 = vector.broadcast %c7_i32_315 : i32 to vector<4x1xi32>
    %828 = arith.cmpi slt, %827, %8 : vector<4x1xi32>
    %829 = vector.broadcast %760 : i32 to vector<4x1xi32>
    %830 = arith.cmpi slt, %829, %8 : vector<4x1xi32>
    %c0_337 = arith.constant 0 : index
    %c0_338 = arith.constant 0 : index
    %831 = vector.load %arg6[%c0_337, %c0_338] : memref<4x32xf32, #tpu.memory_space<vmem>>, vector<4x32xf32>
    %832 = vector.shape_cast %828 : vector<4x1xi1> to vector<4x1xi1>
    %833 = vector.broadcast %832 : vector<4x1xi1> to vector<4x32xi1>
    %834 = arith.select %833, %798, %831 : vector<4x32xi1>, vector<4x32xf32>
    %c0_339 = arith.constant 0 : index
    %c0_340 = arith.constant 0 : index
    %835 = vector.load %arg6[%c0_339, %c0_340] : memref<4x32xf32, #tpu.memory_space<vmem>>, vector<4x32xf32>
    tpu.vector_store %arg6[%c0_339, %c0_340], %834 {strides = array<i32>} : memref<4x32xf32, #tpu.memory_space<vmem>>, vector<4x32xf32>,
    %c0_341 = arith.constant 0 : index
    %c0_342 = arith.constant 0 : index
    %836 = vector.load %arg5[%c0_341, %c0_342] : memref<4x32xf32, #tpu.memory_space<vmem>>, vector<4x32xf32>
    %837 = vector.shape_cast %828 : vector<4x1xi1> to vector<4x1xi1>
    %838 = vector.broadcast %837 : vector<4x1xi1> to vector<4x32xi1>
    %839 = arith.select %838, %800, %836 : vector<4x32xi1>, vector<4x32xf32>
    %c0_343 = arith.constant 0 : index
    %c0_344 = arith.constant 0 : index
    %840 = vector.load %arg5[%c0_343, %c0_344] : memref<4x32xf32, #tpu.memory_space<vmem>>, vector<4x32xf32>
    tpu.vector_store %arg5[%c0_343, %c0_344], %839 {strides = array<i32>} : memref<4x32xf32, #tpu.memory_space<vmem>>, vector<4x32xf32>,
    %c0_345 = arith.constant 0 : index
    %c0_346 = arith.constant 0 : index
    %841 = vector.load %arg8[%c0_345, %c0_346] : memref<4x32xf32, #tpu.memory_space<vmem>>, vector<4x32xf32>
    %842 = vector.shape_cast %830 : vector<4x1xi1> to vector<4x1xi1>
    %843 = vector.broadcast %842 : vector<4x1xi1> to vector<4x32xi1>
    %844 = arith.select %843, %824, %841 : vector<4x32xi1>, vector<4x32xf32>
    %c0_347 = arith.constant 0 : index
    %c0_348 = arith.constant 0 : index
    %845 = vector.load %arg8[%c0_347, %c0_348] : memref<4x32xf32, #tpu.memory_space<vmem>>, vector<4x32xf32>
    tpu.vector_store %arg8[%c0_347, %c0_348], %844 {strides = array<i32>} : memref<4x32xf32, #tpu.memory_space<vmem>>, vector<4x32xf32>,
    %c0_349 = arith.constant 0 : index
    %c0_350 = arith.constant 0 : index
    %846 = vector.load %arg7[%c0_349, %c0_350] : memref<4x32xf32, #tpu.memory_space<vmem>>, vector<4x32xf32>
    %847 = vector.shape_cast %830 : vector<4x1xi1> to vector<4x1xi1>
    %848 = vector.broadcast %847 : vector<4x1xi1> to vector<4x32xi1>
    %849 = arith.select %848, %826, %846 : vector<4x32xi1>, vector<4x32xf32>
    %c0_351 = arith.constant 0 : index
    %c0_352 = arith.constant 0 : index
    %850 = vector.load %arg7[%c0_351, %c0_352] : memref<4x32xf32, #tpu.memory_space<vmem>>, vector<4x32xf32>
    tpu.vector_store %arg7[%c0_351, %c0_352], %849 {strides = array<i32>} : memref<4x32xf32, #tpu.memory_space<vmem>>, vector<4x32xf32>,
    %cst_353 = arith.constant 0.000000e+00 : f32
    %851 = vector.shape_cast %828 : vector<4x1xi1> to vector<4x1xi1>
    %852 = vector.broadcast %851 : vector<4x1xi1> to vector<4x32xi1>
    %853 = vector.broadcast %cst_353 : f32 to vector<4x32xf32>
    %854 = arith.select %852, %800, %853 : vector<4x32xi1>, vector<4x32xf32>
    %cst_354 = arith.constant 0.000000e+00 : f32
    %855 = vector.shape_cast %830 : vector<4x1xi1> to vector<4x1xi1>
    %856 = vector.broadcast %855 : vector<4x1xi1> to vector<4x32xi1>
    %857 = vector.broadcast %cst_354 : f32 to vector<4x32xf32>
    %858 = arith.select %856, %826, %857 : vector<4x32xi1>, vector<4x32xf32>
    %859 = arith.index_cast %c7_i32_315 : i32 to index
    %c0_355 = arith.constant 0 : index
    %c0_356 = arith.constant 0 : index
    %860 = vector.load %arg4[%859, %c0_355, %c0_356] : memref<8x4x64xf32, #tpu.memory_space<vmem>>, vector<1x4x32xf32>
    %861 = vector.shape_cast %860 : vector<1x4x32xf32> to vector<4x32xf32>
    %862 = vector.shape_cast %854 : vector<4x32xf32> to vector<1x4x32xf32>
    tpu.vector_store %arg4[%859, %c0_355, %c0_356], %862 {strides = array<i32>} : memref<8x4x64xf32, #tpu.memory_space<vmem>>, vector<1x4x32xf32>,
    %863 = arith.index_cast %760 : i32 to index
    %c0_357 = arith.constant 0 : index
    %c32_358 = arith.constant 32 : index
    %864 = vector.load %arg4[%863, %c0_357, %c32_358] : memref<8x4x64xf32, #tpu.memory_space<vmem>>, vector<1x4x32xf32>
    %865 = vector.shape_cast %864 : vector<1x4x32xf32> to vector<4x32xf32>
    %866 = vector.shape_cast %858 : vector<4x32xf32> to vector<1x4x32xf32>
    tpu.vector_store %arg4[%863, %c0_357, %c32_358], %866 {strides = array<i32>} : memref<8x4x64xf32, #tpu.memory_space<vmem>>, vector<1x4x32xf32>,
    %c8_i32 = arith.constant 8 : i32
    return
  }
}

</mosaic_0001>

<bundles_post_ra>
// kernel: bilstm_maxpool_encoder.3
= control target key start
LH: loop header
LB: loop body
LE: loop exit
PB: predicated region body
PF: predicated region fallthrough
CT: control target
= control target key end

     0   :  { %vm18_vm0 = vcmask 257024   ;;  %v1861_v2 = vmov 0.0   ;;  %s2462_s0 = inlined_call_operand.vmem [shape: f32[8,4,256], index: 0, kind: input, shape index: {}]   ;;  %s2463_s1 = inlined_call_operand.vmem [shape: s32[4,1], index: 1, kind: input, shape index: {}]   ;;  %s2464_s2 = inlined_call_operand.vmem [shape: f32[32,128], index: 2, kind: input, shape index: {}]   ;;  %s2465_s3 = inlined_call_operand.vmem [shape: f32[32,128], index: 3, kind: input, shape index: {}]   ;;  %s2466_s4 = inlined_call_operand.hbm [shape: f32[4,64], index: 4, kind: output, shape index: {}]  }
   0x1   :  { %v1896_v0 = vld [vmem:[%s2464_s2 + $0x18] sm:$0xff]  ;;  %v1901_v1 = vld [vmem:[%s2464_s2 + $0x10] sm:$0xff]  ;;  %19 = vst.msk [vmem:[#allocation2] sm:$0xf] %vm18_vm0, %v1861_v2  ;;  %v1919_v5 = vld [vmem:[%s2464_s2 + $0x8] sm:$0xff] }
   0x2   :  { %54 = vmatpush.msra.mxu0 %v1896_v0  ;;  %v1908_v3 = vld [vmem:[%s2465_s3 + $0x18] sm:$0xff]  ;;  %v1913_v4 = vld [vmem:[%s2465_s3 + $0x10] sm:$0xff]  ;;  %260 = vmatpush.msra.mxu2 %v1896_v0  ;;  %20 = vst.msk [vmem:[#allocation3] sm:$0xf] %vm18_vm0, %v1861_v2  ;;  %v1929_v6 = vld [vmem:[%s2465_s3 + $0x8] sm:$0xff] }
   0x3   :  { %79 = vmatpush.msra.mxu1 %v1908_v3  ;;  %285 = vmatpush.msra.mxu3 %v1908_v3  ;;  %21 = vst.msk [vmem:[#allocation4] sm:$0xf] %vm18_vm0, %v1861_v2 }
   0x4   :  { %55 = vmatpush.msra.mxu0 %v1901_v1  ;;  %261 = vmatpush.msra.mxu2 %v1901_v1 }
   0x5   :  { %9 = vsyncpa [#allocation9], 0  ;;  %v1935_v7 = vld [vmem:[%s2464_s2] sm:$0xff]  ;;  %22 = vst.msk [vmem:[#allocation5] sm:$0xf] %vm18_vm0, %v1861_v2  ;;  %80 = vmatpush.msra.mxu1 %v1913_v4  ;;  %286 = vmatpush.msra.mxu3 %v1913_v4  ;;  %vm38_vm1 = vcmask 261120  }
   0x6   :  { %56 = vmatpush.msra.mxu0 %v1919_v5  ;;  %v1944_v8 = vld [vmem:[%s2465_s3] sm:$0xff]  ;;  %262 = vmatpush.msra.mxu2 %v1919_v5  ;;  %s1862_s2 = smov 32   ;;  %v1651_v14 = vld [vmem:[%s2462_s0 + $0x38] sm:$0xff]  ;;  %s1863_s8 = smov 64   ;;  %v1864_v63 = vmov 0  }
   0x7   :  { %81 = vmatpush.msra.mxu1 %v1929_v6  ;;  %287 = vmatpush.msra.mxu3 %v1929_v6  ;;  %v34_v13 = vld [vmem:[%s2462_s0] sm:$0xff]  ;;  %v88_v17 = vrot.slane %v1651_v14, 4  ;;  %s1642_s6 = sshll.u32 %s2466_s4, 4  ;;  %s1643_s6 = int_to_ptr.hbm [resolvable:$true] %s1642_s6 }
   0x8   :  { %57 = vmatpush.msra.mxu0 %v1935_v7  ;;  %263 = vmatpush.msra.mxu2 %v1935_v7  ;;  %v37_v9 = vld [vmem:[#allocation2] sm:$0xf]  ;;  %v1999_v62 = vld [vmem:[%s2463_s1] sm:$0xf]  ;;  %s1865_s1 = smov 96  }
   0x9   :  { %82 = vmatpush.msra.mxu1 %v1944_v8  ;;  %288 = vmatpush.msra.mxu3 %v1944_v8  ;;  %v1954_v10 = vld [vmem:[#allocation3] sm:$0xf]  ;;  %vm176_vm10 = vcmp.gt.s32.totalorder %v1999_v62, 7  ;;  %vm175_vm11 = vcmp.gt.s32.totalorder %v1999_v62, 0 }
   0xa   :  { %1652 = vmatmul.msk.f32.vlgmr.msra.gmra.mxu0 %vm38_vm1, %v37_v9  ;;  %v63_v11 = vld [vmem:[#allocation4] sm:$0xf]  ;;  %113 = vrot.lane.b32.xlu1 %v1954_v10, %s1862_s2  ;;  %v200_v2 = vsel %vm176_vm10, 1, %v1864_v63  ;;  %v177_v9 = vsel %vm175_vm11, 1, %v1864_v63 }
   0xb   :  { %491 = vmatpush.msrb.mxu1 %v1908_v3  ;;  %466 = vmatpush.msrb.mxu0 %v1896_v0 }
   0xc   :  { %1653 = vmatmul.msk.f32.vlgmr.msra.gmra.mxu1 %vm38_vm1, %v63_v11  ;;  %v133_v12 = vld [vmem:[#allocation5] sm:$0xf]  ;;  %672 = vmatpush.msrb.mxu2 %v1896_v0 }
   0xd   :  { %155 = vrot.lane.b32.xlu2 %v133_v12, %s1862_s2  ;;  %467 = vmatpush.msrb.mxu0 %v1901_v1 }
   0xe   :  { %492 = vmatpush.msrb.mxu1 %v1913_v4  ;;  %673 = vmatpush.msrb.mxu2 %v1901_v1 }
   0xf   :  { %468 = vmatpush.msrb.mxu0 %v1919_v5  ;;  %697 = vmatpush.msrb.mxu3 %v1908_v3 }
  0x10   :  { %493 = vmatpush.msrb.mxu1 %v1929_v6  ;;  %674 = vmatpush.msrb.mxu2 %v1919_v5 }
  0x11   :  { %469 = vmatpush.msrb.mxu0 %v1935_v7  ;;  %698 = vmatpush.msrb.mxu3 %v1913_v4 }
  0x12   :  { %494 = vmatpush.msrb.mxu1 %v1944_v8  ;;  %675 = vmatpush.msrb.mxu2 %v1935_v7 }
  0x13   :  { %699 = vmatpush.msrb.mxu3 %v1929_v6  ;;  %876 = vmatpush.msra.mxu0 %v1896_v0 }
  0x14   :  { %901 = vmatpush.msra.mxu1 %v1908_v3  ;;  %1705 = vset.pattern.permute.xlu1 %v1864_v63 }
  0x15   :  { %700 = vmatpush.msrb.mxu3 %v1944_v8  ;;  %877 = vmatpush.msra.mxu0 %v1901_v1 }
  0x16   :  { %902 = vmatpush.msra.mxu1 %v1913_v4  ;;  %1704 = vset.pattern.permute.xlu2 %v1864_v63 }
  0x17   :  { %878 = vmatpush.msra.mxu0 %v1919_v5  ;;  %1706 = vset.pattern.permute.xlu0 %v1864_v63 }
  0x18   :  { %903 = vmatpush.msra.mxu1 %v1929_v6 }
  0x19   :  { %879 = vmatpush.msra.mxu0 %v1935_v7 }
  0x1a   :  { %904 = vmatpush.msra.mxu1 %v1944_v8 }
  0x67   :  { %v156_v52 = vpop.permute.xlu2 %155 }
  0x7c   :  { %v114_v56 = vpop.permute.xlu1 %113 }
  0x87   :  { %v59_v15 = vpop.f32.mrf.mxu0 }
  0x88   :  { %v62_v16 = vadd.f32 %v59_v15, %v34_v13 }
  0x89   :  { %v84_v18 = vpop.f32.mrf.mxu1 }
  0x8a   :  { %1707 = vtanh.f32 %v62_v16  ;;  %v90_v19 = vadd.f32 %v88_v17, %v84_v18  ;;  %v1654_v22 = vmul.f32 -1.442695, %v62_v16 }
  0x8c   :  { %1709 = vtanh.f32 %v90_v19  ;;  %v1655_v23 = vmul.f32 -1.442695, %v90_v19 }
  0x8d   :  { %1711 = vpow2.f32 %v1654_v22  ;;  %v213_v22 = vld [vmem:[#allocation4] sm:$0xf] }
  0x8e   :  { %1713 = vpow2.f32 %v1655_v23 }
  0x90   :  { %v1708_v20 = vpop.eup %1707 }
  0x91   :  { %118 = vrot.lane.b32.xlu0 %v1708_v20, %s1863_s8 }
  0x92   :  { %v1710_v21 = vpop.eup %1709 }
  0x93   :  { %v1712_v24 = vpop.eup %1711 }
  0x94   :  { %v95_v25 = vadd.f32 1.0, %v1712_v24  ;;  %v1714_v26 = vpop.eup %1713 }
  0x95   :  { %v137_v27 = vadd.f32 1.0, %v1714_v26  ;;  %v199_v26 = vld [vmem:[#allocation5] sm:$0xf] }
  0x96   :  { %1715 = vrcp.f32 %v95_v25  ;;  %v107_v36 = vand.u32 2147483648, %v95_v25  ;;  %vm101_vm3 = vweird.f32 %v95_v25  ;;  %v105_v37 = vand.u32 2147483647, %v95_v25 }
  0x97   :  { %1717 = vrcp.f32 %v137_v27  ;;  %vm143_vm6 = vweird.f32 %v137_v27  ;;  %v149_v42 = vand.u32 2147483648, %v137_v27  ;;  %v147_v45 = vand.u32 2147483647, %v137_v27 }
  0x98   :  { %v108_v40 = vor.u32 1.1754944e-38, %v107_v36  ;;  %vm106_vm5 = vcmp.eq.f32.partialorder %v105_v37, 8.507059e+37 }
  0x99   :  { %160 = vrot.lane.b32.xlu0 %v1710_v21, %s1863_s8  ;;  %v150_v47 = vor.u32 1.1754944e-38, %v149_v42  ;;  %vm148_vm9 = vcmp.eq.f32.partialorder %v147_v45, 8.507059e+37 }
  0x9c   :  { %v1716_v28 = vpop.eup %1715 }
  0x9d   :  { %v97_v29 = vmul.f32 %v1716_v28, %v95_v25  ;;  %v1718_v31 = vpop.eup %1717  ;;  %vm102_vm2 = vweird.f32 %v1716_v28  ;;  %v190_v25 = vld [vmem:[#allocation2] sm:$0xf] }
  0x9e   :  { %v139_v33 = vmul.f32 %v1718_v31, %v137_v27  ;;  %vm103_vm4 = vmor %vm101_vm3, %vm102_vm2  ;;  %vm144_vm7 = vweird.f32 %v1718_v31 }
  0x9f   :  { %v98_v30 = vsub.f32 1.0, %v97_v29  ;;  %vm145_vm8 = vmor %vm143_vm6, %vm144_vm7  ;;  %vm381_vm7 = vcmp.gt.s32.totalorder %v1999_v62, 1 }
  0xa0   :  { %v140_v35 = vsub.f32 1.0, %v139_v33 }
  0xa1   :  { %v99_v32 = vmul.f32 %v1716_v28, %v98_v30 }
  0xa2   :  { %v141_v39 = vmul.f32 %v1718_v31, %v140_v35  ;;  %v1657_v35 = vld [vmem:[%s2462_s0 + $0x30] sm:$0xff] }
  0xa3   :  { %v100_v34 = vadd.f32 %v1716_v28, %v99_v32 }
  0xa4   :  { %v142_v44 = vadd.f32 %v1718_v31, %v141_v39 }
  0xa5   :  { %v104_v38 = vsel %vm103_vm4, %v1716_v28, %v100_v34 }
  0xa6   :  { %v109_v41 = vsel %vm106_vm5, %v108_v40, %v104_v38  ;;  %v146_v48 = vsel %vm145_vm8, %v1718_v31, %v142_v44  ;;  %v1656_v38 = vld [vmem:[%s2462_s0 + $0x8] sm:$0xff] }
  0xa7   :  { %v151_v49 = vsel %vm148_vm9, %v150_v47, %v146_v48  ;;  %v116_v58 = vmul.f32 %v114_v56, %v109_v41  ;;  %vm382_vm9 = vcmp.gt.s32.totalorder %v1999_v62, 6 }
  0xa8   :  { %v158_v53 = vmul.f32 %v156_v52, %v151_v49 }
 0x103   :  { %v119_v43 = vpop.permute.xlu0 %118 }
 0x104   :  { %v121_v46 = vmul.f32 %v119_v43, %v109_v41 }
 0x106   :  { %123 = vrot.lane.b32.xlu1 %v121_v46, %s1862_s2 }
 0x10b   :  { %v161_v50 = vpop.permute.xlu0 %160 }
 0x10c   :  { %v163_v51 = vmul.f32 %v161_v50, %v151_v49 }
 0x10e   :  { %165 = vrot.lane.b32.xlu2 %v163_v51, %s1862_s2 }
 0x116   :  { %179 = vperm.xlu2 %1704, %v177_v9  }
 0x168   :  { %v166_v54 = vpop.permute.xlu2 %165 }
 0x169   :  { %v168_v55 = vadd.f32 %v166_v54, %v158_v53 }
 0x16b   :  { %1719 = vtanh.f32 %v168_v55 }
 0x170   :  { %v2014_v20 = vpop.permute.xlu2 %179 }
 0x171   :  { %v1720_v57 = vpop.eup %1719  ;;  %vm181_vm13 = vcmp.eq.s32.totalorder %v2014_v20, 1 }
 0x172   :  { %171 = vrot.lane.b32.xlu1 %v1720_v57, %s1863_s8 }
 0x178   :  { %v124_v59 = vpop.permute.xlu1 %123 }
 0x179   :  { %v126_v60 = vadd.f32 %v124_v59, %v116_v58 }
 0x17a   :  { %202 = vperm.xlu1 %1705, %v200_v2  }
 0x17b   :  { %1721 = vtanh.f32 %v126_v60  ;;  %183 = vst [vmem:[#allocation1] ss:$2 sm:$0xff] %v126_v60 }
 0x181   :  { %v1722_v61 = vpop.eup %1721 }
 0x182   :  { %129 = vrot.lane.b32.xlu0 %v1722_v61, %s1863_s8  ;;  %v184_v13 = vld.sshfl [vmem:[#allocation1] sm:$0xff pattern:$0x75316420] }
 0x1e4   :  { %v172_v15 = vpop.permute.xlu1 %171 }
 0x1e5   :  { %v174_v16 = vmul.f32 %v172_v15, %v151_v49 }
 0x1ec   :  { %v2016_v21 = vpop.permute.xlu1 %202 }
 0x1ed   :  { %vm204_vm12 = vcmp.eq.s32.totalorder %v2016_v21, 1 }
 0x1f4   :  { %v130_v11 = vpop.permute.xlu0 %129 }
 0x1f5   :  { %v132_v12 = vmul.f32 %v130_v11, %v109_v41 }
 0x1f7   :  { %192 = vst [vmem:[#allocation1] ss:$2 sm:$0xff] %v132_v12 }
 0x1fe   :  { %v193_v14 = vld.sshfl [vmem:[#allocation1] sm:$0xff pattern:$0x75316420] }
 0x1ff   :  { %206 = vst [vmem:[#allocation1] ss:$2 sm:$0xff] %v168_v55  ;;  %194 = vrot.lane.b32.xlu0 %v193_v14, %s1862_s2 }
 0x206   :  { %v207_v17 = vld.sshfl [vmem:[#allocation1] sm:$0xff pattern:$0x75316420] }
 0x207   :  { %215 = vst [vmem:[#allocation1] ss:$2 sm:$0xff] %v174_v16  ;;  %185 = vrot.lane.b32.xlu0 %v184_v13, %s1865_s1 }
 0x20e   :  { %v216_v18 = vld.sshfl [vmem:[#allocation1] sm:$0xff pattern:$0x75316420] }
 0x20f   :  { %222 = vst [vmem:[#allocation1] ss:$2 sm:$0xff] %v132_v12  ;;  %217 = vrot.lane.b32.xlu2 %v216_v18, %s1862_s2 }
 0x216   :  { %v2011_v19 = vld.sshfl [vmem:[#allocation1] sm:$0xff pattern:$0x75316420] }
 0x217   :  { %228 = vst [vmem:[#allocation1] ss:$2 sm:$0xff] %v174_v16  ;;  %208 = vrot.lane.b32.xlu2 %v207_v17, %s1865_s1 }
 0x269   :  { %v218_v23 = vpop.permute.xlu2 %217 }
 0x26a   :  { %v220_v24 = vsel %vm204_vm12, %v218_v23, %v213_v22 }
 0x26b   :  { %221 = vst.msk [vmem:[#allocation4] sm:$0xf] %vm18_vm0, %v220_v24  ;;  %v383_v24 = vsel %vm381_vm7, 1, %v1864_v63 }
 0x271   :  { %v195_v27 = vpop.permute.xlu0 %194  ;;  %v209_v28 = vpop.permute.xlu2 %208 }
 0x272   :  { %v197_v29 = vsel %vm181_vm13, %v195_v27, %v190_v25  ;;  %v211_v30 = vsel %vm204_vm12, %v209_v28, %v199_v26  ;;  %v269_v31 = vld [vmem:[#allocation4] sm:$0xf] }
 0x273   :  { %198 = vst.msk [vmem:[#allocation2] sm:$0xf] %vm18_vm0, %v197_v29  ;;  %1659 = vmatmul.msk.f32.vlgmr.msra.gmra.mxu3 %vm38_vm1, %v269_v31 }
 0x274   :  { %212 = vst.msk [vmem:[#allocation5] sm:$0xf] %vm18_vm0, %v211_v30  ;;  %1093 = vmatpush.msra.mxu3 %v1908_v3  ;;  %v2060_v30 = vld.sshfl [vmem:[#allocation1] sm:$0xff pattern:$0x75316420] }
 0x276   :  { %1094 = vmatpush.msra.mxu3 %v1913_v4 }
 0x278   :  { %1095 = vmatpush.msra.mxu3 %v1929_v6 }
 0x279   :  { %v186_v32 = vpop.permute.xlu0 %185 }
 0x27a   :  { %v188_v33 = vsel %vm181_vm13, %v186_v32, %v1954_v10  ;;  %v244_v34 = vld [vmem:[#allocation2] sm:$0xf]  ;;  %1096 = vmatpush.msra.mxu3 %v1944_v8  ;;  %v294_v10 = vrot.slane %v1657_v35, 4 }
 0x27b   :  { %189 = vst.msk [vmem:[#allocation3] sm:$0xf] %vm18_vm0, %v188_v33  ;;  %1658 = vmatmul.msk.f32.vlgmr.msra.gmra.mxu2 %vm38_vm1, %v244_v34  ;;  %v339_v43 = vld [vmem:[#allocation5] sm:$0xf] }
 0x27c   :  { %1068 = vmatpush.msra.mxu2 %v1896_v0 }
 0x27e   :  { %1069 = vmatpush.msra.mxu2 %v1901_v1 }
 0x280   :  { %1070 = vmatpush.msra.mxu2 %v1919_v5 }
 0x282   :  { %1071 = vmatpush.msra.mxu2 %v1935_v7  ;;  %v2052_v44 = vld [vmem:[#allocation3] sm:$0xf] }
 0x2f6   :  { %v290_v36 = vpop.f32.mrf.mxu3 }
 0x2f7   :  { %v296_v37 = vadd.f32 %v294_v10, %v290_v36  ;;  %v406_v36 = vsel %vm382_vm9, 1, %v1864_v63  ;;  %vm588_vm9 = vcmp.gt.s32.totalorder %v1999_v62, 5 }
 0x2f9   :  { %1723 = vtanh.f32 %v296_v37  ;;  %v1661_v45 = vmul.f32 -1.442695, %v296_v37 }
 0x2fe   :  { %v265_v39 = vpop.f32.mrf.mxu2 }
 0x2ff   :  { %v1724_v40 = vpop.eup %1723  ;;  %v268_v41 = vadd.f32 %v1656_v38, %v265_v39 }
 0x300   :  { %366 = vrot.lane.b32.xlu0 %v1724_v40, %s1863_s8 }
 0x301   :  { %1725 = vtanh.f32 %v268_v41  ;;  %v1660_v46 = vmul.f32 -1.442695, %v268_v41 }
 0x302   :  { %1727 = vpow2.f32 %v1661_v45 }
 0x303   :  { %1729 = vpow2.f32 %v1660_v46 }
 0x307   :  { %v1726_v42 = vpop.eup %1725 }
 0x308   :  { %324 = vrot.lane.b32.xlu1 %v1726_v42, %s1863_s8  ;;  %361 = vrot.lane.b32.xlu0 %v339_v43, %s1862_s2  ;;  %v1728_v47 = vpop.eup %1727 }
 0x309   :  { %v343_v48 = vadd.f32 1.0, %v1728_v47  ;;  %v1730_v49 = vpop.eup %1729 }
 0x30a   :  { %v301_v50 = vadd.f32 1.0, %v1730_v49 }
 0x30b   :  { %1731 = vrcp.f32 %v343_v48  ;;  %v355_v59 = vand.u32 2147483648, %v343_v48  ;;  %vm349_vm15 = vweird.f32 %v343_v48  ;;  %v353_v60 = vand.u32 2147483647, %v343_v48 }
 0x30c   :  { %1733 = vrcp.f32 %v301_v50  ;;  %v313_v15 = vand.u32 2147483648, %v301_v50  ;;  %vm307_vm5 = vweird.f32 %v301_v50  ;;  %v311_v16 = vand.u32 2147483647, %v301_v50 }
 0x30d   :  { %v356_v9 = vor.u32 1.1754944e-38, %v355_v59  ;;  %vm354_vm3 = vcmp.eq.f32.partialorder %v353_v60, 8.507059e+37 }
 0x30e   :  { %v314_v18 = vor.u32 1.1754944e-38, %v313_v15  ;;  %vm312_vm8 = vcmp.eq.f32.partialorder %v311_v16, 8.507059e+37 }
 0x310   :  { %319 = vrot.lane.b32.xlu1 %v2052_v44, %s1862_s2 }
 0x311   :  { %v1732_v51 = vpop.eup %1731 }
 0x312   :  { %v345_v52 = vmul.f32 %v1732_v51, %v343_v48  ;;  %v1734_v54 = vpop.eup %1733  ;;  %vm350_vm14 = vweird.f32 %v1732_v51  ;;  %v396_v48 = vld [vmem:[#allocation2] sm:$0xf] }
 0x313   :  { %v303_v56 = vmul.f32 %v1734_v54, %v301_v50  ;;  %vm351_vm2 = vmor %vm349_vm15, %vm350_vm14  ;;  %vm308_vm4 = vweird.f32 %v1734_v54 }
 0x314   :  { %v346_v53 = vsub.f32 1.0, %v345_v52  ;;  %vm309_vm6 = vmor %vm307_vm5, %vm308_vm4 }
 0x315   :  { %v304_v58 = vsub.f32 1.0, %v303_v56 }
 0x316   :  { %v347_v55 = vmul.f32 %v1732_v51, %v346_v53 }
 0x317   :  { %v305_v2 = vmul.f32 %v1734_v54, %v304_v58 }
 0x318   :  { %v348_v57 = vadd.f32 %v1732_v51, %v347_v55  ;;  %v405_v55 = vld [vmem:[#allocation5] sm:$0xf] }
 0x319   :  { %v306_v14 = vadd.f32 %v1734_v54, %v305_v2 }
 0x31a   :  { %v352_v61 = vsel %vm351_vm2, %v1732_v51, %v348_v57  ;;  %v419_v57 = vld [vmem:[#allocation4] sm:$0xf] }
 0x31b   :  { %v357_v12 = vsel %vm354_vm3, %v356_v9, %v352_v61  ;;  %v310_v17 = vsel %vm309_vm6, %v1734_v54, %v306_v14  ;;  %v2104_v61 = vld [vmem:[%s2462_s0 + $0x10] sm:$0xff] }
 0x31c   :  { %v315_v23 = vsel %vm312_vm8, %v314_v18, %v310_v17  ;;  %vm587_vm8 = vcmp.gt.s32.totalorder %v1999_v62, 2 }
 0x372   :  { %v367_v11 = vpop.permute.xlu0 %366 }
 0x373   :  { %v369_v13 = vmul.f32 %v367_v11, %v357_v12 }
 0x375   :  { %371 = vrot.lane.b32.xlu1 %v369_v13, %s1862_s2  ;;  %v2115_v13 = vld [vmem:[%s2462_s0 + $0x28] sm:$0xff] }
 0x376   :  { %v500_v14 = vrot.slane %v2115_v13, 4 }
 0x37a   :  { %v325_v22 = vpop.permute.xlu1 %324  ;;  %v362_v32 = vpop.permute.xlu0 %361 }
 0x37b   :  { %v327_v25 = vmul.f32 %v325_v22, %v315_v23  ;;  %v364_v33 = vmul.f32 %v362_v32, %v357_v12 }
 0x37d   :  { %329 = vrot.lane.b32.xlu2 %v327_v25, %s1862_s2  ;;  %385 = vperm.xlu1 %1705, %v383_v24  }
 0x382   :  { %v320_v26 = vpop.permute.xlu1 %319 }
 0x383   :  { %v322_v27 = vmul.f32 %v320_v26, %v315_v23 }
 0x3d7   :  { %v330_v28 = vpop.permute.xlu2 %329 }
 0x3d8   :  { %v332_v29 = vadd.f32 %v330_v28, %v322_v27 }
 0x3da   :  { %1735 = vtanh.f32 %v332_v29  ;;  %389 = vst [vmem:[#allocation1] ss:$2 sm:$0xff] %v332_v29 }
 0x3e0   :  { %v1736_v31 = vpop.eup %1735 }
 0x3e1   :  { %335 = vrot.lane.b32.xlu2 %v1736_v31, %s1863_s8  ;;  %v390_v39 = vld.sshfl [vmem:[#allocation1] sm:$0xff pattern:$0x75316420] }
 0x3e7   :  { %v372_v34 = vpop.permute.xlu1 %371 }
 0x3e8   :  { %v374_v35 = vadd.f32 %v372_v34, %v364_v33 }
 0x3ea   :  { %1737 = vtanh.f32 %v374_v35 }
 0x3ef   :  { %v2072_v47 = vpop.permute.xlu1 %385 }
 0x3f0   :  { %v1738_v10 = vpop.eup %1737  ;;  %vm387_vm10 = vcmp.eq.s32.totalorder %v2072_v47, 1 }
 0x3f1   :  { %377 = vrot.lane.b32.xlu0 %v1738_v10, %s1863_s8 }
 0x3f9   :  { %408 = vperm.xlu0 %1706, %v406_v36  }
 0x43b   :  { %v336_v37 = vpop.permute.xlu2 %335 }
 0x43c   :  { %v338_v38 = vmul.f32 %v336_v37, %v315_v23 }
 0x43e   :  { %398 = vst [vmem:[#allocation1] ss:$2 sm:$0xff] %v338_v38 }
 0x445   :  { %v399_v40 = vld.sshfl [vmem:[#allocation1] sm:$0xff pattern:$0x75316420] }
 0x446   :  { %412 = vst [vmem:[#allocation1] ss:$2 sm:$0xff] %v374_v35  ;;  %400 = vrot.lane.b32.xlu2 %v399_v40, %s1862_s2 }
 0x44d   :  { %v413_v41 = vld.sshfl [vmem:[#allocation1] sm:$0xff pattern:$0x75316420] }
 0x44e   :  { %391 = vrot.lane.b32.xlu2 %v390_v39, %s1865_s1 }
 0x456   :  { %414 = vrot.lane.b32.xlu2 %v413_v41, %s1865_s1 }
 0x463   :  { %v378_v42 = vpop.permute.xlu0 %377 }
 0x464   :  { %v380_v43 = vmul.f32 %v378_v42, %v357_v12 }
 0x466   :  { %421 = vst [vmem:[#allocation1] ss:$2 sm:$0xff] %v380_v43 }
 0x46b   :  { %v2083_v54 = vpop.permute.xlu0 %408 }
 0x46c   :  { %vm410_vm11 = vcmp.eq.s32.totalorder %v2083_v54, 1 }
 0x46d   :  { %v422_v45 = vld.sshfl [vmem:[#allocation1] sm:$0xff pattern:$0x75316420] }
 0x46e   :  { %428 = vst [vmem:[#allocation1] ss:$2 sm:$0xff] %v338_v38  ;;  %423 = vrot.lane.b32.xlu1 %v422_v45, %s1862_s2 }
 0x475   :  { %v2070_v46 = vld.sshfl [vmem:[#allocation1] sm:$0xff pattern:$0x75316420] }
 0x476   :  { %434 = vst [vmem:[#allocation1] ss:$2 sm:$0xff] %v380_v43 }
 0x4a0   :  { %v401_v49 = vpop.permute.xlu2 %400 }
 0x4a1   :  { %v403_v50 = vsel %vm387_vm10, %v401_v49, %v396_v48 }
 0x4a2   :  { %404 = vst.msk [vmem:[#allocation2] sm:$0xf] %vm18_vm0, %v403_v50 }
 0x4a8   :  { %v392_v51 = vpop.permute.xlu2 %391 }
 0x4a9   :  { %v394_v52 = vsel %vm387_vm10, %v392_v51, %v2052_v44  ;;  %v450_v53 = vld [vmem:[#allocation2] sm:$0xf] }
 0x4aa   :  { %395 = vst.msk [vmem:[#allocation3] sm:$0xf] %vm18_vm0, %v394_v52  ;;  %1664 = vmatmul.msk.f32.vlgmr.msrb.gmra.mxu0 %vm38_vm1, %v450_v53 }
 0x4ab   :  { %1260 = vmatpush.msrb.mxu0 %v1896_v0 }
 0x4ad   :  { %1261 = vmatpush.msrb.mxu0 %v1901_v1 }
 0x4af   :  { %1262 = vmatpush.msrb.mxu0 %v1919_v5 }
 0x4b0   :  { %v415_v56 = vpop.permute.xlu2 %414 }
 0x4b1   :  { %v417_v44 = vsel %vm410_vm11, %v415_v56, %v405_v55  ;;  %1263 = vmatpush.msrb.mxu0 %v1935_v7  ;;  %v2108_v12 = vld [vmem:[#allocation3] sm:$0xf]  ;;  %v589_v56 = vsel %vm587_vm8, 1, %v1864_v63 }
 0x4b2   :  { %418 = vst.msk [vmem:[#allocation5] sm:$0xf] %vm18_vm0, %v417_v44 }
 0x4b9   :  { %v545_v22 = vld [vmem:[#allocation5] sm:$0xf] }
 0x4e0   :  { %v424_v58 = vpop.permute.xlu1 %423 }
 0x4e1   :  { %v426_v59 = vsel %vm410_vm11, %v424_v58, %v419_v57 }
 0x4e2   :  { %427 = vst.msk [vmem:[#allocation4] sm:$0xf] %vm18_vm0, %v426_v59 }
 0x4e9   :  { %v475_v60 = vld [vmem:[#allocation4] sm:$0xf] }
 0x4ea   :  { %1665 = vmatmul.msk.f32.vlgmr.msrb.gmra.mxu1 %vm38_vm1, %v475_v60  ;;  %v2124_v60 = vld.sshfl [vmem:[#allocation1] sm:$0xff pattern:$0x75316420] }
 0x4eb   :  { %1285 = vmatpush.msrb.mxu1 %v1908_v3 }
 0x4ed   :  { %1286 = vmatpush.msrb.mxu1 %v1913_v4 }
 0x4ef   :  { %1287 = vmatpush.msrb.mxu1 %v1929_v6 }
 0x4f1   :  { %1288 = vmatpush.msrb.mxu1 %v1944_v8 }
 0x527   :  { %v471_v2 = vpop.f32.mrf.mxu0 }
 0x528   :  { %v474_v9 = vadd.f32 %v2104_v61, %v471_v2 }
 0x52a   :  { %1739 = vtanh.f32 %v474_v9  ;;  %v1666_v18 = vmul.f32 -1.442695, %v474_v9 }
 0x530   :  { %v1740_v11 = vpop.eup %1739 }
 0x531   :  { %530 = vrot.lane.b32.xlu1 %v1740_v11, %s1863_s8 }
 0x539   :  { %525 = vrot.lane.b32.xlu1 %v2108_v12, %s1862_s2 }
 0x567   :  { %v496_v15 = vpop.f32.mrf.mxu1 }
 0x568   :  { %v502_v16 = vadd.f32 %v500_v14, %v496_v15 }
 0x56a   :  { %1741 = vtanh.f32 %v502_v16  ;;  %v1667_v37 = vmul.f32 -1.442695, %v502_v16 }
 0x56b   :  { %1743 = vpow2.f32 %v1666_v18 }
 0x570   :  { %v1742_v17 = vpop.eup %1741 }
 0x571   :  { %572 = vrot.lane.b32.xlu0 %v1742_v17, %s1863_s8  ;;  %v1744_v23 = vpop.eup %1743 }
 0x572   :  { %v507_v24 = vadd.f32 1.0, %v1744_v23  ;;  %v612_v23 = vsel %vm588_vm9, 1, %v1864_v63 }
 0x574   :  { %1745 = vrcp.f32 %v507_v24  ;;  %v519_v31 = vand.u32 2147483648, %v507_v24  ;;  %vm513_vm15 = vweird.f32 %v507_v24  ;;  %v517_v32 = vand.u32 2147483647, %v507_v24 }
 0x575   :  { %1747 = vpow2.f32 %v1667_v37 }
 0x576   :  { %v520_v34 = vor.u32 1.1754944e-38, %v519_v31  ;;  %vm518_vm3 = vcmp.eq.f32.partialorder %v517_v32, 8.507059e+37 }
 0x579   :  { %567 = vrot.lane.b32.xlu0 %v545_v22, %s1862_s2 }
 0x57a   :  { %v1746_v25 = vpop.eup %1745 }
 0x57b   :  { %v509_v26 = vmul.f32 %v1746_v25, %v507_v24  ;;  %vm514_vm14 = vweird.f32 %v1746_v25  ;;  %v1748_v38 = vpop.eup %1747 }
 0x57c   :  { %vm515_vm2 = vmor %vm513_vm15, %vm514_vm14  ;;  %v549_v39 = vadd.f32 1.0, %v1748_v38 }
 0x57d   :  { %v510_v27 = vsub.f32 1.0, %v509_v26  ;;  %v602_v26 = vld [vmem:[#allocation2] sm:$0xf] }
 0x57e   :  { %1749 = vrcp.f32 %v549_v39  ;;  %v561_v48 = vand.u32 2147483648, %v549_v39  ;;  %vm555_vm5 = vweird.f32 %v549_v39  ;;  %v559_v49 = vand.u32 2147483647, %v549_v39 }
 0x57f   :  { %v511_v28 = vmul.f32 %v1746_v25, %v510_v27 }
 0x580   :  { %v562_v51 = vor.u32 1.1754944e-38, %v561_v48  ;;  %vm560_vm7 = vcmp.eq.f32.partialorder %v559_v49, 8.507059e+37 }
 0x581   :  { %v512_v29 = vadd.f32 %v1746_v25, %v511_v28 }
 0x583   :  { %v516_v33 = vsel %vm515_vm2, %v1746_v25, %v512_v29 }
 0x584   :  { %v521_v35 = vsel %vm518_vm3, %v520_v34, %v516_v33  ;;  %v1750_v40 = vpop.eup %1749 }
 0x585   :  { %v551_v41 = vmul.f32 %v1750_v40, %v549_v39  ;;  %vm556_vm4 = vweird.f32 %v1750_v40  ;;  %v611_v39 = vld [vmem:[#allocation5] sm:$0xf] }
 0x586   :  { %vm557_vm6 = vmor %vm555_vm5, %vm556_vm4 }
 0x587   :  { %v552_v42 = vsub.f32 1.0, %v551_v41 }
 0x589   :  { %v553_v43 = vmul.f32 %v1750_v40, %v552_v42 }
 0x58b   :  { %v554_v45 = vadd.f32 %v1750_v40, %v553_v43 }
 0x58d   :  { %v558_v50 = vsel %vm557_vm6, %v1750_v40, %v554_v45 }
 0x58e   :  { %v563_v53 = vsel %vm560_vm7, %v562_v51, %v558_v50 }
 0x5a3   :  { %v531_v10 = vpop.permute.xlu1 %530 }
 0x5a4   :  { %v533_v36 = vmul.f32 %v531_v10, %v521_v35 }
 0x5a6   :  { %535 = vrot.lane.b32.xlu2 %v533_v36, %s1862_s2 }
 0x5ab   :  { %v526_v44 = vpop.permute.xlu1 %525 }
 0x5ac   :  { %v528_v57 = vmul.f32 %v526_v44, %v521_v35 }
 0x5e3   :  { %v573_v52 = vpop.permute.xlu0 %572 }
 0x5e4   :  { %v575_v55 = vmul.f32 %v573_v52, %v563_v53 }
 0x5e6   :  { %577 = vrot.lane.b32.xlu1 %v575_v55, %s1862_s2 }
 0x5eb   :  { %v568_v9 = vpop.permute.xlu0 %567 }
 0x5ec   :  { %v570_v11 = vmul.f32 %v568_v9, %v563_v53 }
 0x5ee   :  { %591 = vperm.xlu1 %1705, %v589_v56  }
 0x600   :  { %v536_v58 = vpop.permute.xlu2 %535 }
 0x601   :  { %v538_v59 = vadd.f32 %v536_v58, %v528_v57 }
 0x603   :  { %1751 = vtanh.f32 %v538_v59  ;;  %595 = vst [vmem:[#allocation1] ss:$2 sm:$0xff] %v538_v59  ;;  %v2180_v59 = vld [vmem:[%s2462_s0 + $0x20] sm:$0xff] }
 0x609   :  { %v1752_v2 = vpop.eup %1751 }
 0x60a   :  { %541 = vrot.lane.b32.xlu2 %v1752_v2, %s1863_s8  ;;  %v596_v22 = vld.sshfl [vmem:[#allocation1] sm:$0xff pattern:$0x75316420]  ;;  %v706_v2 = vrot.slane %v2180_v59, 4 }
 0x658   :  { %v578_v14 = vpop.permute.xlu1 %577 }
 0x659   :  { %v580_v15 = vadd.f32 %v578_v14, %v570_v11 }
 0x65b   :  { %1753 = vtanh.f32 %v580_v15 }
 0x660   :  { %v2132_v25 = vpop.permute.xlu1 %591 }
 0x661   :  { %v1754_v16 = vpop.eup %1753  ;;  %vm593_vm14 = vcmp.eq.s32.totalorder %v2132_v25, 1 }
 0x662   :  { %583 = vrot.lane.b32.xlu0 %v1754_v16, %s1863_s8 }
 0x664   :  { %v542_v17 = vpop.permute.xlu2 %541 }
 0x665   :  { %v544_v18 = vmul.f32 %v542_v17, %v521_v35 }
 0x667   :  { %604 = vst [vmem:[#allocation1] ss:$2 sm:$0xff] %v544_v18 }
 0x66a   :  { %614 = vperm.xlu0 %1706, %v612_v23  }
 0x66e   :  { %v605_v24 = vld.sshfl [vmem:[#allocation1] sm:$0xff pattern:$0x75316420] }
 0x66f   :  { %618 = vst [vmem:[#allocation1] ss:$2 sm:$0xff] %v580_v15  ;;  %606 = vrot.lane.b32.xlu2 %v605_v24, %s1862_s2 }
 0x676   :  { %v619_v35 = vld.sshfl [vmem:[#allocation1] sm:$0xff pattern:$0x75316420] }
 0x677   :  { %597 = vrot.lane.b32.xlu2 %v596_v22, %s1865_s1 }
 0x6c9   :  { %v607_v27 = vpop.permute.xlu2 %606 }
 0x6ca   :  { %v609_v28 = vsel %vm593_vm14, %v607_v27, %v602_v26 }
 0x6cb   :  { %610 = vst.msk [vmem:[#allocation2] sm:$0xf] %vm18_vm0, %v609_v28 }
 0x6d1   :  { %v598_v29 = vpop.permute.xlu2 %597 }
 0x6d2   :  { %v600_v31 = vsel %vm593_vm14, %v598_v29, %v2108_v12  ;;  %v656_v32 = vld [vmem:[#allocation2] sm:$0xf] }
 0x6d3   :  { %601 = vst.msk [vmem:[#allocation3] sm:$0xf] %vm18_vm0, %v600_v31  ;;  %1670 = vmatmul.msk.f32.vlgmr.msrb.gmra.mxu2 %vm38_vm1, %v656_v32 }
 0x6d4   :  { %v584_v33 = vpop.permute.xlu0 %583  ;;  %1452 = vmatpush.msrb.mxu2 %v1896_v0  ;;  %v625_v0 = vld [vmem:[#allocation4] sm:$0xf] }
 0x6d5   :  { %v586_v34 = vmul.f32 %v584_v33, %v563_v53 }
 0x6d6   :  { %1453 = vmatpush.msrb.mxu2 %v1901_v1 }
 0x6d7   :  { %627 = vst [vmem:[#allocation1] ss:$2 sm:$0xff] %v586_v34 }
 0x6d8   :  { %1454 = vmatpush.msrb.mxu2 %v1919_v5 }
 0x6da   :  { %1455 = vmatpush.msrb.mxu2 %v1935_v7  ;;  %v2160_v7 = vld [vmem:[%s2462_s0 + $0x18] sm:$0xff]  ;;  %v2172_v45 = vld [vmem:[#allocation3] sm:$0xf] }
 0x6dc   :  { %v2151_v36 = vpop.permute.xlu0 %614 }
 0x6dd   :  { %vm616_vm15 = vcmp.eq.s32.totalorder %v2151_v36, 1 }
 0x6de   :  { %v628_v10 = vld.sshfl [vmem:[#allocation1] sm:$0xff pattern:$0x75316420] }
 0x6df   :  { %634 = vst [vmem:[#allocation1] ss:$2 sm:$0xff] %v544_v18  ;;  %629 = vrot.lane.b32.xlu1 %v628_v10, %s1862_s2 }
 0x6e6   :  { %v2148_v12 = vld.sshfl [vmem:[#allocation1] sm:$0xff pattern:$0x75316420] }
 0x6e7   :  { %640 = vst [vmem:[#allocation1] ss:$2 sm:$0xff] %v586_v34  ;;  %620 = vrot.lane.b32.xlu1 %v619_v35, %s1865_s1 }
 0x751   :  { %v630_v1 = vpop.permute.xlu1 %629 }
 0x752   :  { %v632_v5 = vsel %vm616_vm15, %v630_v1, %v625_v0 }
 0x753   :  { %633 = vst.msk [vmem:[#allocation4] sm:$0xf] %vm18_vm0, %v632_v5 }
 0x756   :  { %v677_v37 = vpop.f32.mrf.mxu2 }
 0x757   :  { %v680_v38 = vadd.f32 %v2160_v7, %v677_v37  ;;  %v2187_v37 = vld.sshfl [vmem:[#allocation1] sm:$0xff pattern:$0x75316420] }
 0x759   :  { %1755 = vtanh.f32 %v680_v38  ;;  %v621_v40 = vpop.permute.xlu1 %620  ;;  %v1672_v48 = vmul.f32 -1.442695, %v680_v38 }
 0x75a   :  { %v623_v41 = vsel %vm616_vm15, %v621_v40, %v611_v39  ;;  %v681_v42 = vld [vmem:[#allocation4] sm:$0xf] }
 0x75b   :  { %624 = vst.msk [vmem:[#allocation5] sm:$0xf] %vm18_vm0, %v623_v41  ;;  %1671 = vmatmul.msk.f32.vlgmr.msrb.gmra.mxu3 %vm38_vm1, %v681_v42  ;;  %1757 = vpow2.f32 %v1672_v48 }
 0x75c   :  { %1477 = vmatpush.msrb.mxu3 %v1908_v3 }
 0x75e   :  { %1478 = vmatpush.msrb.mxu3 %v1913_v4 }
 0x75f   :  { %v1756_v43 = vpop.eup %1755 }
 0x760   :  { %736 = vrot.lane.b32.xlu0 %v1756_v43, %s1863_s8  ;;  %1479 = vmatpush.msrb.mxu3 %v1929_v6 }
 0x761   :  { %v1758_v49 = vpop.eup %1757 }
 0x762   :  { %1480 = vmatpush.msrb.mxu3 %v1944_v8  ;;  %v713_v50 = vadd.f32 1.0, %v1758_v49  ;;  %v751_v15 = vld [vmem:[#allocation5] sm:$0xf] }
 0x764   :  { %1759 = vrcp.f32 %v713_v50  ;;  %v725_v55 = vand.u32 2147483648, %v713_v50  ;;  %vm719_vm3 = vweird.f32 %v713_v50  ;;  %v723_v6 = vand.u32 2147483647, %v713_v50 }
 0x766   :  { %v726_v56 = vor.u32 1.1754944e-38, %v725_v55  ;;  %vm724_vm5 = vcmp.eq.f32.partialorder %v723_v6, 8.507059e+37 }
 0x768   :  { %731 = vrot.lane.b32.xlu0 %v2172_v45, %s1862_s2 }
 0x76a   :  { %v1760_v3 = vpop.eup %1759 }
 0x76b   :  { %v715_v51 = vmul.f32 %v1760_v3, %v713_v50  ;;  %vm720_vm2 = vweird.f32 %v1760_v3 }
 0x76c   :  { %vm721_vm4 = vmor %vm719_vm3, %vm720_vm2  ;;  %vm793_vm2 = vcmp.gt.s32.totalorder %v1999_v62, 3  ;;  %vm794_vm3 = vcmp.gt.s32.totalorder %v1999_v62, 4 }
 0x76d   :  { %v716_v4 = vsub.f32 1.0, %v715_v51  ;;  %v795_v38 = vsel %vm793_vm2, 1, %v1864_v63  ;;  %v818_v51 = vsel %vm794_vm3, 1, %v1864_v63 }
 0x76f   :  { %v717_v52 = vmul.f32 %v1760_v3, %v716_v4 }
 0x771   :  { %v718_v53 = vadd.f32 %v1760_v3, %v717_v52 }
 0x773   :  { %v722_v8 = vsel %vm721_vm4, %v1760_v3, %v718_v53 }
 0x774   :  { %v727_v57 = vsel %vm724_vm5, %v726_v56, %v722_v8  ;;  %v808_v8 = vld [vmem:[#allocation2] sm:$0xf] }
 0x7d2   :  { %v737_v44 = vpop.permute.xlu0 %736 }
 0x7d3   :  { %v739_v58 = vmul.f32 %v737_v44, %v727_v57 }
 0x7d5   :  { %741 = vrot.lane.b32.xlu1 %v739_v58, %s1862_s2 }
 0x7da   :  { %v732_v35 = vpop.permute.xlu0 %731 }
 0x7db   :  { %v734_v0 = vmul.f32 %v732_v35, %v727_v57 }
 0x7de   :  { %v702_v9 = vpop.f32.mrf.mxu3 }
 0x7df   :  { %v708_v11 = vadd.f32 %v706_v2, %v702_v9 }
 0x7e1   :  { %1761 = vtanh.f32 %v708_v11  ;;  %v1673_v16 = vmul.f32 -1.442695, %v708_v11  ;;  %v831_v11 = vld [vmem:[#allocation4] sm:$0xf] }
 0x7e3   :  { %1763 = vpow2.f32 %v1673_v16  ;;  %v817_v16 = vld [vmem:[#allocation5] sm:$0xf] }
 0x7e7   :  { %v1762_v14 = vpop.eup %1761 }
 0x7e8   :  { %778 = vrot.lane.b32.xlu2 %v1762_v14, %s1863_s8 }
 0x7e9   :  { %v1764_v17 = vpop.eup %1763 }
 0x7ea   :  { %v755_v18 = vadd.f32 1.0, %v1764_v17 }
 0x7ec   :  { %1765 = vrcp.f32 %v755_v18  ;;  %v767_v28 = vand.u32 2147483648, %v755_v18  ;;  %vm761_vm7 = vweird.f32 %v755_v18  ;;  %v765_v29 = vand.u32 2147483647, %v755_v18 }
 0x7ee   :  { %v768_v32 = vor.u32 1.1754944e-38, %v767_v28  ;;  %vm766_vm9 = vcmp.eq.f32.partialorder %v765_v29, 8.507059e+37 }
 0x7f0   :  { %773 = vrot.lane.b32.xlu2 %v751_v15, %s1862_s2 }
 0x7f2   :  { %v1766_v22 = vpop.eup %1765 }
 0x7f3   :  { %v757_v23 = vmul.f32 %v1766_v22, %v755_v18  ;;  %vm762_vm6 = vweird.f32 %v1766_v22 }
 0x7f4   :  { %vm763_vm8 = vmor %vm761_vm7, %vm762_vm6 }
 0x7f5   :  { %v758_v24 = vsub.f32 1.0, %v757_v23 }
 0x7f7   :  { %v759_v26 = vmul.f32 %v1766_v22, %v758_v24 }
 0x7f9   :  { %v760_v27 = vadd.f32 %v1766_v22, %v759_v26 }
 0x7fb   :  { %v764_v31 = vsel %vm763_vm8, %v1766_v22, %v760_v27 }
 0x7fc   :  { %v769_v34 = vsel %vm766_vm9, %v768_v32, %v764_v31 }
 0x842   :  { %v779_v33 = vpop.permute.xlu2 %778 }
 0x843   :  { %v781_v10 = vmul.f32 %v779_v33, %v769_v34  ;;  %v910_v33 = vrot.slane %v2160_v7, 4 }
 0x845   :  { %783 = vrot.lane.b32.xlu0 %v781_v10, %s1862_s2 }
 0x847   :  { %v742_v1 = vpop.permute.xlu1 %741 }
 0x848   :  { %v744_v5 = vadd.f32 %v742_v1, %v734_v0 }
 0x84a   :  { %1767 = vtanh.f32 %v744_v5  ;;  %801 = vst [vmem:[#allocation1] ss:$2 sm:$0xff] %v744_v5  ;;  %v774_v40 = vpop.permute.xlu2 %773 }
 0x84b   :  { %v776_v41 = vmul.f32 %v774_v40, %v769_v34 }
 0x84d   :  { %797 = vperm.xlu0 %1706, %v795_v38  }
 0x850   :  { %v1768_v39 = vpop.eup %1767 }
 0x851   :  { %747 = vrot.lane.b32.xlu1 %v1768_v39, %s1863_s8  ;;  %v802_v3 = vld.sshfl [vmem:[#allocation1] sm:$0xff pattern:$0x75316420] }
 0x8b7   :  { %v784_v42 = vpop.permute.xlu0 %783 }
 0x8b8   :  { %v786_v43 = vadd.f32 %v784_v42, %v776_v41 }
 0x8ba   :  { %1769 = vtanh.f32 %v786_v43 }
 0x8bf   :  { %v2200_v63 = vpop.permute.xlu0 %797 }
 0x8c0   :  { %v1770_v48 = vpop.eup %1769  ;;  %vm799_vm4 = vcmp.eq.s32.totalorder %v2200_v63, 1 }
 0x8c1   :  { %789 = vrot.lane.b32.xlu2 %v1770_v48, %s1863_s8 }
 0x8c3   :  { %v748_v49 = vpop.permute.xlu1 %747 }
 0x8c4   :  { %v750_v50 = vmul.f32 %v748_v49, %v727_v57 }
 0x8c6   :  { %810 = vst [vmem:[#allocation1] ss:$2 sm:$0xff] %v750_v50 }
 0x8c9   :  { %820 = vperm.xlu2 %1704, %v818_v51  }
 0x8cd   :  { %v811_v4 = vld.sshfl [vmem:[#allocation1] sm:$0xff pattern:$0x75316420] }
 0x8ce   :  { %812 = vrot.lane.b32.xlu1 %v811_v4, %s1862_s2  ;;  %824 = vst [vmem:[#allocation1] ss:$2 sm:$0xff] %v786_v43 }
 0x8d5   :  { %v825_v55 = vld.sshfl [vmem:[#allocation1] sm:$0xff pattern:$0x75316420] }
 0x8d6   :  { %803 = vrot.lane.b32.xlu1 %v802_v3, %s1865_s1 }
 0x91b   :  { %v790_v52 = vpop.permute.xlu2 %789 }
 0x91c   :  { %v792_v53 = vmul.f32 %v790_v52, %v769_v34 }
 0x91e   :  { %833 = vst [vmem:[#allocation1] ss:$2 sm:$0xff] %v792_v53 }
 0x923   :  { %v2211_v9 = vpop.permute.xlu2 %820 }
 0x924   :  { %vm822_vm5 = vcmp.eq.s32.totalorder %v2211_v9, 1 }
 0x925   :  { %v834_v6 = vld.sshfl [vmem:[#allocation1] sm:$0xff pattern:$0x75316420] }
 0x926   :  { %835 = vrot.lane.b32.xlu0 %v834_v6, %s1862_s2  ;;  %840 = vst [vmem:[#allocation1] ss:$2 sm:$0xff] %v750_v50 }
 0x92d   :  { %v2197_v62 = vld.sshfl [vmem:[#allocation1] sm:$0xff pattern:$0x75316420] }
 0x92e   :  { %826 = vrot.lane.b32.xlu0 %v825_v55, %s1865_s1  ;;  %846 = vst [vmem:[#allocation1] ss:$2 sm:$0xff] %v792_v53 }
 0x940   :  { %v813_v56 = vpop.permute.xlu1 %812 }
 0x941   :  { %v815_v44 = vsel %vm799_vm4, %v813_v56, %v808_v8 }
 0x942   :  { %816 = vst.msk [vmem:[#allocation2] sm:$0xf] %vm18_vm0, %v815_v44 }
 0x948   :  { %v804_v57 = vpop.permute.xlu1 %803 }
 0x949   :  { %v806_v58 = vsel %vm799_vm4, %v804_v57, %v2172_v45  ;;  %v860_v2 = vld [vmem:[#allocation2] sm:$0xf] }
 0x94a   :  { %807 = vst.msk [vmem:[#allocation3] sm:$0xf] %vm18_vm0, %v806_v58  ;;  %1676 = vmatmul.msk.f32.vlgmr.msra.gmra.mxu0 %vm38_vm1, %v860_v2 }
 0x951   :  { %v2223_v26 = vld [vmem:[#allocation3] sm:$0xf] }
 0x998   :  { %v836_v14 = vpop.permute.xlu0 %835 }
 0x999   :  { %v838_v15 = vsel %vm822_vm5, %v836_v14, %v831_v11 }
 0x99a   :  { %839 = vst.msk [vmem:[#allocation4] sm:$0xf] %vm18_vm0, %v838_v15 }
 0x9a0   :  { %v827_v17 = vpop.permute.xlu0 %826 }
 0x9a1   :  { %v829_v45 = vsel %vm822_vm5, %v827_v17, %v817_v16  ;;  %v885_v18 = vld [vmem:[#allocation4] sm:$0xf]  ;;  %v2232_v16 = vld.sshfl [vmem:[#allocation1] sm:$0xff pattern:$0x75316420] }
 0x9a2   :  { %830 = vst.msk [vmem:[#allocation5] sm:$0xf] %vm18_vm0, %v829_v45  ;;  %1677 = vmatmul.msk.f32.vlgmr.msra.gmra.mxu1 %vm38_vm1, %v885_v18 }
 0x9a9   :  { %v955_v43 = vld [vmem:[#allocation5] sm:$0xf] }
 0x9c7   :  { %v881_v22 = vpop.f32.mrf.mxu0 }
 0x9c8   :  { %v884_v23 = vadd.f32 %v2180_v59, %v881_v22 }
 0x9ca   :  { %1771 = vtanh.f32 %v884_v23  ;;  %v1678_v27 = vmul.f32 -1.442695, %v884_v23 }
 0x9cc   :  { %1773 = vpow2.f32 %v1678_v27 }
 0x9d0   :  { %v1772_v24 = vpop.eup %1771 }
 0x9d1   :  { %940 = vrot.lane.b32.xlu2 %v1772_v24, %s1863_s8 }
 0x9d2   :  { %v1774_v28 = vpop.eup %1773 }
 0x9d3   :  { %v917_v29 = vadd.f32 1.0, %v1774_v28 }
 0x9d5   :  { %1775 = vrcp.f32 %v917_v29  ;;  %v929_v1 = vand.u32 2147483648, %v917_v29  ;;  %vm923_vm7 = vweird.f32 %v917_v29  ;;  %v927_v5 = vand.u32 2147483647, %v917_v29 }
 0x9d7   :  { %v930_v40 = vor.u32 1.1754944e-38, %v929_v1  ;;  %vm928_vm9 = vcmp.eq.f32.partialorder %v927_v5, 8.507059e+37 }
 0x9d9   :  { %935 = vrot.lane.b32.xlu2 %v2223_v26, %s1862_s2 }
 0x9db   :  { %v1776_v31 = vpop.eup %1775 }
 0x9dc   :  { %v919_v32 = vmul.f32 %v1776_v31, %v917_v29  ;;  %vm924_vm6 = vweird.f32 %v1776_v31 }
 0x9dd   :  { %vm925_vm8 = vmor %vm923_vm7, %vm924_vm6 }
 0x9de   :  { %v920_v34 = vsub.f32 1.0, %v919_v32 }
 0x9e0   :  { %v921_v10 = vmul.f32 %v1776_v31, %v920_v34 }
 0x9e2   :  { %v922_v0 = vadd.f32 %v1776_v31, %v921_v10 }
 0x9e4   :  { %v926_v39 = vsel %vm925_vm8, %v1776_v31, %v922_v0  ;;  %v1005_v0 = vld [vmem:[#allocation2] sm:$0xf] }
 0x9e5   :  { %v931_v42 = vsel %vm928_vm9, %v930_v40, %v926_v39 }
 0xa1f   :  { %v906_v59 = vpop.f32.mrf.mxu1 }
 0xa20   :  { %v912_v35 = vadd.f32 %v910_v33, %v906_v59 }
 0xa22   :  { %1777 = vtanh.f32 %v912_v35  ;;  %v1679_v48 = vmul.f32 -1.442695, %v912_v35 }
 0xa24   :  { %1779 = vpow2.f32 %v1679_v48 }
 0xa28   :  { %v1778_v38 = vpop.eup %1777 }
 0xa29   :  { %982 = vrot.lane.b32.xlu1 %v1778_v38, %s1863_s8 }
 0xa2a   :  { %v1780_v49 = vpop.eup %1779 }
 0xa2b   :  { %v941_v41 = vpop.permute.xlu2 %940  ;;  %v959_v50 = vadd.f32 1.0, %v1780_v49 }
 0xa2c   :  { %v943_v7 = vmul.f32 %v941_v41, %v931_v42 }
 0xa2d   :  { %1781 = vrcp.f32 %v959_v50  ;;  %v971_v55 = vand.u32 2147483648, %v959_v50  ;;  %vm965_vm3 = vweird.f32 %v959_v50  ;;  %v969_v6 = vand.u32 2147483647, %v959_v50 }
 0xa2e   :  { %945 = vrot.lane.b32.xlu0 %v943_v7, %s1862_s2 }
 0xa2f   :  { %v972_v56 = vor.u32 1.1754944e-38, %v971_v55  ;;  %vm970_vm7 = vcmp.eq.f32.partialorder %v969_v6, 8.507059e+37 }
 0xa31   :  { %977 = vrot.lane.b32.xlu1 %v955_v43, %s1862_s2 }
 0xa33   :  { %v1782_v3 = vpop.eup %1781  ;;  %v936_v58 = vpop.permute.xlu2 %935 }
 0xa34   :  { %v961_v51 = vmul.f32 %v1782_v3, %v959_v50  ;;  %vm966_vm2 = vweird.f32 %v1782_v3  ;;  %v938_v11 = vmul.f32 %v936_v58, %v931_v42 }
 0xa35   :  { %vm967_vm6 = vmor %vm965_vm3, %vm966_vm2 }
 0xa36   :  { %v962_v4 = vsub.f32 1.0, %v961_v51 }
 0xa38   :  { %v963_v52 = vmul.f32 %v1782_v3, %v962_v4 }
 0xa3a   :  { %v964_v53 = vadd.f32 %v1782_v3, %v963_v52 }
 0xa3c   :  { %v968_v8 = vsel %vm967_vm6, %v1782_v3, %v964_v53 }
 0xa3d   :  { %v973_v57 = vsel %vm970_vm7, %v972_v56, %v968_v8 }
 0xa9b   :  { %v983_v44 = vpop.permute.xlu1 %982 }
 0xa9c   :  { %v985_v2 = vmul.f32 %v983_v44, %v973_v57 }
 0xa9e   :  { %987 = vrot.lane.b32.xlu2 %v985_v2, %s1862_s2 }
 0xaa0   :  { %v946_v14 = vpop.permute.xlu0 %945 }
 0xaa1   :  { %v948_v15 = vadd.f32 %v946_v14, %v938_v11 }
 0xaa3   :  { %1783 = vtanh.f32 %v948_v15  ;;  %998 = vst [vmem:[#allocation1] ss:$2 sm:$0xff] %v948_v15  ;;  %v978_v45 = vpop.permute.xlu1 %977 }
 0xaa4   :  { %v980_v18 = vmul.f32 %v978_v45, %v973_v57 }
 0xaa9   :  { %v1784_v17 = vpop.eup %1783 }
 0xaaa   :  { %951 = vrot.lane.b32.xlu0 %v1784_v17, %s1863_s8  ;;  %v999_v27 = vld.sshfl [vmem:[#allocation1] sm:$0xff pattern:$0x75316420]  ;;  %v1102_v17 = vrot.slane %v2104_v61, 4 }
 0xaf8   :  { %v988_v22 = vpop.permute.xlu2 %987 }
 0xaf9   :  { %v990_v23 = vadd.f32 %v988_v22, %v980_v18 }
 0xafb   :  { %1785 = vtanh.f32 %v990_v23 }
 0xb01   :  { %v1786_v24 = vpop.eup %1785 }
 0xb02   :  { %993 = vrot.lane.b32.xlu1 %v1786_v24, %s1863_s8 }
 0xb0a   :  { %1000 = vrot.lane.b32.xlu1 %v999_v27, %s1865_s1 }
 0xb1c   :  { %v952_v28 = vpop.permute.xlu0 %951 }
 0xb1d   :  { %v954_v29 = vmul.f32 %v952_v28, %v931_v42  ;;  %v1014_v42 = vld [vmem:[#allocation5] sm:$0xf] }
 0xb1f   :  { %1007 = vst [vmem:[#allocation1] ss:$2 sm:$0xff] %v954_v29 }
 0xb26   :  { %v1008_v31 = vld.sshfl [vmem:[#allocation1] sm:$0xff pattern:$0x75316420] }
 0xb27   :  { %1009 = vrot.lane.b32.xlu2 %v1008_v31, %s1862_s2  ;;  %1016 = vst [vmem:[#allocation1] ss:$2 sm:$0xff] %v990_v23 }
 0xb2e   :  { %v1017_v34 = vld.sshfl [vmem:[#allocation1] sm:$0xff pattern:$0x75316420] }
 0xb74   :  { %v994_v32 = vpop.permute.xlu1 %993 }
 0xb75   :  { %v996_v33 = vmul.f32 %v994_v32, %v973_v57 }
 0xb77   :  { %1025 = vst [vmem:[#allocation1] ss:$2 sm:$0xff] %v996_v33 }
 0xb7c   :  { %v1001_v59 = vpop.permute.xlu1 %1000 }
 0xb7d   :  { %v1003_v35 = vsel %vm822_vm5, %v1001_v59, %v2223_v26  ;;  %v1023_v26 = vld [vmem:[#allocation4] sm:$0xf] }
 0xb7e   :  { %1004 = vst.msk [vmem:[#allocation3] sm:$0xf] %vm18_vm0, %v1003_v35  ;;  %v1026_v10 = vld.sshfl [vmem:[#allocation1] sm:$0xff pattern:$0x75316420] }
 0xb7f   :  { %1027 = vrot.lane.b32.xlu0 %v1026_v10, %s1862_s2  ;;  %1032 = vst [vmem:[#allocation1] ss:$2 sm:$0xff] %v954_v29 }
 0xb81   :  { %v1010_v1 = vpop.permute.xlu2 %1009 }
 0xb82   :  { %v1012_v5 = vsel %vm822_vm5, %v1010_v1, %v1005_v0 }
 0xb83   :  { %1013 = vst.msk [vmem:[#allocation2] sm:$0xf] %vm18_vm0, %v1012_v5 }
 0xb85   :  { %v2259_v51 = vld [vmem:[#allocation3] sm:$0xf] }
 0xb86   :  { %v2246_v38 = vld.sshfl [vmem:[#allocation1] sm:$0xff pattern:$0x75316420] }
 0xb87   :  { %1038 = vst [vmem:[#allocation1] ss:$2 sm:$0xff] %v996_v33  ;;  %1018 = vrot.lane.b32.xlu0 %v1017_v34, %s1865_s1 }
 0xb8a   :  { %v1052_v39 = vld [vmem:[#allocation2] sm:$0xf] }
 0xb8b   :  { %1682 = vmatmul.msk.f32.vlgmr.msra.gmra.mxu2 %vm38_vm1, %v1052_v39 }
 0xb8e   :  { %v2267_v59 = vld.sshfl [vmem:[#allocation1] sm:$0xff pattern:$0x75316420] }
 0xbf1   :  { %v1028_v40 = vpop.permute.xlu0 %1027 }
 0xbf2   :  { %v1030_v41 = vsel %vm799_vm4, %v1028_v40, %v1023_v26 }
 0xbf3   :  { %1031 = vst.msk [vmem:[#allocation4] sm:$0xf] %vm18_vm0, %v1030_v41 }
 0xbf9   :  { %v1019_v7 = vpop.permute.xlu0 %1018 }
 0xbfa   :  { %v1021_v43 = vsel %vm799_vm4, %v1019_v7, %v1014_v42  ;;  %v1077_v48 = vld [vmem:[#allocation4] sm:$0xf] }
 0xbfb   :  { %1022 = vst.msk [vmem:[#allocation5] sm:$0xf] %vm18_vm0, %v1021_v43  ;;  %1683 = vmatmul.msk.f32.vlgmr.msra.gmra.mxu3 %vm38_vm1, %v1077_v48 }
 0xc02   :  { %v1147_v23 = vld [vmem:[#allocation5] sm:$0xf] }
 0xc0e   :  { %v1073_v49 = vpop.f32.mrf.mxu2 }
 0xc0f   :  { %v1076_v50 = vadd.f32 %v2115_v13, %v1073_v49 }
 0xc11   :  { %1787 = vtanh.f32 %v1076_v50  ;;  %v1684_v4 = vmul.f32 -1.442695, %v1076_v50 }
 0xc13   :  { %1789 = vpow2.f32 %v1684_v4 }
 0xc17   :  { %v1788_v3 = vpop.eup %1787 }
 0xc18   :  { %1132 = vrot.lane.b32.xlu2 %v1788_v3, %s1863_s8 }
 0xc19   :  { %v1790_v52 = vpop.eup %1789 }
 0xc1a   :  { %v1109_v53 = vadd.f32 1.0, %v1790_v52 }
 0xc1c   :  { %1791 = vrcp.f32 %v1109_v53  ;;  %v1121_v13 = vand.u32 2147483648, %v1109_v53  ;;  %vm1115_vm9 = vweird.f32 %v1109_v53  ;;  %v1119_v57 = vand.u32 2147483647, %v1109_v53 }
 0xc1e   :  { %v1122_v2 = vor.u32 1.1754944e-38, %v1121_v13  ;;  %vm1120_vm3 = vcmp.eq.f32.partialorder %v1119_v57, 8.507059e+37 }
 0xc20   :  { %1127 = vrot.lane.b32.xlu2 %v2259_v51, %s1862_s2 }
 0xc22   :  { %v1792_v55 = vpop.eup %1791 }
 0xc23   :  { %v1111_v6 = vmul.f32 %v1792_v55, %v1109_v53  ;;  %vm1116_vm8 = vweird.f32 %v1792_v55 }
 0xc24   :  { %vm1117_vm2 = vmor %vm1115_vm9, %vm1116_vm8 }
 0xc25   :  { %v1112_v8 = vsub.f32 1.0, %v1111_v6  ;;  %v1197_v6 = vld [vmem:[#allocation2] sm:$0xf] }
 0xc27   :  { %v1113_v56 = vmul.f32 %v1792_v55, %v1112_v8 }
 0xc29   :  { %v1114_v44 = vadd.f32 %v1792_v55, %v1113_v56 }
 0xc2b   :  { %v1118_v58 = vsel %vm1117_vm2, %v1792_v55, %v1114_v44 }
 0xc2c   :  { %v1123_v14 = vsel %vm1120_vm3, %v1122_v2, %v1118_v58 }
 0xc72   :  { %v1133_v11 = vpop.permute.xlu2 %1132 }
 0xc73   :  { %v1135_v15 = vmul.f32 %v1133_v11, %v1123_v14 }
 0xc75   :  { %1137 = vrot.lane.b32.xlu0 %v1135_v15, %s1862_s2 }
 0xc7a   :  { %v1128_v29 = vpop.permute.xlu2 %1127 }
 0xc7b   :  { %v1130_v32 = vmul.f32 %v1128_v29, %v1123_v14 }
 0xc7e   :  { %v1098_v45 = vpop.f32.mrf.mxu3 }
 0xc7f   :  { %v1104_v18 = vadd.f32 %v1102_v17, %v1098_v45  ;;  %v1686_v17 = vld [vmem:[%s2462_s0 + $0x30] sm:$0xff] }
 0xc81   :  { %1793 = vtanh.f32 %v1104_v18  ;;  %v1685_v24 = vmul.f32 -1.442695, %v1104_v18 }
 0xc83   :  { %1795 = vpow2.f32 %v1685_v24 }
 0xc87   :  { %v1794_v22 = vpop.eup %1793 }
 0xc88   :  { %1174 = vrot.lane.b32.xlu1 %v1794_v22, %s1863_s8  ;;  %v1215_v22 = vld [vmem:[#allocation4] sm:$0xf] }
 0xc89   :  { %v1796_v27 = vpop.eup %1795 }
 0xc8a   :  { %v1151_v28 = vadd.f32 1.0, %v1796_v27  ;;  %v1206_v27 = vld [vmem:[#allocation5] sm:$0xf] }
 0xc8c   :  { %1797 = vrcp.f32 %v1151_v28  ;;  %v1163_v5 = vand.u32 2147483648, %v1151_v28  ;;  %vm1157_vm7 = vweird.f32 %v1151_v28  ;;  %v1161_v39 = vand.u32 2147483647, %v1151_v28 }
 0xc8e   :  { %v1164_v40 = vor.u32 1.1754944e-38, %v1163_v5  ;;  %vm1162_vm9 = vcmp.eq.f32.partialorder %v1161_v39, 8.507059e+37 }
 0xc90   :  { %1169 = vrot.lane.b32.xlu1 %v1147_v23, %s1862_s2 }
 0xc92   :  { %v1798_v31 = vpop.eup %1797 }
 0xc93   :  { %v1153_v34 = vmul.f32 %v1798_v31, %v1151_v28  ;;  %vm1158_vm6 = vweird.f32 %v1798_v31 }
 0xc94   :  { %vm1159_vm8 = vmor %vm1157_vm7, %vm1158_vm6 }
 0xc95   :  { %v1154_v35 = vsub.f32 1.0, %v1153_v34 }
 0xc97   :  { %v1155_v10 = vmul.f32 %v1798_v31, %v1154_v35 }
 0xc99   :  { %v1156_v1 = vadd.f32 %v1798_v31, %v1155_v10 }
 0xc9b   :  { %v1160_v26 = vsel %vm1159_vm8, %v1798_v31, %v1156_v1 }
 0xc9c   :  { %v1165_v42 = vsel %vm1162_vm9, %v1164_v40, %v1160_v26 }
 0xce7   :  { %v1138_v33 = vpop.permute.xlu0 %1137 }
 0xce8   :  { %v1140_v61 = vadd.f32 %v1138_v33, %v1130_v32 }
 0xcea   :  { %1799 = vtanh.f32 %v1140_v61  ;;  %1190 = vst [vmem:[#allocation1] ss:$2 sm:$0xff] %v1140_v61 }
 0xcf0   :  { %v1800_v0 = vpop.eup %1799 }
 0xcf1   :  { %1143 = vrot.lane.b32.xlu0 %v1800_v0, %s1863_s8  ;;  %v1191_v53 = vld.sshfl [vmem:[#allocation1] sm:$0xff pattern:$0x75316420] }
 0xcfa   :  { %v1175_v41 = vpop.permute.xlu1 %1174 }
 0xcfb   :  { %v1177_v7 = vmul.f32 %v1175_v41, %v1165_v42 }
 0xcfd   :  { %1179 = vrot.lane.b32.xlu2 %v1177_v7, %s1862_s2 }
 0xd02   :  { %v1170_v43 = vpop.permute.xlu1 %1169 }
 0xd03   :  { %v1172_v48 = vmul.f32 %v1170_v43, %v1165_v42 }
 0xd57   :  { %v1180_v49 = vpop.permute.xlu2 %1179 }
 0xd58   :  { %v1182_v50 = vadd.f32 %v1180_v49, %v1172_v48  ;;  %v1687_v48 = vld [vmem:[%s2462_s0 + $0x8] sm:$0xff] }
 0xd59   :  { %v1294_v49 = vrot.slane %v1687_v48, 4 }
 0xd5a   :  { %1801 = vtanh.f32 %v1182_v50 }
 0xd60   :  { %v1802_v3 = vpop.eup %1801 }
 0xd61   :  { %1185 = vrot.lane.b32.xlu1 %v1802_v3, %s1863_s8 }
 0xd63   :  { %v1144_v4 = vpop.permute.xlu0 %1143 }
 0xd64   :  { %v1146_v52 = vmul.f32 %v1144_v4, %v1123_v14 }
 0xd66   :  { %1199 = vst [vmem:[#allocation1] ss:$2 sm:$0xff] %v1146_v52 }
 0xd69   :  { %1192 = vrot.lane.b32.xlu1 %v1191_v53, %s1865_s1 }
 0xd6d   :  { %v1200_v55 = vld.sshfl [vmem:[#allocation1] sm:$0xff pattern:$0x75316420] }
 0xd6e   :  { %1201 = vrot.lane.b32.xlu2 %v1200_v55, %s1862_s2  ;;  %1208 = vst [vmem:[#allocation1] ss:$2 sm:$0xff] %v1182_v50 }
 0xd75   :  { %v1209_v58 = vld.sshfl [vmem:[#allocation1] sm:$0xff pattern:$0x75316420] }
 0xdc8   :  { %v1202_v8 = vpop.permute.xlu2 %1201 }
 0xdc9   :  { %v1204_v56 = vsel %vm616_vm15, %v1202_v8, %v1197_v6 }
 0xdca   :  { %1205 = vst.msk [vmem:[#allocation2] sm:$0xf] %vm18_vm0, %v1204_v56 }
 0xdd1   :  { %v1244_v44 = vld [vmem:[#allocation2] sm:$0xf] }
 0xdd2   :  { %1688 = vmatmul.msk.f32.vlgmr.msrb.gmra.mxu0 %vm38_vm1, %v1244_v44 }
 0xdd3   :  { %v1186_v13 = vpop.permute.xlu1 %1185 }
 0xdd4   :  { %v1188_v57 = vmul.f32 %v1186_v13, %v1165_v42 }
 0xdd6   :  { %1217 = vst [vmem:[#allocation1] ss:$2 sm:$0xff] %v1188_v57 }
 0xddb   :  { %v1193_v2 = vpop.permute.xlu1 %1192 }
 0xddc   :  { %v1195_v11 = vsel %vm616_vm15, %v1193_v2, %v2259_v51 }
 0xddd   :  { %1196 = vst.msk [vmem:[#allocation3] sm:$0xf] %vm18_vm0, %v1195_v11  ;;  %v1218_v14 = vld.sshfl [vmem:[#allocation1] sm:$0xff pattern:$0x75316420] }
 0xdde   :  { %1219 = vrot.lane.b32.xlu0 %v1218_v14, %s1862_s2  ;;  %1224 = vst [vmem:[#allocation1] ss:$2 sm:$0xff] %v1146_v52 }
 0xde4   :  { %v2297_v32 = vld [vmem:[#allocation3] sm:$0xf] }
 0xde5   :  { %v2283_v15 = vld.sshfl [vmem:[#allocation1] sm:$0xff pattern:$0x75316420] }
 0xde6   :  { %1230 = vst [vmem:[#allocation1] ss:$2 sm:$0xff] %v1188_v57  ;;  %1210 = vrot.lane.b32.xlu0 %v1209_v58, %s1865_s1 }
 0xded   :  { %v2307_v44 = vld.sshfl [vmem:[#allocation1] sm:$0xff pattern:$0x75316420] }
 0xe4f   :  { %v1265_v45 = vpop.f32.mrf.mxu0 }
 0xe50   :  { %v1268_v18 = vadd.f32 %v1686_v17, %v1265_v45  ;;  %v1220_v23 = vpop.permute.xlu0 %1219 }
 0xe51   :  { %v1222_v51 = vsel %vm593_vm14, %v1220_v23, %v1215_v22 }
 0xe52   :  { %1803 = vtanh.f32 %v1268_v18  ;;  %1223 = vst.msk [vmem:[#allocation4] sm:$0xf] %vm18_vm0, %v1222_v51  ;;  %v1690_v33 = vmul.f32 -1.442695, %v1268_v18 }
 0xe54   :  { %1805 = vpow2.f32 %v1690_v33 }
 0xe58   :  { %v1804_v24 = vpop.eup %1803  ;;  %v1211_v28 = vpop.permute.xlu0 %1210 }
 0xe59   :  { %v1213_v29 = vsel %vm593_vm14, %v1211_v28, %v1206_v27  ;;  %1324 = vrot.lane.b32.xlu2 %v1804_v24, %s1863_s8  ;;  %v1269_v31 = vld [vmem:[#allocation4] sm:$0xf] }
 0xe5a   :  { %1214 = vst.msk [vmem:[#allocation5] sm:$0xf] %vm18_vm0, %v1213_v29  ;;  %1689 = vmatmul.msk.f32.vlgmr.msrb.gmra.mxu1 %vm38_vm1, %v1269_v31  ;;  %v1806_v34 = vpop.eup %1805 }
 0xe5b   :  { %v1301_v61 = vadd.f32 1.0, %v1806_v34 }
 0xe5d   :  { %1807 = vrcp.f32 %v1301_v61  ;;  %v1313_v39 = vand.u32 2147483648, %v1301_v61  ;;  %vm1307_vm3 = vweird.f32 %v1301_v61  ;;  %v1311_v26 = vand.u32 2147483647, %v1301_v61 }
 0xe5f   :  { %v1314_v41 = vor.u32 1.1754944e-38, %v1313_v39  ;;  %vm1312_vm7 = vcmp.eq.f32.partialorder %v1311_v26, 8.507059e+37 }
 0xe61   :  { %1319 = vrot.lane.b32.xlu2 %v2297_v32, %s1862_s2  ;;  %v1339_v52 = vld [vmem:[#allocation5] sm:$0xf] }
 0xe63   :  { %v1808_v35 = vpop.eup %1807 }
 0xe64   :  { %v1303_v10 = vmul.f32 %v1808_v35, %v1301_v61  ;;  %vm1308_vm2 = vweird.f32 %v1808_v35 }
 0xe65   :  { %vm1309_vm6 = vmor %vm1307_vm3, %vm1308_vm2 }
 0xe66   :  { %v1304_v0 = vsub.f32 1.0, %v1303_v10 }
 0xe68   :  { %v1305_v1 = vmul.f32 %v1808_v35, %v1304_v0 }
 0xe6a   :  { %v1306_v5 = vadd.f32 %v1808_v35, %v1305_v1 }
 0xe6c   :  { %v1310_v40 = vsel %vm1309_vm6, %v1808_v35, %v1306_v5  ;;  %v1389_v5 = vld [vmem:[#allocation2] sm:$0xf] }
 0xe6d   :  { %v1315_v7 = vsel %vm1312_vm7, %v1314_v41, %v1310_v40 }
 0xeb3   :  { %v1325_v42 = vpop.permute.xlu2 %1324 }
 0xeb4   :  { %v1327_v43 = vmul.f32 %v1325_v42, %v1315_v7 }
 0xeb6   :  { %1329 = vrot.lane.b32.xlu0 %v1327_v43, %s1862_s2 }
 0xebb   :  { %v1320_v53 = vpop.permute.xlu2 %1319 }
 0xebc   :  { %v1322_v6 = vmul.f32 %v1320_v53, %v1315_v7 }
 0xed7   :  { %v1290_v50 = vpop.f32.mrf.mxu1 }
 0xed8   :  { %v1296_v3 = vadd.f32 %v1294_v49, %v1290_v50 }
 0xeda   :  { %1809 = vtanh.f32 %v1296_v3  ;;  %v1691_v55 = vmul.f32 -1.442695, %v1296_v3  ;;  %v1692_v3 = vld [vmem:[%s2462_s0 + $0x38] sm:$0xff] }
 0xedc   :  { %1811 = vpow2.f32 %v1691_v55  ;;  %v1407_v55 = vld [vmem:[#allocation4] sm:$0xf] }
 0xee0   :  { %v1810_v4 = vpop.eup %1809 }
 0xee1   :  { %1366 = vrot.lane.b32.xlu1 %v1810_v4, %s1863_s8 }
 0xee2   :  { %v1812_v13 = vpop.eup %1811 }
 0xee3   :  { %v1343_v58 = vadd.f32 1.0, %v1812_v13 }
 0xee5   :  { %v1355_v18 = vand.u32 2147483648, %v1343_v58  ;;  %vm1349_vm9 = vweird.f32 %v1343_v58  ;;  %v1353_v22 = vand.u32 2147483647, %v1343_v58 }
 0xee7   :  { %v1356_v51 = vor.u32 1.1754944e-38, %v1355_v18  ;;  %vm1354_vm3 = vcmp.eq.f32.partialorder %v1353_v22, 8.507059e+37 }
 0xee9   :  { %1361 = vrot.lane.b32.xlu1 %v1339_v52, %s1862_s2 }
 0xf28   :  { %v1330_v8 = vpop.permute.xlu0 %1329 }
 0xf29   :  { %v1332_v56 = vadd.f32 %v1330_v8, %v1322_v6 }
 0xf2b   :  { %1813 = vtanh.f32 %v1332_v56  ;;  %1382 = vst [vmem:[#allocation1] ss:$2 sm:$0xff] %v1332_v56  ;;  %v1398_v56 = vld [vmem:[#allocation5] sm:$0xf] }
 0xf2c   :  { %1815 = vrcp.f32 %v1343_v58 }
 0xf31   :  { %v1814_v57 = vpop.eup %1813 }
 0xf32   :  { %1335 = vrot.lane.b32.xlu0 %v1814_v57, %s1863_s8  ;;  %v1816_v2 = vpop.eup %1815  ;;  %v1383_v33 = vld.sshfl [vmem:[#allocation1] sm:$0xff pattern:$0x75316420] }
 0xf33   :  { %v1345_v11 = vmul.f32 %v1816_v2, %v1343_v58  ;;  %vm1350_vm8 = vweird.f32 %v1816_v2 }
 0xf34   :  { %vm1351_vm2 = vmor %vm1349_vm9, %vm1350_vm8 }
 0xf35   :  { %v1346_v14 = vsub.f32 1.0, %v1345_v11 }
 0xf37   :  { %v1347_v17 = vmul.f32 %v1816_v2, %v1346_v14 }
 0xf39   :  { %v1348_v45 = vadd.f32 %v1816_v2, %v1347_v17 }
 0xf3b   :  { %v1352_v23 = vsel %vm1351_vm2, %v1816_v2, %v1348_v45 }
 0xf3c   :  { %v1357_v27 = vsel %vm1354_vm3, %v1356_v51, %v1352_v23 }
 0xf53   :  { %v1367_v24 = vpop.permute.xlu1 %1366 }
 0xf54   :  { %v1369_v28 = vmul.f32 %v1367_v24, %v1357_v27 }
 0xf56   :  { %1371 = vrot.lane.b32.xlu2 %v1369_v28, %s1862_s2 }
 0xf5b   :  { %v1362_v34 = vpop.permute.xlu1 %1361 }
 0xf5c   :  { %v1364_v35 = vmul.f32 %v1362_v34, %v1357_v27  ;;  %v1435_v34 = vld [vmem:[%s2462_s0] sm:$0xff]  ;;  %s1867_s0 = smov [#allocation8]  }
 0xf5d   :  { %s1640_s3 = sshll.u32 %s1867_s0, 4  ;;  %s1641_s3 = int_to_ptr.vmem [resolvable:$true] %s1640_s3 }
 0xfa4   :  { %v1336_v29 = vpop.permute.xlu0 %1335 }
 0xfa5   :  { %v1338_v31 = vmul.f32 %v1336_v29, %v1315_v7 }
 0xfa7   :  { %1391 = vst [vmem:[#allocation1] ss:$2 sm:$0xff] %v1338_v31 }
 0xfae   :  { %v1392_v61 = vld.sshfl [vmem:[#allocation1] sm:$0xff pattern:$0x75316420] }
 0xfaf   :  { %1393 = vrot.lane.b32.xlu2 %v1392_v61, %s1862_s2  ;;  %v1486_v61 = vrot.slane %v1435_v34, 4 }
 0xfb0   :  { %v1372_v10 = vpop.permute.xlu2 %1371 }
 0xfb1   :  { %v1374_v0 = vadd.f32 %v1372_v10, %v1364_v35 }
 0xfb3   :  { %1817 = vtanh.f32 %v1374_v0  ;;  %1400 = vst [vmem:[#allocation1] ss:$2 sm:$0xff] %v1374_v0 }
 0xfb9   :  { %v1818_v1 = vpop.eup %1817 }
 0xfba   :  { %1377 = vrot.lane.b32.xlu1 %v1818_v1, %s1863_s8  ;;  %v1401_v7 = vld.sshfl [vmem:[#allocation1] sm:$0xff pattern:$0x75316420] }
 0xfc2   :  { %1384 = vrot.lane.b32.xlu1 %v1383_v33, %s1865_s1 }
0x1009   :  { %v1394_v39 = vpop.permute.xlu2 %1393 }
0x100a   :  { %v1396_v26 = vsel %vm410_vm11, %v1394_v39, %v1389_v5 }
0x100b   :  { %1397 = vst.msk [vmem:[#allocation2] sm:$0xf] %vm18_vm0, %v1396_v26 }
0x1012   :  { %v1436_v40 = vld [vmem:[#allocation2] sm:$0xf] }
0x1013   :  { %1693 = vmatmul.msk.f32.vlgmr.msrb.gmra.mxu2 %vm38_vm1, %v1436_v40 }
0x102c   :  { %v1378_v41 = vpop.permute.xlu1 %1377 }
0x102d   :  { %v1380_v42 = vmul.f32 %v1378_v41, %v1357_v27 }
0x102f   :  { %1409 = vst [vmem:[#allocation1] ss:$2 sm:$0xff] %v1380_v42 }
0x1034   :  { %v1385_v43 = vpop.permute.xlu1 %1384 }
0x1035   :  { %v1387_v48 = vsel %vm410_vm11, %v1385_v43, %v2297_v32 }
0x1036   :  { %1388 = vst.msk [vmem:[#allocation3] sm:$0xf] %vm18_vm0, %v1387_v48  ;;  %v1410_v49 = vld.sshfl [vmem:[#allocation1] sm:$0xff pattern:$0x75316420] }
0x1037   :  { %1411 = vrot.lane.b32.xlu0 %v1410_v49, %s1862_s2  ;;  %1416 = vst [vmem:[#allocation1] ss:$2 sm:$0xff] %v1338_v31 }
0x103d   :  { %v2330_v32 = vld [vmem:[#allocation3] sm:$0xf] }
0x103e   :  { %v2323_v50 = vld.sshfl [vmem:[#allocation1] sm:$0xff pattern:$0x75316420] }
0x103f   :  { %1422 = vst [vmem:[#allocation1] ss:$2 sm:$0xff] %v1380_v42  ;;  %1402 = vrot.lane.b32.xlu0 %v1401_v7, %s1865_s1  ;;  %v1866_v7 = vmov -inf  }
0x1040   :  { %24 = vst.msk [vmem:[#allocation7] sm:$0xf] %vm18_vm0, %v1866_v7 }
0x1041   :  { %23 = vst.msk [vmem:[#allocation6] sm:$0xf] %vm18_vm0, %v1866_v7 }
0x1046   :  { %v2359_v41 = vld.sshfl [vmem:[#allocation1] sm:$0xff pattern:$0x75316420] }
0x1096   :  { %v1457_v4 = vpop.f32.mrf.mxu2 }
0x1097   :  { %v1460_v52 = vadd.f32 %v1692_v3, %v1457_v4 }
0x1099   :  { %1819 = vtanh.f32 %v1460_v52  ;;  %v1695_v2 = vmul.f32 -1.442695, %v1460_v52 }
0x109b   :  { %1821 = vpow2.f32 %v1695_v2 }
0x109f   :  { %v1820_v53 = vpop.eup %1819 }
0x10a0   :  { %1516 = vrot.lane.b32.xlu2 %v1820_v53, %s1863_s8 }
0x10a1   :  { %v1822_v11 = vpop.eup %1821 }
0x10a2   :  { %v1493_v14 = vadd.f32 1.0, %v1822_v11 }
0x10a4   :  { %1823 = vrcp.f32 %v1493_v14  ;;  %v1505_v51 = vand.u32 2147483648, %v1493_v14  ;;  %vm1499_vm7 = vweird.f32 %v1493_v14  ;;  %v1503_v24 = vand.u32 2147483647, %v1493_v14 }
0x10a6   :  { %v1506_v28 = vor.u32 1.1754944e-38, %v1505_v51  ;;  %vm1504_vm9 = vcmp.eq.f32.partialorder %v1503_v24, 8.507059e+37 }
0x10a8   :  { %1511 = vrot.lane.b32.xlu2 %v2330_v32, %s1862_s2 }
0x10a9   :  { %v1412_v6 = vpop.permute.xlu0 %1411 }
0x10aa   :  { %v1414_v8 = vsel %vm387_vm10, %v1412_v6, %v1407_v55  ;;  %v1824_v17 = vpop.eup %1823  ;;  %v237_v6 = vld [vmem:[#allocation7] sm:$0xf] }
0x10ab   :  { %1415 = vst.msk [vmem:[#allocation4] sm:$0xf] %vm18_vm0, %v1414_v8  ;;  %v1495_v45 = vmul.f32 %v1824_v17, %v1493_v14  ;;  %vm1500_vm6 = vweird.f32 %v1824_v17 }
0x10ac   :  { %vm1501_vm8 = vmor %vm1499_vm7, %vm1500_vm6 }
0x10ad   :  { %v1496_v18 = vsub.f32 1.0, %v1495_v45  ;;  %v234_v45 = vld [vmem:[#allocation6] sm:$0xf] }
0x10af   :  { %v1497_v22 = vmul.f32 %v1824_v17, %v1496_v18 }
0x10b1   :  { %v1403_v13 = vpop.permute.xlu0 %1402  ;;  %v1498_v23 = vadd.f32 %v1824_v17, %v1497_v22 }
0x10b2   :  { %v1405_v57 = vsel %vm387_vm10, %v1403_v13, %v1398_v56  ;;  %v1461_v58 = vld [vmem:[#allocation4] sm:$0xf] }
0x10b3   :  { %1406 = vst.msk [vmem:[#allocation5] sm:$0xf] %vm18_vm0, %v1405_v57  ;;  %1694 = vmatmul.msk.f32.vlgmr.msrb.gmra.mxu3 %vm38_vm1, %v1461_v58  ;;  %v1502_v27 = vsel %vm1501_vm8, %v1824_v17, %v1498_v23  ;;  %v1599_v9 = vld [vmem:[#allocation4] sm:$0xf] }
0x10b4   :  { %v2341_v31 = vsel %vm1504_vm9, %v1506_v28, %v1502_v27 }
0x10ba   :  { %v1531_v1 = vld [vmem:[#allocation5] sm:$0xf] }
0x10fa   :  { %v1517_v29 = vpop.permute.xlu2 %1516 }
0x10fb   :  { %v1519_v33 = vmul.f32 %v1517_v29, %v2341_v31 }
0x10fd   :  { %1521 = vrot.lane.b32.xlu0 %v1519_v33, %s1862_s2 }
0x1102   :  { %v1512_v5 = vpop.permute.xlu2 %1511 }
0x1103   :  { %v1514_v39 = vmul.f32 %v1512_v5, %v2341_v31 }
0x1136   :  { %v1482_v35 = vpop.f32.mrf.mxu3 }
0x1137   :  { %v1488_v10 = vadd.f32 %v1486_v61, %v1482_v35 }
0x1139   :  { %1825 = vtanh.f32 %v1488_v10 }
0x113f   :  { %v1826_v0 = vpop.eup %1825 }
0x1140   :  { %1558 = vrot.lane.b32.xlu1 %v1826_v0, %s1863_s8 }
0x1148   :  { %1553 = vrot.lane.b32.xlu1 %v1531_v1, %s1862_s2 }
0x1150   :  { %230 = vrot.lane.b32.xlu1 %v2060_v30, %s1862_s2  ;;  %v1696_v30 = vmul.f32 -1.442695, %v1488_v10 }
0x1158   :  { %642 = vrot.lane.b32.xlu1 %v2187_v37, %s1862_s2 }
0x1160   :  { %1040 = vrot.lane.b32.xlu1 %v2267_v59, %s1862_s2 }
0x1168   :  { %636 = vrot.lane.b32.xlu1 %v2148_v12, %s1862_s2 }
0x116f   :  { %v1522_v26 = vpop.permute.xlu0 %1521 }
0x1170   :  { %v1524_v40 = vadd.f32 %v1522_v26, %v1514_v39 }
0x1172   :  { %1827 = vtanh.f32 %v1524_v40  ;;  %1574 = vst [vmem:[#allocation1] ss:$2 sm:$0xff] %v1524_v40 }
0x1173   :  { %1829 = vpow2.f32 %v1696_v30 }
0x1178   :  { %v1828_v42 = vpop.eup %1827 }
0x1179   :  { %1527 = vrot.lane.b32.xlu0 %v1828_v42, %s1863_s8  ;;  %v1830_v12 = vpop.eup %1829  ;;  %v1575_v48 = vld.sshfl [vmem:[#allocation1] sm:$0xff pattern:$0x75316420] }
0x117a   :  { %v1535_v37 = vadd.f32 1.0, %v1830_v12 }
0x117c   :  { %1831 = vrcp.f32 %v1535_v37  ;;  %v1547_v49 = vand.u32 2147483648, %v1535_v37  ;;  %vm1541_vm2 = vweird.f32 %v1535_v37 }
0x117e   :  { %v1548_v4 = vor.u32 1.1754944e-38, %v1547_v49 }
0x1181   :  { %436 = vrot.lane.b32.xlu0 %v2124_v60, %s1862_s2 }
0x1182   :  { %v1832_v59 = vpop.eup %1831 }
0x1183   :  { %v1537_v60 = vmul.f32 %v1832_v59, %v1535_v37  ;;  %vm1542_vm1 = vweird.f32 %v1832_v59 }
0x1184   :  { %vm1543_vm3 = vmor %vm1541_vm2, %vm1542_vm1 }
0x1189   :  { %224 = vrot.lane.b32.xlu0 %v2011_v19, %s1862_s2  ;;  %v1538_v19 = vsub.f32 1.0, %v1537_v60 }
0x118b   :  { %v1539_v43 = vmul.f32 %v1832_v59, %v1538_v19 }
0x1191   :  { %1232 = vrot.lane.b32.xlu0 %v2307_v44, %s1862_s2  ;;  %v1540_v44 = vadd.f32 %v1832_v59, %v1539_v43 }
0x1193   :  { %v1544_v3 = vsel %vm1543_vm3, %v1832_v59, %v1540_v44 }
0x1199   :  { %842 = vrot.lane.b32.xlu0 %v2197_v62, %s1862_s2  ;;  %v1545_v62 = vand.u32 2147483647, %v1535_v37 }
0x119b   :  { %vm1546_vm6 = vcmp.eq.f32.partialorder %v1545_v62, 8.507059e+37 }
0x119c   :  { %v1549_v53 = vsel %vm1546_vm6, %v1548_v4, %v1544_v3 }
0x11a1   :  { %1226 = vrot.lane.b32.xlu0 %v2283_v15, %s1862_s2 }
0x11a9   :  { %1576 = vrot.lane.b32.xlu0 %v1575_v48, %s1865_s1 }
0x11b2   :  { %v1559_v52 = vpop.permute.xlu1 %1558 }
0x11b3   :  { %v1561_v55 = vmul.f32 %v1559_v52, %v1549_v53 }
0x11b5   :  { %1563 = vrot.lane.b32.xlu2 %v1561_v55, %s1862_s2 }
0x11ba   :  { %v1554_v15 = vpop.permute.xlu1 %1553 }
0x11bb   :  { %v1556_v33 = vmul.f32 %v1554_v15, %v1549_v53 }
0x11c2   :  { %v231_v8 = vpop.permute.xlu1 %230 }
0x11c3   :  { %v233_v56 = vsel %vm204_vm12, %v231_v8, 0.0 }
0x11c4   :  { %v238_v13 = vmax.f32 %v237_v6, %v233_v56 }
0x11c6   :  { %239 = vst.msk [vmem:[#allocation7] sm:$0xf] %vm18_vm0, %v238_v13 }
0x11ca   :  { %v643_v18 = vpop.permute.xlu1 %642 }
0x11cb   :  { %v645_v24 = vsel %vm616_vm15, %v643_v18, 0.0 }
0x11cd   :  { %v443_v11 = vld [vmem:[#allocation7] sm:$0xf] }
0x11eb   :  { %v1528_v57 = vpop.permute.xlu0 %1527 }
0x11ec   :  { %v1530_v58 = vmul.f32 %v1528_v57, %v2341_v31 }
0x11ee   :  { %1583 = vst [vmem:[#allocation1] ss:$2 sm:$0xff] %v1530_v58 }
0x11f3   :  { %v437_v2 = vpop.permute.xlu0 %436 }
0x11f4   :  { %v439_v14 = vsel %vm410_vm11, %v437_v2, 0.0 }
0x11f5   :  { %v444_v17 = vmax.f32 %v443_v11, %v439_v14  ;;  %v1584_v35 = vld.sshfl [vmem:[#allocation1] sm:$0xff pattern:$0x75316420] }
0x11f7   :  { %445 = vst.msk [vmem:[#allocation7] sm:$0xf] %vm18_vm0, %v444_v17  ;;  %v1590_v17 = vld [vmem:[#allocation5] sm:$0xf] }
0x11fb   :  { %v225_v22 = vpop.permute.xlu0 %224 }
0x11fc   :  { %v227_v23 = vsel %vm181_vm13, %v225_v22, 0.0 }
0x11fd   :  { %v235_v51 = vmax.f32 %v234_v45, %v227_v23 }
0x11fe   :  { %v649_v27 = vld [vmem:[#allocation7] sm:$0xf] }
0x11ff   :  { %v650_v28 = vmax.f32 %v649_v27, %v645_v24  ;;  %236 = vst.msk [vmem:[#allocation6] sm:$0xf] %vm18_vm0, %v235_v51 }
0x1201   :  { %651 = vst.msk [vmem:[#allocation7] sm:$0xf] %vm18_vm0, %v650_v28 }
0x1203   :  { %v1233_v29 = vpop.permute.xlu0 %1232 }
0x1204   :  { %v1235_v4 = vsel %vm593_vm14, %v1233_v29, 0.0 }
0x1206   :  { %v440_v37 = vld [vmem:[#allocation6] sm:$0xf] }
0x1208   :  { %v855_v30 = vld [vmem:[#allocation7] sm:$0xf] }
0x120b   :  { %v843_v31 = vpop.permute.xlu0 %842 }
0x120c   :  { %v845_v15 = vsel %vm799_vm4, %v843_v31, 0.0 }
0x120f   :  { %v1564_v34 = vpop.permute.xlu2 %1563 }
0x1210   :  { %v1566_v61 = vadd.f32 %v1564_v34, %v1556_v33 }
0x1212   :  { %1833 = vtanh.f32 %v1566_v61  ;;  %1592 = vst [vmem:[#allocation1] ss:$2 sm:$0xff] %v1566_v61  ;;  %v1581_v61 = vld [vmem:[#allocation2] sm:$0xf] }
0x1213   :  { %v2389_v10 = vpop.permute.xlu0 %1226 }
0x1214   :  { %v1229_v47 = vsel %vm616_vm15, %v2389_v10, 0.0 }
0x1218   :  { %v1834_v0 = vpop.eup %1833 }
0x1219   :  { %1569 = vrot.lane.b32.xlu2 %v1834_v0, %s1863_s8  ;;  %v1593_v40 = vld.sshfl [vmem:[#allocation1] sm:$0xff pattern:$0x75316420] }
0x121b   :  { %v1577_v1 = vpop.permute.xlu0 %1576 }
0x121c   :  { %v1579_v5 = vsel %vm204_vm12, %v1577_v1, %v2330_v32 }
0x121d   :  { %1580 = vst.msk [vmem:[#allocation3] sm:$0xf] %vm18_vm0, %v1579_v5 }
0x1221   :  { %848 = vrot.lane.b32.xlu2 %v2232_v16, %s1862_s2 }
0x1229   :  { %430 = vrot.lane.b32.xlu2 %v2070_v46, %s1862_s2  ;;  %v1041_v46 = vpop.permute.xlu1 %1040 }
0x122a   :  { %v1043_v60 = vsel %vm799_vm4, %v1041_v46, 0.0 }
0x1231   :  { %1424 = vrot.lane.b32.xlu2 %v2359_v41, %s1862_s2  ;;  %v637_v48 = vpop.permute.xlu1 %636 }
0x1232   :  { %v639_v49 = vsel %vm593_vm14, %v637_v48, 0.0 }
0x1239   :  { %1034 = vrot.lane.b32.xlu2 %v2246_v38, %s1862_s2 }
0x1273   :  { %v1570_v39 = vpop.permute.xlu2 %1569 }
0x1274   :  { %v1572_v26 = vmul.f32 %v1570_v39, %v1549_v53 }
0x1276   :  { %1601 = vst [vmem:[#allocation1] ss:$2 sm:$0xff] %v1572_v26 }
0x127b   :  { %v849_v42 = vpop.permute.xlu2 %848 }
0x127c   :  { %v851_v32 = vsel %vm822_vm5, %v849_v42, 0.0 }
0x127d   :  { %v856_v12 = vmax.f32 %v855_v30, %v851_v32  ;;  %v1602_v16 = vld.sshfl [vmem:[#allocation1] sm:$0xff pattern:$0x75316420] }
0x127e   :  { %1603 = vrot.lane.b32.xlu0 %v1602_v16, %s1862_s2  ;;  %1608 = vst [vmem:[#allocation1] ss:$2 sm:$0xff] %v1530_v58 }
0x127f   :  { %857 = vst.msk [vmem:[#allocation7] sm:$0xf] %vm18_vm0, %v856_v12 }
0x1283   :  { %v431_v41 = vpop.permute.xlu2 %430 }
0x1284   :  { %v433_v38 = vsel %vm387_vm10, %v431_v41, 0.0 }
0x1285   :  { %v441_v59 = vmax.f32 %v440_v37, %v433_v38  ;;  %v1609_v7 = vld.sshfl [vmem:[#allocation1] sm:$0xff pattern:$0x75316420] }
0x1286   :  { %v1047_v19 = vld [vmem:[#allocation7] sm:$0xf]  ;;  %1610 = vrot.lane.b32.xlu2 %v1609_v7, %s1862_s2  ;;  %1614 = vst [vmem:[#allocation1] ss:$2 sm:$0xff] %v1572_v26 }
0x1287   :  { %v1048_v43 = vmax.f32 %v1047_v19, %v1043_v60  ;;  %442 = vst.msk [vmem:[#allocation6] sm:$0xf] %vm18_vm0, %v441_v59 }
0x1289   :  { %1049 = vst.msk [vmem:[#allocation7] sm:$0xf] %vm18_vm0, %v1048_v43 }
0x128b   :  { %v1425_v55 = vpop.permute.xlu2 %1424 }
0x128c   :  { %v1427_v25 = vsel %vm387_vm10, %v1425_v55, 0.0 }
0x128d   :  { %v1615_v44 = vld.sshfl [vmem:[#allocation1] sm:$0xff pattern:$0x75316420] }
0x128e   :  { %v646_v62 = vld [vmem:[#allocation6] sm:$0xf]  ;;  %1594 = vrot.lane.b32.xlu2 %v1593_v40, %s1865_s1  ;;  %1616 = vrot.lane.b32.xlu1 %v1615_v44, %s1862_s2 }
0x128f   :  { %v647_v3 = vmax.f32 %v646_v62, %v639_v49 }
0x1290   :  { %v1239_v52 = vld [vmem:[#allocation7] sm:$0xf] }
0x1291   :  { %v1240_v53 = vmax.f32 %v1239_v52, %v1235_v4  ;;  %648 = vst.msk [vmem:[#allocation6] sm:$0xf] %vm18_vm0, %v647_v3 }
0x1293   :  { %1241 = vst.msk [vmem:[#allocation7] sm:$0xf] %vm18_vm0, %v1240_v53  ;;  %v1035_v57 = vpop.permute.xlu2 %1034 }
0x1296   :  { %1418 = vrot.lane.b32.xlu1 %v2323_v50, %s1862_s2  ;;  %v1037_v50 = vsel %vm822_vm5, %v1035_v57, 0.0 }
0x1298   :  { %v852_v6 = vld [vmem:[#allocation6] sm:$0xf] }
0x1299   :  { %v853_v8 = vmax.f32 %v852_v6, %v845_v15 }
0x129a   :  { %v1431_v56 = vld [vmem:[#allocation7] sm:$0xf] }
0x129b   :  { %854 = vst.msk [vmem:[#allocation6] sm:$0xf] %vm18_vm0, %v853_v8  ;;  %v1432_v13 = vmax.f32 %v1431_v56, %v1427_v25 }
0x129d   :  { %1433 = vst.msk [vmem:[#allocation7] sm:$0xf] %vm18_vm0, %v1432_v13 }
0x129e   :  { %1585 = vrot.lane.b32.xlu1 %v1584_v35, %s1862_s2 }
0x12a2   :  { %v1044_v58 = vld [vmem:[#allocation6] sm:$0xf] }
0x12a3   :  { %v1045_v63 = vmax.f32 %v1044_v58, %v1037_v50 }
0x12a4   :  { %v1623_v51 = vld [vmem:[#allocation7] sm:$0xf] }
0x12a5   :  { %1046 = vst.msk [vmem:[#allocation6] sm:$0xf] %vm18_vm0, %v1045_v63 }
0x12ac   :  { %v1236_v2 = vld [vmem:[#allocation6] sm:$0xf] }
0x12ad   :  { %v1237_v11 = vmax.f32 %v1236_v2, %v1229_v47 }
0x12af   :  { %1238 = vst.msk [vmem:[#allocation6] sm:$0xf] %vm18_vm0, %v1237_v11 }
0x12b6   :  { %v1428_v29 = vld [vmem:[#allocation6] sm:$0xf] }
0x12e0   :  { %v1611_v14 = vpop.permute.xlu2 %1610 }
0x12e1   :  { %v1613_v10 = vsel %vm204_vm12, %v1611_v14, 0.0 }
0x12e8   :  { %v1595_v45 = vpop.permute.xlu2 %1594 }
0x12e9   :  { %v1597_v18 = vsel %vm181_vm13, %v1595_v45, %v1590_v17 }
0x12ea   :  { %1598 = vst.msk [vmem:[#allocation5] sm:$0xf] %vm18_vm0, %v1597_v18 }
0x12f0   :  { %v1604_v22 = vpop.permute.xlu0 %1603 }
0x12f1   :  { %v1606_v23 = vsel %vm181_vm13, %v1604_v22, %v1599_v9 }
0x12f2   :  { %1607 = vst.msk [vmem:[#allocation4] sm:$0xf] %vm18_vm0, %v1606_v23 }
0x1300   :  { %v1617_v36 = vpop.permute.xlu1 %1616 }
0x1301   :  { %v1619_v24 = vsel %vm181_vm13, %v1617_v36, 0.0  ;;  %vm1633_vm13 = vcmask 519424  }
0x1302   :  { %v1624_v27 = vmax.f32 %v1623_v51, %v1619_v24 }
0x1304   :  { %1625 = vst.msk [vmem:[#allocation7] sm:$0xf] %vm18_vm0, %v1624_v27 }
0x1308   :  { %v1419_v28 = vpop.permute.xlu1 %1418 }
0x1309   :  { %v1421_v31 = vsel %vm410_vm11, %v1419_v28, 0.0 }
0x130a   :  { %v1429_v33 = vmax.f32 %v1428_v29, %v1421_v31 }
0x130b   :  { %v1628_v34 = vld [vmem:[#allocation7] sm:$0xf] }
0x130c   :  { %1430 = vst.msk [vmem:[#allocation6] sm:$0xf] %vm18_vm0, %v1429_v33  ;;  %1630 = vrot.lane.b32.xlu1 %v1628_v34, %s1862_s2 }
0x1310   :  { %v1586_v35 = vpop.permute.xlu1 %1585 }
0x1311   :  { %v1588_v20 = vsel %vm204_vm12, %v1586_v35, %v1581_v61 }
0x1312   :  { %1589 = vst.msk [vmem:[#allocation2] sm:$0xf] %vm18_vm0, %v1588_v20 }
0x1313   :  { %v1620_v0 = vld [vmem:[#allocation6] sm:$0xf] }
0x1314   :  { %v1621_v1 = vmax.f32 %v1620_v0, %v1613_v10 }
0x1316   :  { %1622 = vst.msk [vmem:[#allocation6] sm:$0xf] %vm18_vm0, %v1621_v1 }
0x131d   :  { %v1626_v54 = vld [vmem:[#allocation6] sm:$0xf] }
0x131e   :  { %1627 = vst.msk [vmem:[#allocation8] sm:$0xf] %vm18_vm0, %v1626_v54 }
0x137e   :  { %v1631_v5 = vpop.permute.xlu1 %1630 }
0x137f   :  { %1634 = vst.msk [vmem:[#allocation8] sm:$0xf] %vm1633_vm13, %v1631_v5 }
0x1380   :  { %1645 = dma.vmem_to_hbm [thread:$0]  %s1641_s3, 64, %s1643_s6, [#allocation9]  }
0x1381   :  { %1859 = dma.done.wait [#allocation9], 64  }
0x1382   :  { %1860 = vsyncadd [#allocation9], 4294967232 }
0x1383   :  { %1650 = vsyncpa [#allocation9], 1 }

// kernel: bilstm_maxpool_encoder.2
= control target key start
LH: loop header
LB: loop body
LE: loop exit
PB: predicated region body
PF: predicated region fallthrough
CT: control target
= control target key end

     0   :  { %vm17_vm0 = vcmask 257024   ;;  %v1831_v2 = vmov 0.0   ;;  %vm35_vm1 = vcmask 261120   ;;  %s1833_s8 = smov 64   ;;  %v1834_v63 = vmov 0   ;;  %s2471_s2 = inlined_call_operand.vmem [shape: f32[32,128], index: 2, kind: input, shape index: {}]   ;;  %s2472_s3 = inlined_call_operand.vmem [shape: f32[32,128], index: 3, kind: input, shape index: {}]   ;;  %s2473_s0 = inlined_call_operand.vmem [shape: f32[8,4,256], index: 0, kind: input, shape index: {}]   ;;  %s2474_s1 = inlined_call_operand.vmem [shape: s32[4,1], index: 1, kind: input, shape index: {}]   ;;  %s2475_s4 = inlined_call_operand.vmem [shape: f32[8,4,64], index: 4, kind: output, shape index: {}]  }
   0x1   :  { %v1864_v0 = vld [vmem:[%s2471_s2 + $0x18] sm:$0xff]  ;;  %v1869_v1 = vld [vmem:[%s2471_s2 + $0x10] sm:$0xff]  ;;  %18 = vst.msk [vmem:[#allocation2] sm:$0xf] %vm17_vm0, %v1831_v2  ;;  %v1888_v5 = vld [vmem:[%s2471_s2 + $0x8] sm:$0xff]  ;;  %1701 = vset.pattern.permute.xlu1 %v1834_v63  ;;  %1700 = vset.pattern.permute.xlu2 %v1834_v63 }
   0x2   :  { %51 = vmatpush.msra.mxu0 %v1864_v0  ;;  %19 = vst.msk [vmem:[#allocation3] sm:$0xf] %vm17_vm0, %v1831_v2  ;;  %v1877_v3 = vld [vmem:[%s2472_s3 + $0x18] sm:$0xff]  ;;  %v1882_v4 = vld [vmem:[%s2472_s3 + $0x10] sm:$0xff]  ;;  %259 = vmatpush.msra.mxu2 %v1864_v0  ;;  %v1898_v6 = vld [vmem:[%s2472_s3 + $0x8] sm:$0xff] }
   0x3   :  { %20 = vst.msk [vmem:[#allocation4] sm:$0xf] %vm17_vm0, %v1831_v2  ;;  %76 = vmatpush.msra.mxu1 %v1877_v3  ;;  %284 = vmatpush.msra.mxu3 %v1877_v3  ;;  %v1904_v7 = vld [vmem:[%s2471_s2] sm:$0xff]  ;;  %s1832_s2 = smov 32   ;;  %v1635_v14 = vld [vmem:[%s2473_s0 + $0x38] sm:$0xff] }
   0x4   :  { %52 = vmatpush.msra.mxu0 %v1869_v1  ;;  %21 = vst.msk [vmem:[#allocation5] sm:$0xf] %vm17_vm0, %v1831_v2  ;;  %260 = vmatpush.msra.mxu2 %v1869_v1  ;;  %v1912_v8 = vld [vmem:[%s2472_s3] sm:$0xff]  ;;  %v85_v17 = vrot.slane %v1635_v14, 4 }
   0x5   :  { %77 = vmatpush.msra.mxu1 %v1882_v4  ;;  %285 = vmatpush.msra.mxu3 %v1882_v4  ;;  %v31_v13 = vld [vmem:[%s2473_s0] sm:$0xff] }
   0x6   :  { %53 = vmatpush.msra.mxu0 %v1888_v5  ;;  %261 = vmatpush.msra.mxu2 %v1888_v5  ;;  %v1967_v62 = vld [vmem:[%s2474_s1] sm:$0xf]  ;;  %s1835_s1 = smov 96  }
   0x7   :  { %78 = vmatpush.msra.mxu1 %v1898_v6  ;;  %286 = vmatpush.msra.mxu3 %v1898_v6  ;;  %vm173_vm10 = vcmp.gt.s32.totalorder %v1967_v62, 7  ;;  %vm172_vm11 = vcmp.gt.s32.totalorder %v1967_v62, 0 }
   0x8   :  { %54 = vmatpush.msra.mxu0 %v1904_v7  ;;  %v34_v9 = vld [vmem:[#allocation2] sm:$0xf]  ;;  %262 = vmatpush.msra.mxu2 %v1904_v7  ;;  %v197_v2 = vsel %vm173_vm10, 1, %v1834_v63 }
   0x9   :  { %1636 = vmatmul.msk.f32.vlgmr.msra.gmra.mxu0 %vm35_vm1, %v34_v9  ;;  %79 = vmatpush.msra.mxu1 %v1912_v8  ;;  %v1921_v10 = vld [vmem:[#allocation3] sm:$0xf]  ;;  %v174_v9 = vsel %vm172_vm11, 1, %v1834_v63 }
   0xa   :  { %v60_v11 = vld [vmem:[#allocation4] sm:$0xf]  ;;  %110 = vrot.lane.b32.xlu1 %v1921_v10, %s1832_s2  ;;  %287 = vmatpush.msra.mxu3 %v1912_v8 }
   0xb   :  { %1637 = vmatmul.msk.f32.vlgmr.msra.gmra.mxu1 %vm35_vm1, %v60_v11  ;;  %v130_v12 = vld [vmem:[#allocation5] sm:$0xf]  ;;  %467 = vmatpush.msrb.mxu0 %v1864_v0 }
   0xc   :  { %152 = vrot.lane.b32.xlu2 %v130_v12, %s1832_s2  ;;  %492 = vmatpush.msrb.mxu1 %v1877_v3 }
   0xd   :  { %468 = vmatpush.msrb.mxu0 %v1869_v1  ;;  %675 = vmatpush.msrb.mxu2 %v1864_v0 }
   0xe   :  { %493 = vmatpush.msrb.mxu1 %v1882_v4  ;;  %700 = vmatpush.msrb.mxu3 %v1877_v3 }
   0xf   :  { %469 = vmatpush.msrb.mxu0 %v1888_v5  ;;  %676 = vmatpush.msrb.mxu2 %v1869_v1 }
  0x10   :  { %494 = vmatpush.msrb.mxu1 %v1898_v6  ;;  %701 = vmatpush.msrb.mxu3 %v1882_v4 }
  0x11   :  { %470 = vmatpush.msrb.mxu0 %v1904_v7  ;;  %677 = vmatpush.msrb.mxu2 %v1888_v5 }
  0x12   :  { %495 = vmatpush.msrb.mxu1 %v1912_v8  ;;  %702 = vmatpush.msrb.mxu3 %v1898_v6 }
  0x13   :  { %678 = vmatpush.msrb.mxu2 %v1904_v7  ;;  %881 = vmatpush.msra.mxu0 %v1864_v0 }
  0x14   :  { %703 = vmatpush.msrb.mxu3 %v1912_v8  ;;  %906 = vmatpush.msra.mxu1 %v1877_v3 }
  0x15   :  { %882 = vmatpush.msra.mxu0 %v1869_v1  ;;  %1702 = vset.pattern.permute.xlu0 %v1834_v63 }
  0x16   :  { %907 = vmatpush.msra.mxu1 %v1882_v4 }
  0x17   :  { %883 = vmatpush.msra.mxu0 %v1888_v5 }
  0x18   :  { %908 = vmatpush.msra.mxu1 %v1898_v6 }
  0x19   :  { %884 = vmatpush.msra.mxu0 %v1904_v7 }
  0x1a   :  { %909 = vmatpush.msra.mxu1 %v1912_v8 }
  0x66   :  { %v153_v52 = vpop.permute.xlu2 %152 }
  0x7c   :  { %v111_v56 = vpop.permute.xlu1 %110 }
  0x86   :  { %v56_v15 = vpop.f32.mrf.mxu0 }
  0x87   :  { %v59_v16 = vadd.f32 %v56_v15, %v31_v13 }
  0x88   :  { %v81_v18 = vpop.f32.mrf.mxu1 }
  0x89   :  { %1703 = vtanh.f32 %v59_v16  ;;  %v87_v19 = vadd.f32 %v85_v17, %v81_v18  ;;  %v1638_v22 = vmul.f32 -1.442695, %v59_v16 }
  0x8b   :  { %1705 = vtanh.f32 %v87_v19  ;;  %v1639_v23 = vmul.f32 -1.442695, %v87_v19 }
  0x8c   :  { %1707 = vpow2.f32 %v1638_v22  ;;  %v210_v22 = vld [vmem:[#allocation4] sm:$0xf] }
  0x8d   :  { %1709 = vpow2.f32 %v1639_v23 }
  0x8f   :  { %v1704_v20 = vpop.eup %1703 }
  0x90   :  { %115 = vrot.lane.b32.xlu0 %v1704_v20, %s1833_s8 }
  0x91   :  { %v1706_v21 = vpop.eup %1705 }
  0x92   :  { %v1708_v24 = vpop.eup %1707 }
  0x93   :  { %v92_v25 = vadd.f32 1.0, %v1708_v24  ;;  %v1710_v26 = vpop.eup %1709 }
  0x94   :  { %v134_v27 = vadd.f32 1.0, %v1710_v26  ;;  %v196_v26 = vld [vmem:[#allocation5] sm:$0xf] }
  0x95   :  { %1711 = vrcp.f32 %v92_v25  ;;  %v104_v36 = vand.u32 2147483648, %v92_v25  ;;  %vm98_vm3 = vweird.f32 %v92_v25  ;;  %v102_v37 = vand.u32 2147483647, %v92_v25 }
  0x96   :  { %1713 = vrcp.f32 %v134_v27  ;;  %vm140_vm6 = vweird.f32 %v134_v27  ;;  %v146_v42 = vand.u32 2147483648, %v134_v27  ;;  %v144_v45 = vand.u32 2147483647, %v134_v27 }
  0x97   :  { %v105_v40 = vor.u32 1.1754944e-38, %v104_v36  ;;  %vm103_vm5 = vcmp.eq.f32.partialorder %v102_v37, 8.507059e+37 }
  0x98   :  { %157 = vrot.lane.b32.xlu0 %v1706_v21, %s1833_s8  ;;  %v147_v47 = vor.u32 1.1754944e-38, %v146_v42  ;;  %vm145_vm9 = vcmp.eq.f32.partialorder %v144_v45, 8.507059e+37 }
  0x9b   :  { %v1712_v28 = vpop.eup %1711 }
  0x9c   :  { %v94_v29 = vmul.f32 %v1712_v28, %v92_v25  ;;  %v1714_v31 = vpop.eup %1713  ;;  %vm99_vm2 = vweird.f32 %v1712_v28  ;;  %v187_v25 = vld [vmem:[#allocation2] sm:$0xf] }
  0x9d   :  { %v136_v33 = vmul.f32 %v1714_v31, %v134_v27  ;;  %vm100_vm4 = vmor %vm98_vm3, %vm99_vm2  ;;  %vm141_vm7 = vweird.f32 %v1714_v31 }
  0x9e   :  { %v95_v30 = vsub.f32 1.0, %v94_v29  ;;  %vm142_vm8 = vmor %vm140_vm6, %vm141_vm7  ;;  %vm380_vm7 = vcmp.gt.s32.totalorder %v1967_v62, 1 }
  0x9f   :  { %v137_v35 = vsub.f32 1.0, %v136_v33 }
  0xa0   :  { %v96_v32 = vmul.f32 %v1712_v28, %v95_v30 }
  0xa1   :  { %v138_v39 = vmul.f32 %v1714_v31, %v137_v35  ;;  %v1642_v35 = vld [vmem:[%s2473_s0 + $0x30] sm:$0xff] }
  0xa2   :  { %v97_v34 = vadd.f32 %v1712_v28, %v96_v32 }
  0xa3   :  { %v139_v44 = vadd.f32 %v1714_v31, %v138_v39 }
  0xa4   :  { %v101_v38 = vsel %vm100_vm4, %v1712_v28, %v97_v34 }
  0xa5   :  { %v106_v41 = vsel %vm103_vm5, %v105_v40, %v101_v38  ;;  %v143_v48 = vsel %vm142_vm8, %v1714_v31, %v139_v44  ;;  %v1641_v38 = vld [vmem:[%s2473_s0 + $0x8] sm:$0xff] }
  0xa6   :  { %v148_v49 = vsel %vm145_vm9, %v147_v47, %v143_v48  ;;  %v113_v58 = vmul.f32 %v111_v56, %v106_v41  ;;  %vm381_vm9 = vcmp.gt.s32.totalorder %v1967_v62, 6 }
  0xa7   :  { %v155_v53 = vmul.f32 %v153_v52, %v148_v49 }
 0x102   :  { %v116_v43 = vpop.permute.xlu0 %115 }
 0x103   :  { %v118_v46 = vmul.f32 %v116_v43, %v106_v41 }
 0x105   :  { %120 = vrot.lane.b32.xlu1 %v118_v46, %s1832_s2 }
 0x10a   :  { %v158_v50 = vpop.permute.xlu0 %157 }
 0x10b   :  { %v160_v51 = vmul.f32 %v158_v50, %v148_v49 }
 0x10d   :  { %162 = vrot.lane.b32.xlu2 %v160_v51, %s1832_s2 }
 0x115   :  { %176 = vperm.xlu2 %1700, %v174_v9  }
 0x167   :  { %v163_v54 = vpop.permute.xlu2 %162 }
 0x168   :  { %v165_v55 = vadd.f32 %v163_v54, %v155_v53 }
 0x16a   :  { %1715 = vtanh.f32 %v165_v55 }
 0x16f   :  { %v1982_v20 = vpop.permute.xlu2 %176 }
 0x170   :  { %v1716_v57 = vpop.eup %1715  ;;  %vm178_vm13 = vcmp.eq.s32.totalorder %v1982_v20, 1 }
 0x171   :  { %168 = vrot.lane.b32.xlu1 %v1716_v57, %s1833_s8 }
 0x177   :  { %v121_v59 = vpop.permute.xlu1 %120 }
 0x178   :  { %v123_v60 = vadd.f32 %v121_v59, %v113_v58 }
 0x179   :  { %199 = vperm.xlu1 %1701, %v197_v2  }
 0x17a   :  { %1717 = vtanh.f32 %v123_v60  ;;  %180 = vst [vmem:[#allocation1] ss:$2 sm:$0xff] %v123_v60 }
 0x180   :  { %v1718_v61 = vpop.eup %1717 }
 0x181   :  { %126 = vrot.lane.b32.xlu0 %v1718_v61, %s1833_s8  ;;  %v181_v13 = vld.sshfl [vmem:[#allocation1] sm:$0xff pattern:$0x75316420] }
 0x1e3   :  { %v169_v15 = vpop.permute.xlu1 %168 }
 0x1e4   :  { %v171_v16 = vmul.f32 %v169_v15, %v148_v49 }
 0x1eb   :  { %v1984_v21 = vpop.permute.xlu1 %199 }
 0x1ec   :  { %vm201_vm12 = vcmp.eq.s32.totalorder %v1984_v21, 1 }
 0x1f3   :  { %v127_v11 = vpop.permute.xlu0 %126 }
 0x1f4   :  { %v129_v12 = vmul.f32 %v127_v11, %v106_v41 }
 0x1f6   :  { %189 = vst [vmem:[#allocation1] ss:$2 sm:$0xff] %v129_v12 }
 0x1fd   :  { %v190_v14 = vld.sshfl [vmem:[#allocation1] sm:$0xff pattern:$0x75316420] }
 0x1fe   :  { %203 = vst [vmem:[#allocation1] ss:$2 sm:$0xff] %v165_v55  ;;  %191 = vrot.lane.b32.xlu0 %v190_v14, %s1832_s2 }
 0x205   :  { %v204_v17 = vld.sshfl [vmem:[#allocation1] sm:$0xff pattern:$0x75316420] }
 0x206   :  { %212 = vst [vmem:[#allocation1] ss:$2 sm:$0xff] %v171_v16  ;;  %182 = vrot.lane.b32.xlu0 %v181_v13, %s1835_s1 }
 0x20d   :  { %v213_v18 = vld.sshfl [vmem:[#allocation1] sm:$0xff pattern:$0x75316420] }
 0x20e   :  { %219 = vst [vmem:[#allocation1] ss:$2 sm:$0xff] %v129_v12  ;;  %214 = vrot.lane.b32.xlu2 %v213_v18, %s1832_s2 }
 0x215   :  { %v1979_v19 = vld.sshfl [vmem:[#allocation1] sm:$0xff pattern:$0x75316420] }
 0x216   :  { %225 = vst [vmem:[#allocation1] ss:$2 sm:$0xff] %v171_v16  ;;  %205 = vrot.lane.b32.xlu2 %v204_v17, %s1835_s1 }
 0x268   :  { %v215_v23 = vpop.permute.xlu2 %214 }
 0x269   :  { %v217_v24 = vsel %vm201_vm12, %v215_v23, %v210_v22 }
 0x26a   :  { %218 = vst.msk [vmem:[#allocation4] sm:$0xf] %vm17_vm0, %v217_v24  ;;  %v382_v24 = vsel %vm380_vm7, 1, %v1834_v63 }
 0x270   :  { %v192_v27 = vpop.permute.xlu0 %191  ;;  %v206_v28 = vpop.permute.xlu2 %205 }
 0x271   :  { %v194_v29 = vsel %vm178_vm13, %v192_v27, %v187_v25  ;;  %v208_v30 = vsel %vm201_vm12, %v206_v28, %v196_v26  ;;  %v268_v31 = vld [vmem:[#allocation4] sm:$0xf] }
 0x272   :  { %195 = vst.msk [vmem:[#allocation2] sm:$0xf] %vm17_vm0, %v194_v29  ;;  %1644 = vmatmul.msk.f32.vlgmr.msra.gmra.mxu3 %vm35_vm1, %v268_v31 }
 0x273   :  { %209 = vst.msk [vmem:[#allocation5] sm:$0xf] %vm17_vm0, %v208_v30  ;;  %1098 = vmatpush.msra.mxu3 %v1877_v3  ;;  %v2028_v30 = vld.sshfl [vmem:[#allocation1] sm:$0xff pattern:$0x75316420] }
 0x275   :  { %1099 = vmatpush.msra.mxu3 %v1882_v4 }
 0x277   :  { %1100 = vmatpush.msra.mxu3 %v1898_v6 }
 0x278   :  { %v183_v32 = vpop.permute.xlu0 %182 }
 0x279   :  { %v185_v33 = vsel %vm178_vm13, %v183_v32, %v1921_v10  ;;  %v243_v34 = vld [vmem:[#allocation2] sm:$0xf]  ;;  %1101 = vmatpush.msra.mxu3 %v1912_v8  ;;  %v293_v10 = vrot.slane %v1642_v35, 4 }
 0x27a   :  { %186 = vst.msk [vmem:[#allocation3] sm:$0xf] %vm17_vm0, %v185_v33  ;;  %1643 = vmatmul.msk.f32.vlgmr.msra.gmra.mxu2 %vm35_vm1, %v243_v34  ;;  %v338_v43 = vld [vmem:[#allocation5] sm:$0xf] }
 0x27b   :  { %1073 = vmatpush.msra.mxu2 %v1864_v0 }
 0x27d   :  { %1074 = vmatpush.msra.mxu2 %v1869_v1 }
 0x27f   :  { %1075 = vmatpush.msra.mxu2 %v1888_v5 }
 0x281   :  { %1076 = vmatpush.msra.mxu2 %v1904_v7  ;;  %v2020_v44 = vld [vmem:[#allocation3] sm:$0xf] }
 0x2f5   :  { %v289_v36 = vpop.f32.mrf.mxu3 }
 0x2f6   :  { %v295_v37 = vadd.f32 %v293_v10, %v289_v36  ;;  %v405_v36 = vsel %vm381_vm9, 1, %v1834_v63  ;;  %vm589_vm9 = vcmp.gt.s32.totalorder %v1967_v62, 5 }
 0x2f8   :  { %1719 = vtanh.f32 %v295_v37  ;;  %v1646_v45 = vmul.f32 -1.442695, %v295_v37 }
 0x2fd   :  { %v264_v39 = vpop.f32.mrf.mxu2 }
 0x2fe   :  { %v1720_v40 = vpop.eup %1719  ;;  %v267_v41 = vadd.f32 %v1641_v38, %v264_v39 }
 0x2ff   :  { %365 = vrot.lane.b32.xlu0 %v1720_v40, %s1833_s8 }
 0x300   :  { %1721 = vtanh.f32 %v267_v41  ;;  %v1645_v46 = vmul.f32 -1.442695, %v267_v41 }
 0x301   :  { %1723 = vpow2.f32 %v1646_v45 }
 0x302   :  { %1725 = vpow2.f32 %v1645_v46 }
 0x306   :  { %v1722_v42 = vpop.eup %1721 }
 0x307   :  { %323 = vrot.lane.b32.xlu1 %v1722_v42, %s1833_s8  ;;  %360 = vrot.lane.b32.xlu0 %v338_v43, %s1832_s2  ;;  %v1724_v47 = vpop.eup %1723 }
 0x308   :  { %v342_v48 = vadd.f32 1.0, %v1724_v47  ;;  %v1726_v49 = vpop.eup %1725 }
 0x309   :  { %v300_v50 = vadd.f32 1.0, %v1726_v49 }
 0x30a   :  { %1727 = vrcp.f32 %v342_v48  ;;  %v354_v59 = vand.u32 2147483648, %v342_v48  ;;  %vm348_vm15 = vweird.f32 %v342_v48  ;;  %v352_v60 = vand.u32 2147483647, %v342_v48 }
 0x30b   :  { %1729 = vrcp.f32 %v300_v50  ;;  %v312_v15 = vand.u32 2147483648, %v300_v50  ;;  %vm306_vm5 = vweird.f32 %v300_v50  ;;  %v310_v16 = vand.u32 2147483647, %v300_v50 }
 0x30c   :  { %v355_v9 = vor.u32 1.1754944e-38, %v354_v59  ;;  %vm353_vm3 = vcmp.eq.f32.partialorder %v352_v60, 8.507059e+37 }
 0x30d   :  { %v313_v18 = vor.u32 1.1754944e-38, %v312_v15  ;;  %vm311_vm8 = vcmp.eq.f32.partialorder %v310_v16, 8.507059e+37 }
 0x30f   :  { %318 = vrot.lane.b32.xlu1 %v2020_v44, %s1832_s2 }
 0x310   :  { %v1728_v51 = vpop.eup %1727 }
 0x311   :  { %v344_v52 = vmul.f32 %v1728_v51, %v342_v48  ;;  %v1730_v54 = vpop.eup %1729  ;;  %vm349_vm14 = vweird.f32 %v1728_v51  ;;  %v395_v48 = vld [vmem:[#allocation2] sm:$0xf] }
 0x312   :  { %v302_v56 = vmul.f32 %v1730_v54, %v300_v50  ;;  %vm350_vm2 = vmor %vm348_vm15, %vm349_vm14  ;;  %vm307_vm4 = vweird.f32 %v1730_v54 }
 0x313   :  { %v345_v53 = vsub.f32 1.0, %v344_v52  ;;  %vm308_vm6 = vmor %vm306_vm5, %vm307_vm4 }
 0x314   :  { %v303_v58 = vsub.f32 1.0, %v302_v56 }
 0x315   :  { %v346_v55 = vmul.f32 %v1728_v51, %v345_v53 }
 0x316   :  { %v304_v2 = vmul.f32 %v1730_v54, %v303_v58 }
 0x317   :  { %v347_v57 = vadd.f32 %v1728_v51, %v346_v55  ;;  %v404_v55 = vld [vmem:[#allocation5] sm:$0xf] }
 0x318   :  { %v305_v14 = vadd.f32 %v1730_v54, %v304_v2 }
 0x319   :  { %v351_v61 = vsel %vm350_vm2, %v1728_v51, %v347_v57  ;;  %v418_v57 = vld [vmem:[#allocation4] sm:$0xf] }
 0x31a   :  { %v356_v12 = vsel %vm353_vm3, %v355_v9, %v351_v61  ;;  %v309_v17 = vsel %vm308_vm6, %v1730_v54, %v305_v14  ;;  %v2072_v61 = vld [vmem:[%s2473_s0 + $0x10] sm:$0xff] }
 0x31b   :  { %v314_v23 = vsel %vm311_vm8, %v313_v18, %v309_v17  ;;  %vm588_vm8 = vcmp.gt.s32.totalorder %v1967_v62, 2 }
 0x371   :  { %v366_v11 = vpop.permute.xlu0 %365 }
 0x372   :  { %v368_v13 = vmul.f32 %v366_v11, %v356_v12 }
 0x374   :  { %370 = vrot.lane.b32.xlu1 %v368_v13, %s1832_s2  ;;  %v2083_v13 = vld [vmem:[%s2473_s0 + $0x28] sm:$0xff] }
 0x375   :  { %v501_v14 = vrot.slane %v2083_v13, 4 }
 0x379   :  { %v324_v22 = vpop.permute.xlu1 %323  ;;  %v361_v32 = vpop.permute.xlu0 %360 }
 0x37a   :  { %v326_v25 = vmul.f32 %v324_v22, %v314_v23  ;;  %v363_v33 = vmul.f32 %v361_v32, %v356_v12 }
 0x37c   :  { %328 = vrot.lane.b32.xlu2 %v326_v25, %s1832_s2  ;;  %384 = vperm.xlu1 %1701, %v382_v24  }
 0x381   :  { %v319_v26 = vpop.permute.xlu1 %318 }
 0x382   :  { %v321_v27 = vmul.f32 %v319_v26, %v314_v23 }
 0x3d6   :  { %v329_v28 = vpop.permute.xlu2 %328 }
 0x3d7   :  { %v331_v29 = vadd.f32 %v329_v28, %v321_v27 }
 0x3d9   :  { %1731 = vtanh.f32 %v331_v29  ;;  %388 = vst [vmem:[#allocation1] ss:$2 sm:$0xff] %v331_v29 }
 0x3df   :  { %v1732_v31 = vpop.eup %1731 }
 0x3e0   :  { %334 = vrot.lane.b32.xlu2 %v1732_v31, %s1833_s8  ;;  %v389_v39 = vld.sshfl [vmem:[#allocation1] sm:$0xff pattern:$0x75316420] }
 0x3e6   :  { %v371_v34 = vpop.permute.xlu1 %370 }
 0x3e7   :  { %v373_v35 = vadd.f32 %v371_v34, %v363_v33 }
 0x3e9   :  { %1733 = vtanh.f32 %v373_v35 }
 0x3ee   :  { %v2040_v47 = vpop.permute.xlu1 %384 }
 0x3ef   :  { %v1734_v10 = vpop.eup %1733  ;;  %vm386_vm10 = vcmp.eq.s32.totalorder %v2040_v47, 1 }
 0x3f0   :  { %376 = vrot.lane.b32.xlu0 %v1734_v10, %s1833_s8 }
 0x3f8   :  { %407 = vperm.xlu0 %1702, %v405_v36  }
 0x43a   :  { %v335_v37 = vpop.permute.xlu2 %334 }
 0x43b   :  { %v337_v38 = vmul.f32 %v335_v37, %v314_v23 }
 0x43d   :  { %397 = vst [vmem:[#allocation1] ss:$2 sm:$0xff] %v337_v38 }
 0x444   :  { %v398_v40 = vld.sshfl [vmem:[#allocation1] sm:$0xff pattern:$0x75316420] }
 0x445   :  { %411 = vst [vmem:[#allocation1] ss:$2 sm:$0xff] %v373_v35  ;;  %399 = vrot.lane.b32.xlu2 %v398_v40, %s1832_s2 }
 0x44c   :  { %v412_v41 = vld.sshfl [vmem:[#allocation1] sm:$0xff pattern:$0x75316420] }
 0x44d   :  { %390 = vrot.lane.b32.xlu2 %v389_v39, %s1835_s1 }
 0x455   :  { %413 = vrot.lane.b32.xlu2 %v412_v41, %s1835_s1 }
 0x462   :  { %v377_v42 = vpop.permute.xlu0 %376 }
 0x463   :  { %v379_v43 = vmul.f32 %v377_v42, %v356_v12 }
 0x465   :  { %420 = vst [vmem:[#allocation1] ss:$2 sm:$0xff] %v379_v43 }
 0x46a   :  { %v2051_v54 = vpop.permute.xlu0 %407 }
 0x46b   :  { %vm409_vm11 = vcmp.eq.s32.totalorder %v2051_v54, 1 }
 0x46c   :  { %v421_v45 = vld.sshfl [vmem:[#allocation1] sm:$0xff pattern:$0x75316420] }
 0x46d   :  { %427 = vst [vmem:[#allocation1] ss:$2 sm:$0xff] %v337_v38  ;;  %422 = vrot.lane.b32.xlu1 %v421_v45, %s1832_s2 }
 0x474   :  { %v2038_v46 = vld.sshfl [vmem:[#allocation1] sm:$0xff pattern:$0x75316420] }
 0x475   :  { %433 = vst [vmem:[#allocation1] ss:$2 sm:$0xff] %v379_v43 }
 0x49f   :  { %v400_v49 = vpop.permute.xlu2 %399 }
 0x4a0   :  { %v402_v50 = vsel %vm386_vm10, %v400_v49, %v395_v48 }
 0x4a1   :  { %403 = vst.msk [vmem:[#allocation2] sm:$0xf] %vm17_vm0, %v402_v50 }
 0x4a7   :  { %v391_v51 = vpop.permute.xlu2 %390 }
 0x4a8   :  { %v393_v52 = vsel %vm386_vm10, %v391_v51, %v2020_v44  ;;  %v451_v53 = vld [vmem:[#allocation2] sm:$0xf] }
 0x4a9   :  { %394 = vst.msk [vmem:[#allocation3] sm:$0xf] %vm17_vm0, %v393_v52  ;;  %1651 = vmatmul.msk.f32.vlgmr.msrb.gmra.mxu0 %vm35_vm1, %v451_v53 }
 0x4aa   :  { %1265 = vmatpush.msrb.mxu0 %v1864_v0 }
 0x4ac   :  { %1266 = vmatpush.msrb.mxu0 %v1869_v1 }
 0x4ae   :  { %1267 = vmatpush.msrb.mxu0 %v1888_v5 }
 0x4af   :  { %v414_v56 = vpop.permute.xlu2 %413 }
 0x4b0   :  { %v416_v44 = vsel %vm409_vm11, %v414_v56, %v404_v55  ;;  %1268 = vmatpush.msrb.mxu0 %v1904_v7  ;;  %v2076_v12 = vld [vmem:[#allocation3] sm:$0xf]  ;;  %v590_v56 = vsel %vm588_vm8, 1, %v1834_v63 }
 0x4b1   :  { %417 = vst.msk [vmem:[#allocation5] sm:$0xf] %vm17_vm0, %v416_v44 }
 0x4b8   :  { %v546_v22 = vld [vmem:[#allocation5] sm:$0xf] }
 0x4df   :  { %v423_v58 = vpop.permute.xlu1 %422 }
 0x4e0   :  { %v425_v59 = vsel %vm409_vm11, %v423_v58, %v418_v57 }
 0x4e1   :  { %426 = vst.msk [vmem:[#allocation4] sm:$0xf] %vm17_vm0, %v425_v59 }
 0x4e8   :  { %v476_v60 = vld [vmem:[#allocation4] sm:$0xf] }
 0x4e9   :  { %1652 = vmatmul.msk.f32.vlgmr.msrb.gmra.mxu1 %vm35_vm1, %v476_v60  ;;  %v2092_v60 = vld.sshfl [vmem:[#allocation1] sm:$0xff pattern:$0x75316420] }
 0x4ea   :  { %1290 = vmatpush.msrb.mxu1 %v1877_v3 }
 0x4ec   :  { %1291 = vmatpush.msrb.mxu1 %v1882_v4 }
 0x4ee   :  { %1292 = vmatpush.msrb.mxu1 %v1898_v6 }
 0x4f0   :  { %1293 = vmatpush.msrb.mxu1 %v1912_v8 }
 0x526   :  { %v472_v2 = vpop.f32.mrf.mxu0 }
 0x527   :  { %v475_v9 = vadd.f32 %v2072_v61, %v472_v2 }
 0x529   :  { %1735 = vtanh.f32 %v475_v9  ;;  %v1653_v18 = vmul.f32 -1.442695, %v475_v9 }
 0x52f   :  { %v1736_v11 = vpop.eup %1735 }
 0x530   :  { %531 = vrot.lane.b32.xlu1 %v1736_v11, %s1833_s8 }
 0x538   :  { %526 = vrot.lane.b32.xlu1 %v2076_v12, %s1832_s2 }
 0x566   :  { %v497_v15 = vpop.f32.mrf.mxu1 }
 0x567   :  { %v503_v16 = vadd.f32 %v501_v14, %v497_v15 }
 0x569   :  { %1737 = vtanh.f32 %v503_v16  ;;  %v1654_v37 = vmul.f32 -1.442695, %v503_v16 }
 0x56a   :  { %1739 = vpow2.f32 %v1653_v18 }
 0x56f   :  { %v1738_v17 = vpop.eup %1737 }
 0x570   :  { %573 = vrot.lane.b32.xlu0 %v1738_v17, %s1833_s8  ;;  %v1740_v23 = vpop.eup %1739 }
 0x571   :  { %v508_v24 = vadd.f32 1.0, %v1740_v23  ;;  %v613_v23 = vsel %vm589_vm9, 1, %v1834_v63 }
 0x573   :  { %1741 = vrcp.f32 %v508_v24  ;;  %v520_v31 = vand.u32 2147483648, %v508_v24  ;;  %vm514_vm15 = vweird.f32 %v508_v24  ;;  %v518_v32 = vand.u32 2147483647, %v508_v24 }
 0x574   :  { %1743 = vpow2.f32 %v1654_v37 }
 0x575   :  { %v521_v34 = vor.u32 1.1754944e-38, %v520_v31  ;;  %vm519_vm3 = vcmp.eq.f32.partialorder %v518_v32, 8.507059e+37 }
 0x578   :  { %568 = vrot.lane.b32.xlu0 %v546_v22, %s1832_s2 }
 0x579   :  { %v1742_v25 = vpop.eup %1741 }
 0x57a   :  { %v510_v26 = vmul.f32 %v1742_v25, %v508_v24  ;;  %vm515_vm14 = vweird.f32 %v1742_v25  ;;  %v1744_v38 = vpop.eup %1743 }
 0x57b   :  { %vm516_vm2 = vmor %vm514_vm15, %vm515_vm14  ;;  %v550_v39 = vadd.f32 1.0, %v1744_v38 }
 0x57c   :  { %v511_v27 = vsub.f32 1.0, %v510_v26  ;;  %v603_v26 = vld [vmem:[#allocation2] sm:$0xf] }
 0x57d   :  { %1745 = vrcp.f32 %v550_v39  ;;  %v562_v48 = vand.u32 2147483648, %v550_v39  ;;  %vm556_vm5 = vweird.f32 %v550_v39  ;;  %v560_v49 = vand.u32 2147483647, %v550_v39 }
 0x57e   :  { %v512_v28 = vmul.f32 %v1742_v25, %v511_v27 }
 0x57f   :  { %v563_v51 = vor.u32 1.1754944e-38, %v562_v48  ;;  %vm561_vm7 = vcmp.eq.f32.partialorder %v560_v49, 8.507059e+37 }
 0x580   :  { %v513_v29 = vadd.f32 %v1742_v25, %v512_v28 }
 0x582   :  { %v517_v33 = vsel %vm516_vm2, %v1742_v25, %v513_v29 }
 0x583   :  { %v522_v35 = vsel %vm519_vm3, %v521_v34, %v517_v33  ;;  %v1746_v40 = vpop.eup %1745 }
 0x584   :  { %v552_v41 = vmul.f32 %v1746_v40, %v550_v39  ;;  %vm557_vm4 = vweird.f32 %v1746_v40  ;;  %v612_v39 = vld [vmem:[#allocation5] sm:$0xf] }
 0x585   :  { %vm558_vm6 = vmor %vm556_vm5, %vm557_vm4 }
 0x586   :  { %v553_v42 = vsub.f32 1.0, %v552_v41 }
 0x588   :  { %v554_v43 = vmul.f32 %v1746_v40, %v553_v42 }
 0x58a   :  { %v555_v45 = vadd.f32 %v1746_v40, %v554_v43 }
 0x58c   :  { %v559_v50 = vsel %vm558_vm6, %v1746_v40, %v555_v45 }
 0x58d   :  { %v564_v53 = vsel %vm561_vm7, %v563_v51, %v559_v50 }
 0x5a2   :  { %v532_v10 = vpop.permute.xlu1 %531 }
 0x5a3   :  { %v534_v36 = vmul.f32 %v532_v10, %v522_v35 }
 0x5a5   :  { %536 = vrot.lane.b32.xlu2 %v534_v36, %s1832_s2 }
 0x5aa   :  { %v527_v44 = vpop.permute.xlu1 %526 }
 0x5ab   :  { %v529_v57 = vmul.f32 %v527_v44, %v522_v35 }
 0x5e2   :  { %v574_v52 = vpop.permute.xlu0 %573 }
 0x5e3   :  { %v576_v55 = vmul.f32 %v574_v52, %v564_v53 }
 0x5e5   :  { %578 = vrot.lane.b32.xlu1 %v576_v55, %s1832_s2 }
 0x5ea   :  { %v569_v9 = vpop.permute.xlu0 %568 }
 0x5eb   :  { %v571_v11 = vmul.f32 %v569_v9, %v564_v53 }
 0x5ed   :  { %592 = vperm.xlu1 %1701, %v590_v56  }
 0x5ff   :  { %v537_v58 = vpop.permute.xlu2 %536 }
 0x600   :  { %v539_v59 = vadd.f32 %v537_v58, %v529_v57 }
 0x602   :  { %1747 = vtanh.f32 %v539_v59  ;;  %596 = vst [vmem:[#allocation1] ss:$2 sm:$0xff] %v539_v59  ;;  %v2148_v59 = vld [vmem:[%s2473_s0 + $0x20] sm:$0xff] }
 0x608   :  { %v1748_v2 = vpop.eup %1747 }
 0x609   :  { %542 = vrot.lane.b32.xlu2 %v1748_v2, %s1833_s8  ;;  %v597_v22 = vld.sshfl [vmem:[#allocation1] sm:$0xff pattern:$0x75316420]  ;;  %v709_v2 = vrot.slane %v2148_v59, 4 }
 0x657   :  { %v579_v14 = vpop.permute.xlu1 %578 }
 0x658   :  { %v581_v15 = vadd.f32 %v579_v14, %v571_v11 }
 0x65a   :  { %1749 = vtanh.f32 %v581_v15 }
 0x65f   :  { %v2100_v25 = vpop.permute.xlu1 %592 }
 0x660   :  { %v1750_v16 = vpop.eup %1749  ;;  %vm594_vm14 = vcmp.eq.s32.totalorder %v2100_v25, 1 }
 0x661   :  { %584 = vrot.lane.b32.xlu0 %v1750_v16, %s1833_s8 }
 0x663   :  { %v543_v17 = vpop.permute.xlu2 %542 }
 0x664   :  { %v545_v18 = vmul.f32 %v543_v17, %v522_v35 }
 0x666   :  { %605 = vst [vmem:[#allocation1] ss:$2 sm:$0xff] %v545_v18 }
 0x669   :  { %615 = vperm.xlu0 %1702, %v613_v23  }
 0x66d   :  { %v606_v24 = vld.sshfl [vmem:[#allocation1] sm:$0xff pattern:$0x75316420] }
 0x66e   :  { %619 = vst [vmem:[#allocation1] ss:$2 sm:$0xff] %v581_v15  ;;  %607 = vrot.lane.b32.xlu2 %v606_v24, %s1832_s2 }
 0x675   :  { %v620_v35 = vld.sshfl [vmem:[#allocation1] sm:$0xff pattern:$0x75316420] }
 0x676   :  { %598 = vrot.lane.b32.xlu2 %v597_v22, %s1835_s1 }
 0x6c8   :  { %v608_v27 = vpop.permute.xlu2 %607 }
 0x6c9   :  { %v610_v28 = vsel %vm594_vm14, %v608_v27, %v603_v26 }
 0x6ca   :  { %611 = vst.msk [vmem:[#allocation2] sm:$0xf] %vm17_vm0, %v610_v28 }
 0x6d0   :  { %v599_v29 = vpop.permute.xlu2 %598 }
 0x6d1   :  { %v601_v31 = vsel %vm594_vm14, %v599_v29, %v2076_v12  ;;  %v659_v32 = vld [vmem:[#allocation2] sm:$0xf] }
 0x6d2   :  { %602 = vst.msk [vmem:[#allocation3] sm:$0xf] %vm17_vm0, %v601_v31  ;;  %1659 = vmatmul.msk.f32.vlgmr.msrb.gmra.mxu2 %vm35_vm1, %v659_v32 }
 0x6d3   :  { %v585_v33 = vpop.permute.xlu0 %584  ;;  %1457 = vmatpush.msrb.mxu2 %v1864_v0  ;;  %v626_v0 = vld [vmem:[#allocation4] sm:$0xf] }
 0x6d4   :  { %v587_v34 = vmul.f32 %v585_v33, %v564_v53 }
 0x6d5   :  { %1458 = vmatpush.msrb.mxu2 %v1869_v1 }
 0x6d6   :  { %628 = vst [vmem:[#allocation1] ss:$2 sm:$0xff] %v587_v34 }
 0x6d7   :  { %1459 = vmatpush.msrb.mxu2 %v1888_v5 }
 0x6d9   :  { %1460 = vmatpush.msrb.mxu2 %v1904_v7  ;;  %v2128_v7 = vld [vmem:[%s2473_s0 + $0x18] sm:$0xff]  ;;  %v2140_v45 = vld [vmem:[#allocation3] sm:$0xf] }
 0x6db   :  { %v2119_v36 = vpop.permute.xlu0 %615 }
 0x6dc   :  { %vm617_vm15 = vcmp.eq.s32.totalorder %v2119_v36, 1 }
 0x6dd   :  { %v629_v10 = vld.sshfl [vmem:[#allocation1] sm:$0xff pattern:$0x75316420] }
 0x6de   :  { %635 = vst [vmem:[#allocation1] ss:$2 sm:$0xff] %v545_v18  ;;  %630 = vrot.lane.b32.xlu1 %v629_v10, %s1832_s2 }
 0x6e5   :  { %v2116_v12 = vld.sshfl [vmem:[#allocation1] sm:$0xff pattern:$0x75316420] }
 0x6e6   :  { %641 = vst [vmem:[#allocation1] ss:$2 sm:$0xff] %v587_v34  ;;  %621 = vrot.lane.b32.xlu1 %v620_v35, %s1835_s1 }
 0x750   :  { %v631_v1 = vpop.permute.xlu1 %630 }
 0x751   :  { %v633_v5 = vsel %vm617_vm15, %v631_v1, %v626_v0 }
 0x752   :  { %634 = vst.msk [vmem:[#allocation4] sm:$0xf] %vm17_vm0, %v633_v5 }
 0x755   :  { %v680_v37 = vpop.f32.mrf.mxu2 }
 0x756   :  { %v683_v38 = vadd.f32 %v2128_v7, %v680_v37  ;;  %v2155_v37 = vld.sshfl [vmem:[#allocation1] sm:$0xff pattern:$0x75316420] }
 0x758   :  { %1751 = vtanh.f32 %v683_v38  ;;  %v622_v40 = vpop.permute.xlu1 %621  ;;  %v1661_v48 = vmul.f32 -1.442695, %v683_v38 }
 0x759   :  { %v624_v41 = vsel %vm617_vm15, %v622_v40, %v612_v39  ;;  %v684_v42 = vld [vmem:[#allocation4] sm:$0xf] }
 0x75a   :  { %625 = vst.msk [vmem:[#allocation5] sm:$0xf] %vm17_vm0, %v624_v41  ;;  %1660 = vmatmul.msk.f32.vlgmr.msrb.gmra.mxu3 %vm35_vm1, %v684_v42  ;;  %1753 = vpow2.f32 %v1661_v48 }
 0x75b   :  { %1482 = vmatpush.msrb.mxu3 %v1877_v3 }
 0x75d   :  { %1483 = vmatpush.msrb.mxu3 %v1882_v4 }
 0x75e   :  { %v1752_v43 = vpop.eup %1751 }
 0x75f   :  { %739 = vrot.lane.b32.xlu0 %v1752_v43, %s1833_s8  ;;  %1484 = vmatpush.msrb.mxu3 %v1898_v6 }
 0x760   :  { %v1754_v49 = vpop.eup %1753 }
 0x761   :  { %1485 = vmatpush.msrb.mxu3 %v1912_v8  ;;  %v716_v50 = vadd.f32 1.0, %v1754_v49  ;;  %v754_v15 = vld [vmem:[#allocation5] sm:$0xf] }
 0x763   :  { %1755 = vrcp.f32 %v716_v50  ;;  %v728_v55 = vand.u32 2147483648, %v716_v50  ;;  %vm722_vm3 = vweird.f32 %v716_v50  ;;  %v726_v6 = vand.u32 2147483647, %v716_v50 }
 0x765   :  { %v729_v56 = vor.u32 1.1754944e-38, %v728_v55  ;;  %vm727_vm5 = vcmp.eq.f32.partialorder %v726_v6, 8.507059e+37 }
 0x767   :  { %734 = vrot.lane.b32.xlu0 %v2140_v45, %s1832_s2 }
 0x769   :  { %v1756_v3 = vpop.eup %1755 }
 0x76a   :  { %v718_v51 = vmul.f32 %v1756_v3, %v716_v50  ;;  %vm723_vm2 = vweird.f32 %v1756_v3 }
 0x76b   :  { %vm724_vm4 = vmor %vm722_vm3, %vm723_vm2  ;;  %vm796_vm2 = vcmp.gt.s32.totalorder %v1967_v62, 3  ;;  %vm797_vm3 = vcmp.gt.s32.totalorder %v1967_v62, 4 }
 0x76c   :  { %v719_v4 = vsub.f32 1.0, %v718_v51  ;;  %v798_v38 = vsel %vm796_vm2, 1, %v1834_v63  ;;  %v821_v51 = vsel %vm797_vm3, 1, %v1834_v63 }
 0x76e   :  { %v720_v52 = vmul.f32 %v1756_v3, %v719_v4 }
 0x770   :  { %v721_v53 = vadd.f32 %v1756_v3, %v720_v52 }
 0x772   :  { %v725_v8 = vsel %vm724_vm4, %v1756_v3, %v721_v53 }
 0x773   :  { %v730_v57 = vsel %vm727_vm5, %v729_v56, %v725_v8  ;;  %v811_v8 = vld [vmem:[#allocation2] sm:$0xf] }
 0x7d1   :  { %v740_v44 = vpop.permute.xlu0 %739 }
 0x7d2   :  { %v742_v58 = vmul.f32 %v740_v44, %v730_v57 }
 0x7d4   :  { %744 = vrot.lane.b32.xlu1 %v742_v58, %s1832_s2 }
 0x7d9   :  { %v735_v35 = vpop.permute.xlu0 %734 }
 0x7da   :  { %v737_v0 = vmul.f32 %v735_v35, %v730_v57 }
 0x7dd   :  { %v705_v9 = vpop.f32.mrf.mxu3 }
 0x7de   :  { %v711_v11 = vadd.f32 %v709_v2, %v705_v9 }
 0x7e0   :  { %1757 = vtanh.f32 %v711_v11  ;;  %v1662_v16 = vmul.f32 -1.442695, %v711_v11  ;;  %v834_v11 = vld [vmem:[#allocation4] sm:$0xf] }
 0x7e2   :  { %1759 = vpow2.f32 %v1662_v16  ;;  %v820_v16 = vld [vmem:[#allocation5] sm:$0xf] }
 0x7e6   :  { %v1758_v14 = vpop.eup %1757 }
 0x7e7   :  { %781 = vrot.lane.b32.xlu2 %v1758_v14, %s1833_s8 }
 0x7e8   :  { %v1760_v17 = vpop.eup %1759 }
 0x7e9   :  { %v758_v18 = vadd.f32 1.0, %v1760_v17 }
 0x7eb   :  { %1761 = vrcp.f32 %v758_v18  ;;  %v770_v28 = vand.u32 2147483648, %v758_v18  ;;  %vm764_vm7 = vweird.f32 %v758_v18  ;;  %v768_v29 = vand.u32 2147483647, %v758_v18 }
 0x7ed   :  { %v771_v32 = vor.u32 1.1754944e-38, %v770_v28  ;;  %vm769_vm9 = vcmp.eq.f32.partialorder %v768_v29, 8.507059e+37 }
 0x7ef   :  { %776 = vrot.lane.b32.xlu2 %v754_v15, %s1832_s2 }
 0x7f1   :  { %v1762_v22 = vpop.eup %1761 }
 0x7f2   :  { %v760_v23 = vmul.f32 %v1762_v22, %v758_v18  ;;  %vm765_vm6 = vweird.f32 %v1762_v22 }
 0x7f3   :  { %vm766_vm8 = vmor %vm764_vm7, %vm765_vm6 }
 0x7f4   :  { %v761_v24 = vsub.f32 1.0, %v760_v23 }
 0x7f6   :  { %v762_v26 = vmul.f32 %v1762_v22, %v761_v24 }
 0x7f8   :  { %v763_v27 = vadd.f32 %v1762_v22, %v762_v26 }
 0x7fa   :  { %v767_v31 = vsel %vm766_vm8, %v1762_v22, %v763_v27 }
 0x7fb   :  { %v772_v34 = vsel %vm769_vm9, %v771_v32, %v767_v31 }
 0x841   :  { %v782_v33 = vpop.permute.xlu2 %781 }
 0x842   :  { %v784_v10 = vmul.f32 %v782_v33, %v772_v34  ;;  %v915_v33 = vrot.slane %v2128_v7, 4 }
 0x844   :  { %786 = vrot.lane.b32.xlu0 %v784_v10, %s1832_s2 }
 0x846   :  { %v745_v1 = vpop.permute.xlu1 %744 }
 0x847   :  { %v747_v5 = vadd.f32 %v745_v1, %v737_v0 }
 0x849   :  { %1763 = vtanh.f32 %v747_v5  ;;  %804 = vst [vmem:[#allocation1] ss:$2 sm:$0xff] %v747_v5  ;;  %v777_v40 = vpop.permute.xlu2 %776 }
 0x84a   :  { %v779_v41 = vmul.f32 %v777_v40, %v772_v34 }
 0x84c   :  { %800 = vperm.xlu0 %1702, %v798_v38  }
 0x84f   :  { %v1764_v39 = vpop.eup %1763 }
 0x850   :  { %750 = vrot.lane.b32.xlu1 %v1764_v39, %s1833_s8  ;;  %v805_v3 = vld.sshfl [vmem:[#allocation1] sm:$0xff pattern:$0x75316420] }
 0x8b6   :  { %v787_v42 = vpop.permute.xlu0 %786 }
 0x8b7   :  { %v789_v43 = vadd.f32 %v787_v42, %v779_v41 }
 0x8b9   :  { %1765 = vtanh.f32 %v789_v43 }
 0x8be   :  { %v2168_v63 = vpop.permute.xlu0 %800 }
 0x8bf   :  { %v1766_v48 = vpop.eup %1765  ;;  %vm802_vm4 = vcmp.eq.s32.totalorder %v2168_v63, 1 }
 0x8c0   :  { %792 = vrot.lane.b32.xlu2 %v1766_v48, %s1833_s8 }
 0x8c2   :  { %v751_v49 = vpop.permute.xlu1 %750 }
 0x8c3   :  { %v753_v50 = vmul.f32 %v751_v49, %v730_v57 }
 0x8c5   :  { %813 = vst [vmem:[#allocation1] ss:$2 sm:$0xff] %v753_v50 }
 0x8c8   :  { %823 = vperm.xlu2 %1700, %v821_v51  }
 0x8cc   :  { %v814_v4 = vld.sshfl [vmem:[#allocation1] sm:$0xff pattern:$0x75316420] }
 0x8cd   :  { %815 = vrot.lane.b32.xlu1 %v814_v4, %s1832_s2  ;;  %827 = vst [vmem:[#allocation1] ss:$2 sm:$0xff] %v789_v43 }
 0x8d4   :  { %v828_v55 = vld.sshfl [vmem:[#allocation1] sm:$0xff pattern:$0x75316420] }
 0x8d5   :  { %806 = vrot.lane.b32.xlu1 %v805_v3, %s1835_s1 }
 0x91a   :  { %v793_v52 = vpop.permute.xlu2 %792 }
 0x91b   :  { %v795_v53 = vmul.f32 %v793_v52, %v772_v34 }
 0x91d   :  { %836 = vst [vmem:[#allocation1] ss:$2 sm:$0xff] %v795_v53 }
 0x922   :  { %v2179_v9 = vpop.permute.xlu2 %823 }
 0x923   :  { %vm825_vm5 = vcmp.eq.s32.totalorder %v2179_v9, 1 }
 0x924   :  { %v837_v6 = vld.sshfl [vmem:[#allocation1] sm:$0xff pattern:$0x75316420] }
 0x925   :  { %838 = vrot.lane.b32.xlu0 %v837_v6, %s1832_s2  ;;  %843 = vst [vmem:[#allocation1] ss:$2 sm:$0xff] %v753_v50 }
 0x92c   :  { %v2165_v62 = vld.sshfl [vmem:[#allocation1] sm:$0xff pattern:$0x75316420] }
 0x92d   :  { %829 = vrot.lane.b32.xlu0 %v828_v55, %s1835_s1  ;;  %849 = vst [vmem:[#allocation1] ss:$2 sm:$0xff] %v795_v53 }
 0x93f   :  { %v816_v56 = vpop.permute.xlu1 %815 }
 0x940   :  { %v818_v44 = vsel %vm802_vm4, %v816_v56, %v811_v8 }
 0x941   :  { %819 = vst.msk [vmem:[#allocation2] sm:$0xf] %vm17_vm0, %v818_v44 }
 0x947   :  { %v807_v57 = vpop.permute.xlu1 %806 }
 0x948   :  { %v809_v58 = vsel %vm802_vm4, %v807_v57, %v2140_v45  ;;  %v865_v2 = vld [vmem:[#allocation2] sm:$0xf] }
 0x949   :  { %810 = vst.msk [vmem:[#allocation3] sm:$0xf] %vm17_vm0, %v809_v58  ;;  %1667 = vmatmul.msk.f32.vlgmr.msra.gmra.mxu0 %vm35_vm1, %v865_v2 }
 0x950   :  { %v2191_v26 = vld [vmem:[#allocation3] sm:$0xf] }
 0x997   :  { %v839_v14 = vpop.permute.xlu0 %838 }
 0x998   :  { %v841_v15 = vsel %vm825_vm5, %v839_v14, %v834_v11 }
 0x999   :  { %842 = vst.msk [vmem:[#allocation4] sm:$0xf] %vm17_vm0, %v841_v15 }
 0x99f   :  { %v830_v17 = vpop.permute.xlu0 %829 }
 0x9a0   :  { %v832_v45 = vsel %vm825_vm5, %v830_v17, %v820_v16  ;;  %v890_v18 = vld [vmem:[#allocation4] sm:$0xf]  ;;  %v2200_v16 = vld.sshfl [vmem:[#allocation1] sm:$0xff pattern:$0x75316420] }
 0x9a1   :  { %833 = vst.msk [vmem:[#allocation5] sm:$0xf] %vm17_vm0, %v832_v45  ;;  %1668 = vmatmul.msk.f32.vlgmr.msra.gmra.mxu1 %vm35_vm1, %v890_v18 }
 0x9a8   :  { %v960_v43 = vld [vmem:[#allocation5] sm:$0xf] }
 0x9c6   :  { %v886_v22 = vpop.f32.mrf.mxu0 }
 0x9c7   :  { %v889_v23 = vadd.f32 %v2148_v59, %v886_v22 }
 0x9c9   :  { %1767 = vtanh.f32 %v889_v23  ;;  %v1669_v27 = vmul.f32 -1.442695, %v889_v23 }
 0x9cb   :  { %1769 = vpow2.f32 %v1669_v27 }
 0x9cf   :  { %v1768_v24 = vpop.eup %1767 }
 0x9d0   :  { %945 = vrot.lane.b32.xlu2 %v1768_v24, %s1833_s8 }
 0x9d1   :  { %v1770_v28 = vpop.eup %1769 }
 0x9d2   :  { %v922_v29 = vadd.f32 1.0, %v1770_v28 }
 0x9d4   :  { %1771 = vrcp.f32 %v922_v29  ;;  %v934_v1 = vand.u32 2147483648, %v922_v29  ;;  %vm928_vm7 = vweird.f32 %v922_v29  ;;  %v932_v5 = vand.u32 2147483647, %v922_v29 }
 0x9d6   :  { %v935_v40 = vor.u32 1.1754944e-38, %v934_v1  ;;  %vm933_vm9 = vcmp.eq.f32.partialorder %v932_v5, 8.507059e+37 }
 0x9d8   :  { %940 = vrot.lane.b32.xlu2 %v2191_v26, %s1832_s2 }
 0x9da   :  { %v1772_v31 = vpop.eup %1771 }
 0x9db   :  { %v924_v32 = vmul.f32 %v1772_v31, %v922_v29  ;;  %vm929_vm6 = vweird.f32 %v1772_v31 }
 0x9dc   :  { %vm930_vm8 = vmor %vm928_vm7, %vm929_vm6 }
 0x9dd   :  { %v925_v34 = vsub.f32 1.0, %v924_v32 }
 0x9df   :  { %v926_v10 = vmul.f32 %v1772_v31, %v925_v34 }
 0x9e1   :  { %v927_v0 = vadd.f32 %v1772_v31, %v926_v10 }
 0x9e3   :  { %v931_v39 = vsel %vm930_vm8, %v1772_v31, %v927_v0  ;;  %v1010_v0 = vld [vmem:[#allocation2] sm:$0xf] }
 0x9e4   :  { %v936_v42 = vsel %vm933_vm9, %v935_v40, %v931_v39 }
 0xa1e   :  { %v911_v59 = vpop.f32.mrf.mxu1 }
 0xa1f   :  { %v917_v35 = vadd.f32 %v915_v33, %v911_v59 }
 0xa21   :  { %1773 = vtanh.f32 %v917_v35  ;;  %v1670_v48 = vmul.f32 -1.442695, %v917_v35 }
 0xa23   :  { %1775 = vpow2.f32 %v1670_v48 }
 0xa27   :  { %v1774_v38 = vpop.eup %1773 }
 0xa28   :  { %987 = vrot.lane.b32.xlu1 %v1774_v38, %s1833_s8 }
 0xa29   :  { %v1776_v49 = vpop.eup %1775 }
 0xa2a   :  { %v946_v41 = vpop.permute.xlu2 %945  ;;  %v964_v50 = vadd.f32 1.0, %v1776_v49 }
 0xa2b   :  { %v948_v7 = vmul.f32 %v946_v41, %v936_v42 }
 0xa2c   :  { %1777 = vrcp.f32 %v964_v50  ;;  %v976_v55 = vand.u32 2147483648, %v964_v50  ;;  %vm970_vm3 = vweird.f32 %v964_v50  ;;  %v974_v6 = vand.u32 2147483647, %v964_v50 }
 0xa2d   :  { %950 = vrot.lane.b32.xlu0 %v948_v7, %s1832_s2 }
 0xa2e   :  { %v977_v56 = vor.u32 1.1754944e-38, %v976_v55  ;;  %vm975_vm7 = vcmp.eq.f32.partialorder %v974_v6, 8.507059e+37 }
 0xa30   :  { %982 = vrot.lane.b32.xlu1 %v960_v43, %s1832_s2 }
 0xa32   :  { %v1778_v3 = vpop.eup %1777  ;;  %v941_v58 = vpop.permute.xlu2 %940 }
 0xa33   :  { %v966_v51 = vmul.f32 %v1778_v3, %v964_v50  ;;  %vm971_vm2 = vweird.f32 %v1778_v3  ;;  %v943_v11 = vmul.f32 %v941_v58, %v936_v42 }
 0xa34   :  { %vm972_vm6 = vmor %vm970_vm3, %vm971_vm2 }
 0xa35   :  { %v967_v4 = vsub.f32 1.0, %v966_v51 }
 0xa37   :  { %v968_v52 = vmul.f32 %v1778_v3, %v967_v4 }
 0xa39   :  { %v969_v53 = vadd.f32 %v1778_v3, %v968_v52 }
 0xa3b   :  { %v973_v8 = vsel %vm972_vm6, %v1778_v3, %v969_v53 }
 0xa3c   :  { %v978_v57 = vsel %vm975_vm7, %v977_v56, %v973_v8 }
 0xa9a   :  { %v988_v44 = vpop.permute.xlu1 %987 }
 0xa9b   :  { %v990_v2 = vmul.f32 %v988_v44, %v978_v57 }
 0xa9d   :  { %992 = vrot.lane.b32.xlu2 %v990_v2, %s1832_s2 }
 0xa9f   :  { %v951_v14 = vpop.permute.xlu0 %950 }
 0xaa0   :  { %v953_v15 = vadd.f32 %v951_v14, %v943_v11 }
 0xaa2   :  { %1779 = vtanh.f32 %v953_v15  ;;  %1003 = vst [vmem:[#allocation1] ss:$2 sm:$0xff] %v953_v15  ;;  %v983_v45 = vpop.permute.xlu1 %982 }
 0xaa3   :  { %v985_v18 = vmul.f32 %v983_v45, %v978_v57 }
 0xaa8   :  { %v1780_v17 = vpop.eup %1779 }
 0xaa9   :  { %956 = vrot.lane.b32.xlu0 %v1780_v17, %s1833_s8  ;;  %v1004_v27 = vld.sshfl [vmem:[#allocation1] sm:$0xff pattern:$0x75316420]  ;;  %v1107_v17 = vrot.slane %v2072_v61, 4 }
 0xaf7   :  { %v993_v22 = vpop.permute.xlu2 %992 }
 0xaf8   :  { %v995_v23 = vadd.f32 %v993_v22, %v985_v18 }
 0xafa   :  { %1781 = vtanh.f32 %v995_v23 }
 0xb00   :  { %v1782_v24 = vpop.eup %1781 }
 0xb01   :  { %998 = vrot.lane.b32.xlu1 %v1782_v24, %s1833_s8 }
 0xb09   :  { %1005 = vrot.lane.b32.xlu1 %v1004_v27, %s1835_s1 }
 0xb1b   :  { %v957_v28 = vpop.permute.xlu0 %956 }
 0xb1c   :  { %v959_v29 = vmul.f32 %v957_v28, %v936_v42  ;;  %v1019_v42 = vld [vmem:[#allocation5] sm:$0xf] }
 0xb1e   :  { %1012 = vst [vmem:[#allocation1] ss:$2 sm:$0xff] %v959_v29 }
 0xb25   :  { %v1013_v31 = vld.sshfl [vmem:[#allocation1] sm:$0xff pattern:$0x75316420] }
 0xb26   :  { %1014 = vrot.lane.b32.xlu2 %v1013_v31, %s1832_s2  ;;  %1021 = vst [vmem:[#allocation1] ss:$2 sm:$0xff] %v995_v23 }
 0xb2d   :  { %v1022_v34 = vld.sshfl [vmem:[#allocation1] sm:$0xff pattern:$0x75316420] }
 0xb73   :  { %v999_v32 = vpop.permute.xlu1 %998 }
 0xb74   :  { %v1001_v33 = vmul.f32 %v999_v32, %v978_v57 }
 0xb76   :  { %1030 = vst [vmem:[#allocation1] ss:$2 sm:$0xff] %v1001_v33 }
 0xb7b   :  { %v1006_v59 = vpop.permute.xlu1 %1005 }
 0xb7c   :  { %v1008_v35 = vsel %vm825_vm5, %v1006_v59, %v2191_v26  ;;  %v1028_v26 = vld [vmem:[#allocation4] sm:$0xf] }
 0xb7d   :  { %1009 = vst.msk [vmem:[#allocation3] sm:$0xf] %vm17_vm0, %v1008_v35  ;;  %v1031_v10 = vld.sshfl [vmem:[#allocation1] sm:$0xff pattern:$0x75316420] }
 0xb7e   :  { %1032 = vrot.lane.b32.xlu0 %v1031_v10, %s1832_s2  ;;  %1037 = vst [vmem:[#allocation1] ss:$2 sm:$0xff] %v959_v29 }
 0xb80   :  { %v1015_v1 = vpop.permute.xlu2 %1014 }
 0xb81   :  { %v1017_v5 = vsel %vm825_vm5, %v1015_v1, %v1010_v0 }
 0xb82   :  { %1018 = vst.msk [vmem:[#allocation2] sm:$0xf] %vm17_vm0, %v1017_v5 }
 0xb84   :  { %v2227_v51 = vld [vmem:[#allocation3] sm:$0xf] }
 0xb85   :  { %v2214_v38 = vld.sshfl [vmem:[#allocation1] sm:$0xff pattern:$0x75316420] }
 0xb86   :  { %1043 = vst [vmem:[#allocation1] ss:$2 sm:$0xff] %v1001_v33  ;;  %1023 = vrot.lane.b32.xlu0 %v1022_v34, %s1835_s1 }
 0xb89   :  { %v1057_v39 = vld [vmem:[#allocation2] sm:$0xf] }
 0xb8a   :  { %1675 = vmatmul.msk.f32.vlgmr.msra.gmra.mxu2 %vm35_vm1, %v1057_v39 }
 0xb8d   :  { %v2235_v59 = vld.sshfl [vmem:[#allocation1] sm:$0xff pattern:$0x75316420] }
 0xbf0   :  { %v1033_v40 = vpop.permute.xlu0 %1032 }
 0xbf1   :  { %v1035_v41 = vsel %vm802_vm4, %v1033_v40, %v1028_v26 }
 0xbf2   :  { %1036 = vst.msk [vmem:[#allocation4] sm:$0xf] %vm17_vm0, %v1035_v41 }
 0xbf8   :  { %v1024_v7 = vpop.permute.xlu0 %1023 }
 0xbf9   :  { %v1026_v43 = vsel %vm802_vm4, %v1024_v7, %v1019_v42  ;;  %v1082_v48 = vld [vmem:[#allocation4] sm:$0xf] }
 0xbfa   :  { %1027 = vst.msk [vmem:[#allocation5] sm:$0xf] %vm17_vm0, %v1026_v43  ;;  %1676 = vmatmul.msk.f32.vlgmr.msra.gmra.mxu3 %vm35_vm1, %v1082_v48 }
 0xc01   :  { %v1152_v23 = vld [vmem:[#allocation5] sm:$0xf] }
 0xc0d   :  { %v1078_v49 = vpop.f32.mrf.mxu2 }
 0xc0e   :  { %v1081_v50 = vadd.f32 %v2083_v13, %v1078_v49 }
 0xc10   :  { %1783 = vtanh.f32 %v1081_v50  ;;  %v1677_v4 = vmul.f32 -1.442695, %v1081_v50 }
 0xc12   :  { %1785 = vpow2.f32 %v1677_v4 }
 0xc16   :  { %v1784_v3 = vpop.eup %1783 }
 0xc17   :  { %1137 = vrot.lane.b32.xlu2 %v1784_v3, %s1833_s8 }
 0xc18   :  { %v1786_v52 = vpop.eup %1785 }
 0xc19   :  { %v1114_v53 = vadd.f32 1.0, %v1786_v52 }
 0xc1b   :  { %1787 = vrcp.f32 %v1114_v53  ;;  %v1126_v13 = vand.u32 2147483648, %v1114_v53  ;;  %vm1120_vm9 = vweird.f32 %v1114_v53  ;;  %v1124_v57 = vand.u32 2147483647, %v1114_v53 }
 0xc1d   :  { %v1127_v2 = vor.u32 1.1754944e-38, %v1126_v13  ;;  %vm1125_vm3 = vcmp.eq.f32.partialorder %v1124_v57, 8.507059e+37 }
 0xc1f   :  { %1132 = vrot.lane.b32.xlu2 %v2227_v51, %s1832_s2 }
 0xc21   :  { %v1788_v55 = vpop.eup %1787 }
 0xc22   :  { %v1116_v6 = vmul.f32 %v1788_v55, %v1114_v53  ;;  %vm1121_vm8 = vweird.f32 %v1788_v55 }
 0xc23   :  { %vm1122_vm2 = vmor %vm1120_vm9, %vm1121_vm8 }
 0xc24   :  { %v1117_v8 = vsub.f32 1.0, %v1116_v6  ;;  %v1202_v6 = vld [vmem:[#allocation2] sm:$0xf] }
 0xc26   :  { %v1118_v56 = vmul.f32 %v1788_v55, %v1117_v8 }
 0xc28   :  { %v1119_v44 = vadd.f32 %v1788_v55, %v1118_v56 }
 0xc2a   :  { %v1123_v58 = vsel %vm1122_vm2, %v1788_v55, %v1119_v44 }
 0xc2b   :  { %v1128_v14 = vsel %vm1125_vm3, %v1127_v2, %v1123_v58 }
 0xc71   :  { %v1138_v11 = vpop.permute.xlu2 %1137 }
 0xc72   :  { %v1140_v15 = vmul.f32 %v1138_v11, %v1128_v14 }
 0xc74   :  { %1142 = vrot.lane.b32.xlu0 %v1140_v15, %s1832_s2 }
 0xc79   :  { %v1133_v29 = vpop.permute.xlu2 %1132 }
 0xc7a   :  { %v1135_v32 = vmul.f32 %v1133_v29, %v1128_v14 }
 0xc7d   :  { %v1103_v45 = vpop.f32.mrf.mxu3 }
 0xc7e   :  { %v1109_v18 = vadd.f32 %v1107_v17, %v1103_v45  ;;  %v1681_v17 = vld [vmem:[%s2473_s0 + $0x30] sm:$0xff] }
 0xc80   :  { %1789 = vtanh.f32 %v1109_v18  ;;  %v1678_v24 = vmul.f32 -1.442695, %v1109_v18 }
 0xc82   :  { %1791 = vpow2.f32 %v1678_v24 }
 0xc86   :  { %v1790_v22 = vpop.eup %1789 }
 0xc87   :  { %1179 = vrot.lane.b32.xlu1 %v1790_v22, %s1833_s8  ;;  %v1220_v22 = vld [vmem:[#allocation4] sm:$0xf] }
 0xc88   :  { %v1792_v27 = vpop.eup %1791 }
 0xc89   :  { %v1156_v28 = vadd.f32 1.0, %v1792_v27  ;;  %v1211_v27 = vld [vmem:[#allocation5] sm:$0xf] }
 0xc8b   :  { %1793 = vrcp.f32 %v1156_v28  ;;  %v1168_v5 = vand.u32 2147483648, %v1156_v28  ;;  %vm1162_vm7 = vweird.f32 %v1156_v28  ;;  %v1166_v39 = vand.u32 2147483647, %v1156_v28 }
 0xc8d   :  { %v1169_v40 = vor.u32 1.1754944e-38, %v1168_v5  ;;  %vm1167_vm9 = vcmp.eq.f32.partialorder %v1166_v39, 8.507059e+37 }
 0xc8f   :  { %1174 = vrot.lane.b32.xlu1 %v1152_v23, %s1832_s2 }
 0xc91   :  { %v1794_v31 = vpop.eup %1793 }
 0xc92   :  { %v1158_v34 = vmul.f32 %v1794_v31, %v1156_v28  ;;  %vm1163_vm6 = vweird.f32 %v1794_v31 }
 0xc93   :  { %vm1164_vm8 = vmor %vm1162_vm7, %vm1163_vm6 }
 0xc94   :  { %v1159_v35 = vsub.f32 1.0, %v1158_v34 }
 0xc96   :  { %v1160_v10 = vmul.f32 %v1794_v31, %v1159_v35 }
 0xc98   :  { %v1161_v1 = vadd.f32 %v1794_v31, %v1160_v10 }
 0xc9a   :  { %v1165_v26 = vsel %vm1164_vm8, %v1794_v31, %v1161_v1 }
 0xc9b   :  { %v1170_v42 = vsel %vm1167_vm9, %v1169_v40, %v1165_v26 }
 0xce6   :  { %v1143_v33 = vpop.permute.xlu0 %1142 }
 0xce7   :  { %v1145_v61 = vadd.f32 %v1143_v33, %v1135_v32 }
 0xce9   :  { %1795 = vtanh.f32 %v1145_v61  ;;  %1195 = vst [vmem:[#allocation1] ss:$2 sm:$0xff] %v1145_v61 }
 0xcef   :  { %v1796_v0 = vpop.eup %1795 }
 0xcf0   :  { %1148 = vrot.lane.b32.xlu0 %v1796_v0, %s1833_s8  ;;  %v1196_v53 = vld.sshfl [vmem:[#allocation1] sm:$0xff pattern:$0x75316420] }
 0xcf9   :  { %v1180_v41 = vpop.permute.xlu1 %1179 }
 0xcfa   :  { %v1182_v7 = vmul.f32 %v1180_v41, %v1170_v42 }
 0xcfc   :  { %1184 = vrot.lane.b32.xlu2 %v1182_v7, %s1832_s2 }
 0xd01   :  { %v1175_v43 = vpop.permute.xlu1 %1174 }
 0xd02   :  { %v1177_v48 = vmul.f32 %v1175_v43, %v1170_v42 }
 0xd56   :  { %v1185_v49 = vpop.permute.xlu2 %1184 }
 0xd57   :  { %v1187_v50 = vadd.f32 %v1185_v49, %v1177_v48  ;;  %v1682_v48 = vld [vmem:[%s2473_s0 + $0x8] sm:$0xff] }
 0xd58   :  { %v1299_v49 = vrot.slane %v1682_v48, 4 }
 0xd59   :  { %1797 = vtanh.f32 %v1187_v50 }
 0xd5f   :  { %v1798_v3 = vpop.eup %1797 }
 0xd60   :  { %1190 = vrot.lane.b32.xlu1 %v1798_v3, %s1833_s8 }
 0xd62   :  { %v1149_v4 = vpop.permute.xlu0 %1148 }
 0xd63   :  { %v1151_v52 = vmul.f32 %v1149_v4, %v1128_v14 }
 0xd65   :  { %1204 = vst [vmem:[#allocation1] ss:$2 sm:$0xff] %v1151_v52 }
 0xd68   :  { %1197 = vrot.lane.b32.xlu1 %v1196_v53, %s1835_s1 }
 0xd6c   :  { %v1205_v55 = vld.sshfl [vmem:[#allocation1] sm:$0xff pattern:$0x75316420] }
 0xd6d   :  { %1206 = vrot.lane.b32.xlu2 %v1205_v55, %s1832_s2  ;;  %1213 = vst [vmem:[#allocation1] ss:$2 sm:$0xff] %v1187_v50 }
 0xd74   :  { %v1214_v58 = vld.sshfl [vmem:[#allocation1] sm:$0xff pattern:$0x75316420] }
 0xdc7   :  { %v1207_v8 = vpop.permute.xlu2 %1206 }
 0xdc8   :  { %v1209_v56 = vsel %vm617_vm15, %v1207_v8, %v1202_v6 }
 0xdc9   :  { %1210 = vst.msk [vmem:[#allocation2] sm:$0xf] %vm17_vm0, %v1209_v56 }
 0xdd0   :  { %v1249_v44 = vld [vmem:[#allocation2] sm:$0xf] }
 0xdd1   :  { %1683 = vmatmul.msk.f32.vlgmr.msrb.gmra.mxu0 %vm35_vm1, %v1249_v44 }
 0xdd2   :  { %v1191_v13 = vpop.permute.xlu1 %1190 }
 0xdd3   :  { %v1193_v57 = vmul.f32 %v1191_v13, %v1170_v42 }
 0xdd5   :  { %1222 = vst [vmem:[#allocation1] ss:$2 sm:$0xff] %v1193_v57 }
 0xdda   :  { %v1198_v2 = vpop.permute.xlu1 %1197 }
 0xddb   :  { %v1200_v11 = vsel %vm617_vm15, %v1198_v2, %v2227_v51 }
 0xddc   :  { %1201 = vst.msk [vmem:[#allocation3] sm:$0xf] %vm17_vm0, %v1200_v11  ;;  %v1223_v14 = vld.sshfl [vmem:[#allocation1] sm:$0xff pattern:$0x75316420] }
 0xddd   :  { %1224 = vrot.lane.b32.xlu0 %v1223_v14, %s1832_s2  ;;  %1229 = vst [vmem:[#allocation1] ss:$2 sm:$0xff] %v1151_v52 }
 0xde3   :  { %v2265_v32 = vld [vmem:[#allocation3] sm:$0xf] }
 0xde4   :  { %v2251_v15 = vld.sshfl [vmem:[#allocation1] sm:$0xff pattern:$0x75316420] }
 0xde5   :  { %1235 = vst [vmem:[#allocation1] ss:$2 sm:$0xff] %v1193_v57  ;;  %1215 = vrot.lane.b32.xlu0 %v1214_v58, %s1835_s1 }
 0xdec   :  { %v2275_v44 = vld.sshfl [vmem:[#allocation1] sm:$0xff pattern:$0x75316420] }
 0xe4e   :  { %v1270_v45 = vpop.f32.mrf.mxu0 }
 0xe4f   :  { %v1273_v18 = vadd.f32 %v1681_v17, %v1270_v45  ;;  %v1225_v23 = vpop.permute.xlu0 %1224 }
 0xe50   :  { %v1227_v51 = vsel %vm594_vm14, %v1225_v23, %v1220_v22 }
 0xe51   :  { %1799 = vtanh.f32 %v1273_v18  ;;  %1228 = vst.msk [vmem:[#allocation4] sm:$0xf] %vm17_vm0, %v1227_v51  ;;  %v1685_v33 = vmul.f32 -1.442695, %v1273_v18 }
 0xe53   :  { %1801 = vpow2.f32 %v1685_v33 }
 0xe57   :  { %v1800_v24 = vpop.eup %1799  ;;  %v1216_v28 = vpop.permute.xlu0 %1215 }
 0xe58   :  { %v1218_v29 = vsel %vm594_vm14, %v1216_v28, %v1211_v27  ;;  %1329 = vrot.lane.b32.xlu2 %v1800_v24, %s1833_s8  ;;  %v1274_v31 = vld [vmem:[#allocation4] sm:$0xf] }
 0xe59   :  { %1219 = vst.msk [vmem:[#allocation5] sm:$0xf] %vm17_vm0, %v1218_v29  ;;  %1684 = vmatmul.msk.f32.vlgmr.msrb.gmra.mxu1 %vm35_vm1, %v1274_v31  ;;  %v1802_v34 = vpop.eup %1801 }
 0xe5a   :  { %v1306_v61 = vadd.f32 1.0, %v1802_v34 }
 0xe5c   :  { %1803 = vrcp.f32 %v1306_v61  ;;  %v1318_v39 = vand.u32 2147483648, %v1306_v61  ;;  %vm1312_vm3 = vweird.f32 %v1306_v61  ;;  %v1316_v26 = vand.u32 2147483647, %v1306_v61 }
 0xe5e   :  { %v1319_v41 = vor.u32 1.1754944e-38, %v1318_v39  ;;  %vm1317_vm7 = vcmp.eq.f32.partialorder %v1316_v26, 8.507059e+37 }
 0xe60   :  { %1324 = vrot.lane.b32.xlu2 %v2265_v32, %s1832_s2  ;;  %v1344_v52 = vld [vmem:[#allocation5] sm:$0xf] }
 0xe62   :  { %v1804_v35 = vpop.eup %1803 }
 0xe63   :  { %v1308_v10 = vmul.f32 %v1804_v35, %v1306_v61  ;;  %vm1313_vm2 = vweird.f32 %v1804_v35 }
 0xe64   :  { %vm1314_vm6 = vmor %vm1312_vm3, %vm1313_vm2 }
 0xe65   :  { %v1309_v0 = vsub.f32 1.0, %v1308_v10 }
 0xe67   :  { %v1310_v1 = vmul.f32 %v1804_v35, %v1309_v0 }
 0xe69   :  { %v1311_v5 = vadd.f32 %v1804_v35, %v1310_v1 }
 0xe6b   :  { %v1315_v40 = vsel %vm1314_vm6, %v1804_v35, %v1311_v5  ;;  %v1394_v5 = vld [vmem:[#allocation2] sm:$0xf] }
 0xe6c   :  { %v1320_v7 = vsel %vm1317_vm7, %v1319_v41, %v1315_v40 }
 0xeb2   :  { %v1330_v42 = vpop.permute.xlu2 %1329 }
 0xeb3   :  { %v1332_v43 = vmul.f32 %v1330_v42, %v1320_v7 }
 0xeb5   :  { %1334 = vrot.lane.b32.xlu0 %v1332_v43, %s1832_s2 }
 0xeba   :  { %v1325_v53 = vpop.permute.xlu2 %1324 }
 0xebb   :  { %v1327_v6 = vmul.f32 %v1325_v53, %v1320_v7 }
 0xed6   :  { %v1295_v50 = vpop.f32.mrf.mxu1 }
 0xed7   :  { %v1301_v3 = vadd.f32 %v1299_v49, %v1295_v50 }
 0xed9   :  { %1805 = vtanh.f32 %v1301_v3  ;;  %v1686_v55 = vmul.f32 -1.442695, %v1301_v3  ;;  %v1689_v3 = vld [vmem:[%s2473_s0 + $0x38] sm:$0xff] }
 0xedb   :  { %1807 = vpow2.f32 %v1686_v55  ;;  %v1412_v55 = vld [vmem:[#allocation4] sm:$0xf] }
 0xedf   :  { %v1806_v4 = vpop.eup %1805 }
 0xee0   :  { %1371 = vrot.lane.b32.xlu1 %v1806_v4, %s1833_s8 }
 0xee1   :  { %v1808_v13 = vpop.eup %1807 }
 0xee2   :  { %v1348_v58 = vadd.f32 1.0, %v1808_v13 }
 0xee4   :  { %v1360_v18 = vand.u32 2147483648, %v1348_v58  ;;  %vm1354_vm9 = vweird.f32 %v1348_v58  ;;  %v1358_v22 = vand.u32 2147483647, %v1348_v58 }
 0xee6   :  { %v1361_v51 = vor.u32 1.1754944e-38, %v1360_v18  ;;  %vm1359_vm3 = vcmp.eq.f32.partialorder %v1358_v22, 8.507059e+37 }
 0xee8   :  { %1366 = vrot.lane.b32.xlu1 %v1344_v52, %s1832_s2 }
 0xf27   :  { %v1335_v8 = vpop.permute.xlu0 %1334 }
 0xf28   :  { %v1337_v56 = vadd.f32 %v1335_v8, %v1327_v6 }
 0xf2a   :  { %1809 = vtanh.f32 %v1337_v56  ;;  %1387 = vst [vmem:[#allocation1] ss:$2 sm:$0xff] %v1337_v56  ;;  %v1403_v56 = vld [vmem:[#allocation5] sm:$0xf] }
 0xf2b   :  { %1811 = vrcp.f32 %v1348_v58 }
 0xf30   :  { %v1810_v57 = vpop.eup %1809 }
 0xf31   :  { %1340 = vrot.lane.b32.xlu0 %v1810_v57, %s1833_s8  ;;  %v1812_v2 = vpop.eup %1811  ;;  %v1388_v33 = vld.sshfl [vmem:[#allocation1] sm:$0xff pattern:$0x75316420] }
 0xf32   :  { %v1350_v11 = vmul.f32 %v1812_v2, %v1348_v58  ;;  %vm1355_vm8 = vweird.f32 %v1812_v2 }
 0xf33   :  { %vm1356_vm2 = vmor %vm1354_vm9, %vm1355_vm8 }
 0xf34   :  { %v1351_v14 = vsub.f32 1.0, %v1350_v11 }
 0xf36   :  { %v1352_v17 = vmul.f32 %v1812_v2, %v1351_v14 }
 0xf38   :  { %v1353_v45 = vadd.f32 %v1812_v2, %v1352_v17 }
 0xf3a   :  { %v1357_v23 = vsel %vm1356_vm2, %v1812_v2, %v1353_v45 }
 0xf3b   :  { %v1362_v27 = vsel %vm1359_vm3, %v1361_v51, %v1357_v23 }
 0xf52   :  { %v1372_v24 = vpop.permute.xlu1 %1371 }
 0xf53   :  { %v1374_v28 = vmul.f32 %v1372_v24, %v1362_v27 }
 0xf55   :  { %1376 = vrot.lane.b32.xlu2 %v1374_v28, %s1832_s2 }
 0xf5a   :  { %v1367_v34 = vpop.permute.xlu1 %1366 }
 0xf5b   :  { %v1369_v35 = vmul.f32 %v1367_v34, %v1362_v27  ;;  %v1440_v34 = vld [vmem:[%s2473_s0] sm:$0xff] }
 0xfa3   :  { %v1341_v29 = vpop.permute.xlu0 %1340 }
 0xfa4   :  { %v1343_v31 = vmul.f32 %v1341_v29, %v1320_v7 }
 0xfa6   :  { %1396 = vst [vmem:[#allocation1] ss:$2 sm:$0xff] %v1343_v31 }
 0xfad   :  { %v1397_v61 = vld.sshfl [vmem:[#allocation1] sm:$0xff pattern:$0x75316420] }
 0xfae   :  { %1398 = vrot.lane.b32.xlu2 %v1397_v61, %s1832_s2  ;;  %v1491_v61 = vrot.slane %v1440_v34, 4 }
 0xfaf   :  { %v1377_v10 = vpop.permute.xlu2 %1376 }
 0xfb0   :  { %v1379_v0 = vadd.f32 %v1377_v10, %v1369_v35 }
 0xfb2   :  { %1813 = vtanh.f32 %v1379_v0  ;;  %1405 = vst [vmem:[#allocation1] ss:$2 sm:$0xff] %v1379_v0 }
 0xfb8   :  { %v1814_v1 = vpop.eup %1813 }
 0xfb9   :  { %1382 = vrot.lane.b32.xlu1 %v1814_v1, %s1833_s8  ;;  %v1406_v7 = vld.sshfl [vmem:[#allocation1] sm:$0xff pattern:$0x75316420] }
 0xfc1   :  { %1389 = vrot.lane.b32.xlu1 %v1388_v33, %s1835_s1 }
0x1008   :  { %v1399_v39 = vpop.permute.xlu2 %1398 }
0x1009   :  { %v1401_v26 = vsel %vm409_vm11, %v1399_v39, %v1394_v5 }
0x100a   :  { %1402 = vst.msk [vmem:[#allocation2] sm:$0xf] %vm17_vm0, %v1401_v26 }
0x1011   :  { %v1441_v40 = vld [vmem:[#allocation2] sm:$0xf] }
0x1012   :  { %1690 = vmatmul.msk.f32.vlgmr.msrb.gmra.mxu2 %vm35_vm1, %v1441_v40  ;;  %v1586_v63 = vld [vmem:[#allocation2] sm:$0xf] }
0x102b   :  { %v1383_v41 = vpop.permute.xlu1 %1382 }
0x102c   :  { %v1385_v42 = vmul.f32 %v1383_v41, %v1362_v27 }
0x102e   :  { %1414 = vst [vmem:[#allocation1] ss:$2 sm:$0xff] %v1385_v42 }
0x1033   :  { %v1390_v43 = vpop.permute.xlu1 %1389 }
0x1034   :  { %v1392_v48 = vsel %vm409_vm11, %v1390_v43, %v2265_v32 }
0x1035   :  { %1393 = vst.msk [vmem:[#allocation3] sm:$0xf] %vm17_vm0, %v1392_v48  ;;  %v1415_v49 = vld.sshfl [vmem:[#allocation1] sm:$0xff pattern:$0x75316420] }
0x1036   :  { %1416 = vrot.lane.b32.xlu0 %v1415_v49, %s1832_s2  ;;  %1421 = vst [vmem:[#allocation1] ss:$2 sm:$0xff] %v1343_v31 }
0x103c   :  { %v2298_v32 = vld [vmem:[#allocation3] sm:$0xf] }
0x103d   :  { %v2291_v50 = vld.sshfl [vmem:[#allocation1] sm:$0xff pattern:$0x75316420] }
0x103e   :  { %1427 = vst [vmem:[#allocation1] ss:$2 sm:$0xff] %v1385_v42  ;;  %1407 = vrot.lane.b32.xlu0 %v1406_v7, %s1835_s1 }
0x1045   :  { %v1428_v41 = vld.sshfl [vmem:[#allocation1] sm:$0xff pattern:$0x75316420] }
0x1095   :  { %v1462_v4 = vpop.f32.mrf.mxu2 }
0x1096   :  { %v1465_v52 = vadd.f32 %v1689_v3, %v1462_v4 }
0x1098   :  { %1815 = vtanh.f32 %v1465_v52  ;;  %v1692_v2 = vmul.f32 -1.442695, %v1465_v52 }
0x109a   :  { %1817 = vpow2.f32 %v1692_v2 }
0x109e   :  { %v1816_v53 = vpop.eup %1815 }
0x109f   :  { %1521 = vrot.lane.b32.xlu2 %v1816_v53, %s1833_s8 }
0x10a0   :  { %v1818_v11 = vpop.eup %1817 }
0x10a1   :  { %v1498_v14 = vadd.f32 1.0, %v1818_v11 }
0x10a3   :  { %1819 = vrcp.f32 %v1498_v14  ;;  %v1510_v51 = vand.u32 2147483648, %v1498_v14  ;;  %vm1504_vm7 = vweird.f32 %v1498_v14  ;;  %v1508_v24 = vand.u32 2147483647, %v1498_v14 }
0x10a5   :  { %v1511_v28 = vor.u32 1.1754944e-38, %v1510_v51  ;;  %vm1509_vm9 = vcmp.eq.f32.partialorder %v1508_v24, 8.507059e+37 }
0x10a7   :  { %1516 = vrot.lane.b32.xlu2 %v2298_v32, %s1832_s2 }
0x10a8   :  { %v1417_v6 = vpop.permute.xlu0 %1416 }
0x10a9   :  { %v1419_v8 = vsel %vm386_vm10, %v1417_v6, %v1412_v55  ;;  %v1820_v17 = vpop.eup %1819 }
0x10aa   :  { %1420 = vst.msk [vmem:[#allocation4] sm:$0xf] %vm17_vm0, %v1419_v8  ;;  %v1500_v45 = vmul.f32 %v1820_v17, %v1498_v14  ;;  %vm1505_vm6 = vweird.f32 %v1820_v17 }
0x10ab   :  { %vm1506_vm8 = vmor %vm1504_vm7, %vm1505_vm6  ;;  %vm237_vm7 = vcmask 519424  }
0x10ac   :  { %v1501_v18 = vsub.f32 1.0, %v1500_v45 }
0x10ae   :  { %v1502_v22 = vmul.f32 %v1820_v17, %v1501_v18 }
0x10b0   :  { %v1408_v13 = vpop.permute.xlu0 %1407  ;;  %v1503_v23 = vadd.f32 %v1820_v17, %v1502_v22 }
0x10b1   :  { %v1410_v57 = vsel %vm386_vm10, %v1408_v13, %v1403_v56  ;;  %v1466_v58 = vld [vmem:[#allocation4] sm:$0xf] }
0x10b2   :  { %1411 = vst.msk [vmem:[#allocation5] sm:$0xf] %vm17_vm0, %v1410_v57  ;;  %1691 = vmatmul.msk.f32.vlgmr.msrb.gmra.mxu3 %vm35_vm1, %v1466_v58  ;;  %v1507_v27 = vsel %vm1506_vm8, %v1820_v17, %v1503_v23 }
0x10b3   :  { %v1512_v31 = vsel %vm1509_vm9, %v1511_v28, %v1507_v27 }
0x10b9   :  { %v1536_v1 = vld [vmem:[#allocation5] sm:$0xf] }
0x10f9   :  { %v1522_v29 = vpop.permute.xlu2 %1521 }
0x10fa   :  { %v1524_v33 = vmul.f32 %v1522_v29, %v1512_v31 }
0x10fc   :  { %1526 = vrot.lane.b32.xlu0 %v1524_v33, %s1832_s2 }
0x1101   :  { %v1517_v5 = vpop.permute.xlu2 %1516 }
0x1102   :  { %v1519_v39 = vmul.f32 %v1517_v5, %v1512_v31 }
0x1135   :  { %v1487_v35 = vpop.f32.mrf.mxu3 }
0x1136   :  { %v1493_v10 = vadd.f32 %v1491_v61, %v1487_v35  ;;  %v1595_v61 = vld [vmem:[#allocation5] sm:$0xf] }
0x1138   :  { %1821 = vtanh.f32 %v1493_v10  ;;  %v1693_v7 = vmul.f32 -1.442695, %v1493_v10 }
0x113e   :  { %v1822_v0 = vpop.eup %1821 }
0x113f   :  { %1563 = vrot.lane.b32.xlu1 %v1822_v0, %s1833_s8 }
0x1147   :  { %1558 = vrot.lane.b32.xlu1 %v1536_v1, %s1832_s2 }
0x116e   :  { %v1527_v26 = vpop.permute.xlu0 %1526 }
0x116f   :  { %v1529_v40 = vadd.f32 %v1527_v26, %v1519_v39 }
0x1171   :  { %1823 = vtanh.f32 %v1529_v40  ;;  %1579 = vst [vmem:[#allocation1] ss:$2 sm:$0xff] %v1529_v40 }
0x1172   :  { %1825 = vpow2.f32 %v1693_v7 }
0x1177   :  { %v1824_v42 = vpop.eup %1823 }
0x1178   :  { %1532 = vrot.lane.b32.xlu0 %v1824_v42, %s1833_s8  ;;  %v1826_v43 = vpop.eup %1825  ;;  %v1580_v58 = vld.sshfl [vmem:[#allocation1] sm:$0xff pattern:$0x75316420] }
0x1179   :  { %v1540_v48 = vadd.f32 1.0, %v1826_v43 }
0x117b   :  { %1827 = vrcp.f32 %v1540_v48  ;;  %vm1546_vm2 = vweird.f32 %v1540_v48  ;;  %v1550_v55 = vand.u32 2147483647, %v1540_v48 }
0x117d   :  { %vm1551_vm6 = vcmp.eq.f32.partialorder %v1550_v55, 8.507059e+37 }
0x1180   :  { %227 = vrot.lane.b32.xlu0 %v2028_v30, %s1832_s2  ;;  %v1552_v30 = vand.u32 2147483648, %v1540_v48 }
0x1181   :  { %v1828_v49 = vpop.eup %1827 }
0x1182   :  { %v1542_v3 = vmul.f32 %v1828_v49, %v1540_v48  ;;  %vm1547_vm1 = vweird.f32 %v1828_v49 }
0x1183   :  { %vm1548_vm3 = vmor %vm1546_vm2, %vm1547_vm1 }
0x1184   :  { %v1543_v4 = vsub.f32 1.0, %v1542_v3 }
0x1186   :  { %v1544_v52 = vmul.f32 %v1828_v49, %v1543_v4 }
0x1188   :  { %851 = vrot.lane.b32.xlu0 %v2200_v16, %s1832_s2  ;;  %v1545_v53 = vadd.f32 %v1828_v49, %v1544_v52  ;;  %v1553_v16 = vor.u32 1.1754944e-38, %v1552_v30 }
0x118a   :  { %v1549_v6 = vsel %vm1548_vm3, %v1828_v49, %v1545_v53 }
0x118b   :  { %v1554_v56 = vsel %vm1551_vm6, %v1553_v16, %v1549_v6 }
0x1190   :  { %1429 = vrot.lane.b32.xlu0 %v1428_v41, %s1832_s2 }
0x1198   :  { %429 = vrot.lane.b32.xlu0 %v2038_v46, %s1832_s2 }
0x11b1   :  { %v1564_v8 = vpop.permute.xlu1 %1563 }
0x11b2   :  { %v1566_v13 = vmul.f32 %v1564_v8, %v1554_v56 }
0x11b4   :  { %1568 = vrot.lane.b32.xlu2 %v1566_v13, %s1832_s2 }
0x11bc   :  { %221 = vrot.lane.b32.xlu2 %v1979_v19, %s1832_s2 }
0x11c4   :  { %643 = vrot.lane.b32.xlu2 %v2155_v37, %s1832_s2 }
0x11cc   :  { %1237 = vrot.lane.b32.xlu2 %v2275_v44, %s1832_s2  ;;  %v1559_v44 = vpop.permute.xlu1 %1558 }
0x11ea   :  { %v1533_v46 = vpop.permute.xlu0 %1532 }
0x11eb   :  { %v1535_v57 = vmul.f32 %v1533_v46, %v1512_v31 }
0x11ed   :  { %1588 = vst [vmem:[#allocation1] ss:$2 sm:$0xff] %v1535_v57 }
0x11f2   :  { %v228_v2 = vpop.permute.xlu0 %227 }
0x11f3   :  { %v230_v11 = vsel %vm201_vm12, %v228_v2, 0.0 }
0x11f4   :  { %233 = vrot.lane.b32.xlu2 %v230_v11, %s1832_s2  ;;  %v1589_v23 = vld.sshfl [vmem:[#allocation1] sm:$0xff pattern:$0x75316420] }
0x11fa   :  { %v852_v14 = vpop.permute.xlu0 %851 }
0x11fb   :  { %v854_v37 = vsel %vm825_vm5, %v852_v14, 0.0 }
0x11fc   :  { %637 = vrot.lane.b32.xlu2 %v2116_v12, %s1832_s2  ;;  %v1561_v12 = vmul.f32 %v1559_v44, %v1554_v56 }
0x1202   :  { %v2335_v19 = vpop.permute.xlu0 %1429 }
0x1203   :  { %v1432_v4 = vsel %vm386_vm10, %v2335_v19, 0.0 }
0x1204   :  { %858 = vrot.lane.b32.xlu2 %v854_v37, %s1832_s2 }
0x120a   :  { %v430_v17 = vpop.permute.xlu0 %429 }
0x120b   :  { %v432_v45 = vsel %vm386_vm10, %v430_v17, 0.0 }
0x120c   :  { %1647 = vst.msk [vmem:[%s2475_s4 + $0x4] sm:$0xf] %vm17_vm0, %v432_v45  ;;  %1423 = vrot.lane.b32.xlu2 %v2291_v50, %s1832_s2 }
0x120e   :  { %v1569_v18 = vpop.permute.xlu2 %1568 }
0x120f   :  { %v1571_v22 = vadd.f32 %v1569_v18, %v1561_v12 }
0x1211   :  { %1829 = vtanh.f32 %v1571_v22  ;;  %1597 = vst [vmem:[#allocation1] ss:$2 sm:$0xff] %v1571_v22 }
0x1216   :  { %v222_v51 = vpop.permute.xlu2 %221 }
0x1217   :  { %v1830_v24 = vpop.eup %1829  ;;  %v224_v27 = vsel %vm178_vm13, %v222_v51, 0.0 }
0x1218   :  { %231 = vst.msk [vmem:[%s2475_s4] sm:$0xf] %vm17_vm0, %v224_v27  ;;  %1574 = vrot.lane.b32.xlu1 %v1830_v24, %s1833_s8  ;;  %v1598_v28 = vld.sshfl [vmem:[#allocation1] sm:$0xff pattern:$0x75316420] }
0x1219   :  { %1599 = vrot.lane.b32.xlu2 %v1598_v28, %s1835_s1 }
0x121e   :  { %v644_v50 = vpop.permute.xlu2 %643 }
0x121f   :  { %v646_v29 = vsel %vm617_vm15, %v644_v50, 0.0 }
0x1220   :  { %435 = vrot.lane.b32.xlu1 %v2092_v60, %s1832_s2  ;;  %650 = vrot.lane.b32.xlu0 %v646_v29, %s1832_s2 }
0x1226   :  { %v1238_v31 = vpop.permute.xlu2 %1237 }
0x1227   :  { %v1240_v48 = vsel %vm594_vm14, %v1238_v31, 0.0 }
0x1228   :  { %1045 = vrot.lane.b32.xlu1 %v2235_v59, %s1832_s2  ;;  %1039 = vrot.lane.b32.xlu0 %v2214_v38, %s1832_s2 }
0x1230   :  { %1581 = vrot.lane.b32.xlu0 %v1580_v58, %s1835_s1 }
0x124e   :  { %v234_v33 = vpop.permute.xlu2 %233 }
0x124f   :  { %1640 = vst.msk [vmem:[%s2475_s4 + $0x1c] sm:$0xf] %vm237_vm7, %v234_v33 }
0x1256   :  { %v638_v34 = vpop.permute.xlu2 %637 }
0x1257   :  { %v640_v60 = vsel %vm594_vm14, %v638_v34, 0.0 }
0x1258   :  { %1655 = vst.msk [vmem:[%s2475_s4 + $0x8] sm:$0xf] %vm17_vm0, %v640_v60 }
0x125e   :  { %v859_v38 = vpop.permute.xlu2 %858 }
0x125f   :  { %1664 = vst.msk [vmem:[%s2475_s4 + $0x10] sm:$0xf] %vm237_vm7, %v859_v38 }
0x1266   :  { %v1424_v59 = vpop.permute.xlu2 %1423 }
0x1267   :  { %v1426_v52 = vsel %vm409_vm11, %v1424_v59, 0.0 }
0x1273   :  { %v1600_v35 = vpop.permute.xlu2 %1599 }
0x1274   :  { %v1602_v10 = vsel %vm178_vm13, %v1600_v35, %v1595_v61 }
0x1275   :  { %1603 = vst.msk [vmem:[#allocation5] sm:$0xf] %vm17_vm0, %v1602_v10 }
0x128a   :  { %v1575_v0 = vpop.permute.xlu1 %1574 }
0x128b   :  { %v1577_v1 = vmul.f32 %v1575_v0, %v1554_v56 }
0x128d   :  { %1606 = vst [vmem:[#allocation1] ss:$2 sm:$0xff] %v1577_v1 }
0x1292   :  { %v436_v5 = vpop.permute.xlu1 %435  ;;  %v651_v39 = vpop.permute.xlu0 %650 }
0x1293   :  { %v438_v26 = vsel %vm409_vm11, %v436_v5, 0.0  ;;  %1656 = vst.msk [vmem:[%s2475_s4 + $0x14] sm:$0xf] %vm237_vm7, %v651_v39 }
0x1294   :  { %442 = vrot.lane.b32.xlu1 %v438_v26, %s1832_s2  ;;  %v1607_v40 = vld.sshfl [vmem:[#allocation1] sm:$0xff pattern:$0x75316420] }
0x1295   :  { %1608 = vrot.lane.b32.xlu0 %v1607_v40, %s1832_s2  ;;  %1613 = vst [vmem:[#allocation1] ss:$2 sm:$0xff] %v1535_v57 }
0x129a   :  { %v1046_v41 = vpop.permute.xlu1 %1045  ;;  %v1040_v42 = vpop.permute.xlu0 %1039 }
0x129b   :  { %v1048_v7 = vsel %vm802_vm4, %v1046_v41, 0.0  ;;  %v1042_v43 = vsel %vm825_vm5, %v1040_v42, 0.0 }
0x129c   :  { %1671 = vst.msk [vmem:[%s2475_s4 + $0x10] sm:$0xf] %vm17_vm0, %v1042_v43  ;;  %1051 = vrot.lane.b32.xlu2 %v1048_v7, %s1832_s2  ;;  %v1614_v49 = vld.sshfl [vmem:[#allocation1] sm:$0xff pattern:$0x75316420] }
0x129d   :  { %1243 = vrot.lane.b32.xlu0 %v1240_v48, %s1832_s2  ;;  %1619 = vst [vmem:[#allocation1] ss:$2 sm:$0xff] %v1577_v1 }
0x12a2   :  { %v1582_v3 = vpop.permute.xlu0 %1581 }
0x12a3   :  { %v1584_v9 = vsel %vm201_vm12, %v1582_v3, %v2298_v32 }
0x12a4   :  { %1585 = vst.msk [vmem:[#allocation3] sm:$0xf] %vm17_vm0, %v1584_v9  ;;  %v1620_v25 = vld.sshfl [vmem:[#allocation1] sm:$0xff pattern:$0x75316420] }
0x12a5   :  { %1621 = vrot.lane.b32.xlu1 %v1620_v25, %s1832_s2 }
0x12ad   :  { %845 = vrot.lane.b32.xlu1 %v2165_v62, %s1832_s2  ;;  %v1604_v62 = vld [vmem:[#allocation4] sm:$0xf] }
0x12b5   :  { %1231 = vrot.lane.b32.xlu1 %v2251_v15, %s1832_s2 }
0x12bd   :  { %1590 = vrot.lane.b32.xlu1 %v1589_v23, %s1832_s2 }
0x12c5   :  { %1615 = vrot.lane.b32.xlu1 %v1614_v49, %s1832_s2 }
0x12cd   :  { %1435 = vrot.lane.b32.xlu1 %v1432_v4, %s1832_s2 }
0x12f6   :  { %v1052_v16 = vpop.permute.xlu2 %1051 }
0x1306   :  { %v443_v32 = vpop.permute.xlu1 %442 }
0x1307   :  { %1648 = vst.msk [vmem:[%s2475_s4 + $0x18] sm:$0xf] %vm237_vm7, %v443_v32  ;;  %v1609_v15 = vpop.permute.xlu0 %1608 }
0x1308   :  { %1687 = vst.msk [vmem:[%s2475_s4 + $0x18] sm:$0xf] %vm17_vm0, %v1426_v52  ;;  %v1611_v47 = vsel %vm178_vm13, %v1609_v15, %v1604_v62 }
0x1309   :  { %1612 = vst.msk [vmem:[#allocation4] sm:$0xf] %vm17_vm0, %v1611_v47 }
0x130f   :  { %v1244_v53 = vpop.permute.xlu0 %1243 }
0x1310   :  { %1680 = vst.msk [vmem:[%s2475_s4 + $0x8] sm:$0xf] %vm237_vm7, %v1244_v53 }
0x1317   :  { %v1622_v54 = vpop.permute.xlu1 %1621 }
0x1318   :  { %v1624_v30 = vsel %vm178_vm13, %v1622_v54, 0.0 }
0x1319   :  { %1627 = vrot.lane.b32.xlu2 %v1624_v30, %s1832_s2 }
0x131f   :  { %v846_v55 = vpop.permute.xlu1 %845 }
0x1320   :  { %v848_v6 = vsel %vm802_vm4, %v846_v55, 0.0 }
0x1321   :  { %1663 = vst.msk [vmem:[%s2475_s4 + $0xc] sm:$0xf] %vm17_vm0, %v848_v6 }
0x1322   :  { %1672 = vst.msk [vmem:[%s2475_s4 + $0xc] sm:$0xf] %vm237_vm7, %v1052_v16 }
0x1327   :  { %v1232_v8 = vpop.permute.xlu1 %1231 }
0x1328   :  { %v1234_v20 = vsel %vm617_vm15, %v1232_v8, 0.0 }
0x1329   :  { %1679 = vst.msk [vmem:[%s2475_s4 + $0x14] sm:$0xf] %vm17_vm0, %v1234_v20 }
0x132f   :  { %v1591_v56 = vpop.permute.xlu1 %1590 }
0x1330   :  { %v1593_v13 = vsel %vm201_vm12, %v1591_v56, %v1586_v63 }
0x1331   :  { %1594 = vst.msk [vmem:[#allocation2] sm:$0xf] %vm17_vm0, %v1593_v13 }
0x1337   :  { %v1616_v46 = vpop.permute.xlu1 %1615 }
0x1338   :  { %v1618_v57 = vsel %vm201_vm12, %v1616_v46, 0.0 }
0x1339   :  { %1694 = vst.msk [vmem:[%s2475_s4 + $0x1c] sm:$0xf] %vm17_vm0, %v1618_v57 }
0x133f   :  { %v1436_v36 = vpop.permute.xlu1 %1435 }
0x1340   :  { %1688 = vst.msk [vmem:[%s2475_s4 + $0x4] sm:$0xf] %vm237_vm7, %v1436_v36 }
0x1373   :  { %v1628_v58 = vpop.permute.xlu2 %1627 }
0x1374   :  { %1630 = vst.msk [vmem:[%s2475_s4] sm:$0xf] %vm237_vm7, %v1628_v58 }

</bundles_post_ra>
